<compile_context>
chip_gen: v5e
topology: v5e:2x2
jax: 0.10.0
libtpu: 0.0.40
codegen_flags: <defaults>
</compile_context>

<pallas_src>
import functools
import math

import numpy as np

import jax
import jax.numpy as jnp
from jax.experimental import pallas as pl
from jax.experimental.pallas import tpu as pltpu

# ----------------------------- model config --------------------------------
N_BATCH = 2
NZ = 16          # latent dim  (opt.nz)
NGF = 8          # generator feature width (opt.ngf)
EPS = 1e-5       # nn.BatchNorm2d default
LANE = 128

LAYER_CFG = [
    # (Cin,      Cout,     k, s, p, has_bn, act)
    (NZ,       NGF * 8,  4, 1, 0, True,  "relu"),
    (NGF * 8,  NGF * 4,  4, 2, 1, True,  "relu"),
    (NGF * 4,  NGF * 2,  4, 2, 1, True,  "relu"),
    (NGF * 2,  NGF,      4, 2, 1, True,  "relu"),
    (NGF,      3,        5, 3, 1, False, "tanh"),
]


def round_up(x, m):
    return ((x + m - 1) // m) * m


# ------------------- transposed-conv phase decomposition -------------------
def _phase_info(k, s, p):
    """1-D sub-pixel decomposition of a transposed conv (stride s, pad p).

    Output position o = s*q + r (phase r) only sees kernel taps
    j = j0_r + s*t (t < n_r), applied to input pixels q + base_r + t.
    """
    kk = k - 1 - p
    phases = []
    for r in range(s):
        taps = [j for j in range(k) if (j - (kk - r)) % s == 0]
        j0, n = taps[0], len(taps)
        base = (r + j0 - kk) // s
        phases.append((j0, n, base))
    min_off = min(b for _, _, b in phases)
    max_off = max(b + n - 1 for _, n, b in phases)
    return phases, min_off, max_off


def _make_plan(n_batch):
    """Static per-layer geometry / tiling plan (pure Python, computed once)."""
    plan = []
    h_in = 1
    for (cin, cout, k, s, p, has_bn, act) in LAYER_CFG:
        ph, mn, mx = _phase_info(k, s, p)
        assert mn <= 0
        weff = mx - mn + 1
        h_out = (h_in - 1) * s + k - 2 * p
        assert h_out % s == 0
        q = h_out // s                                 # per-phase output size
        pad = (-mn, max(0, q - 1 + mx - (h_in - 1)))
        m = n_batch * q * q
        ncols = s * s * cout
        cp = round_up(ncols, LANE)                     # lane-dense output cols
        k_gemm = weff * weff * cin
        kp = round_up(k_gemm, LANE)                    # K padded to 128
        if has_bn:
            mp = round_up(m, 8)
            tm = mp                                    # whole layer = 1 block
            tr = math.gcd(mp, 64)                      # in-kernel row strip
        else:
            tm = min(round_up(m, 8), 1024)             # 2 blocks on v7x
            mp = round_up(m, tm)
            tr = math.gcd(tm, 256)
        plan.append(dict(cin=cin, cout=cout, k=k, s=s, p=p, has_bn=has_bn,
                         act=act, ph=ph, min_off=mn, weff=weff,
                         h_in=h_in, h_out=h_out, q=q, pad=pad,
                         m=m, mp=mp, kp=kp, cp=cp, ncols=ncols,
                         k_gemm=k_gemm, tm=tm, tr=tr))
        h_in = h_out
    return plan


PLAN = _make_plan(N_BATCH)


# ------------------- one-time host-side parameter packing ------------------
def _phase_gemm_weight(w_t, s, ph, min_off, weff):
    """Pack the ConvTranspose2d weight (Cin, Cout, K, K) into a direct-conv
    GEMM weight (weff*weff*Cin, s*s*Cout); columns ordered (phase_y, phase_x,
    cout).  Host-side numpy: runs once, never inside the jitted forward."""
    cin, cout, _, _ = w_t.shape
    wf = np.flip(np.asarray(w_t, np.float32), axis=(2, 3))
    wc = np.zeros((weff, weff, cin, s * s, cout), np.float32)
    for ry, (j0y, ny, by) in enumerate(ph):
        for rx, (j0x, nx, bx) in enumerate(ph):
            for ty in range(ny):
                for tx in range(nx):
                    wy = by + ty - min_off
                    wx = bx + tx - min_off
                    wc[wy, wx, :, ry * s + rx, :] = wf[:, :, j0y + s * ty,
                                                       j0x + s * tx]
    return wc.reshape(weff * weff * cin, s * s * cout)


def prepare_params(params):
    """Pack weights / BN params into the exact (padded, bf16) kernel operands."""
    packed = []
    for (w, gamma, beta), lp in zip(params, PLAN):
        s, cout = lp["s"], lp["cout"]
        kp, cp, ncols = lp["kp"], lp["cp"], lp["ncols"]
        wg = _phase_gemm_weight(w, s, lp["ph"], lp["min_off"], lp["weff"])
        b = np.zeros((kp, cp), np.float32)
        b[:lp["k_gemm"], :ncols] = wg
        entry = {"b": jnp.asarray(b, jnp.bfloat16)}
        if lp["has_bn"]:
            # fold[j', j] = 1 iff columns j', j belong to the same channel
            ch = np.arange(cp) % cout
            valid = np.arange(cp) < ncols
            fold = ((ch[:, None] == ch[None, :])
                    & valid[:, None] & valid[None, :]).astype(np.float32)
            g = np.zeros((1, cp), np.float32)
            bt = np.zeros((1, cp), np.float32)
            g[0, :ncols] = np.tile(np.asarray(gamma, np.float32), s * s)
            bt[0, :ncols] = np.tile(np.asarray(beta, np.float32), s * s)
            entry.update(fold=jnp.asarray(fold),
                         gamma=jnp.asarray(g), beta=jnp.asarray(bt))
        packed.append(entry)
    return packed


# ----------------------------- Pallas kernels ------------------------------
def _gemm_bn_act_kernel(a_ref, b_ref, fold_ref, gamma_ref, beta_ref,
                        o_ref, acc_ref, *, act, inv_count, pad_corr, tr):
    """Fused: y = A@B (f32 acc in VMEM scratch); training-mode BatchNorm over
    the s*s phase-column groups; affine + activation; single output store."""
    mp, cp = acc_ref.shape
    n_strips = mp // tr

    # pass 1: strip-wise bf16 GEMM -> f32 scratch + folded per-channel sums
    s1 = jnp.zeros((1, cp), jnp.float32)
    for i in range(n_strips):
        ys = jnp.dot(a_ref[i * tr:(i + 1) * tr, :], b_ref[...],
                     preferred_element_type=jnp.float32)
        acc_ref[i * tr:(i + 1) * tr, :] = ys
        s1 = s1 + jnp.sum(
            jnp.dot(ys, fold_ref[...], preferred_element_type=jnp.float32),
            axis=0, keepdims=True)
    mean = s1 * inv_count                 # per-channel mean, column-broadcast

    # pass 2: centered sum of squares (avoids E[x^2]-E[x]^2 cancellation)
    s2 = jnp.zeros((1, cp), jnp.float32)
    for i in range(n_strips):
        yc = acc_ref[i * tr:(i + 1) * tr, :] - mean
        s2 = s2 + jnp.sum(
            jnp.dot(yc * yc, fold_ref[...], preferred_element_type=jnp.float32),
            axis=0, keepdims=True)
    # zero-padded rows each contributed mean^2 to the centered sum: remove
    var = jnp.maximum((s2 - pad_corr * mean * mean) * inv_count, 0.0)
    scale = gamma_ref[...] * jax.lax.rsqrt(var + EPS)
    shift = beta_ref[...] - mean * scale

    # pass 3: affine + activation, single store of the layer output
    for i in range(n_strips):
        yo = acc_ref[i * tr:(i + 1) * tr, :] * scale + shift
        if act == "relu":
            yo = jnp.maximum(yo, 0.0)
        elif act == "tanh":
            yo = jnp.tanh(yo)
        o_ref[i * tr:(i + 1) * tr, :] = yo.astype(o_ref.dtype)


def gemm_bn_act(a, b, fold, gamma, beta, *, act, inv_count, pad_corr, tr,
                out_dtype):
    mp, kp = a.shape
    cp = b.shape[1]
    kernel = functools.partial(_gemm_bn_act_kernel, act=act,
                               inv_count=inv_count, pad_corr=pad_corr, tr=tr)
    return pl.pallas_call(
        kernel,
        out_shape=jax.ShapeDtypeStruct((mp, cp), out_dtype),
        grid=(1,),
        in_specs=[pl.BlockSpec((mp, kp), lambda i: (0, 0)),
                  pl.BlockSpec((kp, cp), lambda i: (0, 0)),
                  pl.BlockSpec((cp, cp), lambda i: (0, 0)),
                  pl.BlockSpec((1, cp), lambda i: (0, 0)),
                  pl.BlockSpec((1, cp), lambda i: (0, 0))],
        out_specs=pl.BlockSpec((mp, cp), lambda i: (0, 0)),
        scratch_shapes=[pltpu.VMEM((mp, cp), jnp.float32)],
        compiler_params=pltpu.CompilerParams(
            dimension_semantics=("arbitrary",)),
    )(a, b, fold, gamma, beta)


def _gemm_act_kernel(a_ref, b_ref, o_ref, *, act, tr):
    """y = act(A@B), computed and stored in row strips (no-BN final layer)."""
    tm = a_ref.shape[0]
    for i in range(tm // tr):
        y = jnp.dot(a_ref[i * tr:(i + 1) * tr, :], b_ref[...],
                    preferred_element_type=jnp.float32)
        if act == "tanh":
            y = jnp.tanh(y)
        elif act == "relu":
            y = jnp.maximum(y, 0.0)
        o_ref[i * tr:(i + 1) * tr, :] = y.astype(o_ref.dtype)


def gemm_act(a, b, *, act, tm, tr, out_dtype):
    mp, kp = a.shape
    cp = b.shape[1]
    kernel = functools.partial(_gemm_act_kernel, act=act, tr=tr)
    return pl.pallas_call(
        kernel,
        out_shape=jax.ShapeDtypeStruct((mp, cp), out_dtype),
        grid=(mp // tm,),
        in_specs=[pl.BlockSpec((tm, kp), lambda i: (i, 0)),
                  pl.BlockSpec((kp, cp), lambda i: (0, 0))],
        out_specs=pl.BlockSpec((tm, cp), lambda i: (i, 0)),
        compiler_params=pltpu.CompilerParams(
            dimension_semantics=("parallel",)),
    )(a, b)


# ----------------------------- layer glue (XLA) ----------------------------
def _im2col(x, kh, kw):
    """x: (N, H, W, C) -> (N*OH*OW, KH*KW*C); patch element order (i, j, c)."""
    n, h, w, c = x.shape
    oh, ow = h - kh + 1, w - kw + 1
    cols = []
    for i in range(kh):
        for j in range(kw):
            cols.append(x[:, i:i + oh, j:j + ow, :])
    patches = jnp.stack(cols, axis=3)                  # (N, OH, OW, KH*KW, C)
    return patches.reshape(n * oh * ow, kh * kw * c)


def _run_layer(x_nhwc, lp, pk, out_dtype):
    n = x_nhwc.shape[0]
    s, cout, q = lp["s"], lp["cout"], lp["q"]
    xp = jnp.pad(x_nhwc, ((0, 0), lp["pad"], lp["pad"], (0, 0)))
    patches = _im2col(xp, lp["weff"], lp["weff"])      # (m, k_gemm) bf16-ish
    m, kg = patches.shape
    assert (m, kg) == (lp["m"], lp["k_gemm"])
    a = jnp.pad(patches.astype(jnp.bfloat16),
                ((0, lp["mp"] - m), (0, lp["kp"] - kg)))
    if lp["has_bn"]:
        y = gemm_bn_act(a, pk["b"], pk["fold"], pk["gamma"], pk["beta"],
                        act=lp["act"],
                        inv_count=1.0 / float(m * s * s),
                        pad_corr=float((lp["mp"] - m) * s * s),
                        tr=lp["tr"], out_dtype=out_dtype)
    else:
        y = gemm_act(a, pk["b"], act=lp["act"], tm=lp["tm"], tr=lp["tr"],
                     out_dtype=out_dtype)
    # un-pack phases: columns (ry, rx, cout) interleave back into (H, W)
    y = y[:m, :lp["ncols"]].reshape(n, q, q, s, s, cout)
    y = y.transpose(0, 1, 3, 2, 4, 5).reshape(n, q * s, q * s, cout)
    return y


@jax.jit
def netg_forward(x_nchw, packed):
    x = jnp.transpose(x_nchw, (0, 2, 3, 1))            # NCHW -> NHWC
    for li, (lp, pk) in enumerate(zip(PLAN, packed)):
        out_dtype = jnp.float32 if li == len(PLAN) - 1 else jnp.bfloat16
        x = _run_layer(x, lp, pk, out_dtype)
    return jnp.transpose(x, (0, 3, 1, 2))              # NHWC -> NCHW


# ----------------------------- params / reference --------------------------
def init_params(key):
    params = []
    for (cin, cout, k, _, _, has_bn, _) in LAYER_CFG:
        key, wk = jax.random.split(key)
        w = 0.02 * jax.random.normal(wk, (cin, cout, k, k), jnp.float32)
        if has_bn:
            gamma = jnp.ones((cout,), jnp.float32)
            beta = jnp.zeros((cout,), jnp.float32)
        else:
            gamma, beta = None, None
        params.append((w, gamma, beta))
    return params


def _reference_forward(x_nchw, params):
    """f32 XLA reference (dilated-conv path, no phase decomposition)."""
    x = jnp.transpose(x_nchw, (0, 2, 3, 1)).astype(jnp.float32)
    for (w, gamma, beta), (_, _, k, s, p, has_bn, act) in zip(params, LAYER_CFG):
        kern = jnp.flip(w, axis=(2, 3)).transpose(2, 3, 0, 1)   # (KH,KW,Cin,Cout)
        x = jax.lax.conv_general_dilated(
            x, kern, window_strides=(1, 1),
            padding=[(k - 1 - p, k - 1 - p)] * 2,
            lhs_dilation=(s, s),
            dimension_numbers=("NHWC", "HWIO", "NHWC"))
        if has_bn:
            mean = jnp.mean(x, axis=(0, 1, 2))
            var = jnp.var(x, axis=(0, 1, 2))
            x = (x - mean) * jax.lax.rsqrt(var + EPS) * gamma + beta
        x = jnp.maximum(x, 0.0) if act == "relu" else jnp.tanh(x)
    return jnp.transpose(x, (0, 3, 1, 2))


if __name__ == "__main__":
    key = jax.random.PRNGKey(0)
    key, xk = jax.random.split(key)
    x = jax.random.normal(xk, (N_BATCH, NZ, 1, 1), jnp.float32)  # latent input
    params = init_params(key)
    packed = prepare_params(params)          # one-time weight packing (host)

    out = jax.block_until_ready(netg_forward(x, packed))

    assert out.shape == (N_BATCH, 3, 96, 96), out.shape
    assert bool(jnp.all(jnp.isfinite(out)))
    assert bool(jnp.all(jnp.abs(out) <= 1.0 + 1e-6))   # tanh range

    # correctness check vs pure-JAX f32 reference (loose: GEMMs run in bf16,
    # intermediate activations stored in bf16)
    ref = jax.block_until_ready(jax.jit(_reference_forward)(x, params))
    max_err = float(jnp.max(jnp.abs(out - ref)))
    mean_err = float(jnp.mean(jnp.abs(out - ref)))
    assert max_err < 0.2 and mean_err < 0.02, (max_err, mean_err)

    print("KERNEL_OK")
</pallas_src>

<mosaic_0001>
module attributes {stable_mosaic.version = 11 : i64} {
  func.func @_gemm_bn_act_kernel(%arg0: i32, %arg1: memref<32x256xbf16, #tpu.memory_space<vmem>>, %arg2: memref<256x128xbf16, #tpu.memory_space<vmem>>, %arg3: memref<128x128xf32, #tpu.memory_space<vmem>>, %arg4: memref<1x128xf32, #tpu.memory_space<vmem>>, %arg5: memref<1x128xf32, #tpu.memory_space<vmem>>, %arg6: memref<32x128xbf16, #tpu.memory_space<vmem>>, %arg7: memref<32x128xf32, #tpu.memory_space<vmem>>) attributes {dimension_semantics = [#tpu.dimension_semantics<arbitrary>], iteration_bounds = array<i64: 1>, scalar_prefetch = 0 : i64, scratch_operands = 1 : i64, tpu.core_type = #tpu.core_type<tc>, window_params = [{pipeline_mode = #tpu.pipeline_mode<synchronous>, transform_indices = @transform_0, window_bounds = array<i64: 32, 256>}, {pipeline_mode = #tpu.pipeline_mode<synchronous>, transform_indices = @transform_1, window_bounds = array<i64: 256, 128>}, {pipeline_mode = #tpu.pipeline_mode<synchronous>, transform_indices = @transform_2, window_bounds = array<i64: 128, 128>}, {pipeline_mode = #tpu.pipeline_mode<synchronous>, transform_indices = @transform_3, window_bounds = array<i64: 1, 128>}, {pipeline_mode = #tpu.pipeline_mode<synchronous>, transform_indices = @transform_4, window_bounds = array<i64: 1, 128>}, {pipeline_mode = #tpu.pipeline_mode<synchronous>, transform_indices = @transform_5, window_bounds = array<i64: 32, 128>}]} {
    %cst = arith.constant 0.000000e+00 : f32
    %0 = vector.broadcast %cst : f32 to vector<1x128xf32>
    %c0 = arith.constant 0 : index
    %c0_0 = arith.constant 0 : index
    %1 = vector.load %arg1[%c0, %c0_0] : memref<32x256xbf16, #tpu.memory_space<vmem>>, vector<32x256xbf16>
    %c0_1 = arith.constant 0 : index
    %c0_2 = arith.constant 0 : index
    %2 = vector.load %arg2[%c0_1, %c0_2] : memref<256x128xbf16, #tpu.memory_space<vmem>>, vector<256x128xbf16>
    %cst_3 = arith.constant dense<0.000000e+00> : vector<32x128xf32>
    %3 = tpu.matmul %1, %2, %cst_3 {dimension_numbers = #tpu.dot_dimension_numbers<[1], [0], [0], [1], [0, 0, 1, 1], [], []>} : vector<32x256xbf16>, vector<256x128xbf16>, vector<32x128xf32> -> vector<32x128xf32>
    %c0_4 = arith.constant 0 : index
    %c0_5 = arith.constant 0 : index
    %4 = vector.load %arg7[%c0_4, %c0_5] : memref<32x128xf32, #tpu.memory_space<vmem>>, vector<32x128xf32>
    tpu.vector_store %arg7[%c0_4, %c0_5], %3 {strides = array<i32>} : memref<32x128xf32, #tpu.memory_space<vmem>>, vector<32x128xf32>,
    %c0_6 = arith.constant 0 : index
    %c0_7 = arith.constant 0 : index
    %5 = vector.load %arg3[%c0_6, %c0_7] : memref<128x128xf32, #tpu.memory_space<vmem>>, vector<128x128xf32>
    %cst_8 = arith.constant dense<0.000000e+00> : vector<32x128xf32>
    %6 = tpu.matmul %3, %5, %cst_8 {dimension_numbers = #tpu.dot_dimension_numbers<[1], [0], [0], [1], [0, 0, 1, 1], [], []>} : vector<32x128xf32>, vector<128x128xf32>, vector<32x128xf32> -> vector<32x128xf32>
    %cst_9 = arith.constant dense<0.000000e+00> : vector<128xf32>
    %7 = vector.multi_reduction <add>, %6, %cst_9 [0] : vector<32x128xf32> to vector<128xf32>
    %8 = vector.shape_cast %7 : vector<128xf32> to vector<1x128xf32>
    %9 = arith.addf %0, %8 : vector<1x128xf32>
    %cst_10 = arith.constant 3.125000e-02 : f32
    %10 = vector.broadcast %cst_10 : f32 to vector<1x128xf32>
    %11 = arith.mulf %9, %10 : vector<1x128xf32>
    %cst_11 = arith.constant 0.000000e+00 : f32
    %12 = vector.broadcast %cst_11 : f32 to vector<1x128xf32>
    %c0_12 = arith.constant 0 : index
    %c0_13 = arith.constant 0 : index
    %13 = vector.load %arg7[%c0_12, %c0_13] : memref<32x128xf32, #tpu.memory_space<vmem>>, vector<32x128xf32>
    %14 = vector.broadcast %11 : vector<1x128xf32> to vector<32x128xf32>
    %15 = arith.subf %13, %14 : vector<32x128xf32>
    %16 = arith.mulf %15, %15 : vector<32x128xf32>
    %c0_14 = arith.constant 0 : index
    %c0_15 = arith.constant 0 : index
    %17 = vector.load %arg3[%c0_14, %c0_15] : memref<128x128xf32, #tpu.memory_space<vmem>>, vector<128x128xf32>
    %cst_16 = arith.constant dense<0.000000e+00> : vector<32x128xf32>
    %18 = tpu.matmul %16, %17, %cst_16 {dimension_numbers = #tpu.dot_dimension_numbers<[1], [0], [0], [1], [0, 0, 1, 1], [], []>} : vector<32x128xf32>, vector<128x128xf32>, vector<32x128xf32> -> vector<32x128xf32>
    %cst_17 = arith.constant dense<0.000000e+00> : vector<128xf32>
    %19 = vector.multi_reduction <add>, %18, %cst_17 [0] : vector<32x128xf32> to vector<128xf32>
    %20 = vector.shape_cast %19 : vector<128xf32> to vector<1x128xf32>
    %21 = arith.addf %12, %20 : vector<1x128xf32>
    %cst_18 = arith.constant 0.000000e+00 : f32
    %22 = vector.broadcast %cst_18 : f32 to vector<1x128xf32>
    %23 = arith.mulf %22, %11 : vector<1x128xf32>
    %24 = arith.mulf %23, %11 : vector<1x128xf32>
    %25 = arith.subf %21, %24 : vector<1x128xf32>
    %cst_19 = arith.constant 3.125000e-02 : f32
    %26 = vector.broadcast %cst_19 : f32 to vector<1x128xf32>
    %27 = arith.mulf %25, %26 : vector<1x128xf32>
    %cst_20 = arith.constant 0.000000e+00 : f32
    %28 = vector.broadcast %cst_20 : f32 to vector<1x128xf32>
    %29 = arith.maximumf %27, %28 : vector<1x128xf32>
    %c0_21 = arith.constant 0 : index
    %c0_22 = arith.constant 0 : index
    %30 = vector.load %arg4[%c0_21, %c0_22] : memref<1x128xf32, #tpu.memory_space<vmem>>, vector<1x128xf32>
    %cst_23 = arith.constant 9.99999974E-6 : f32
    %31 = vector.broadcast %cst_23 : f32 to vector<1x128xf32>
    %32 = arith.addf %29, %31 : vector<1x128xf32>
    %33 = math.rsqrt %32 : vector<1x128xf32>
    %34 = arith.mulf %30, %33 : vector<1x128xf32>
    %c0_24 = arith.constant 0 : index
    %c0_25 = arith.constant 0 : index
    %35 = vector.load %arg5[%c0_24, %c0_25] : memref<1x128xf32, #tpu.memory_space<vmem>>, vector<1x128xf32>
    %36 = arith.mulf %11, %34 : vector<1x128xf32>
    %37 = arith.subf %35, %36 : vector<1x128xf32>
    %c0_26 = arith.constant 0 : index
    %c0_27 = arith.constant 0 : index
    %38 = vector.load %arg7[%c0_26, %c0_27] : memref<32x128xf32, #tpu.memory_space<vmem>>, vector<32x128xf32>
    %39 = vector.broadcast %34 : vector<1x128xf32> to vector<32x128xf32>
    %40 = arith.mulf %38, %39 : vector<32x128xf32>
    %41 = vector.broadcast %37 : vector<1x128xf32> to vector<32x128xf32>
    %42 = arith.addf %40, %41 : vector<32x128xf32>
    %cst_28 = arith.constant 0.000000e+00 : f32
    %43 = vector.broadcast %cst_28 : f32 to vector<32x128xf32>
    %44 = arith.maximumf %42, %43 : vector<32x128xf32>
    %45 = arith.truncf %44 : vector<32x128xf32> to vector<32x128xbf16>
    %c0_29 = arith.constant 0 : index
    %c0_30 = arith.constant 0 : index
    %46 = vector.load %arg6[%c0_29, %c0_30] : memref<32x128xbf16, #tpu.memory_space<vmem>>, vector<32x128xbf16>
    tpu.vector_store %arg6[%c0_29, %c0_30], %45 {strides = array<i32>} : memref<32x128xbf16, #tpu.memory_space<vmem>>, vector<32x128xbf16>,
    return
  }
  func.func @transform_0(%arg0: i32) -> (i32, i32) {
    %c0_i32 = arith.constant 0 : i32
    %c0_i32_0 = arith.constant 0 : i32
    %c0_i32_1 = arith.constant 0 : i32
    return %c0_i32, %c0_i32_0 : i32, i32
  }
  func.func @transform_1(%arg0: i32) -> (i32, i32) {
    %c0_i32 = arith.constant 0 : i32
    %c0_i32_0 = arith.constant 0 : i32
    %c0_i32_1 = arith.constant 0 : i32
    return %c0_i32, %c0_i32_0 : i32, i32
  }
  func.func @transform_2(%arg0: i32) -> (i32, i32) {
    %c0_i32 = arith.constant 0 : i32
    %c0_i32_0 = arith.constant 0 : i32
    %c0_i32_1 = arith.constant 0 : i32
    return %c0_i32, %c0_i32_0 : i32, i32
  }
  func.func @transform_3(%arg0: i32) -> (i32, i32) {
    %c0_i32 = arith.constant 0 : i32
    %c0_i32_0 = arith.constant 0 : i32
    %c0_i32_1 = arith.constant 0 : i32
    return %c0_i32, %c0_i32_0 : i32, i32
  }
  func.func @transform_4(%arg0: i32) -> (i32, i32) {
    %c0_i32 = arith.constant 0 : i32
    %c0_i32_0 = arith.constant 0 : i32
    %c0_i32_1 = arith.constant 0 : i32
    return %c0_i32, %c0_i32_0 : i32, i32
  }
  func.func @transform_5(%arg0: i32) -> (i32, i32) {
    %c0_i32 = arith.constant 0 : i32
    %c0_i32_0 = arith.constant 0 : i32
    %c0_i32_1 = arith.constant 0 : i32
    return %c0_i32, %c0_i32_0 : i32, i32
  }
}

module attributes {stable_mosaic.version = 11 : i64} {
  func.func @_gemm_bn_act_kernel(%arg0: i32, %arg1: memref<32x640xbf16, #tpu.memory_space<vmem>>, %arg2: memref<640x128xbf16, #tpu.memory_space<vmem>>, %arg3: memref<128x128xf32, #tpu.memory_space<vmem>>, %arg4: memref<1x128xf32, #tpu.memory_space<vmem>>, %arg5: memref<1x128xf32, #tpu.memory_space<vmem>>, %arg6: memref<32x128xbf16, #tpu.memory_space<vmem>>, %arg7: memref<32x128xf32, #tpu.memory_space<vmem>>) attributes {dimension_semantics = [#tpu.dimension_semantics<arbitrary>], iteration_bounds = array<i64: 1>, scalar_prefetch = 0 : i64, scratch_operands = 1 : i64, tpu.core_type = #tpu.core_type<tc>, window_params = [{pipeline_mode = #tpu.pipeline_mode<synchronous>, transform_indices = @transform_0, window_bounds = array<i64: 32, 640>}, {pipeline_mode = #tpu.pipeline_mode<synchronous>, transform_indices = @transform_1, window_bounds = array<i64: 640, 128>}, {pipeline_mode = #tpu.pipeline_mode<synchronous>, transform_indices = @transform_2, window_bounds = array<i64: 128, 128>}, {pipeline_mode = #tpu.pipeline_mode<synchronous>, transform_indices = @transform_3, window_bounds = array<i64: 1, 128>}, {pipeline_mode = #tpu.pipeline_mode<synchronous>, transform_indices = @transform_4, window_bounds = array<i64: 1, 128>}, {pipeline_mode = #tpu.pipeline_mode<synchronous>, transform_indices = @transform_5, window_bounds = array<i64: 32, 128>}]} {
    %cst = arith.constant 0.000000e+00 : f32
    %0 = vector.broadcast %cst : f32 to vector<1x128xf32>
    %c0 = arith.constant 0 : index
    %c0_0 = arith.constant 0 : index
    %1 = vector.load %arg1[%c0, %c0_0] : memref<32x640xbf16, #tpu.memory_space<vmem>>, vector<32x640xbf16>
    %c0_1 = arith.constant 0 : index
    %c0_2 = arith.constant 0 : index
    %2 = vector.load %arg2[%c0_1, %c0_2] : memref<640x128xbf16, #tpu.memory_space<vmem>>, vector<640x128xbf16>
    %cst_3 = arith.constant dense<0.000000e+00> : vector<32x128xf32>
    %3 = tpu.matmul %1, %2, %cst_3 {dimension_numbers = #tpu.dot_dimension_numbers<[1], [0], [0], [1], [0, 0, 1, 1], [], []>} : vector<32x640xbf16>, vector<640x128xbf16>, vector<32x128xf32> -> vector<32x128xf32>
    %c0_4 = arith.constant 0 : index
    %c0_5 = arith.constant 0 : index
    %4 = vector.load %arg7[%c0_4, %c0_5] : memref<32x128xf32, #tpu.memory_space<vmem>>, vector<32x128xf32>
    tpu.vector_store %arg7[%c0_4, %c0_5], %3 {strides = array<i32>} : memref<32x128xf32, #tpu.memory_space<vmem>>, vector<32x128xf32>,
    %c0_6 = arith.constant 0 : index
    %c0_7 = arith.constant 0 : index
    %5 = vector.load %arg3[%c0_6, %c0_7] : memref<128x128xf32, #tpu.memory_space<vmem>>, vector<128x128xf32>
    %cst_8 = arith.constant dense<0.000000e+00> : vector<32x128xf32>
    %6 = tpu.matmul %3, %5, %cst_8 {dimension_numbers = #tpu.dot_dimension_numbers<[1], [0], [0], [1], [0, 0, 1, 1], [], []>} : vector<32x128xf32>, vector<128x128xf32>, vector<32x128xf32> -> vector<32x128xf32>
    %cst_9 = arith.constant dense<0.000000e+00> : vector<128xf32>
    %7 = vector.multi_reduction <add>, %6, %cst_9 [0] : vector<32x128xf32> to vector<128xf32>
    %8 = vector.shape_cast %7 : vector<128xf32> to vector<1x128xf32>
    %9 = arith.addf %0, %8 : vector<1x128xf32>
    %cst_10 = arith.constant 7.812500e-03 : f32
    %10 = vector.broadcast %cst_10 : f32 to vector<1x128xf32>
    %11 = arith.mulf %9, %10 : vector<1x128xf32>
    %cst_11 = arith.constant 0.000000e+00 : f32
    %12 = vector.broadcast %cst_11 : f32 to vector<1x128xf32>
    %c0_12 = arith.constant 0 : index
    %c0_13 = arith.constant 0 : index
    %13 = vector.load %arg7[%c0_12, %c0_13] : memref<32x128xf32, #tpu.memory_space<vmem>>, vector<32x128xf32>
    %14 = vector.broadcast %11 : vector<1x128xf32> to vector<32x128xf32>
    %15 = arith.subf %13, %14 : vector<32x128xf32>
    %16 = arith.mulf %15, %15 : vector<32x128xf32>
    %c0_14 = arith.constant 0 : index
    %c0_15 = arith.constant 0 : index
    %17 = vector.load %arg3[%c0_14, %c0_15] : memref<128x128xf32, #tpu.memory_space<vmem>>, vector<128x128xf32>
    %cst_16 = arith.constant dense<0.000000e+00> : vector<32x128xf32>
    %18 = tpu.matmul %16, %17, %cst_16 {dimension_numbers = #tpu.dot_dimension_numbers<[1], [0], [0], [1], [0, 0, 1, 1], [], []>} : vector<32x128xf32>, vector<128x128xf32>, vector<32x128xf32> -> vector<32x128xf32>
    %cst_17 = arith.constant dense<0.000000e+00> : vector<128xf32>
    %19 = vector.multi_reduction <add>, %18, %cst_17 [0] : vector<32x128xf32> to vector<128xf32>
    %20 = vector.shape_cast %19 : vector<128xf32> to vector<1x128xf32>
    %21 = arith.addf %12, %20 : vector<1x128xf32>
    %cst_18 = arith.constant 0.000000e+00 : f32
    %22 = vector.broadcast %cst_18 : f32 to vector<1x128xf32>
    %23 = arith.mulf %22, %11 : vector<1x128xf32>
    %24 = arith.mulf %23, %11 : vector<1x128xf32>
    %25 = arith.subf %21, %24 : vector<1x128xf32>
    %cst_19 = arith.constant 7.812500e-03 : f32
    %26 = vector.broadcast %cst_19 : f32 to vector<1x128xf32>
    %27 = arith.mulf %25, %26 : vector<1x128xf32>
    %cst_20 = arith.constant 0.000000e+00 : f32
    %28 = vector.broadcast %cst_20 : f32 to vector<1x128xf32>
    %29 = arith.maximumf %27, %28 : vector<1x128xf32>
    %c0_21 = arith.constant 0 : index
    %c0_22 = arith.constant 0 : index
    %30 = vector.load %arg4[%c0_21, %c0_22] : memref<1x128xf32, #tpu.memory_space<vmem>>, vector<1x128xf32>
    %cst_23 = arith.constant 9.99999974E-6 : f32
    %31 = vector.broadcast %cst_23 : f32 to vector<1x128xf32>
    %32 = arith.addf %29, %31 : vector<1x128xf32>
    %33 = math.rsqrt %32 : vector<1x128xf32>
    %34 = arith.mulf %30, %33 : vector<1x128xf32>
    %c0_24 = arith.constant 0 : index
    %c0_25 = arith.constant 0 : index
    %35 = vector.load %arg5[%c0_24, %c0_25] : memref<1x128xf32, #tpu.memory_space<vmem>>, vector<1x128xf32>
    %36 = arith.mulf %11, %34 : vector<1x128xf32>
    %37 = arith.subf %35, %36 : vector<1x128xf32>
    %c0_26 = arith.constant 0 : index
    %c0_27 = arith.constant 0 : index
    %38 = vector.load %arg7[%c0_26, %c0_27] : memref<32x128xf32, #tpu.memory_space<vmem>>, vector<32x128xf32>
    %39 = vector.broadcast %34 : vector<1x128xf32> to vector<32x128xf32>
    %40 = arith.mulf %38, %39 : vector<32x128xf32>
    %41 = vector.broadcast %37 : vector<1x128xf32> to vector<32x128xf32>
    %42 = arith.addf %40, %41 : vector<32x128xf32>
    %cst_28 = arith.constant 0.000000e+00 : f32
    %43 = vector.broadcast %cst_28 : f32 to vector<32x128xf32>
    %44 = arith.maximumf %42, %43 : vector<32x128xf32>
    %45 = arith.truncf %44 : vector<32x128xf32> to vector<32x128xbf16>
    %c0_29 = arith.constant 0 : index
    %c0_30 = arith.constant 0 : index
    %46 = vector.load %arg6[%c0_29, %c0_30] : memref<32x128xbf16, #tpu.memory_space<vmem>>, vector<32x128xbf16>
    tpu.vector_store %arg6[%c0_29, %c0_30], %45 {strides = array<i32>} : memref<32x128xbf16, #tpu.memory_space<vmem>>, vector<32x128xbf16>,
    return
  }
  func.func @transform_0(%arg0: i32) -> (i32, i32) {
    %c0_i32 = arith.constant 0 : i32
    %c0_i32_0 = arith.constant 0 : i32
    %c0_i32_1 = arith.constant 0 : i32
    return %c0_i32, %c0_i32_0 : i32, i32
  }
  func.func @transform_1(%arg0: i32) -> (i32, i32) {
    %c0_i32 = arith.constant 0 : i32
    %c0_i32_0 = arith.constant 0 : i32
    %c0_i32_1 = arith.constant 0 : i32
    return %c0_i32, %c0_i32_0 : i32, i32
  }
  func.func @transform_2(%arg0: i32) -> (i32, i32) {
    %c0_i32 = arith.constant 0 : i32
    %c0_i32_0 = arith.constant 0 : i32
    %c0_i32_1 = arith.constant 0 : i32
    return %c0_i32, %c0_i32_0 : i32, i32
  }
  func.func @transform_3(%arg0: i32) -> (i32, i32) {
    %c0_i32 = arith.constant 0 : i32
    %c0_i32_0 = arith.constant 0 : i32
    %c0_i32_1 = arith.constant 0 : i32
    return %c0_i32, %c0_i32_0 : i32, i32
  }
  func.func @transform_4(%arg0: i32) -> (i32, i32) {
    %c0_i32 = arith.constant 0 : i32
    %c0_i32_0 = arith.constant 0 : i32
    %c0_i32_1 = arith.constant 0 : i32
    return %c0_i32, %c0_i32_0 : i32, i32
  }
  func.func @transform_5(%arg0: i32) -> (i32, i32) {
    %c0_i32 = arith.constant 0 : i32
    %c0_i32_0 = arith.constant 0 : i32
    %c0_i32_1 = arith.constant 0 : i32
    return %c0_i32, %c0_i32_0 : i32, i32
  }
}

module attributes {stable_mosaic.version = 11 : i64} {
  func.func @_gemm_bn_act_kernel(%arg0: i32, %arg1: memref<128x384xbf16, #tpu.memory_space<vmem>>, %arg2: memref<384x128xbf16, #tpu.memory_space<vmem>>, %arg3: memref<128x128xf32, #tpu.memory_space<vmem>>, %arg4: memref<1x128xf32, #tpu.memory_space<vmem>>, %arg5: memref<1x128xf32, #tpu.memory_space<vmem>>, %arg6: memref<128x128xbf16, #tpu.memory_space<vmem>>, %arg7: memref<128x128xf32, #tpu.memory_space<vmem>>) attributes {dimension_semantics = [#tpu.dimension_semantics<arbitrary>], iteration_bounds = array<i64: 1>, scalar_prefetch = 0 : i64, scratch_operands = 1 : i64, tpu.core_type = #tpu.core_type<tc>, window_params = [{pipeline_mode = #tpu.pipeline_mode<synchronous>, transform_indices = @transform_0, window_bounds = array<i64: 128, 384>}, {pipeline_mode = #tpu.pipeline_mode<synchronous>, transform_indices = @transform_1, window_bounds = array<i64: 384, 128>}, {pipeline_mode = #tpu.pipeline_mode<synchronous>, transform_indices = @transform_2, window_bounds = array<i64: 128, 128>}, {pipeline_mode = #tpu.pipeline_mode<synchronous>, transform_indices = @transform_3, window_bounds = array<i64: 1, 128>}, {pipeline_mode = #tpu.pipeline_mode<synchronous>, transform_indices = @transform_4, window_bounds = array<i64: 1, 128>}, {pipeline_mode = #tpu.pipeline_mode<synchronous>, transform_indices = @transform_5, window_bounds = array<i64: 128, 128>}]} {
    %cst = arith.constant 0.000000e+00 : f32
    %0 = vector.broadcast %cst : f32 to vector<1x128xf32>
    %c0 = arith.constant 0 : index
    %c0_0 = arith.constant 0 : index
    %1 = vector.load %arg1[%c0, %c0_0] : memref<128x384xbf16, #tpu.memory_space<vmem>>, vector<64x384xbf16>
    %c0_1 = arith.constant 0 : index
    %c0_2 = arith.constant 0 : index
    %2 = vector.load %arg2[%c0_1, %c0_2] : memref<384x128xbf16, #tpu.memory_space<vmem>>, vector<384x128xbf16>
    %cst_3 = arith.constant dense<0.000000e+00> : vector<64x128xf32>
    %3 = tpu.matmul %1, %2, %cst_3 {dimension_numbers = #tpu.dot_dimension_numbers<[1], [0], [0], [1], [0, 0, 1, 1], [], []>} : vector<64x384xbf16>, vector<384x128xbf16>, vector<64x128xf32> -> vector<64x128xf32>
    %c0_4 = arith.constant 0 : index
    %c0_5 = arith.constant 0 : index
    %4 = vector.load %arg7[%c0_4, %c0_5] : memref<128x128xf32, #tpu.memory_space<vmem>>, vector<64x128xf32>
    tpu.vector_store %arg7[%c0_4, %c0_5], %3 {strides = array<i32>} : memref<128x128xf32, #tpu.memory_space<vmem>>, vector<64x128xf32>,
    %c0_6 = arith.constant 0 : index
    %c0_7 = arith.constant 0 : index
    %5 = vector.load %arg3[%c0_6, %c0_7] : memref<128x128xf32, #tpu.memory_space<vmem>>, vector<128x128xf32>
    %cst_8 = arith.constant dense<0.000000e+00> : vector<64x128xf32>
    %6 = tpu.matmul %3, %5, %cst_8 {dimension_numbers = #tpu.dot_dimension_numbers<[1], [0], [0], [1], [0, 0, 1, 1], [], []>} : vector<64x128xf32>, vector<128x128xf32>, vector<64x128xf32> -> vector<64x128xf32>
    %cst_9 = arith.constant dense<0.000000e+00> : vector<128xf32>
    %7 = vector.multi_reduction <add>, %6, %cst_9 [0] : vector<64x128xf32> to vector<128xf32>
    %8 = vector.shape_cast %7 : vector<128xf32> to vector<1x128xf32>
    %9 = arith.addf %0, %8 : vector<1x128xf32>
    %c64 = arith.constant 64 : index
    %c0_10 = arith.constant 0 : index
    %10 = vector.load %arg1[%c64, %c0_10] : memref<128x384xbf16, #tpu.memory_space<vmem>>, vector<64x384xbf16>
    %c0_11 = arith.constant 0 : index
    %c0_12 = arith.constant 0 : index
    %11 = vector.load %arg2[%c0_11, %c0_12] : memref<384x128xbf16, #tpu.memory_space<vmem>>, vector<384x128xbf16>
    %cst_13 = arith.constant dense<0.000000e+00> : vector<64x128xf32>
    %12 = tpu.matmul %10, %11, %cst_13 {dimension_numbers = #tpu.dot_dimension_numbers<[1], [0], [0], [1], [0, 0, 1, 1], [], []>} : vector<64x384xbf16>, vector<384x128xbf16>, vector<64x128xf32> -> vector<64x128xf32>
    %c64_14 = arith.constant 64 : index
    %c0_15 = arith.constant 0 : index
    %13 = vector.load %arg7[%c64_14, %c0_15] : memref<128x128xf32, #tpu.memory_space<vmem>>, vector<64x128xf32>
    tpu.vector_store %arg7[%c64_14, %c0_15], %12 {strides = array<i32>} : memref<128x128xf32, #tpu.memory_space<vmem>>, vector<64x128xf32>,
    %c0_16 = arith.constant 0 : index
    %c0_17 = arith.constant 0 : index
    %14 = vector.load %arg3[%c0_16, %c0_17] : memref<128x128xf32, #tpu.memory_space<vmem>>, vector<128x128xf32>
    %cst_18 = arith.constant dense<0.000000e+00> : vector<64x128xf32>
    %15 = tpu.matmul %12, %14, %cst_18 {dimension_numbers = #tpu.dot_dimension_numbers<[1], [0], [0], [1], [0, 0, 1, 1], [], []>} : vector<64x128xf32>, vector<128x128xf32>, vector<64x128xf32> -> vector<64x128xf32>
    %cst_19 = arith.constant dense<0.000000e+00> : vector<128xf32>
    %16 = vector.multi_reduction <add>, %15, %cst_19 [0] : vector<64x128xf32> to vector<128xf32>
    %17 = vector.shape_cast %16 : vector<128xf32> to vector<1x128xf32>
    %18 = arith.addf %9, %17 : vector<1x128xf32>
    %cst_20 = arith.constant 0.001953125 : f32
    %19 = vector.broadcast %cst_20 : f32 to vector<1x128xf32>
    %20 = arith.mulf %18, %19 : vector<1x128xf32>
    %cst_21 = arith.constant 0.000000e+00 : f32
    %21 = vector.broadcast %cst_21 : f32 to vector<1x128xf32>
    %c0_22 = arith.constant 0 : index
    %c0_23 = arith.constant 0 : index
    %22 = vector.load %arg7[%c0_22, %c0_23] : memref<128x128xf32, #tpu.memory_space<vmem>>, vector<64x128xf32>
    %23 = vector.broadcast %20 : vector<1x128xf32> to vector<64x128xf32>
    %24 = arith.subf %22, %23 : vector<64x128xf32>
    %25 = arith.mulf %24, %24 : vector<64x128xf32>
    %c0_24 = arith.constant 0 : index
    %c0_25 = arith.constant 0 : index
    %26 = vector.load %arg3[%c0_24, %c0_25] : memref<128x128xf32, #tpu.memory_space<vmem>>, vector<128x128xf32>
    %cst_26 = arith.constant dense<0.000000e+00> : vector<64x128xf32>
    %27 = tpu.matmul %25, %26, %cst_26 {dimension_numbers = #tpu.dot_dimension_numbers<[1], [0], [0], [1], [0, 0, 1, 1], [], []>} : vector<64x128xf32>, vector<128x128xf32>, vector<64x128xf32> -> vector<64x128xf32>
    %cst_27 = arith.constant dense<0.000000e+00> : vector<128xf32>
    %28 = vector.multi_reduction <add>, %27, %cst_27 [0] : vector<64x128xf32> to vector<128xf32>
    %29 = vector.shape_cast %28 : vector<128xf32> to vector<1x128xf32>
    %30 = arith.addf %21, %29 : vector<1x128xf32>
    %c64_28 = arith.constant 64 : index
    %c0_29 = arith.constant 0 : index
    %31 = vector.load %arg7[%c64_28, %c0_29] : memref<128x128xf32, #tpu.memory_space<vmem>>, vector<64x128xf32>
    %32 = vector.broadcast %20 : vector<1x128xf32> to vector<64x128xf32>
    %33 = arith.subf %31, %32 : vector<64x128xf32>
    %34 = arith.mulf %33, %33 : vector<64x128xf32>
    %c0_30 = arith.constant 0 : index
    %c0_31 = arith.constant 0 : index
    %35 = vector.load %arg3[%c0_30, %c0_31] : memref<128x128xf32, #tpu.memory_space<vmem>>, vector<128x128xf32>
    %cst_32 = arith.constant dense<0.000000e+00> : vector<64x128xf32>
    %36 = tpu.matmul %34, %35, %cst_32 {dimension_numbers = #tpu.dot_dimension_numbers<[1], [0], [0], [1], [0, 0, 1, 1], [], []>} : vector<64x128xf32>, vector<128x128xf32>, vector<64x128xf32> -> vector<64x128xf32>
    %cst_33 = arith.constant dense<0.000000e+00> : vector<128xf32>
    %37 = vector.multi_reduction <add>, %36, %cst_33 [0] : vector<64x128xf32> to vector<128xf32>
    %38 = vector.shape_cast %37 : vector<128xf32> to vector<1x128xf32>
    %39 = arith.addf %30, %38 : vector<1x128xf32>
    %cst_34 = arith.constant 0.000000e+00 : f32
    %40 = vector.broadcast %cst_34 : f32 to vector<1x128xf32>
    %41 = arith.mulf %40, %20 : vector<1x128xf32>
    %42 = arith.mulf %41, %20 : vector<1x128xf32>
    %43 = arith.subf %39, %42 : vector<1x128xf32>
    %cst_35 = arith.constant 0.001953125 : f32
    %44 = vector.broadcast %cst_35 : f32 to vector<1x128xf32>
    %45 = arith.mulf %43, %44 : vector<1x128xf32>
    %cst_36 = arith.constant 0.000000e+00 : f32
    %46 = vector.broadcast %cst_36 : f32 to vector<1x128xf32>
    %47 = arith.maximumf %45, %46 : vector<1x128xf32>
    %c0_37 = arith.constant 0 : index
    %c0_38 = arith.constant 0 : index
    %48 = vector.load %arg4[%c0_37, %c0_38] : memref<1x128xf32, #tpu.memory_space<vmem>>, vector<1x128xf32>
    %cst_39 = arith.constant 9.99999974E-6 : f32
    %49 = vector.broadcast %cst_39 : f32 to vector<1x128xf32>
    %50 = arith.addf %47, %49 : vector<1x128xf32>
    %51 = math.rsqrt %50 : vector<1x128xf32>
    %52 = arith.mulf %48, %51 : vector<1x128xf32>
    %c0_40 = arith.constant 0 : index
    %c0_41 = arith.constant 0 : index
    %53 = vector.load %arg5[%c0_40, %c0_41] : memref<1x128xf32, #tpu.memory_space<vmem>>, vector<1x128xf32>
    %54 = arith.mulf %20, %52 : vector<1x128xf32>
    %55 = arith.subf %53, %54 : vector<1x128xf32>
    %c0_42 = arith.constant 0 : index
    %c0_43 = arith.constant 0 : index
    %56 = vector.load %arg7[%c0_42, %c0_43] : memref<128x128xf32, #tpu.memory_space<vmem>>, vector<64x128xf32>
    %57 = vector.broadcast %52 : vector<1x128xf32> to vector<64x128xf32>
    %58 = arith.mulf %56, %57 : vector<64x128xf32>
    %59 = vector.broadcast %55 : vector<1x128xf32> to vector<64x128xf32>
    %60 = arith.addf %58, %59 : vector<64x128xf32>
    %cst_44 = arith.constant 0.000000e+00 : f32
    %61 = vector.broadcast %cst_44 : f32 to vector<64x128xf32>
    %62 = arith.maximumf %60, %61 : vector<64x128xf32>
    %63 = arith.truncf %62 : vector<64x128xf32> to vector<64x128xbf16>
    %c0_45 = arith.constant 0 : index
    %c0_46 = arith.constant 0 : index
    %64 = vector.load %arg6[%c0_45, %c0_46] : memref<128x128xbf16, #tpu.memory_space<vmem>>, vector<64x128xbf16>
    tpu.vector_store %arg6[%c0_45, %c0_46], %63 {strides = array<i32>} : memref<128x128xbf16, #tpu.memory_space<vmem>>, vector<64x128xbf16>,
    %c64_47 = arith.constant 64 : index
    %c0_48 = arith.constant 0 : index
    %65 = vector.load %arg7[%c64_47, %c0_48] : memref<128x128xf32, #tpu.memory_space<vmem>>, vector<64x128xf32>
    %66 = vector.broadcast %52 : vector<1x128xf32> to vector<64x128xf32>
    %67 = arith.mulf %65, %66 : vector<64x128xf32>
    %68 = vector.broadcast %55 : vector<1x128xf32> to vector<64x128xf32>
    %69 = arith.addf %67, %68 : vector<64x128xf32>
    %cst_49 = arith.constant 0.000000e+00 : f32
    %70 = vector.broadcast %cst_49 : f32 to vector<64x128xf32>
    %71 = arith.maximumf %69, %70 : vector<64x128xf32>
    %72 = arith.truncf %71 : vector<64x128xf32> to vector<64x128xbf16>
    %c64_50 = arith.constant 64 : index
    %c0_51 = arith.constant 0 : index
    %73 = vector.load %arg6[%c64_50, %c0_51] : memref<128x128xbf16, #tpu.memory_space<vmem>>, vector<64x128xbf16>
    tpu.vector_store %arg6[%c64_50, %c0_51], %72 {strides = array<i32>} : memref<128x128xbf16, #tpu.memory_space<vmem>>, vector<64x128xbf16>,
    return
  }
  func.func @transform_0(%arg0: i32) -> (i32, i32) {
    %c0_i32 = arith.constant 0 : i32
    %c0_i32_0 = arith.constant 0 : i32
    %c0_i32_1 = arith.constant 0 : i32
    return %c0_i32, %c0_i32_0 : i32, i32
  }
  func.func @transform_1(%arg0: i32) -> (i32, i32) {
    %c0_i32 = arith.constant 0 : i32
    %c0_i32_0 = arith.constant 0 : i32
    %c0_i32_1 = arith.constant 0 : i32
    return %c0_i32, %c0_i32_0 : i32, i32
  }
  func.func @transform_2(%arg0: i32) -> (i32, i32) {
    %c0_i32 = arith.constant 0 : i32
    %c0_i32_0 = arith.constant 0 : i32
    %c0_i32_1 = arith.constant 0 : i32
    return %c0_i32, %c0_i32_0 : i32, i32
  }
  func.func @transform_3(%arg0: i32) -> (i32, i32) {
    %c0_i32 = arith.constant 0 : i32
    %c0_i32_0 = arith.constant 0 : i32
    %c0_i32_1 = arith.constant 0 : i32
    return %c0_i32, %c0_i32_0 : i32, i32
  }
  func.func @transform_4(%arg0: i32) -> (i32, i32) {
    %c0_i32 = arith.constant 0 : i32
    %c0_i32_0 = arith.constant 0 : i32
    %c0_i32_1 = arith.constant 0 : i32
    return %c0_i32, %c0_i32_0 : i32, i32
  }
  func.func @transform_5(%arg0: i32) -> (i32, i32) {
    %c0_i32 = arith.constant 0 : i32
    %c0_i32_0 = arith.constant 0 : i32
    %c0_i32_1 = arith.constant 0 : i32
    return %c0_i32, %c0_i32_0 : i32, i32
  }
}

module attributes {stable_mosaic.version = 11 : i64} {
  func.func @_gemm_bn_act_kernel(%arg0: i32, %arg1: memref<512x256xbf16, #tpu.memory_space<vmem>>, %arg2: memref<256x128xbf16, #tpu.memory_space<vmem>>, %arg3: memref<128x128xf32, #tpu.memory_space<vmem>>, %arg4: memref<1x128xf32, #tpu.memory_space<vmem>>, %arg5: memref<1x128xf32, #tpu.memory_space<vmem>>, %arg6: memref<512x128xbf16, #tpu.memory_space<vmem>>, %arg7: memref<512x128xf32, #tpu.memory_space<vmem>>) attributes {dimension_semantics = [#tpu.dimension_semantics<arbitrary>], iteration_bounds = array<i64: 1>, scalar_prefetch = 0 : i64, scratch_operands = 1 : i64, tpu.core_type = #tpu.core_type<tc>, window_params = [{pipeline_mode = #tpu.pipeline_mode<synchronous>, transform_indices = @transform_0, window_bounds = array<i64: 512, 256>}, {pipeline_mode = #tpu.pipeline_mode<synchronous>, transform_indices = @transform_1, window_bounds = array<i64: 256, 128>}, {pipeline_mode = #tpu.pipeline_mode<synchronous>, transform_indices = @transform_2, window_bounds = array<i64: 128, 128>}, {pipeline_mode = #tpu.pipeline_mode<synchronous>, transform_indices = @transform_3, window_bounds = array<i64: 1, 128>}, {pipeline_mode = #tpu.pipeline_mode<synchronous>, transform_indices = @transform_4, window_bounds = array<i64: 1, 128>}, {pipeline_mode = #tpu.pipeline_mode<synchronous>, transform_indices = @transform_5, window_bounds = array<i64: 512, 128>}]} {
    %cst = arith.constant 0.000000e+00 : f32
    %0 = vector.broadcast %cst : f32 to vector<1x128xf32>
    %c0 = arith.constant 0 : index
    %c0_0 = arith.constant 0 : index
    %1 = vector.load %arg1[%c0, %c0_0] : memref<512x256xbf16, #tpu.memory_space<vmem>>, vector<64x256xbf16>
    %c0_1 = arith.constant 0 : index
    %c0_2 = arith.constant 0 : index
    %2 = vector.load %arg2[%c0_1, %c0_2] : memref<256x128xbf16, #tpu.memory_space<vmem>>, vector<256x128xbf16>
    %cst_3 = arith.constant dense<0.000000e+00> : vector<64x128xf32>
    %3 = tpu.matmul %1, %2, %cst_3 {dimension_numbers = #tpu.dot_dimension_numbers<[1], [0], [0], [1], [0, 0, 1, 1], [], []>} : vector<64x256xbf16>, vector<256x128xbf16>, vector<64x128xf32> -> vector<64x128xf32>
    %c0_4 = arith.constant 0 : index
    %c0_5 = arith.constant 0 : index
    %4 = vector.load %arg7[%c0_4, %c0_5] : memref<512x128xf32, #tpu.memory_space<vmem>>, vector<64x128xf32>
    tpu.vector_store %arg7[%c0_4, %c0_5], %3 {strides = array<i32>} : memref<512x128xf32, #tpu.memory_space<vmem>>, vector<64x128xf32>,
    %c0_6 = arith.constant 0 : index
    %c0_7 = arith.constant 0 : index
    %5 = vector.load %arg3[%c0_6, %c0_7] : memref<128x128xf32, #tpu.memory_space<vmem>>, vector<128x128xf32>
    %cst_8 = arith.constant dense<0.000000e+00> : vector<64x128xf32>
    %6 = tpu.matmul %3, %5, %cst_8 {dimension_numbers = #tpu.dot_dimension_numbers<[1], [0], [0], [1], [0, 0, 1, 1], [], []>} : vector<64x128xf32>, vector<128x128xf32>, vector<64x128xf32> -> vector<64x128xf32>
    %cst_9 = arith.constant dense<0.000000e+00> : vector<128xf32>
    %7 = vector.multi_reduction <add>, %6, %cst_9 [0] : vector<64x128xf32> to vector<128xf32>
    %8 = vector.shape_cast %7 : vector<128xf32> to vector<1x128xf32>
    %9 = arith.addf %0, %8 : vector<1x128xf32>
    %c64 = arith.constant 64 : index
    %c0_10 = arith.constant 0 : index
    %10 = vector.load %arg1[%c64, %c0_10] : memref<512x256xbf16, #tpu.memory_space<vmem>>, vector<64x256xbf16>
    %c0_11 = arith.constant 0 : index
    %c0_12 = arith.constant 0 : index
    %11 = vector.load %arg2[%c0_11, %c0_12] : memref<256x128xbf16, #tpu.memory_space<vmem>>, vector<256x128xbf16>
    %cst_13 = arith.constant dense<0.000000e+00> : vector<64x128xf32>
    %12 = tpu.matmul %10, %11, %cst_13 {dimension_numbers = #tpu.dot_dimension_numbers<[1], [0], [0], [1], [0, 0, 1, 1], [], []>} : vector<64x256xbf16>, vector<256x128xbf16>, vector<64x128xf32> -> vector<64x128xf32>
    %c64_14 = arith.constant 64 : index
    %c0_15 = arith.constant 0 : index
    %13 = vector.load %arg7[%c64_14, %c0_15] : memref<512x128xf32, #tpu.memory_space<vmem>>, vector<64x128xf32>
    tpu.vector_store %arg7[%c64_14, %c0_15], %12 {strides = array<i32>} : memref<512x128xf32, #tpu.memory_space<vmem>>, vector<64x128xf32>,
    %c0_16 = arith.constant 0 : index
    %c0_17 = arith.constant 0 : index
    %14 = vector.load %arg3[%c0_16, %c0_17] : memref<128x128xf32, #tpu.memory_space<vmem>>, vector<128x128xf32>
    %cst_18 = arith.constant dense<0.000000e+00> : vector<64x128xf32>
    %15 = tpu.matmul %12, %14, %cst_18 {dimension_numbers = #tpu.dot_dimension_numbers<[1], [0], [0], [1], [0, 0, 1, 1], [], []>} : vector<64x128xf32>, vector<128x128xf32>, vector<64x128xf32> -> vector<64x128xf32>
    %cst_19 = arith.constant dense<0.000000e+00> : vector<128xf32>
    %16 = vector.multi_reduction <add>, %15, %cst_19 [0] : vector<64x128xf32> to vector<128xf32>
    %17 = vector.shape_cast %16 : vector<128xf32> to vector<1x128xf32>
    %18 = arith.addf %9, %17 : vector<1x128xf32>
    %c128 = arith.constant 128 : index
    %c0_20 = arith.constant 0 : index
    %19 = vector.load %arg1[%c128, %c0_20] : memref<512x256xbf16, #tpu.memory_space<vmem>>, vector<64x256xbf16>
    %c0_21 = arith.constant 0 : index
    %c0_22 = arith.constant 0 : index
    %20 = vector.load %arg2[%c0_21, %c0_22] : memref<256x128xbf16, #tpu.memory_space<vmem>>, vector<256x128xbf16>
    %cst_23 = arith.constant dense<0.000000e+00> : vector<64x128xf32>
    %21 = tpu.matmul %19, %20, %cst_23 {dimension_numbers = #tpu.dot_dimension_numbers<[1], [0], [0], [1], [0, 0, 1, 1], [], []>} : vector<64x256xbf16>, vector<256x128xbf16>, vector<64x128xf32> -> vector<64x128xf32>
    %c128_24 = arith.constant 128 : index
    %c0_25 = arith.constant 0 : index
    %22 = vector.load %arg7[%c128_24, %c0_25] : memref<512x128xf32, #tpu.memory_space<vmem>>, vector<64x128xf32>
    tpu.vector_store %arg7[%c128_24, %c0_25], %21 {strides = array<i32>} : memref<512x128xf32, #tpu.memory_space<vmem>>, vector<64x128xf32>,
    %c0_26 = arith.constant 0 : index
    %c0_27 = arith.constant 0 : index
    %23 = vector.load %arg3[%c0_26, %c0_27] : memref<128x128xf32, #tpu.memory_space<vmem>>, vector<128x128xf32>
    %cst_28 = arith.constant dense<0.000000e+00> : vector<64x128xf32>
    %24 = tpu.matmul %21, %23, %cst_28 {dimension_numbers = #tpu.dot_dimension_numbers<[1], [0], [0], [1], [0, 0, 1, 1], [], []>} : vector<64x128xf32>, vector<128x128xf32>, vector<64x128xf32> -> vector<64x128xf32>
    %cst_29 = arith.constant dense<0.000000e+00> : vector<128xf32>
    %25 = vector.multi_reduction <add>, %24, %cst_29 [0] : vector<64x128xf32> to vector<128xf32>
    %26 = vector.shape_cast %25 : vector<128xf32> to vector<1x128xf32>
    %27 = arith.addf %18, %26 : vector<1x128xf32>
    %c192 = arith.constant 192 : index
    %c0_30 = arith.constant 0 : index
    %28 = vector.load %arg1[%c192, %c0_30] : memref<512x256xbf16, #tpu.memory_space<vmem>>, vector<64x256xbf16>
    %c0_31 = arith.constant 0 : index
    %c0_32 = arith.constant 0 : index
    %29 = vector.load %arg2[%c0_31, %c0_32] : memref<256x128xbf16, #tpu.memory_space<vmem>>, vector<256x128xbf16>
    %cst_33 = arith.constant dense<0.000000e+00> : vector<64x128xf32>
    %30 = tpu.matmul %28, %29, %cst_33 {dimension_numbers = #tpu.dot_dimension_numbers<[1], [0], [0], [1], [0, 0, 1, 1], [], []>} : vector<64x256xbf16>, vector<256x128xbf16>, vector<64x128xf32> -> vector<64x128xf32>
    %c192_34 = arith.constant 192 : index
    %c0_35 = arith.constant 0 : index
    %31 = vector.load %arg7[%c192_34, %c0_35] : memref<512x128xf32, #tpu.memory_space<vmem>>, vector<64x128xf32>
    tpu.vector_store %arg7[%c192_34, %c0_35], %30 {strides = array<i32>} : memref<512x128xf32, #tpu.memory_space<vmem>>, vector<64x128xf32>,
    %c0_36 = arith.constant 0 : index
    %c0_37 = arith.constant 0 : index
    %32 = vector.load %arg3[%c0_36, %c0_37] : memref<128x128xf32, #tpu.memory_space<vmem>>, vector<128x128xf32>
    %cst_38 = arith.constant dense<0.000000e+00> : vector<64x128xf32>
    %33 = tpu.matmul %30, %32, %cst_38 {dimension_numbers = #tpu.dot_dimension_numbers<[1], [0], [0], [1], [0, 0, 1, 1], [], []>} : vector<64x128xf32>, vector<128x128xf32>, vector<64x128xf32> -> vector<64x128xf32>
    %cst_39 = arith.constant dense<0.000000e+00> : vector<128xf32>
    %34 = vector.multi_reduction <add>, %33, %cst_39 [0] : vector<64x128xf32> to vector<128xf32>
    %35 = vector.shape_cast %34 : vector<128xf32> to vector<1x128xf32>
    %36 = arith.addf %27, %35 : vector<1x128xf32>
    %c256 = arith.constant 256 : index
    %c0_40 = arith.constant 0 : index
    %37 = vector.load %arg1[%c256, %c0_40] : memref<512x256xbf16, #tpu.memory_space<vmem>>, vector<64x256xbf16>
    %c0_41 = arith.constant 0 : index
    %c0_42 = arith.constant 0 : index
    %38 = vector.load %arg2[%c0_41, %c0_42] : memref<256x128xbf16, #tpu.memory_space<vmem>>, vector<256x128xbf16>
    %cst_43 = arith.constant dense<0.000000e+00> : vector<64x128xf32>
    %39 = tpu.matmul %37, %38, %cst_43 {dimension_numbers = #tpu.dot_dimension_numbers<[1], [0], [0], [1], [0, 0, 1, 1], [], []>} : vector<64x256xbf16>, vector<256x128xbf16>, vector<64x128xf32> -> vector<64x128xf32>
    %c256_44 = arith.constant 256 : index
    %c0_45 = arith.constant 0 : index
    %40 = vector.load %arg7[%c256_44, %c0_45] : memref<512x128xf32, #tpu.memory_space<vmem>>, vector<64x128xf32>
    tpu.vector_store %arg7[%c256_44, %c0_45], %39 {strides = array<i32>} : memref<512x128xf32, #tpu.memory_space<vmem>>, vector<64x128xf32>,
    %c0_46 = arith.constant 0 : index
    %c0_47 = arith.constant 0 : index
    %41 = vector.load %arg3[%c0_46, %c0_47] : memref<128x128xf32, #tpu.memory_space<vmem>>, vector<128x128xf32>
    %cst_48 = arith.constant dense<0.000000e+00> : vector<64x128xf32>
    %42 = tpu.matmul %39, %41, %cst_48 {dimension_numbers = #tpu.dot_dimension_numbers<[1], [0], [0], [1], [0, 0, 1, 1], [], []>} : vector<64x128xf32>, vector<128x128xf32>, vector<64x128xf32> -> vector<64x128xf32>
    %cst_49 = arith.constant dense<0.000000e+00> : vector<128xf32>
    %43 = vector.multi_reduction <add>, %42, %cst_49 [0] : vector<64x128xf32> to vector<128xf32>
    %44 = vector.shape_cast %43 : vector<128xf32> to vector<1x128xf32>
    %45 = arith.addf %36, %44 : vector<1x128xf32>
    %c320 = arith.constant 320 : index
    %c0_50 = arith.constant 0 : index
    %46 = vector.load %arg1[%c320, %c0_50] : memref<512x256xbf16, #tpu.memory_space<vmem>>, vector<64x256xbf16>
    %c0_51 = arith.constant 0 : index
    %c0_52 = arith.constant 0 : index
    %47 = vector.load %arg2[%c0_51, %c0_52] : memref<256x128xbf16, #tpu.memory_space<vmem>>, vector<256x128xbf16>
    %cst_53 = arith.constant dense<0.000000e+00> : vector<64x128xf32>
    %48 = tpu.matmul %46, %47, %cst_53 {dimension_numbers = #tpu.dot_dimension_numbers<[1], [0], [0], [1], [0, 0, 1, 1], [], []>} : vector<64x256xbf16>, vector<256x128xbf16>, vector<64x128xf32> -> vector<64x128xf32>
    %c320_54 = arith.constant 320 : index
    %c0_55 = arith.constant 0 : index
    %49 = vector.load %arg7[%c320_54, %c0_55] : memref<512x128xf32, #tpu.memory_space<vmem>>, vector<64x128xf32>
    tpu.vector_store %arg7[%c320_54, %c0_55], %48 {strides = array<i32>} : memref<512x128xf32, #tpu.memory_space<vmem>>, vector<64x128xf32>,
    %c0_56 = arith.constant 0 : index
    %c0_57 = arith.constant 0 : index
    %50 = vector.load %arg3[%c0_56, %c0_57] : memref<128x128xf32, #tpu.memory_space<vmem>>, vector<128x128xf32>
    %cst_58 = arith.constant dense<0.000000e+00> : vector<64x128xf32>
    %51 = tpu.matmul %48, %50, %cst_58 {dimension_numbers = #tpu.dot_dimension_numbers<[1], [0], [0], [1], [0, 0, 1, 1], [], []>} : vector<64x128xf32>, vector<128x128xf32>, vector<64x128xf32> -> vector<64x128xf32>
    %cst_59 = arith.constant dense<0.000000e+00> : vector<128xf32>
    %52 = vector.multi_reduction <add>, %51, %cst_59 [0] : vector<64x128xf32> to vector<128xf32>
    %53 = vector.shape_cast %52 : vector<128xf32> to vector<1x128xf32>
    %54 = arith.addf %45, %53 : vector<1x128xf32>
    %c384 = arith.constant 384 : index
    %c0_60 = arith.constant 0 : index
    %55 = vector.load %arg1[%c384, %c0_60] : memref<512x256xbf16, #tpu.memory_space<vmem>>, vector<64x256xbf16>
    %c0_61 = arith.constant 0 : index
    %c0_62 = arith.constant 0 : index
    %56 = vector.load %arg2[%c0_61, %c0_62] : memref<256x128xbf16, #tpu.memory_space<vmem>>, vector<256x128xbf16>
    %cst_63 = arith.constant dense<0.000000e+00> : vector<64x128xf32>
    %57 = tpu.matmul %55, %56, %cst_63 {dimension_numbers = #tpu.dot_dimension_numbers<[1], [0], [0], [1], [0, 0, 1, 1], [], []>} : vector<64x256xbf16>, vector<256x128xbf16>, vector<64x128xf32> -> vector<64x128xf32>
    %c384_64 = arith.constant 384 : index
    %c0_65 = arith.constant 0 : index
    %58 = vector.load %arg7[%c384_64, %c0_65] : memref<512x128xf32, #tpu.memory_space<vmem>>, vector<64x128xf32>
    tpu.vector_store %arg7[%c384_64, %c0_65], %57 {strides = array<i32>} : memref<512x128xf32, #tpu.memory_space<vmem>>, vector<64x128xf32>,
    %c0_66 = arith.constant 0 : index
    %c0_67 = arith.constant 0 : index
    %59 = vector.load %arg3[%c0_66, %c0_67] : memref<128x128xf32, #tpu.memory_space<vmem>>, vector<128x128xf32>
    %cst_68 = arith.constant dense<0.000000e+00> : vector<64x128xf32>
    %60 = tpu.matmul %57, %59, %cst_68 {dimension_numbers = #tpu.dot_dimension_numbers<[1], [0], [0], [1], [0, 0, 1, 1], [], []>} : vector<64x128xf32>, vector<128x128xf32>, vector<64x128xf32> -> vector<64x128xf32>
    %cst_69 = arith.constant dense<0.000000e+00> : vector<128xf32>
    %61 = vector.multi_reduction <add>, %60, %cst_69 [0] : vector<64x128xf32> to vector<128xf32>
    %62 = vector.shape_cast %61 : vector<128xf32> to vector<1x128xf32>
    %63 = arith.addf %54, %62 : vector<1x128xf32>
    %c448 = arith.constant 448 : index
    %c0_70 = arith.constant 0 : index
    %64 = vector.load %arg1[%c448, %c0_70] : memref<512x256xbf16, #tpu.memory_space<vmem>>, vector<64x256xbf16>
    %c0_71 = arith.constant 0 : index
    %c0_72 = arith.constant 0 : index
    %65 = vector.load %arg2[%c0_71, %c0_72] : memref<256x128xbf16, #tpu.memory_space<vmem>>, vector<256x128xbf16>
    %cst_73 = arith.constant dense<0.000000e+00> : vector<64x128xf32>
    %66 = tpu.matmul %64, %65, %cst_73 {dimension_numbers = #tpu.dot_dimension_numbers<[1], [0], [0], [1], [0, 0, 1, 1], [], []>} : vector<64x256xbf16>, vector<256x128xbf16>, vector<64x128xf32> -> vector<64x128xf32>
    %c448_74 = arith.constant 448 : index
    %c0_75 = arith.constant 0 : index
    %67 = vector.load %arg7[%c448_74, %c0_75] : memref<512x128xf32, #tpu.memory_space<vmem>>, vector<64x128xf32>
    tpu.vector_store %arg7[%c448_74, %c0_75], %66 {strides = array<i32>} : memref<512x128xf32, #tpu.memory_space<vmem>>, vector<64x128xf32>,
    %c0_76 = arith.constant 0 : index
    %c0_77 = arith.constant 0 : index
    %68 = vector.load %arg3[%c0_76, %c0_77] : memref<128x128xf32, #tpu.memory_space<vmem>>, vector<128x128xf32>
    %cst_78 = arith.constant dense<0.000000e+00> : vector<64x128xf32>
    %69 = tpu.matmul %66, %68, %cst_78 {dimension_numbers = #tpu.dot_dimension_numbers<[1], [0], [0], [1], [0, 0, 1, 1], [], []>} : vector<64x128xf32>, vector<128x128xf32>, vector<64x128xf32> -> vector<64x128xf32>
    %cst_79 = arith.constant dense<0.000000e+00> : vector<128xf32>
    %70 = vector.multi_reduction <add>, %69, %cst_79 [0] : vector<64x128xf32> to vector<128xf32>
    %71 = vector.shape_cast %70 : vector<128xf32> to vector<1x128xf32>
    %72 = arith.addf %63, %71 : vector<1x128xf32>
    %cst_80 = arith.constant 4.8828125E-4 : f32
    %73 = vector.broadcast %cst_80 : f32 to vector<1x128xf32>
    %74 = arith.mulf %72, %73 : vector<1x128xf32>
    %cst_81 = arith.constant 0.000000e+00 : f32
    %75 = vector.broadcast %cst_81 : f32 to vector<1x128xf32>
    %c0_82 = arith.constant 0 : index
    %c0_83 = arith.constant 0 : index
    %76 = vector.load %arg7[%c0_82, %c0_83] : memref<512x128xf32, #tpu.memory_space<vmem>>, vector<64x128xf32>
    %77 = vector.broadcast %74 : vector<1x128xf32> to vector<64x128xf32>
    %78 = arith.subf %76, %77 : vector<64x128xf32>
    %79 = arith.mulf %78, %78 : vector<64x128xf32>
    %c0_84 = arith.constant 0 : index
    %c0_85 = arith.constant 0 : index
    %80 = vector.load %arg3[%c0_84, %c0_85] : memref<128x128xf32, #tpu.memory_space<vmem>>, vector<128x128xf32>
    %cst_86 = arith.constant dense<0.000000e+00> : vector<64x128xf32>
    %81 = tpu.matmul %79, %80, %cst_86 {dimension_numbers = #tpu.dot_dimension_numbers<[1], [0], [0], [1], [0, 0, 1, 1], [], []>} : vector<64x128xf32>, vector<128x128xf32>, vector<64x128xf32> -> vector<64x128xf32>
    %cst_87 = arith.constant dense<0.000000e+00> : vector<128xf32>
    %82 = vector.multi_reduction <add>, %81, %cst_87 [0] : vector<64x128xf32> to vector<128xf32>
    %83 = vector.shape_cast %82 : vector<128xf32> to vector<1x128xf32>
    %84 = arith.addf %75, %83 : vector<1x128xf32>
    %c64_88 = arith.constant 64 : index
    %c0_89 = arith.constant 0 : index
    %85 = vector.load %arg7[%c64_88, %c0_89] : memref<512x128xf32, #tpu.memory_space<vmem>>, vector<64x128xf32>
    %86 = vector.broadcast %74 : vector<1x128xf32> to vector<64x128xf32>
    %87 = arith.subf %85, %86 : vector<64x128xf32>
    %88 = arith.mulf %87, %87 : vector<64x128xf32>
    %c0_90 = arith.constant 0 : index
    %c0_91 = arith.constant 0 : index
    %89 = vector.load %arg3[%c0_90, %c0_91] : memref<128x128xf32, #tpu.memory_space<vmem>>, vector<128x128xf32>
    %cst_92 = arith.constant dense<0.000000e+00> : vector<64x128xf32>
    %90 = tpu.matmul %88, %89, %cst_92 {dimension_numbers = #tpu.dot_dimension_numbers<[1], [0], [0], [1], [0, 0, 1, 1], [], []>} : vector<64x128xf32>, vector<128x128xf32>, vector<64x128xf32> -> vector<64x128xf32>
    %cst_93 = arith.constant dense<0.000000e+00> : vector<128xf32>
    %91 = vector.multi_reduction <add>, %90, %cst_93 [0] : vector<64x128xf32> to vector<128xf32>
    %92 = vector.shape_cast %91 : vector<128xf32> to vector<1x128xf32>
    %93 = arith.addf %84, %92 : vector<1x128xf32>
    %c128_94 = arith.constant 128 : index
    %c0_95 = arith.constant 0 : index
    %94 = vector.load %arg7[%c128_94, %c0_95] : memref<512x128xf32, #tpu.memory_space<vmem>>, vector<64x128xf32>
    %95 = vector.broadcast %74 : vector<1x128xf32> to vector<64x128xf32>
    %96 = arith.subf %94, %95 : vector<64x128xf32>
    %97 = arith.mulf %96, %96 : vector<64x128xf32>
    %c0_96 = arith.constant 0 : index
    %c0_97 = arith.constant 0 : index
    %98 = vector.load %arg3[%c0_96, %c0_97] : memref<128x128xf32, #tpu.memory_space<vmem>>, vector<128x128xf32>
    %cst_98 = arith.constant dense<0.000000e+00> : vector<64x128xf32>
    %99 = tpu.matmul %97, %98, %cst_98 {dimension_numbers = #tpu.dot_dimension_numbers<[1], [0], [0], [1], [0, 0, 1, 1], [], []>} : vector<64x128xf32>, vector<128x128xf32>, vector<64x128xf32> -> vector<64x128xf32>
    %cst_99 = arith.constant dense<0.000000e+00> : vector<128xf32>
    %100 = vector.multi_reduction <add>, %99, %cst_99 [0] : vector<64x128xf32> to vector<128xf32>
    %101 = vector.shape_cast %100 : vector<128xf32> to vector<1x128xf32>
    %102 = arith.addf %93, %101 : vector<1x128xf32>
    %c192_100 = arith.constant 192 : index
    %c0_101 = arith.constant 0 : index
    %103 = vector.load %arg7[%c192_100, %c0_101] : memref<512x128xf32, #tpu.memory_space<vmem>>, vector<64x128xf32>
    %104 = vector.broadcast %74 : vector<1x128xf32> to vector<64x128xf32>
    %105 = arith.subf %103, %104 : vector<64x128xf32>
    %106 = arith.mulf %105, %105 : vector<64x128xf32>
    %c0_102 = arith.constant 0 : index
    %c0_103 = arith.constant 0 : index
    %107 = vector.load %arg3[%c0_102, %c0_103] : memref<128x128xf32, #tpu.memory_space<vmem>>, vector<128x128xf32>
    %cst_104 = arith.constant dense<0.000000e+00> : vector<64x128xf32>
    %108 = tpu.matmul %106, %107, %cst_104 {dimension_numbers = #tpu.dot_dimension_numbers<[1], [0], [0], [1], [0, 0, 1, 1], [], []>} : vector<64x128xf32>, vector<128x128xf32>, vector<64x128xf32> -> vector<64x128xf32>
    %cst_105 = arith.constant dense<0.000000e+00> : vector<128xf32>
    %109 = vector.multi_reduction <add>, %108, %cst_105 [0] : vector<64x128xf32> to vector<128xf32>
    %110 = vector.shape_cast %109 : vector<128xf32> to vector<1x128xf32>
    %111 = arith.addf %102, %110 : vector<1x128xf32>
    %c256_106 = arith.constant 256 : index
    %c0_107 = arith.constant 0 : index
    %112 = vector.load %arg7[%c256_106, %c0_107] : memref<512x128xf32, #tpu.memory_space<vmem>>, vector<64x128xf32>
    %113 = vector.broadcast %74 : vector<1x128xf32> to vector<64x128xf32>
    %114 = arith.subf %112, %113 : vector<64x128xf32>
    %115 = arith.mulf %114, %114 : vector<64x128xf32>
    %c0_108 = arith.constant 0 : index
    %c0_109 = arith.constant 0 : index
    %116 = vector.load %arg3[%c0_108, %c0_109] : memref<128x128xf32, #tpu.memory_space<vmem>>, vector<128x128xf32>
    %cst_110 = arith.constant dense<0.000000e+00> : vector<64x128xf32>
    %117 = tpu.matmul %115, %116, %cst_110 {dimension_numbers = #tpu.dot_dimension_numbers<[1], [0], [0], [1], [0, 0, 1, 1], [], []>} : vector<64x128xf32>, vector<128x128xf32>, vector<64x128xf32> -> vector<64x128xf32>
    %cst_111 = arith.constant dense<0.000000e+00> : vector<128xf32>
    %118 = vector.multi_reduction <add>, %117, %cst_111 [0] : vector<64x128xf32> to vector<128xf32>
    %119 = vector.shape_cast %118 : vector<128xf32> to vector<1x128xf32>
    %120 = arith.addf %111, %119 : vector<1x128xf32>
    %c320_112 = arith.constant 320 : index
    %c0_113 = arith.constant 0 : index
    %121 = vector.load %arg7[%c320_112, %c0_113] : memref<512x128xf32, #tpu.memory_space<vmem>>, vector<64x128xf32>
    %122 = vector.broadcast %74 : vector<1x128xf32> to vector<64x128xf32>
    %123 = arith.subf %121, %122 : vector<64x128xf32>
    %124 = arith.mulf %123, %123 : vector<64x128xf32>
    %c0_114 = arith.constant 0 : index
    %c0_115 = arith.constant 0 : index
    %125 = vector.load %arg3[%c0_114, %c0_115] : memref<128x128xf32, #tpu.memory_space<vmem>>, vector<128x128xf32>
    %cst_116 = arith.constant dense<0.000000e+00> : vector<64x128xf32>
    %126 = tpu.matmul %124, %125, %cst_116 {dimension_numbers = #tpu.dot_dimension_numbers<[1], [0], [0], [1], [0, 0, 1, 1], [], []>} : vector<64x128xf32>, vector<128x128xf32>, vector<64x128xf32> -> vector<64x128xf32>
    %cst_117 = arith.constant dense<0.000000e+00> : vector<128xf32>
    %127 = vector.multi_reduction <add>, %126, %cst_117 [0] : vector<64x128xf32> to vector<128xf32>
    %128 = vector.shape_cast %127 : vector<128xf32> to vector<1x128xf32>
    %129 = arith.addf %120, %128 : vector<1x128xf32>
    %c384_118 = arith.constant 384 : index
    %c0_119 = arith.constant 0 : index
    %130 = vector.load %arg7[%c384_118, %c0_119] : memref<512x128xf32, #tpu.memory_space<vmem>>, vector<64x128xf32>
    %131 = vector.broadcast %74 : vector<1x128xf32> to vector<64x128xf32>
    %132 = arith.subf %130, %131 : vector<64x128xf32>
    %133 = arith.mulf %132, %132 : vector<64x128xf32>
    %c0_120 = arith.constant 0 : index
    %c0_121 = arith.constant 0 : index
    %134 = vector.load %arg3[%c0_120, %c0_121] : memref<128x128xf32, #tpu.memory_space<vmem>>, vector<128x128xf32>
    %cst_122 = arith.constant dense<0.000000e+00> : vector<64x128xf32>
    %135 = tpu.matmul %133, %134, %cst_122 {dimension_numbers = #tpu.dot_dimension_numbers<[1], [0], [0], [1], [0, 0, 1, 1], [], []>} : vector<64x128xf32>, vector<128x128xf32>, vector<64x128xf32> -> vector<64x128xf32>
    %cst_123 = arith.constant dense<0.000000e+00> : vector<128xf32>
    %136 = vector.multi_reduction <add>, %135, %cst_123 [0] : vector<64x128xf32> to vector<128xf32>
    %137 = vector.shape_cast %136 : vector<128xf32> to vector<1x128xf32>
    %138 = arith.addf %129, %137 : vector<1x128xf32>
    %c448_124 = arith.constant 448 : index
    %c0_125 = arith.constant 0 : index
    %139 = vector.load %arg7[%c448_124, %c0_125] : memref<512x128xf32, #tpu.memory_space<vmem>>, vector<64x128xf32>
    %140 = vector.broadcast %74 : vector<1x128xf32> to vector<64x128xf32>
    %141 = arith.subf %139, %140 : vector<64x128xf32>
    %142 = arith.mulf %141, %141 : vector<64x128xf32>
    %c0_126 = arith.constant 0 : index
    %c0_127 = arith.constant 0 : index
    %143 = vector.load %arg3[%c0_126, %c0_127] : memref<128x128xf32, #tpu.memory_space<vmem>>, vector<128x128xf32>
    %cst_128 = arith.constant dense<0.000000e+00> : vector<64x128xf32>
    %144 = tpu.matmul %142, %143, %cst_128 {dimension_numbers = #tpu.dot_dimension_numbers<[1], [0], [0], [1], [0, 0, 1, 1], [], []>} : vector<64x128xf32>, vector<128x128xf32>, vector<64x128xf32> -> vector<64x128xf32>
    %cst_129 = arith.constant dense<0.000000e+00> : vector<128xf32>
    %145 = vector.multi_reduction <add>, %144, %cst_129 [0] : vector<64x128xf32> to vector<128xf32>
    %146 = vector.shape_cast %145 : vector<128xf32> to vector<1x128xf32>
    %147 = arith.addf %138, %146 : vector<1x128xf32>
    %cst_130 = arith.constant 0.000000e+00 : f32
    %148 = vector.broadcast %cst_130 : f32 to vector<1x128xf32>
    %149 = arith.mulf %148, %74 : vector<1x128xf32>
    %150 = arith.mulf %149, %74 : vector<1x128xf32>
    %151 = arith.subf %147, %150 : vector<1x128xf32>
    %cst_131 = arith.constant 4.8828125E-4 : f32
    %152 = vector.broadcast %cst_131 : f32 to vector<1x128xf32>
    %153 = arith.mulf %151, %152 : vector<1x128xf32>
    %cst_132 = arith.constant 0.000000e+00 : f32
    %154 = vector.broadcast %cst_132 : f32 to vector<1x128xf32>
    %155 = arith.maximumf %153, %154 : vector<1x128xf32>
    %c0_133 = arith.constant 0 : index
    %c0_134 = arith.constant 0 : index
    %156 = vector.load %arg4[%c0_133, %c0_134] : memref<1x128xf32, #tpu.memory_space<vmem>>, vector<1x128xf32>
    %cst_135 = arith.constant 9.99999974E-6 : f32
    %157 = vector.broadcast %cst_135 : f32 to vector<1x128xf32>
    %158 = arith.addf %155, %157 : vector<1x128xf32>
    %159 = math.rsqrt %158 : vector<1x128xf32>
    %160 = arith.mulf %156, %159 : vector<1x128xf32>
    %c0_136 = arith.constant 0 : index
    %c0_137 = arith.constant 0 : index
    %161 = vector.load %arg5[%c0_136, %c0_137] : memref<1x128xf32, #tpu.memory_space<vmem>>, vector<1x128xf32>
    %162 = arith.mulf %74, %160 : vector<1x128xf32>
    %163 = arith.subf %161, %162 : vector<1x128xf32>
    %c0_138 = arith.constant 0 : index
    %c0_139 = arith.constant 0 : index
    %164 = vector.load %arg7[%c0_138, %c0_139] : memref<512x128xf32, #tpu.memory_space<vmem>>, vector<64x128xf32>
    %165 = vector.broadcast %160 : vector<1x128xf32> to vector<64x128xf32>
    %166 = arith.mulf %164, %165 : vector<64x128xf32>
    %167 = vector.broadcast %163 : vector<1x128xf32> to vector<64x128xf32>
    %168 = arith.addf %166, %167 : vector<64x128xf32>
    %cst_140 = arith.constant 0.000000e+00 : f32
    %169 = vector.broadcast %cst_140 : f32 to vector<64x128xf32>
    %170 = arith.maximumf %168, %169 : vector<64x128xf32>
    %171 = arith.truncf %170 : vector<64x128xf32> to vector<64x128xbf16>
    %c0_141 = arith.constant 0 : index
    %c0_142 = arith.constant 0 : index
    %172 = vector.load %arg6[%c0_141, %c0_142] : memref<512x128xbf16, #tpu.memory_space<vmem>>, vector<64x128xbf16>
    tpu.vector_store %arg6[%c0_141, %c0_142], %171 {strides = array<i32>} : memref<512x128xbf16, #tpu.memory_space<vmem>>, vector<64x128xbf16>,
    %c64_143 = arith.constant 64 : index
    %c0_144 = arith.constant 0 : index
    %173 = vector.load %arg7[%c64_143, %c0_144] : memref<512x128xf32, #tpu.memory_space<vmem>>, vector<64x128xf32>
    %174 = vector.broadcast %160 : vector<1x128xf32> to vector<64x128xf32>
    %175 = arith.mulf %173, %174 : vector<64x128xf32>
    %176 = vector.broadcast %163 : vector<1x128xf32> to vector<64x128xf32>
    %177 = arith.addf %175, %176 : vector<64x128xf32>
    %cst_145 = arith.constant 0.000000e+00 : f32
    %178 = vector.broadcast %cst_145 : f32 to vector<64x128xf32>
    %179 = arith.maximumf %177, %178 : vector<64x128xf32>
    %180 = arith.truncf %179 : vector<64x128xf32> to vector<64x128xbf16>
    %c64_146 = arith.constant 64 : index
    %c0_147 = arith.constant 0 : index
    %181 = vector.load %arg6[%c64_146, %c0_147] : memref<512x128xbf16, #tpu.memory_space<vmem>>, vector<64x128xbf16>
    tpu.vector_store %arg6[%c64_146, %c0_147], %180 {strides = array<i32>} : memref<512x128xbf16, #tpu.memory_space<vmem>>, vector<64x128xbf16>,
    %c128_148 = arith.constant 128 : index
    %c0_149 = arith.constant 0 : index
    %182 = vector.load %arg7[%c128_148, %c0_149] : memref<512x128xf32, #tpu.memory_space<vmem>>, vector<64x128xf32>
    %183 = vector.broadcast %160 : vector<1x128xf32> to vector<64x128xf32>
    %184 = arith.mulf %182, %183 : vector<64x128xf32>
    %185 = vector.broadcast %163 : vector<1x128xf32> to vector<64x128xf32>
    %186 = arith.addf %184, %185 : vector<64x128xf32>
    %cst_150 = arith.constant 0.000000e+00 : f32
    %187 = vector.broadcast %cst_150 : f32 to vector<64x128xf32>
    %188 = arith.maximumf %186, %187 : vector<64x128xf32>
    %189 = arith.truncf %188 : vector<64x128xf32> to vector<64x128xbf16>
    %c128_151 = arith.constant 128 : index
    %c0_152 = arith.constant 0 : index
    %190 = vector.load %arg6[%c128_151, %c0_152] : memref<512x128xbf16, #tpu.memory_space<vmem>>, vector<64x128xbf16>
    tpu.vector_store %arg6[%c128_151, %c0_152], %189 {strides = array<i32>} : memref<512x128xbf16, #tpu.memory_space<vmem>>, vector<64x128xbf16>,
    %c192_153 = arith.constant 192 : index
    %c0_154 = arith.constant 0 : index
    %191 = vector.load %arg7[%c192_153, %c0_154] : memref<512x128xf32, #tpu.memory_space<vmem>>, vector<64x128xf32>
    %192 = vector.broadcast %160 : vector<1x128xf32> to vector<64x128xf32>
    %193 = arith.mulf %191, %192 : vector<64x128xf32>
    %194 = vector.broadcast %163 : vector<1x128xf32> to vector<64x128xf32>
    %195 = arith.addf %193, %194 : vector<64x128xf32>
    %cst_155 = arith.constant 0.000000e+00 : f32
    %196 = vector.broadcast %cst_155 : f32 to vector<64x128xf32>
    %197 = arith.maximumf %195, %196 : vector<64x128xf32>
    %198 = arith.truncf %197 : vector<64x128xf32> to vector<64x128xbf16>
    %c192_156 = arith.constant 192 : index
    %c0_157 = arith.constant 0 : index
    %199 = vector.load %arg6[%c192_156, %c0_157] : memref<512x128xbf16, #tpu.memory_space<vmem>>, vector<64x128xbf16>
    tpu.vector_store %arg6[%c192_156, %c0_157], %198 {strides = array<i32>} : memref<512x128xbf16, #tpu.memory_space<vmem>>, vector<64x128xbf16>,
    %c256_158 = arith.constant 256 : index
    %c0_159 = arith.constant 0 : index
    %200 = vector.load %arg7[%c256_158, %c0_159] : memref<512x128xf32, #tpu.memory_space<vmem>>, vector<64x128xf32>
    %201 = vector.broadcast %160 : vector<1x128xf32> to vector<64x128xf32>
    %202 = arith.mulf %200, %201 : vector<64x128xf32>
    %203 = vector.broadcast %163 : vector<1x128xf32> to vector<64x128xf32>
    %204 = arith.addf %202, %203 : vector<64x128xf32>
    %cst_160 = arith.constant 0.000000e+00 : f32
    %205 = vector.broadcast %cst_160 : f32 to vector<64x128xf32>
    %206 = arith.maximumf %204, %205 : vector<64x128xf32>
    %207 = arith.truncf %206 : vector<64x128xf32> to vector<64x128xbf16>
    %c256_161 = arith.constant 256 : index
    %c0_162 = arith.constant 0 : index
    %208 = vector.load %arg6[%c256_161, %c0_162] : memref<512x128xbf16, #tpu.memory_space<vmem>>, vector<64x128xbf16>
    tpu.vector_store %arg6[%c256_161, %c0_162], %207 {strides = array<i32>} : memref<512x128xbf16, #tpu.memory_space<vmem>>, vector<64x128xbf16>,
    %c320_163 = arith.constant 320 : index
    %c0_164 = arith.constant 0 : index
    %209 = vector.load %arg7[%c320_163, %c0_164] : memref<512x128xf32, #tpu.memory_space<vmem>>, vector<64x128xf32>
    %210 = vector.broadcast %160 : vector<1x128xf32> to vector<64x128xf32>
    %211 = arith.mulf %209, %210 : vector<64x128xf32>
    %212 = vector.broadcast %163 : vector<1x128xf32> to vector<64x128xf32>
    %213 = arith.addf %211, %212 : vector<64x128xf32>
    %cst_165 = arith.constant 0.000000e+00 : f32
    %214 = vector.broadcast %cst_165 : f32 to vector<64x128xf32>
    %215 = arith.maximumf %213, %214 : vector<64x128xf32>
    %216 = arith.truncf %215 : vector<64x128xf32> to vector<64x128xbf16>
    %c320_166 = arith.constant 320 : index
    %c0_167 = arith.constant 0 : index
    %217 = vector.load %arg6[%c320_166, %c0_167] : memref<512x128xbf16, #tpu.memory_space<vmem>>, vector<64x128xbf16>
    tpu.vector_store %arg6[%c320_166, %c0_167], %216 {strides = array<i32>} : memref<512x128xbf16, #tpu.memory_space<vmem>>, vector<64x128xbf16>,
    %c384_168 = arith.constant 384 : index
    %c0_169 = arith.constant 0 : index
    %218 = vector.load %arg7[%c384_168, %c0_169] : memref<512x128xf32, #tpu.memory_space<vmem>>, vector<64x128xf32>
    %219 = vector.broadcast %160 : vector<1x128xf32> to vector<64x128xf32>
    %220 = arith.mulf %218, %219 : vector<64x128xf32>
    %221 = vector.broadcast %163 : vector<1x128xf32> to vector<64x128xf32>
    %222 = arith.addf %220, %221 : vector<64x128xf32>
    %cst_170 = arith.constant 0.000000e+00 : f32
    %223 = vector.broadcast %cst_170 : f32 to vector<64x128xf32>
    %224 = arith.maximumf %222, %223 : vector<64x128xf32>
    %225 = arith.truncf %224 : vector<64x128xf32> to vector<64x128xbf16>
    %c384_171 = arith.constant 384 : index
    %c0_172 = arith.constant 0 : index
    %226 = vector.load %arg6[%c384_171, %c0_172] : memref<512x128xbf16, #tpu.memory_space<vmem>>, vector<64x128xbf16>
    tpu.vector_store %arg6[%c384_171, %c0_172], %225 {strides = array<i32>} : memref<512x128xbf16, #tpu.memory_space<vmem>>, vector<64x128xbf16>,
    %c448_173 = arith.constant 448 : index
    %c0_174 = arith.constant 0 : index
    %227 = vector.load %arg7[%c448_173, %c0_174] : memref<512x128xf32, #tpu.memory_space<vmem>>, vector<64x128xf32>
    %228 = vector.broadcast %160 : vector<1x128xf32> to vector<64x128xf32>
    %229 = arith.mulf %227, %228 : vector<64x128xf32>
    %230 = vector.broadcast %163 : vector<1x128xf32> to vector<64x128xf32>
    %231 = arith.addf %229, %230 : vector<64x128xf32>
    %cst_175 = arith.constant 0.000000e+00 : f32
    %232 = vector.broadcast %cst_175 : f32 to vector<64x128xf32>
    %233 = arith.maximumf %231, %232 : vector<64x128xf32>
    %234 = arith.truncf %233 : vector<64x128xf32> to vector<64x128xbf16>
    %c448_176 = arith.constant 448 : index
    %c0_177 = arith.constant 0 : index
    %235 = vector.load %arg6[%c448_176, %c0_177] : memref<512x128xbf16, #tpu.memory_space<vmem>>, vector<64x128xbf16>
    tpu.vector_store %arg6[%c448_176, %c0_177], %234 {strides = array<i32>} : memref<512x128xbf16, #tpu.memory_space<vmem>>, vector<64x128xbf16>,
    return
  }
  func.func @transform_0(%arg0: i32) -> (i32, i32) {
    %c0_i32 = arith.constant 0 : i32
    %c0_i32_0 = arith.constant 0 : i32
    %c0_i32_1 = arith.constant 0 : i32
    return %c0_i32, %c0_i32_0 : i32, i32
  }
  func.func @transform_1(%arg0: i32) -> (i32, i32) {
    %c0_i32 = arith.constant 0 : i32
    %c0_i32_0 = arith.constant 0 : i32
    %c0_i32_1 = arith.constant 0 : i32
    return %c0_i32, %c0_i32_0 : i32, i32
  }
  func.func @transform_2(%arg0: i32) -> (i32, i32) {
    %c0_i32 = arith.constant 0 : i32
    %c0_i32_0 = arith.constant 0 : i32
    %c0_i32_1 = arith.constant 0 : i32
    return %c0_i32, %c0_i32_0 : i32, i32
  }
  func.func @transform_3(%arg0: i32) -> (i32, i32) {
    %c0_i32 = arith.constant 0 : i32
    %c0_i32_0 = arith.constant 0 : i32
    %c0_i32_1 = arith.constant 0 : i32
    return %c0_i32, %c0_i32_0 : i32, i32
  }
  func.func @transform_4(%arg0: i32) -> (i32, i32) {
    %c0_i32 = arith.constant 0 : i32
    %c0_i32_0 = arith.constant 0 : i32
    %c0_i32_1 = arith.constant 0 : i32
    return %c0_i32, %c0_i32_0 : i32, i32
  }
  func.func @transform_5(%arg0: i32) -> (i32, i32) {
    %c0_i32 = arith.constant 0 : i32
    %c0_i32_0 = arith.constant 0 : i32
    %c0_i32_1 = arith.constant 0 : i32
    return %c0_i32, %c0_i32_0 : i32, i32
  }
}

module attributes {stable_mosaic.version = 11 : i64} {
  func.func @_gemm_act_kernel(%arg0: i32, %arg1: memref<1024x128xbf16, #tpu.memory_space<vmem>>, %arg2: memref<128x128xbf16, #tpu.memory_space<vmem>>, %arg3: memref<1024x128xf32, #tpu.memory_space<vmem>>) attributes {dimension_semantics = [#tpu.dimension_semantics<parallel>], iteration_bounds = array<i64: 2>, scalar_prefetch = 0 : i64, scratch_operands = 0 : i64, tpu.core_type = #tpu.core_type<tc>, window_params = [{transform_indices = @transform_0, window_bounds = array<i64: 1024, 128>}, {pipeline_mode = #tpu.pipeline_mode<synchronous>, transform_indices = @transform_1, window_bounds = array<i64: 128, 128>}, {transform_indices = @transform_2, window_bounds = array<i64: 1024, 128>}]} {
    %c0 = arith.constant 0 : index
    %c0_0 = arith.constant 0 : index
    %0 = vector.load %arg1[%c0, %c0_0] : memref<1024x128xbf16, #tpu.memory_space<vmem>>, vector<256x128xbf16>
    %c0_1 = arith.constant 0 : index
    %c0_2 = arith.constant 0 : index
    %1 = vector.load %arg2[%c0_1, %c0_2] : memref<128x128xbf16, #tpu.memory_space<vmem>>, vector<128x128xbf16>
    %cst = arith.constant dense<0.000000e+00> : vector<256x128xf32>
    %2 = tpu.matmul %0, %1, %cst {dimension_numbers = #tpu.dot_dimension_numbers<[1], [0], [0], [1], [0, 0, 1, 1], [], []>} : vector<256x128xbf16>, vector<128x128xbf16>, vector<256x128xf32> -> vector<256x128xf32>
    %3 = math.tanh %2 : vector<256x128xf32>
    %c0_3 = arith.constant 0 : index
    %c0_4 = arith.constant 0 : index
    %4 = vector.load %arg3[%c0_3, %c0_4] : memref<1024x128xf32, #tpu.memory_space<vmem>>, vector<256x128xf32>
    tpu.vector_store %arg3[%c0_3, %c0_4], %3 {strides = array<i32>} : memref<1024x128xf32, #tpu.memory_space<vmem>>, vector<256x128xf32>,
    %c256 = arith.constant 256 : index
    %c0_5 = arith.constant 0 : index
    %5 = vector.load %arg1[%c256, %c0_5] : memref<1024x128xbf16, #tpu.memory_space<vmem>>, vector<256x128xbf16>
    %c0_6 = arith.constant 0 : index
    %c0_7 = arith.constant 0 : index
    %6 = vector.load %arg2[%c0_6, %c0_7] : memref<128x128xbf16, #tpu.memory_space<vmem>>, vector<128x128xbf16>
    %cst_8 = arith.constant dense<0.000000e+00> : vector<256x128xf32>
    %7 = tpu.matmul %5, %6, %cst_8 {dimension_numbers = #tpu.dot_dimension_numbers<[1], [0], [0], [1], [0, 0, 1, 1], [], []>} : vector<256x128xbf16>, vector<128x128xbf16>, vector<256x128xf32> -> vector<256x128xf32>
    %8 = math.tanh %7 : vector<256x128xf32>
    %c256_9 = arith.constant 256 : index
    %c0_10 = arith.constant 0 : index
    %9 = vector.load %arg3[%c256_9, %c0_10] : memref<1024x128xf32, #tpu.memory_space<vmem>>, vector<256x128xf32>
    tpu.vector_store %arg3[%c256_9, %c0_10], %8 {strides = array<i32>} : memref<1024x128xf32, #tpu.memory_space<vmem>>, vector<256x128xf32>,
    %c512 = arith.constant 512 : index
    %c0_11 = arith.constant 0 : index
    %10 = vector.load %arg1[%c512, %c0_11] : memref<1024x128xbf16, #tpu.memory_space<vmem>>, vector<256x128xbf16>
    %c0_12 = arith.constant 0 : index
    %c0_13 = arith.constant 0 : index
    %11 = vector.load %arg2[%c0_12, %c0_13] : memref<128x128xbf16, #tpu.memory_space<vmem>>, vector<128x128xbf16>
    %cst_14 = arith.constant dense<0.000000e+00> : vector<256x128xf32>
    %12 = tpu.matmul %10, %11, %cst_14 {dimension_numbers = #tpu.dot_dimension_numbers<[1], [0], [0], [1], [0, 0, 1, 1], [], []>} : vector<256x128xbf16>, vector<128x128xbf16>, vector<256x128xf32> -> vector<256x128xf32>
    %13 = math.tanh %12 : vector<256x128xf32>
    %c512_15 = arith.constant 512 : index
    %c0_16 = arith.constant 0 : index
    %14 = vector.load %arg3[%c512_15, %c0_16] : memref<1024x128xf32, #tpu.memory_space<vmem>>, vector<256x128xf32>
    tpu.vector_store %arg3[%c512_15, %c0_16], %13 {strides = array<i32>} : memref<1024x128xf32, #tpu.memory_space<vmem>>, vector<256x128xf32>,
    %c768 = arith.constant 768 : index
    %c0_17 = arith.constant 0 : index
    %15 = vector.load %arg1[%c768, %c0_17] : memref<1024x128xbf16, #tpu.memory_space<vmem>>, vector<256x128xbf16>
    %c0_18 = arith.constant 0 : index
    %c0_19 = arith.constant 0 : index
    %16 = vector.load %arg2[%c0_18, %c0_19] : memref<128x128xbf16, #tpu.memory_space<vmem>>, vector<128x128xbf16>
    %cst_20 = arith.constant dense<0.000000e+00> : vector<256x128xf32>
    %17 = tpu.matmul %15, %16, %cst_20 {dimension_numbers = #tpu.dot_dimension_numbers<[1], [0], [0], [1], [0, 0, 1, 1], [], []>} : vector<256x128xbf16>, vector<128x128xbf16>, vector<256x128xf32> -> vector<256x128xf32>
    %18 = math.tanh %17 : vector<256x128xf32>
    %c768_21 = arith.constant 768 : index
    %c0_22 = arith.constant 0 : index
    %19 = vector.load %arg3[%c768_21, %c0_22] : memref<1024x128xf32, #tpu.memory_space<vmem>>, vector<256x128xf32>
    tpu.vector_store %arg3[%c768_21, %c0_22], %18 {strides = array<i32>} : memref<1024x128xf32, #tpu.memory_space<vmem>>, vector<256x128xf32>,
    return
  }
  func.func @transform_0(%arg0: i32) -> (i32, i32) {
    %c0_i32 = arith.constant 0 : i32
    %c0_i32_0 = arith.constant 0 : i32
    return %arg0, %c0_i32 : i32, i32
  }
  func.func @transform_1(%arg0: i32) -> (i32, i32) {
    %c0_i32 = arith.constant 0 : i32
    %c0_i32_0 = arith.constant 0 : i32
    %c0_i32_1 = arith.constant 0 : i32
    return %c0_i32, %c0_i32_0 : i32, i32
  }
  func.func @transform_2(%arg0: i32) -> (i32, i32) {
    %c0_i32 = arith.constant 0 : i32
    %c0_i32_0 = arith.constant 0 : i32
    return %arg0, %c0_i32 : i32, i32
  }
}

</mosaic_0001>

<bundles_post_ra>
// kernel: netg_forward.5
= control target key start
LH: loop header
LB: loop body
LE: loop exit
PB: predicated region body
PF: predicated region fallthrough
CT: control target
= control target key end

     0   :  { %10 = vsyncpa [#allocation4], 0  ;;  %s757_s0 = inlined_call_operand.vmem [shape: bf16[32,256], index: 0, kind: input, shape index: {}]   ;;  %s758_s1 = inlined_call_operand.hbm [shape: bf16[256,128], index: 1, kind: input, shape index: {}]   ;;  %s759_s2 = inlined_call_operand.hbm [shape: f32[128,128], index: 2, kind: input, shape index: {}]   ;;  %s760_s3 = inlined_call_operand.hbm [shape: f32[1,128], index: 3, kind: input, shape index: {}]   ;;  %s761_s4 = inlined_call_operand.hbm [shape: f32[1,128], index: 4, kind: input, shape index: {}]   ;;  %s762_s5 = inlined_call_operand.vmem [shape: bf16[32,128], index: 5, kind: output, shape index: {}]  }
   0x1   :  { %11 = vsyncpa [#allocation6], 0  ;;  %s32_s20 = sshll.u32 %s759_s2, 4  ;;  %s33_s20 = int_to_ptr.hbm [resolvable:$true] %s32_s20 }
   0x2   :  { %12 = vsyncpa [#allocation9], 0  ;;  %s657_s21 = smov [#allocation5]   ;;  %s19_s25 = sshll.u32 %s758_s1, 4  ;;  %s20_s25 = int_to_ptr.hbm [resolvable:$true] %s19_s25 }
   0x3   :  { %s34_s22 = sshll.u32 %s657_s21, 4  ;;  %s658_s26 = smov 128   ;;  %s35_s22 = int_to_ptr.vmem [resolvable:$true] %s34_s22 }
   0x4   :  { %s659_s27 = smov 8   ;;  %s660_s28 = smov [#allocation3]  }
   0x5   :  { %40 = dma.hbm_to_vmem [thread:$0]  %s33_s20, 2048, %s35_s22, [#allocation6], %s658_s26, %s658_s26, %s659_s27  }
   0x6   :  { %s21_s29 = sshll.u32 %s660_s28, 4  ;;  %s661_s30 = smov 64   ;;  %s22_s29 = int_to_ptr.vmem [resolvable:$true] %s21_s29 }
   0x7   :  { %s662_s6 = smov 4   ;;  %s46_s8 = sshll.u32 %s760_s3, 4  ;;  %s47_s8 = int_to_ptr.hbm [resolvable:$true] %s46_s8 }
   0x8   :  { %27 = dma.hbm_to_vmem [thread:$0]  %s20_s25, 2048, %s22_s29, [#allocation4], %s661_s30, %s661_s30, %s662_s6  }
   0x9   :  { %s663_s9 = smov [#allocation7]   ;;  %s57_s12 = sshll.u32 %s761_s4, 4  ;;  %s58_s12 = int_to_ptr.hbm [resolvable:$true] %s57_s12 }
   0xa   :  { %s48_s10 = sshll.u32 %s663_s9, 4  ;;  %s664_s13 = smov [#allocation8]   ;;  %s49_s10 = int_to_ptr.vmem [resolvable:$true] %s48_s10 }
   0xb   :  { %51 = dma.hbm_to_vmem [thread:$0]  %s47_s8, 16, %s49_s10, [#allocation6]  }
   0xc   :  { %s59_s14 = sshll.u32 %s664_s13, 4  ;;  %s60_s14 = int_to_ptr.vmem [resolvable:$true] %s59_s14 }
   0xd   :  { %62 = dma.hbm_to_vmem [thread:$0]  %s58_s12, 16, %s60_s14, [#allocation9]  }
   0xe   :  { %651 = dma.done.wait [#allocation4], 2048  }
   0xf   :  { %652 = vsyncadd [#allocation4], 4294965248 }
  0x10   :  { %653 = dma.done.wait [#allocation6], 2064  }
  0x11   :  { %654 = vsyncadd [#allocation6], 4294965232 }
  0x12   :  { %655 = dma.done.wait [#allocation9], 16  }
  0x13   :  { %656 = vsyncadd [#allocation9], 4294967280  ;;  %v525_v0 = vld [vmem:[#allocation3 + $0x38] sm:$0xff]  ;;  %v524_v2 = vld [vmem:[#allocation3 + $0x30] sm:$0xff] }
  0x14   :  { %v533_v1 = vld [vmem:[#allocation3 + $0x78] sm:$0xff]  ;;  %231 = vmatpush.bf16.msra.mxu0 %v525_v0  ;;  %v532_v3 = vld [vmem:[#allocation3 + $0x70] sm:$0xff]  ;;  %v523_v4 = vld [vmem:[#allocation3 + $0x28] sm:$0xff] }
  0x15   :  { %250 = vmatpush.bf16.msra.mxu1 %v533_v1  ;;  %v531_v5 = vld [vmem:[#allocation3 + $0x68] sm:$0xff]  ;;  %v522_v6 = vld [vmem:[#allocation3 + $0x20] sm:$0xff]  ;;  %v521_v8 = vld [vmem:[#allocation3 + $0x18] sm:$0xff] }
  0x16   :  { %v530_v7 = vld [vmem:[#allocation3 + $0x60] sm:$0xff]  ;;  %v529_v9 = vld [vmem:[#allocation3 + $0x58] sm:$0xff]  ;;  %v520_v11 = vld [vmem:[#allocation3 + $0x10] sm:$0xff] }
  0x17   :  { %v288_v10 = vld [vmem:[#allocation5 + $0x78] sm:$0xff]  ;;  %v528_v12 = vld [vmem:[#allocation3 + $0x50] sm:$0xff]  ;;  %v286_v14 = vld [vmem:[#allocation5 + $0x68] sm:$0xff] }
  0x18   :  { %232 = vmatpush.bf16.msra.mxu0 %v524_v2  ;;  %v287_v13 = vld [vmem:[#allocation5 + $0x70] sm:$0xff]  ;;  %289 = vmatpush.msra.mxu2 %v288_v10  ;;  %v519_v15 = vld [vmem:[#allocation3 + $0x8] sm:$0xff]  ;;  %v285_v17 = vld [vmem:[#allocation5 + $0x60] sm:$0xff] }
  0x19   :  { %251 = vmatpush.bf16.msra.mxu1 %v532_v3  ;;  %341 = vmatpush.msra.mxu3 %v288_v10  ;;  %v527_v16 = vld [vmem:[#allocation3 + $0x48] sm:$0xff]  ;;  %v518_v18 = vld [vmem:[#allocation3] sm:$0xff]  ;;  %v284_v19 = vld [vmem:[#allocation5 + $0x58] sm:$0xff] }
  0x1a   :  { %290 = vmatpush.msra.mxu2 %v287_v13  ;;  %v526_v20 = vld [vmem:[#allocation3 + $0x40] sm:$0xff]  ;;  %v515_v22 = vld [vmem:[%s757_s0 + $0x4] sm:$0xf0]  ;;  %v438_v24 = vld [vmem:[%s757_s0 + $0x8] sm:$0xf0] }
  0x1b   :  { %342 = vmatpush.msra.mxu3 %v287_v13  ;;  %v436_v21 = vld [vmem:[%s757_s0] sm:$0xf]  ;;  %v514_v23 = vld [vmem:[%s757_s0 + $0x4] sm:$0xf]  ;;  %v283_v25 = vld [vmem:[#allocation5 + $0x50] sm:$0xff] }
  0x1c   :  { %233 = vmatpush.bf16.msra.mxu0 %v523_v4  ;;  %291 = vmatpush.msra.mxu2 %v286_v14  ;;  %v282_v26 = vld [vmem:[#allocation5 + $0x48] sm:$0xff]  ;;  %v437_v27 = vor.u32 %v515_v22, %v436_v21  ;;  %v441_v28 = vor.u32 %v514_v23, %v438_v24  ;;  %v281_v29 = vld [vmem:[#allocation5 + $0x40] sm:$0xff]  ;;  %v280_v30 = vld [vmem:[#allocation5 + $0x38] sm:$0xff] }
  0x1d   :  { %252 = vmatpush.bf16.msra.mxu1 %v531_v5  ;;  %343 = vmatpush.msra.mxu3 %v286_v14  ;;  %v279_v31 = vld [vmem:[#allocation5 + $0x30] sm:$0xff]  ;;  %v278_v32 = vld [vmem:[#allocation5 + $0x28] sm:$0xff]  ;;  %v277_v33 = vld [vmem:[#allocation5 + $0x20] sm:$0xff] }
  0x1e   :  { %292 = vmatpush.msra.mxu2 %v285_v17  ;;  %v444_v34 = vld [vmem:[%s757_s0 + $0x10] sm:$0xf]  ;;  %v276_v35 = vld [vmem:[#allocation5 + $0x18] sm:$0xff]  ;;  %v516_v37 = vld [vmem:[%s757_s0 + $0x14] sm:$0xf] }
  0x1f   :  { %344 = vmatpush.msra.mxu3 %v285_v17  ;;  %v517_v36 = vld [vmem:[%s757_s0 + $0x14] sm:$0xf0]  ;;  %v446_v38 = vld [vmem:[%s757_s0 + $0x18] sm:$0xf0]  ;;  %v275_v39 = vld [vmem:[#allocation5 + $0x10] sm:$0xff] }
  0x20   :  { %234 = vmatpush.bf16.msra.mxu0 %v522_v6  ;;  %293 = vmatpush.msra.mxu2 %v284_v19  ;;  %v445_v40 = vor.u32 %v517_v36, %v444_v34  ;;  %v449_v41 = vor.u32 %v516_v37, %v446_v38  ;;  %v274_v42 = vld [vmem:[#allocation5 + $0x8] sm:$0xff]  ;;  %v273_v43 = vld [vmem:[#allocation5] sm:$0xff] }
  0x21   :  { %253 = vmatpush.bf16.msra.mxu1 %v530_v7  ;;  %345 = vmatpush.msra.mxu3 %v284_v19  ;;  %v385_v38 = vld [vmem:[#allocation7] sm:$0x1] }
  0x22   :  { %294 = vmatpush.msra.mxu2 %v283_v25 }
  0x23   :  { %346 = vmatpush.msra.mxu3 %v283_v25 }
  0x24   :  { %235 = vmatpush.bf16.msra.mxu0 %v521_v8  ;;  %295 = vmatpush.msra.mxu2 %v282_v26 }
  0x25   :  { %254 = vmatpush.bf16.msra.mxu1 %v529_v9  ;;  %347 = vmatpush.msra.mxu3 %v282_v26 }
  0x26   :  { %296 = vmatpush.msra.mxu2 %v281_v29 }
  0x27   :  { %348 = vmatpush.msra.mxu3 %v281_v29 }
  0x28   :  { %236 = vmatpush.bf16.msra.mxu0 %v520_v11  ;;  %297 = vmatpush.msra.mxu2 %v280_v30 }
  0x29   :  { %255 = vmatpush.bf16.msra.mxu1 %v528_v12  ;;  %349 = vmatpush.msra.mxu3 %v280_v30 }
  0x2a   :  { %298 = vmatpush.msra.mxu2 %v279_v31 }
  0x2b   :  { %350 = vmatpush.msra.mxu3 %v279_v31 }
  0x2c   :  { %237 = vmatpush.bf16.msra.mxu0 %v519_v15  ;;  %299 = vmatpush.msra.mxu2 %v278_v32 }
  0x2d   :  { %256 = vmatpush.bf16.msra.mxu1 %v527_v16  ;;  %351 = vmatpush.msra.mxu3 %v278_v32 }
  0x2e   :  { %300 = vmatpush.msra.mxu2 %v277_v33 }
  0x2f   :  { %352 = vmatpush.msra.mxu3 %v277_v33 }
  0x30   :  { %238 = vmatpush.bf16.msra.mxu0 %v518_v18  ;;  %301 = vmatpush.msra.mxu2 %v276_v35 }
  0x31   :  { %257 = vmatpush.bf16.msra.mxu1 %v526_v20  ;;  %353 = vmatpush.msra.mxu3 %v276_v35 }
  0x32   :  { %302 = vmatpush.msra.mxu2 %v275_v39 }
  0x33   :  { %239 = vmatmul.bf16.vlgmr.msra.gmra.mxu0 %v437_v27  ;;  %354 = vmatpush.msra.mxu3 %v275_v39 }
  0x34   :  { %258 = vmatmul.bf16.vlgmr.msra.gmra.mxu1 %v441_v28  ;;  %303 = vmatpush.msra.mxu2 %v274_v42 }
  0x35   :  { %355 = vmatpush.msra.mxu3 %v274_v42  ;;  %v398_v42 = vld [vmem:[#allocation8] sm:$0x1] }
  0x36   :  { %304 = vmatpush.msra.mxu2 %v273_v43 }
  0x37   :  { %356 = vmatpush.msra.mxu3 %v273_v43 }
  0x43   :  { %244 = vmatmul.bf16.gmra.mxu0 %v445_v40 }
  0x44   :  { %263 = vmatmul.bf16.gmra.mxu1 %v449_v41 }
  0xb0   :  { %v240_v44 = vpop.f32.mrf.mxu0 }
  0xb1   :  { %v259_v45 = vpop.f32.mrf.mxu1 }
  0xb2   :  { %v731_v46 = vadd.f32 %v259_v45, %v240_v44 }
  0xb4   :  { %305 = vmatmul.f32.vlgmr.msra.gmra.mxu2 %v731_v46 }
  0xb8   :  { %v242_v47 = vpop.f32.mrf.mxu0 }
  0xb9   :  { %v261_v48 = vpop.f32.mrf.mxu1 }
  0xba   :  { %v734_v49 = vadd.f32 %v261_v48, %v242_v47 }
  0xbc   :  { %308 = vmatmul.f32.gmra.mxu2 %v734_v49 }
  0xc0   :  { %v245_v50 = vpop.f32.mrf.mxu0 }
  0xc1   :  { %v264_v51 = vpop.f32.mrf.mxu1 }
  0xc2   :  { %v737_v52 = vadd.f32 %v264_v51, %v245_v50 }
  0xc4   :  { %311 = vmatmul.f32.gmra.mxu2 %v737_v52 }
  0xc8   :  { %v247_v53 = vpop.f32.mrf.mxu0 }
  0xc9   :  { %v266_v54 = vpop.f32.mrf.mxu1 }
  0xca   :  { %v740_v55 = vadd.f32 %v266_v54, %v247_v53 }
  0xcc   :  { %314 = vmatmul.f32.gmra.mxu2 %v740_v55 }
 0x137   :  { %v306_v56 = vpop.f32.mrf.mxu2 }
 0x13f   :  { %v309_v57 = vpop.f32.mrf.mxu2 }
 0x140   :  { %v318_v59 = vadd.f32 %v309_v57, %v306_v56 }
 0x147   :  { %v312_v58 = vpop.f32.mrf.mxu2 }
 0x148   :  { %v319_v60 = vadd.f32 %v318_v59, %v312_v58 }
 0x14f   :  { %v315_v61 = vpop.f32.mrf.mxu2 }
 0x150   :  { %v320_v62 = vadd.f32 %v319_v60, %v315_v61 }
 0x152   :  { %v321_v63 = vrot.slane %v320_v62, 4 }
 0x154   :  { %v322_v0 = vadd.f32 %v321_v63, %v320_v62 }
 0x156   :  { %v323_v1 = vrot.slane %v322_v0, 2 }
 0x158   :  { %v324_v2 = vadd.f32 %v323_v1, %v322_v0 }
 0x15a   :  { %v325_v3 = vrot.slane %v324_v2, 1 }
 0x15c   :  { %v326_v4 = vadd.f32 %v325_v3, %v324_v2 }
 0x15e   :  { %v328_v5 = vmul.f32 0.03125, %v326_v4 }
 0x160   :  { %v333_v6 = vsub.f32 %v731_v46, %v328_v5  ;;  %v334_v8 = vsub.f32 %v734_v49, %v328_v5  ;;  %v335_v10 = vsub.f32 %v737_v52, %v328_v5  ;;  %v336_v12 = vsub.f32 %v740_v55, %v328_v5 }
 0x161   :  { %v380_v25 = vmul.f32 0.0, %v328_v5 }
 0x162   :  { %v337_v7 = vmul.f32 %v333_v6, %v333_v6  ;;  %v338_v9 = vmul.f32 %v334_v8, %v334_v8  ;;  %v339_v11 = vmul.f32 %v335_v10, %v335_v10  ;;  %v340_v13 = vmul.f32 %v336_v12, %v336_v12 }
 0x163   :  { %v381_v28 = vmul.f32 %v380_v25, %v328_v5 }
 0x164   :  { %357 = vmatmul.f32.vlgmr.msra.gmra.mxu3 %v337_v7 }
 0x16c   :  { %360 = vmatmul.f32.gmra.mxu3 %v338_v9 }
 0x174   :  { %363 = vmatmul.f32.gmra.mxu3 %v339_v11 }
 0x17c   :  { %366 = vmatmul.f32.gmra.mxu3 %v340_v13 }
 0x1e7   :  { %v358_v14 = vpop.f32.mrf.mxu3 }
 0x1ef   :  { %v361_v15 = vpop.f32.mrf.mxu3 }
 0x1f0   :  { %v370_v17 = vadd.f32 %v361_v15, %v358_v14 }
 0x1f7   :  { %v364_v16 = vpop.f32.mrf.mxu3 }
 0x1f8   :  { %v371_v18 = vadd.f32 %v370_v17, %v364_v16 }
 0x1ff   :  { %v367_v19 = vpop.f32.mrf.mxu3 }
 0x200   :  { %v372_v20 = vadd.f32 %v371_v18, %v367_v19 }
 0x202   :  { %v373_v21 = vrot.slane %v372_v20, 4 }
 0x204   :  { %v374_v22 = vadd.f32 %v373_v21, %v372_v20 }
 0x206   :  { %v375_v23 = vrot.slane %v374_v22, 2 }
 0x208   :  { %v376_v24 = vadd.f32 %v375_v23, %v374_v22 }
 0x20a   :  { %v377_v26 = vrot.slane %v376_v24, 1 }
 0x20c   :  { %v378_v27 = vadd.f32 %v377_v26, %v376_v24 }
 0x20e   :  { %v382_v29 = vsub.f32 %v378_v27, %v381_v28 }
 0x210   :  { %v383_v30 = vmul.f32 0.03125, %v382_v29 }
 0x212   :  { %v384_v31 = vmax.f32 %v383_v30, 0.0 }
 0x214   :  { %v386_v32 = vadd.f32 1e-05, %v384_v31 }
 0x216   :  { %553 = vrsqrt.f32 %v386_v32  ;;  %vm393_vm1 = vweird.f32 %v386_v32 }
 0x21c   :  { %v554_v33 = vpop.eup %553 }
 0x21d   :  { %v388_v34 = vmul.f32 %v554_v33, %v386_v32  ;;  %vm394_vm0 = vweird.f32 %v554_v33 }
 0x21e   :  { %vm395_vm2 = vmor %vm393_vm1, %vm394_vm0 }
 0x21f   :  { %v389_v35 = vmul.f32 %v554_v33, %v388_v34 }
 0x221   :  { %v390_v36 = vmul.f32 0.5, %v389_v35 }
 0x223   :  { %v391_v37 = vsub.f32 1.5, %v390_v36 }
 0x225   :  { %v392_v39 = vmul.f32 %v554_v33, %v391_v37 }
 0x227   :  { %v396_v40 = vsel %vm395_vm2, %v554_v33, %v392_v39 }
 0x228   :  { %v397_v41 = vmul.f32 %v396_v40, %v385_v38 }
 0x22a   :  { %v399_v43 = vmul.f32 %v397_v41, %v328_v5  ;;  %v402_v44 = vperm.slane %v397_v41, 0 }
 0x22c   :  { %v400_v45 = vsub.f32 %v398_v42, %v399_v43  ;;  %v404_v47 = vmul.f32 %v402_v44, %v731_v46  ;;  %v405_v48 = vmul.f32 %v402_v44, %v734_v49  ;;  %v406_v50 = vmul.f32 %v402_v44, %v737_v52 }
 0x22d   :  { %v407_v51 = vmul.f32 %v402_v44, %v740_v55 }
 0x22e   :  { %v409_v53 = vperm.slane %v400_v45, 0 }
 0x230   :  { %v411_v54 = vadd.f32 %v409_v53, %v404_v47  ;;  %v412_v56 = vadd.f32 %v409_v53, %v405_v48  ;;  %v413_v57 = vadd.f32 %v409_v53, %v406_v50  ;;  %v414_v58 = vadd.f32 %v409_v53, %v407_v51 }
 0x232   :  { %v415_v59 = vmax.f32 %v411_v54, 0.0  ;;  %v416_v60 = vmax.f32 %v412_v56, 0.0  ;;  %v417_v61 = vmax.f32 %v413_v57, 0.0  ;;  %v418_v62 = vmax.f32 %v414_v58, 0.0 }
 0x234   :  { %v537_v63 = vpack.c.bf16 %v416_v60, %v415_v59  ;;  %v542_v0 = vpack.c.bf16 %v418_v62, %v417_v61 }
 0x236   :  { %538 = vst [vmem:[%s762_s5] sm:$0xff] %v537_v63  }
 0x237   :  { %544 = vst [vmem:[%s762_s5 + $0x8] sm:$0xff] %v542_v0  }
 0x238   :  { %431 = vsyncpa [#allocation4], 1 }
 0x239   :  { %432 = vsyncpa [#allocation6], 1 }
 0x23a   :  { %433 = vsyncpa [#allocation9], 1 }

// kernel: netg_forward.6
= control target key start
LH: loop header
LB: loop body
LE: loop exit
PB: predicated region body
PF: predicated region fallthrough
CT: control target
= control target key end

     0   :  { %s1222_s1 = inlined_call_operand.vmem [shape: bf16[640,128], index: 1, kind: input, shape index: {}]   ;;  %s1223_s0 = inlined_call_operand.vmem [shape: bf16[32,640], index: 0, kind: input, shape index: {}]   ;;  %s1224_s2 = inlined_call_operand.vmem [shape: f32[128,128], index: 2, kind: input, shape index: {}]   ;;  %s1225_s3 = inlined_call_operand.vmem [shape: f32[1,128], index: 3, kind: input, shape index: {}]   ;;  %s1226_s4 = inlined_call_operand.vmem [shape: f32[1,128], index: 4, kind: input, shape index: {}]   ;;  %s1227_s5 = inlined_call_operand.vmem [shape: bf16[32,128], index: 5, kind: output, shape index: {}]  }
   0x1   :  { %v878_v0 = vld [vmem:[%s1222_s1 + $0x38] sm:$0xff]  ;;  %v877_v4 = vld [vmem:[%s1222_s1 + $0x30] sm:$0xff]  ;;  %v876_v8 = vld [vmem:[%s1222_s1 + $0x28] sm:$0xff] }
   0x2   :  { %v886_v1 = vld [vmem:[%s1222_s1 + $0x78] sm:$0xff]  ;;  %404 = vmatpush.bf16.msra.mxu0 %v878_v0  ;;  %v885_v5 = vld [vmem:[%s1222_s1 + $0x70] sm:$0xff]  ;;  %v884_v9 = vld [vmem:[%s1222_s1 + $0x68] sm:$0xff] }
   0x3   :  { %v894_v2 = vld [vmem:[%s1222_s1 + $0xb8] sm:$0xff]  ;;  %423 = vmatpush.bf16.msra.mxu1 %v886_v1  ;;  %v893_v6 = vld [vmem:[%s1222_s1 + $0xb0] sm:$0xff]  ;;  %v892_v10 = vld [vmem:[%s1222_s1 + $0xa8] sm:$0xff] }
   0x4   :  { %v902_v3 = vld [vmem:[%s1222_s1 + $0xf8] sm:$0xff]  ;;  %442 = vmatpush.bf16.msra.mxu2 %v894_v2  ;;  %v901_v7 = vld [vmem:[%s1222_s1 + $0xf0] sm:$0xff]  ;;  %v900_v11 = vld [vmem:[%s1222_s1 + $0xe8] sm:$0xff] }
   0x5   :  { %461 = vmatpush.bf16.msra.mxu3 %v902_v3  ;;  %v875_v12 = vld [vmem:[%s1222_s1 + $0x20] sm:$0xff]  ;;  %v874_v16 = vld [vmem:[%s1222_s1 + $0x18] sm:$0xff]  ;;  %v873_v20 = vld [vmem:[%s1222_s1 + $0x10] sm:$0xff] }
   0x6   :  { %405 = vmatpush.bf16.msra.mxu0 %v877_v4  ;;  %v883_v13 = vld [vmem:[%s1222_s1 + $0x60] sm:$0xff]  ;;  %v882_v17 = vld [vmem:[%s1222_s1 + $0x58] sm:$0xff]  ;;  %v881_v21 = vld [vmem:[%s1222_s1 + $0x50] sm:$0xff] }
   0x7   :  { %424 = vmatpush.bf16.msra.mxu1 %v885_v5  ;;  %v891_v14 = vld [vmem:[%s1222_s1 + $0xa0] sm:$0xff]  ;;  %v890_v18 = vld [vmem:[%s1222_s1 + $0x98] sm:$0xff]  ;;  %v889_v22 = vld [vmem:[%s1222_s1 + $0x90] sm:$0xff] }
   0x8   :  { %443 = vmatpush.bf16.msra.mxu2 %v893_v6  ;;  %v899_v15 = vld [vmem:[%s1222_s1 + $0xe0] sm:$0xff]  ;;  %v898_v19 = vld [vmem:[%s1222_s1 + $0xd8] sm:$0xff]  ;;  %v897_v23 = vld [vmem:[%s1222_s1 + $0xd0] sm:$0xff] }
   0x9   :  { %462 = vmatpush.bf16.msra.mxu3 %v901_v7  ;;  %v872_v24 = vld [vmem:[%s1222_s1 + $0x8] sm:$0xff]  ;;  %v871_v28 = vld [vmem:[%s1222_s1] sm:$0xff]  ;;  %v863_v33 = vld [vmem:[%s1223_s0 + $0x10] sm:$0xf0] }
   0xa   :  { %406 = vmatpush.bf16.msra.mxu0 %v876_v8  ;;  %v880_v25 = vld [vmem:[%s1222_s1 + $0x48] sm:$0xff]  ;;  %v879_v29 = vld [vmem:[%s1222_s1 + $0x40] sm:$0xff]  ;;  %v665_v35 = vld [vmem:[%s1223_s0 + $0x14] sm:$0xf0] }
   0xb   :  { %425 = vmatpush.bf16.msra.mxu1 %v884_v9  ;;  %v888_v26 = vld [vmem:[%s1222_s1 + $0x88] sm:$0xff]  ;;  %v887_v30 = vld [vmem:[%s1222_s1 + $0x80] sm:$0xff]  ;;  %v864_v37 = vld [vmem:[%s1223_s0 + $0x18] sm:$0xf0] }
   0xc   :  { %444 = vmatpush.bf16.msra.mxu2 %v892_v10  ;;  %v896_v27 = vld [vmem:[%s1222_s1 + $0xc8] sm:$0xff]  ;;  %v895_v31 = vld [vmem:[%s1222_s1 + $0xc0] sm:$0xff]  ;;  %v910_v40 = vld [vmem:[%s1222_s1 + $0x138] sm:$0xff] }
   0xd   :  { %463 = vmatpush.bf16.msra.mxu3 %v900_v11  ;;  %v663_v32 = vld [vmem:[%s1223_s0] sm:$0xf]  ;;  %v861_v34 = vld [vmem:[%s1223_s0 + $0x4] sm:$0xf]  ;;  %v671_v36 = vld [vmem:[%s1223_s0 + $0x8] sm:$0xf] }
   0xe   :  { %407 = vmatpush.bf16.msra.mxu0 %v875_v12  ;;  %v862_v38 = vld [vmem:[%s1223_s0 + $0xc] sm:$0xf]  ;;  %v673_v39 = vld [vmem:[%s1223_s0 + $0x1c] sm:$0xf0]  ;;  %v664_v41 = vor.u32 %v863_v33, %v663_v32  ;;  %v668_v42 = vor.u32 %v861_v34, %v665_v35  ;;  %v672_v43 = vor.u32 %v864_v37, %v671_v36  ;;  %v909_v45 = vld [vmem:[%s1222_s1 + $0x130] sm:$0xff] }
   0xf   :  { %426 = vmatpush.bf16.msra.mxu1 %v883_v13  ;;  %v676_v44 = vor.u32 %v862_v38, %v673_v39  ;;  %v908_v46 = vld [vmem:[%s1222_s1 + $0x128] sm:$0xff]  ;;  %v907_v47 = vld [vmem:[%s1222_s1 + $0x120] sm:$0xff]  ;;  %v868_v49 = vld [vmem:[%s1223_s0 + $0x38] sm:$0xf0] }
  0x10   :  { %445 = vmatpush.bf16.msra.mxu2 %v891_v14  ;;  %v683_v48 = vld [vmem:[%s1223_s0 + $0x28] sm:$0xf]  ;;  %v866_v50 = vld [vmem:[%s1223_s0 + $0x2c] sm:$0xf]  ;;  %v685_v51 = vld [vmem:[%s1223_s0 + $0x3c] sm:$0xf0] }
  0x11   :  { %464 = vmatpush.bf16.msra.mxu3 %v899_v15  ;;  %v691_v52 = vld [vmem:[%s1223_s0 + $0x30] sm:$0xf]  ;;  %v869_v53 = vld [vmem:[%s1223_s0 + $0x40] sm:$0xf0]  ;;  %v867_v54 = vld [vmem:[%s1223_s0 + $0x34] sm:$0xf]  ;;  %v684_v57 = vor.u32 %v868_v49, %v683_v48  ;;  %v688_v58 = vor.u32 %v866_v50, %v685_v51 }
  0x12   :  { %408 = vmatpush.bf16.msra.mxu0 %v874_v16  ;;  %v693_v55 = vld [vmem:[%s1223_s0 + $0x44] sm:$0xf0]  ;;  %v906_v56 = vld [vmem:[%s1222_s1 + $0x118] sm:$0xff]  ;;  %v692_v59 = vor.u32 %v869_v53, %v691_v52  ;;  %v905_v61 = vld [vmem:[%s1222_s1 + $0x110] sm:$0xff] }
  0x13   :  { %427 = vmatpush.bf16.msra.mxu1 %v882_v17  ;;  %v696_v60 = vor.u32 %v867_v54, %v693_v55  ;;  %v904_v62 = vld [vmem:[%s1222_s1 + $0x108] sm:$0xff]  ;;  %v903_v63 = vld [vmem:[%s1222_s1 + $0x100] sm:$0xff]  ;;  %v679_v0 = vld [vmem:[%s1223_s0 + $0x10] sm:$0xf] }
  0x14   :  { %446 = vmatpush.bf16.msra.mxu2 %v890_v18  ;;  %v865_v1 = vld [vmem:[%s1223_s0 + $0x20] sm:$0xf0]  ;;  %v699_v2 = vld [vmem:[%s1223_s0 + $0x38] sm:$0xf]  ;;  %v870_v3 = vld [vmem:[%s1223_s0 + $0x48] sm:$0xf0] }
  0x15   :  { %465 = vmatpush.bf16.msra.mxu3 %v898_v19  ;;  %v680_v4 = vor.u32 %v865_v1, %v679_v0  ;;  %v700_v5 = vor.u32 %v870_v3, %v699_v2  ;;  %v518_v6 = vld [vmem:[%s1224_s2 + $0x78] sm:$0xff]  ;;  %v517_v7 = vld [vmem:[%s1224_s2 + $0x70] sm:$0xff]  ;;  %v516_v8 = vld [vmem:[%s1224_s2 + $0x68] sm:$0xff] }
  0x16   :  { %409 = vmatpush.bf16.msra.mxu0 %v873_v20  ;;  %v515_v9 = vld [vmem:[%s1224_s2 + $0x60] sm:$0xff]  ;;  %v514_v10 = vld [vmem:[%s1224_s2 + $0x58] sm:$0xff]  ;;  %v513_v11 = vld [vmem:[%s1224_s2 + $0x50] sm:$0xff] }
  0x17   :  { %428 = vmatpush.bf16.msra.mxu1 %v881_v21  ;;  %v512_v12 = vld [vmem:[%s1224_s2 + $0x48] sm:$0xff]  ;;  %v511_v13 = vld [vmem:[%s1224_s2 + $0x40] sm:$0xff]  ;;  %v510_v14 = vld [vmem:[%s1224_s2 + $0x38] sm:$0xff] }
  0x18   :  { %447 = vmatpush.bf16.msra.mxu2 %v889_v22  ;;  %v509_v15 = vld [vmem:[%s1224_s2 + $0x30] sm:$0xff]  ;;  %v508_v16 = vld [vmem:[%s1224_s2 + $0x28] sm:$0xff]  ;;  %v507_v17 = vld [vmem:[%s1224_s2 + $0x20] sm:$0xff] }
  0x19   :  { %466 = vmatpush.bf16.msra.mxu3 %v897_v23  ;;  %v506_v18 = vld [vmem:[%s1224_s2 + $0x18] sm:$0xff]  ;;  %v505_v19 = vld [vmem:[%s1224_s2 + $0x10] sm:$0xff]  ;;  %v504_v21 = vld [vmem:[%s1224_s2 + $0x8] sm:$0xff] }
  0x1a   :  { %410 = vmatpush.bf16.msra.mxu0 %v872_v24  ;;  %v503_v22 = vld [vmem:[%s1224_s2] sm:$0xff] }
  0x1b   :  { %429 = vmatpush.bf16.msra.mxu1 %v880_v25 }
  0x1c   :  { %448 = vmatpush.bf16.msra.mxu2 %v888_v26 }
  0x1d   :  { %467 = vmatpush.bf16.msra.mxu3 %v896_v27 }
  0x1e   :  { %411 = vmatpush.bf16.msra.mxu0 %v871_v28 }
  0x1f   :  { %430 = vmatpush.bf16.msra.mxu1 %v879_v29 }
  0x20   :  { %449 = vmatpush.bf16.msra.mxu2 %v887_v30 }
  0x21   :  { %468 = vmatpush.bf16.msra.mxu3 %v895_v31  ;;  %412 = vmatmul.bf16.vlgmr.msra.gmra.mxu0 %v664_v41 }
  0x22   :  { %480 = vmatpush.bf16.msrb.mxu0 %v910_v40  ;;  %431 = vmatmul.bf16.vlgmr.msra.gmra.mxu1 %v668_v42 }
  0x23   :  { %450 = vmatmul.bf16.vlgmr.msra.gmra.mxu2 %v672_v43  ;;  %519 = vmatpush.msrb.mxu1 %v518_v6 }
  0x24   :  { %469 = vmatmul.bf16.vlgmr.msra.gmra.mxu3 %v676_v44  ;;  %571 = vmatpush.msrb.mxu2 %v518_v6 }
  0x25   :  { %922 = vmatpush.bf16.msrb.mxu3 %v910_v40  ;;  %520 = vmatpush.msrb.mxu1 %v517_v7 }
  0x26   :  { %481 = vmatpush.bf16.msrb.mxu0 %v909_v45  ;;  %572 = vmatpush.msrb.mxu2 %v517_v7 }
  0x27   :  { %521 = vmatpush.msrb.mxu1 %v516_v8 }
  0x28   :  { %573 = vmatpush.msrb.mxu2 %v516_v8 }
  0x29   :  { %923 = vmatpush.bf16.msrb.mxu3 %v909_v45  ;;  %522 = vmatpush.msrb.mxu1 %v515_v9 }
  0x2a   :  { %482 = vmatpush.bf16.msrb.mxu0 %v908_v46  ;;  %574 = vmatpush.msrb.mxu2 %v515_v9 }
  0x2b   :  { %523 = vmatpush.msrb.mxu1 %v514_v10 }
  0x2c   :  { %575 = vmatpush.msrb.mxu2 %v514_v10 }
  0x2d   :  { %924 = vmatpush.bf16.msrb.mxu3 %v908_v46  ;;  %524 = vmatpush.msrb.mxu1 %v513_v11 }
  0x2e   :  { %483 = vmatpush.bf16.msrb.mxu0 %v907_v47  ;;  %576 = vmatpush.msrb.mxu2 %v513_v11 }
  0x2f   :  { %525 = vmatpush.msrb.mxu1 %v512_v12 }
  0x30   :  { %577 = vmatpush.msrb.mxu2 %v512_v12 }
  0x31   :  { %925 = vmatpush.bf16.msrb.mxu3 %v907_v47  ;;  %417 = vmatmul.bf16.gmra.mxu0 %v684_v57 }
  0x32   :  { %484 = vmatpush.bf16.msrb.mxu0 %v906_v56  ;;  %436 = vmatmul.bf16.gmra.mxu1 %v688_v58 }
  0x33   :  { %455 = vmatmul.bf16.gmra.mxu2 %v692_v59  ;;  %526 = vmatpush.msrb.mxu1 %v511_v13 }
  0x34   :  { %474 = vmatmul.bf16.gmra.mxu3 %v696_v60  ;;  %578 = vmatpush.msrb.mxu2 %v511_v13 }
  0x35   :  { %926 = vmatpush.bf16.msrb.mxu3 %v906_v56  ;;  %527 = vmatpush.msrb.mxu1 %v510_v14 }
  0x36   :  { %485 = vmatpush.bf16.msrb.mxu0 %v905_v61  ;;  %579 = vmatpush.msrb.mxu2 %v510_v14 }
  0x37   :  { %528 = vmatpush.msrb.mxu1 %v509_v15 }
  0x38   :  { %580 = vmatpush.msrb.mxu2 %v509_v15 }
  0x39   :  { %927 = vmatpush.bf16.msrb.mxu3 %v905_v61  ;;  %529 = vmatpush.msrb.mxu1 %v508_v16 }
  0x3a   :  { %486 = vmatpush.bf16.msrb.mxu0 %v904_v62  ;;  %581 = vmatpush.msrb.mxu2 %v508_v16 }
  0x3b   :  { %530 = vmatpush.msrb.mxu1 %v507_v17 }
  0x3c   :  { %582 = vmatpush.msrb.mxu2 %v507_v17 }
  0x3d   :  { %928 = vmatpush.bf16.msrb.mxu3 %v904_v62  ;;  %531 = vmatpush.msrb.mxu1 %v506_v18 }
  0x3e   :  { %487 = vmatpush.bf16.msrb.mxu0 %v903_v63  ;;  %583 = vmatpush.msrb.mxu2 %v506_v18 }
  0x3f   :  { %532 = vmatpush.msrb.mxu1 %v505_v19 }
  0x40   :  { %584 = vmatpush.msrb.mxu2 %v505_v19 }
  0x41   :  { %929 = vmatpush.bf16.msrb.mxu3 %v903_v63  ;;  %488 = vmatmul.bf16.vlgmr.msrb.gmra.mxu0 %v680_v4 }
  0x42   :  { %533 = vmatpush.msrb.mxu1 %v504_v21  ;;  %585 = vmatpush.msrb.mxu2 %v504_v21 }
  0x44   :  { %493 = vmatmul.bf16.vlgmr.msrb.gmra.mxu3 %v700_v5  ;;  %534 = vmatpush.msrb.mxu1 %v503_v22 }
  0x45   :  { %586 = vmatpush.msrb.mxu2 %v503_v22 }
  0x9e   :  { %v413_v20 = vpop.f32.mrf.mxu0 }
  0x9f   :  { %v432_v26 = vpop.f32.mrf.mxu1 }
  0xa0   :  { %v433_v31 = vadd.f32 %v432_v26, %v413_v20 }
  0xa6   :  { %v415_v24 = vpop.f32.mrf.mxu0  ;;  %v451_v28 = vpop.f32.mrf.mxu2 }
  0xa7   :  { %v470_v23 = vpop.f32.mrf.mxu3  ;;  %v434_v32 = vpop.f32.mrf.mxu1  ;;  %v452_v33 = vadd.f32 %v451_v28, %v433_v31 }
  0xa8   :  { %v435_v37 = vadd.f32 %v434_v32, %v415_v24 }
  0xa9   :  { %v471_v35 = vadd.f32 %v470_v23, %v452_v33 }
  0xae   :  { %v418_v27 = vpop.f32.mrf.mxu0  ;;  %v453_v34 = vpop.f32.mrf.mxu2 }
  0xaf   :  { %v472_v25 = vpop.f32.mrf.mxu3  ;;  %v454_v40 = vadd.f32 %v453_v34, %v435_v37  ;;  %v437_v41 = vpop.f32.mrf.mxu1 }
  0xb0   :  { %v438_v45 = vadd.f32 %v437_v41, %v418_v27  ;;  %v615_v41 = vld [vmem:[%s1225_s3] sm:$0x1] }
  0xb1   :  { %v473_v43 = vadd.f32 %v472_v25, %v454_v40 }
  0xb6   :  { %v420_v30 = vpop.f32.mrf.mxu0  ;;  %v456_v42 = vpop.f32.mrf.mxu2 }
  0xb7   :  { %v475_v29 = vpop.f32.mrf.mxu3  ;;  %v457_v47 = vadd.f32 %v456_v42, %v438_v45  ;;  %v439_v49 = vpop.f32.mrf.mxu1  ;;  %v628_v45 = vld [vmem:[%s1226_s4] sm:$0x1] }
  0xb8   :  { %v440_v52 = vadd.f32 %v439_v49, %v420_v30 }
  0xb9   :  { %v476_v50 = vadd.f32 %v475_v29, %v457_v47 }
  0xbe   :  { %v489_v36 = vpop.f32.mrf.mxu0  ;;  %v458_v51 = vpop.f32.mrf.mxu2 }
  0xbf   :  { %v1190_v38 = vadd.f32 %v489_v36, %v471_v35  ;;  %v477_v39 = vpop.f32.mrf.mxu3  ;;  %v459_v54 = vadd.f32 %v458_v51, %v440_v52 }
  0xc1   :  { %535 = vmatmul.f32.vlgmr.msrb.gmra.mxu1 %v1190_v38  ;;  %v478_v56 = vadd.f32 %v477_v39, %v459_v54 }
  0xc6   :  { %v491_v44 = vpop.f32.mrf.mxu0 }
  0xc7   :  { %v1193_v46 = vadd.f32 %v491_v44, %v473_v43  ;;  %v494_v48 = vpop.f32.mrf.mxu3 }
  0xc8   :  { %v1196_v53 = vadd.f32 %v494_v48, %v476_v50 }
  0xc9   :  { %538 = vmatmul.f32.gmra.mxu1 %v1193_v46 }
  0xcf   :  { %v496_v55 = vpop.f32.mrf.mxu3 }
  0xd0   :  { %v1199_v57 = vadd.f32 %v496_v55, %v478_v56 }
  0xd1   :  { %541 = vmatmul.f32.gmra.mxu1 %v1196_v53 }
  0xd9   :  { %544 = vmatmul.f32.gmra.mxu1 %v1199_v57 }
 0x13e   :  { %v536_v58 = vpop.f32.mrf.mxu1 }
 0x146   :  { %v539_v59 = vpop.f32.mrf.mxu1 }
 0x147   :  { %v548_v61 = vadd.f32 %v539_v59, %v536_v58 }
 0x14e   :  { %v542_v60 = vpop.f32.mrf.mxu1 }
 0x14f   :  { %v549_v62 = vadd.f32 %v548_v61, %v542_v60 }
 0x156   :  { %v545_v63 = vpop.f32.mrf.mxu1 }
 0x157   :  { %v550_v0 = vadd.f32 %v549_v62, %v545_v63 }
 0x159   :  { %v551_v1 = vrot.slane %v550_v0, 4 }
 0x15b   :  { %v552_v2 = vadd.f32 %v551_v1, %v550_v0 }
 0x15d   :  { %v553_v3 = vrot.slane %v552_v2, 2 }
 0x15f   :  { %v554_v4 = vadd.f32 %v553_v3, %v552_v2 }
 0x161   :  { %v555_v5 = vrot.slane %v554_v4, 1 }
 0x163   :  { %v556_v6 = vadd.f32 %v555_v5, %v554_v4 }
 0x165   :  { %v558_v7 = vmul.f32 0.0078125, %v556_v6 }
 0x167   :  { %v563_v8 = vsub.f32 %v1190_v38, %v558_v7  ;;  %v564_v10 = vsub.f32 %v1193_v46, %v558_v7  ;;  %v565_v12 = vsub.f32 %v1196_v53, %v558_v7  ;;  %v566_v14 = vsub.f32 %v1199_v57, %v558_v7 }
 0x168   :  { %v610_v27 = vmul.f32 0.0, %v558_v7 }
 0x169   :  { %v567_v9 = vmul.f32 %v563_v8, %v563_v8  ;;  %v568_v11 = vmul.f32 %v564_v10, %v564_v10  ;;  %v569_v13 = vmul.f32 %v565_v12, %v565_v12  ;;  %v570_v15 = vmul.f32 %v566_v14, %v566_v14 }
 0x16a   :  { %v611_v30 = vmul.f32 %v610_v27, %v558_v7 }
 0x16b   :  { %587 = vmatmul.f32.vlgmr.msrb.gmra.mxu2 %v567_v9 }
 0x173   :  { %590 = vmatmul.f32.gmra.mxu2 %v568_v11 }
 0x17b   :  { %593 = vmatmul.f32.gmra.mxu2 %v569_v13 }
 0x183   :  { %596 = vmatmul.f32.gmra.mxu2 %v570_v15 }
 0x1ee   :  { %v588_v16 = vpop.f32.mrf.mxu2 }
 0x1f6   :  { %v591_v17 = vpop.f32.mrf.mxu2 }
 0x1f7   :  { %v600_v19 = vadd.f32 %v591_v17, %v588_v16 }
 0x1fe   :  { %v594_v18 = vpop.f32.mrf.mxu2 }
 0x1ff   :  { %v601_v20 = vadd.f32 %v600_v19, %v594_v18 }
 0x206   :  { %v597_v21 = vpop.f32.mrf.mxu2 }
 0x207   :  { %v602_v22 = vadd.f32 %v601_v20, %v597_v21 }
 0x209   :  { %v603_v23 = vrot.slane %v602_v22, 4 }
 0x20b   :  { %v604_v24 = vadd.f32 %v603_v23, %v602_v22 }
 0x20d   :  { %v605_v25 = vrot.slane %v604_v24, 2 }
 0x20f   :  { %v606_v26 = vadd.f32 %v605_v25, %v604_v24 }
 0x211   :  { %v607_v28 = vrot.slane %v606_v26, 1 }
 0x213   :  { %v608_v29 = vadd.f32 %v607_v28, %v606_v26 }
 0x215   :  { %v612_v31 = vsub.f32 %v608_v29, %v611_v30 }
 0x217   :  { %v613_v32 = vmul.f32 0.0078125, %v612_v31 }
 0x219   :  { %v614_v33 = vmax.f32 %v613_v32, 0.0 }
 0x21b   :  { %v616_v34 = vadd.f32 1e-05, %v614_v33 }
 0x21d   :  { %930 = vrsqrt.f32 %v616_v34  ;;  %vm623_vm1 = vweird.f32 %v616_v34 }
 0x223   :  { %v931_v35 = vpop.eup %930 }
 0x224   :  { %v618_v36 = vmul.f32 %v931_v35, %v616_v34  ;;  %vm624_vm0 = vweird.f32 %v931_v35 }
 0x225   :  { %vm625_vm2 = vmor %vm623_vm1, %vm624_vm0 }
 0x226   :  { %v619_v37 = vmul.f32 %v931_v35, %v618_v36 }
 0x228   :  { %v620_v39 = vmul.f32 0.5, %v619_v37 }
 0x22a   :  { %v621_v40 = vsub.f32 1.5, %v620_v39 }
 0x22c   :  { %v622_v42 = vmul.f32 %v931_v35, %v621_v40 }
 0x22e   :  { %v626_v43 = vsel %vm625_vm2, %v931_v35, %v622_v42 }
 0x22f   :  { %v627_v44 = vmul.f32 %v626_v43, %v615_v41 }
 0x231   :  { %v629_v47 = vmul.f32 %v627_v44, %v558_v7  ;;  %v632_v48 = vperm.slane %v627_v44, 0 }
 0x233   :  { %v630_v49 = vsub.f32 %v628_v45, %v629_v47  ;;  %v634_v50 = vmul.f32 %v632_v48, %v1190_v38  ;;  %v635_v51 = vmul.f32 %v632_v48, %v1193_v46  ;;  %v636_v52 = vmul.f32 %v632_v48, %v1196_v53 }
 0x234   :  { %v637_v54 = vmul.f32 %v632_v48, %v1199_v57 }
 0x235   :  { %v639_v55 = vperm.slane %v630_v49, 0 }
 0x237   :  { %v641_v56 = vadd.f32 %v639_v55, %v634_v50  ;;  %v642_v58 = vadd.f32 %v639_v55, %v635_v51  ;;  %v643_v59 = vadd.f32 %v639_v55, %v636_v52  ;;  %v644_v60 = vadd.f32 %v639_v55, %v637_v54 }
 0x239   :  { %v645_v61 = vmax.f32 %v641_v56, 0.0  ;;  %v646_v62 = vmax.f32 %v642_v58, 0.0  ;;  %v647_v63 = vmax.f32 %v643_v59, 0.0  ;;  %v648_v0 = vmax.f32 %v644_v60, 0.0 }
 0x23b   :  { %v914_v1 = vpack.c.bf16 %v646_v62, %v645_v61  ;;  %v919_v2 = vpack.c.bf16 %v648_v0, %v647_v63 }
 0x23d   :  { %915 = vst [vmem:[%s1227_s5] sm:$0xff] %v914_v1  }
 0x23e   :  { %921 = vst [vmem:[%s1227_s5 + $0x8] sm:$0xff] %v919_v2  }

// kernel: netg_forward.7
= control target key start
LH: loop header
LB: loop body
LE: loop exit
PB: predicated region body
PF: predicated region fallthrough
CT: control target
= control target key end

     0   :  { %s2132_s1 = inlined_call_operand.vmem [shape: bf16[384,128], index: 1, kind: input, shape index: {}]   ;;  %s2133_s0 = inlined_call_operand.vmem [shape: bf16[128,384], index: 0, kind: input, shape index: {}]   ;;  %s2134_s2 = inlined_call_operand.vmem [shape: f32[128,128], index: 2, kind: input, shape index: {}]   ;;  %s2135_s3 = inlined_call_operand.vmem [shape: f32[1,128], index: 3, kind: input, shape index: {}]   ;;  %s2136_s4 = inlined_call_operand.vmem [shape: f32[1,128], index: 4, kind: input, shape index: {}]   ;;  %s2137_s5 = inlined_call_operand.vmem [shape: bf16[128,128], index: 5, kind: output, shape index: {}]  }
   0x1   :  { %v1481_v0 = vld [vmem:[%s2132_s1 + $0x38] sm:$0xff]  ;;  %v1480_v2 = vld [vmem:[%s2132_s1 + $0x30] sm:$0xff]  ;;  %v1479_v4 = vld [vmem:[%s2132_s1 + $0x28] sm:$0xff] }
   0x2   :  { %v1489_v1 = vld [vmem:[%s2132_s1 + $0x78] sm:$0xff]  ;;  %1581 = vmatpush.bf16.msra.mxu2 %v1481_v0  ;;  %v1488_v3 = vld [vmem:[%s2132_s1 + $0x70] sm:$0xff]  ;;  %292 = vmatpush.bf16.msra.mxu0 %v1481_v0  ;;  %v1487_v5 = vld [vmem:[%s2132_s1 + $0x68] sm:$0xff] }
   0x3   :  { %1589 = vmatpush.bf16.msra.mxu3 %v1489_v1  ;;  %321 = vmatpush.bf16.msra.mxu1 %v1489_v1  ;;  %v1478_v6 = vld [vmem:[%s2132_s1 + $0x20] sm:$0xff]  ;;  %v1477_v8 = vld [vmem:[%s2132_s1 + $0x18] sm:$0xff]  ;;  %v1476_v10 = vld [vmem:[%s2132_s1 + $0x10] sm:$0xff] }
   0x4   :  { %v1486_v7 = vld [vmem:[%s2132_s1 + $0x60] sm:$0xff]  ;;  %v1485_v9 = vld [vmem:[%s2132_s1 + $0x58] sm:$0xff]  ;;  %v1484_v11 = vld [vmem:[%s2132_s1 + $0x50] sm:$0xff] }
   0x5   :  { %v1475_v12 = vld [vmem:[%s2132_s1 + $0x8] sm:$0xff]  ;;  %v1474_v14 = vld [vmem:[%s2132_s1] sm:$0xff]  ;;  %v1200_v16 = vld [vmem:[%s2133_s0 + $0x30] sm:$0xf] }
   0x6   :  { %1582 = vmatpush.bf16.msra.mxu2 %v1480_v2  ;;  %293 = vmatpush.bf16.msra.mxu0 %v1480_v2  ;;  %v1483_v13 = vld [vmem:[%s2132_s1 + $0x48] sm:$0xff]  ;;  %v1482_v15 = vld [vmem:[%s2132_s1 + $0x40] sm:$0xff]  ;;  %v1469_v17 = vld [vmem:[%s2133_s0 + $0x38] sm:$0xf0] }
   0x7   :  { %1590 = vmatpush.bf16.msra.mxu3 %v1488_v3  ;;  %322 = vmatpush.bf16.msra.mxu1 %v1488_v3  ;;  %v1468_v18 = vld [vmem:[%s2133_s0 + $0x34] sm:$0xf]  ;;  %v1202_v19 = vld [vmem:[%s2133_s0 + $0x3c] sm:$0xf0]  ;;  %v1497_v20 = vld [vmem:[%s2132_s1 + $0xb8] sm:$0xff]  ;;  %v1201_v25 = vor.u32 %v1469_v17, %v1200_v16 }
   0x8   :  { %v1176_v21 = vld [vmem:[%s2133_s0] sm:$0xf]  ;;  %v1463_v22 = vld [vmem:[%s2133_s0 + $0x8] sm:$0xf0]  ;;  %v1462_v23 = vld [vmem:[%s2133_s0 + $0x4] sm:$0xf]  ;;  %v1205_v26 = vor.u32 %v1468_v18, %v1202_v19 }
   0x9   :  { %v1178_v24 = vld [vmem:[%s2133_s0 + $0xc] sm:$0xf0]  ;;  %v1177_v27 = vor.u32 %v1463_v22, %v1176_v21  ;;  %v1495_v30 = vld [vmem:[%s2132_s1 + $0xa8] sm:$0xff]  ;;  %v1494_v31 = vld [vmem:[%s2132_s1 + $0xa0] sm:$0xff] }
   0xa   :  { %1583 = vmatpush.bf16.msra.mxu2 %v1479_v4  ;;  %294 = vmatpush.bf16.msra.mxu0 %v1479_v4  ;;  %v1496_v28 = vld [vmem:[%s2132_s1 + $0xb0] sm:$0xff]  ;;  %v1181_v29 = vor.u32 %v1462_v23, %v1178_v24  ;;  %v1212_v32 = vld [vmem:[%s2133_s0 + $0x48] sm:$0xf]  ;;  %v1471_v34 = vld [vmem:[%s2133_s0 + $0x4c] sm:$0xf] }
   0xb   :  { %1591 = vmatpush.bf16.msra.mxu3 %v1487_v5  ;;  %323 = vmatpush.bf16.msra.mxu1 %v1487_v5  ;;  %v1472_v33 = vld [vmem:[%s2133_s0 + $0x50] sm:$0xf0]  ;;  %v1214_v35 = vld [vmem:[%s2133_s0 + $0x54] sm:$0xf0]  ;;  %v1466_v38 = vld [vmem:[%s2133_s0 + $0x20] sm:$0xf0] }
   0xc   :  { %v1493_v36 = vld [vmem:[%s2132_s1 + $0x98] sm:$0xff]  ;;  %v1190_v40 = vld [vmem:[%s2133_s0 + $0x24] sm:$0xf0]  ;;  %v1213_v41 = vor.u32 %v1472_v33, %v1212_v32  ;;  %v1217_v42 = vor.u32 %v1471_v34, %v1214_v35  ;;  %v1492_v44 = vld [vmem:[%s2132_s1 + $0x90] sm:$0xff] }
   0xd   :  { %v1188_v37 = vld [vmem:[%s2133_s0 + $0x18] sm:$0xf]  ;;  %v1465_v39 = vld [vmem:[%s2133_s0 + $0x1c] sm:$0xf]  ;;  %v1491_v48 = vld [vmem:[%s2132_s1 + $0x88] sm:$0xff] }
   0xe   :  { %1584 = vmatpush.bf16.msra.mxu2 %v1478_v6  ;;  %295 = vmatpush.bf16.msra.mxu0 %v1478_v6  ;;  %v1189_v43 = vor.u32 %v1466_v38, %v1188_v37  ;;  %v1193_v45 = vor.u32 %v1465_v39, %v1190_v40  ;;  %v1517_v46 = vld [vmem:[%s2132_s1 + $0x38] sm:$0xff]  ;;  %v1490_v49 = vld [vmem:[%s2132_s1 + $0x80] sm:$0xff]  ;;  %v1184_v51 = vld [vmem:[%s2133_s0 + $0x8] sm:$0xf] }
   0xf   :  { %1592 = vmatpush.bf16.msra.mxu3 %v1486_v7  ;;  %324 = vmatpush.bf16.msra.mxu1 %v1486_v7  ;;  %v1525_v47 = vld [vmem:[%s2132_s1 + $0x78] sm:$0xff]  ;;  %v1464_v52 = vld [vmem:[%s2133_s0 + $0x10] sm:$0xf0]  ;;  %v1531_v55 = vld [vmem:[%s2132_s1 + $0xa8] sm:$0xff] }
  0x10   :  { %v1533_v50 = vld [vmem:[%s2132_s1 + $0xb8] sm:$0xff]  ;;  %v1532_v53 = vld [vmem:[%s2132_s1 + $0xb0] sm:$0xff]  ;;  %v1185_v54 = vor.u32 %v1464_v52, %v1184_v51  ;;  %v1515_v58 = vld [vmem:[%s2132_s1 + $0x28] sm:$0xff] }
  0x11   :  { %v1516_v56 = vld [vmem:[%s2132_s1 + $0x30] sm:$0xff]  ;;  %v1523_v59 = vld [vmem:[%s2132_s1 + $0x68] sm:$0xff]  ;;  %v1530_v60 = vld [vmem:[%s2132_s1 + $0xa0] sm:$0xff] }
  0x12   :  { %1585 = vmatpush.bf16.msra.mxu2 %v1477_v8  ;;  %296 = vmatpush.bf16.msra.mxu0 %v1477_v8  ;;  %v1524_v57 = vld [vmem:[%s2132_s1 + $0x70] sm:$0xff]  ;;  %v1514_v61 = vld [vmem:[%s2132_s1 + $0x20] sm:$0xff]  ;;  %v1529_v63 = vld [vmem:[%s2132_s1 + $0x98] sm:$0xff] }
  0x13   :  { %1593 = vmatpush.bf16.msra.mxu3 %v1485_v9  ;;  %325 = vmatpush.bf16.msra.mxu1 %v1485_v9  ;;  %v1522_v62 = vld [vmem:[%s2132_s1 + $0x60] sm:$0xff]  ;;  %v1467_v1 = vld [vmem:[%s2133_s0 + $0x28] sm:$0xf0]  ;;  %v1513_v2 = vld [vmem:[%s2132_s1 + $0x18] sm:$0xff] }
  0x14   :  { %v1196_v0 = vld [vmem:[%s2133_s0 + $0x20] sm:$0xf]  ;;  %v1521_v3 = vld [vmem:[%s2132_s1 + $0x58] sm:$0xff]  ;;  %v1528_v4 = vld [vmem:[%s2132_s1 + $0x90] sm:$0xff] }
  0x15   :  { %v1197_v5 = vor.u32 %v1467_v1, %v1196_v0  ;;  %v1512_v6 = vld [vmem:[%s2132_s1 + $0x10] sm:$0xff]  ;;  %v1527_v8 = vld [vmem:[%s2132_s1 + $0x88] sm:$0xff]  ;;  %v1498_v16 = vld [vmem:[%s2133_s0 + $0x64] sm:$0xf] }
  0x16   :  { %1586 = vmatpush.bf16.msra.mxu2 %v1476_v10  ;;  %297 = vmatpush.bf16.msra.mxu0 %v1476_v10  ;;  %v1520_v7 = vld [vmem:[%s2132_s1 + $0x50] sm:$0xff]  ;;  %v1511_v9 = vld [vmem:[%s2132_s1 + $0x8] sm:$0xff]  ;;  %v1470_v21 = vld [vmem:[%s2133_s0 + $0x40] sm:$0xf0] }
  0x17   :  { %1594 = vmatpush.bf16.msra.mxu3 %v1484_v11  ;;  %326 = vmatpush.bf16.msra.mxu1 %v1484_v11  ;;  %v1519_v10 = vld [vmem:[%s2132_s1 + $0x48] sm:$0xff]  ;;  %v1526_v11 = vld [vmem:[%s2132_s1 + $0x80] sm:$0xff]  ;;  %v1322_v17 = vld [vmem:[%s2133_s0 + $0x6c] sm:$0xf0] }
  0x18   :  { %v1325_v19 = vor.u32 %v1498_v16, %v1322_v17  ;;  %v1332_v23 = vld [vmem:[%s2133_s0 + $0x78] sm:$0xf]  ;;  %v1502_v24 = vld [vmem:[%s2133_s0 + $0x80] sm:$0xf0]  ;;  %v1344_v32 = vld [vmem:[%s2133_s0 + $0x90] sm:$0xf] }
  0x19   :  { %v1505_v33 = vld [vmem:[%s2133_s0 + $0x98] sm:$0xf0]  ;;  %v1504_v34 = vld [vmem:[%s2133_s0 + $0x94] sm:$0xf]  ;;  %v1346_v35 = vld [vmem:[%s2133_s0 + $0x9c] sm:$0xf0] }
  0x1a   :  { %1587 = vmatpush.bf16.msra.mxu2 %v1475_v12  ;;  %298 = vmatpush.bf16.msra.mxu0 %v1475_v12  ;;  %v1510_v12 = vld [vmem:[%s2132_s1] sm:$0xff]  ;;  %v1349_v37 = vor.u32 %v1504_v34, %v1346_v35  ;;  %v1328_v38 = vld [vmem:[%s2133_s0 + $0x68] sm:$0xf]  ;;  %v1500_v39 = vld [vmem:[%s2133_s0 + $0x70] sm:$0xf0] }
  0x1b   :  { %1595 = vmatpush.bf16.msra.mxu3 %v1483_v13  ;;  %327 = vmatpush.bf16.msra.mxu1 %v1483_v13  ;;  %v1518_v13 = vld [vmem:[%s2132_s1 + $0x40] sm:$0xff]  ;;  %v1329_v40 = vor.u32 %v1500_v39, %v1328_v38  ;;  %v390_v1 = vld [vmem:[%s2134_s2 + $0x18] sm:$0xff] }
  0x1c   :  { %v391_v0 = vld [vmem:[%s2134_s2 + $0x20] sm:$0xff] }
  0x1e   :  { %1588 = vmatpush.bf16.msra.mxu2 %v1474_v14  ;;  %299 = vmatpush.bf16.msra.mxu0 %v1474_v14  ;;  %v1320_v14 = vld [vmem:[%s2133_s0 + $0x60] sm:$0xf] }
  0x1f   :  { %1596 = vmatpush.bf16.msra.mxu3 %v1482_v15  ;;  %328 = vmatpush.bf16.msra.mxu1 %v1482_v15  ;;  %v1499_v15 = vld [vmem:[%s2133_s0 + $0x68] sm:$0xf0] }
  0x20   :  { %v1321_v18 = vor.u32 %v1499_v15, %v1320_v14 }
  0x21   :  { %310 = vmatmul.bf16.vlgmr.msra.gmra.mxu2 %v1201_v25  ;;  %300 = vmatmul.bf16.vlgmr.msra.gmra.mxu0 %v1177_v27  ;;  %v1501_v25 = vld [vmem:[%s2133_s0 + $0x7c] sm:$0xf]  ;;  %v1333_v27 = vor.u32 %v1502_v24, %v1332_v23 }
  0x22   :  { %350 = vmatpush.bf16.msrb.mxu2 %v1497_v20  ;;  %339 = vmatmul.bf16.vlgmr.msra.gmra.mxu3 %v1205_v26  ;;  %v1208_v20 = vld [vmem:[%s2133_s0 + $0x38] sm:$0xf]  ;;  %v1334_v26 = vld [vmem:[%s2133_s0 + $0x84] sm:$0xf0] }
  0x23   :  { %329 = vmatmul.bf16.vlgmr.msra.gmra.mxu1 %v1181_v29  ;;  %730 = vmatpush.bf16.msrb.mxu0 %v1517_v46  ;;  %v1209_v22 = vor.u32 %v1470_v21, %v1208_v20  ;;  %v1220_v29 = vld [vmem:[%s2133_s0 + $0x50] sm:$0xf]  ;;  %v1356_v46 = vld [vmem:[%s2133_s0 + $0xa8] sm:$0xf] }
  0x24   :  { %759 = vmatpush.bf16.msrb.mxu1 %v1525_v47  ;;  %v1508_v47 = vld [vmem:[%s2133_s0 + $0xb0] sm:$0xf0] }
  0x26   :  { %351 = vmatpush.bf16.msrb.mxu2 %v1496_v28  ;;  %v1337_v28 = vor.u32 %v1501_v25, %v1334_v26 }
  0x27   :  { %731 = vmatpush.bf16.msrb.mxu0 %v1516_v56  ;;  %v396_v56 = vld [vmem:[%s2134_s2 + $0x48] sm:$0xff] }
  0x28   :  { %760 = vmatpush.bf16.msrb.mxu1 %v1524_v57  ;;  %v395_v57 = vld [vmem:[%s2134_s2 + $0x40] sm:$0xff] }
  0x2a   :  { %352 = vmatpush.bf16.msrb.mxu2 %v1495_v30  ;;  %v1473_v30 = vld [vmem:[%s2133_s0 + $0x58] sm:$0xf0] }
  0x2b   :  { %732 = vmatpush.bf16.msrb.mxu0 %v1515_v58  ;;  %v394_v58 = vld [vmem:[%s2134_s2 + $0x38] sm:$0xff] }
  0x2c   :  { %761 = vmatpush.bf16.msrb.mxu1 %v1523_v59  ;;  %v393_v59 = vld [vmem:[%s2134_s2 + $0x30] sm:$0xff] }
  0x2e   :  { %353 = vmatpush.bf16.msrb.mxu2 %v1494_v31  ;;  %v1221_v31 = vor.u32 %v1473_v30, %v1220_v29 }
  0x2f   :  { %733 = vmatpush.bf16.msrb.mxu0 %v1514_v61  ;;  %v1352_v61 = vld [vmem:[%s2133_s0 + $0x98] sm:$0xf] }
  0x30   :  { %762 = vmatpush.bf16.msrb.mxu1 %v1522_v62  ;;  %v1506_v62 = vld [vmem:[%s2133_s0 + $0xa0] sm:$0xf0] }
  0x31   :  { %315 = vmatmul.bf16.gmra.mxu2 %v1213_v41  ;;  %305 = vmatmul.bf16.gmra.mxu0 %v1189_v43  ;;  %v1890_v41 = vld [vmem:[%s2134_s2 + $0x78] sm:$0xff]  ;;  %v1902_v43 = vld [vmem:[%s2134_s2 + $0x68] sm:$0xff] }
  0x32   :  { %354 = vmatpush.bf16.msrb.mxu2 %v1493_v36  ;;  %344 = vmatmul.bf16.gmra.mxu3 %v1217_v42  ;;  %v1345_v36 = vor.u32 %v1505_v33, %v1344_v32  ;;  %v1895_v42 = vld [vmem:[%s2134_s2 + $0x70] sm:$0xff] }
  0x33   :  { %334 = vmatmul.bf16.gmra.mxu1 %v1193_v45  ;;  %734 = vmatpush.bf16.msrb.mxu0 %v1513_v2  ;;  %v1503_v45 = vld [vmem:[%s2133_s0 + $0x88] sm:$0xf0]  ;;  %v389_v2 = vld [vmem:[%s2134_s2 + $0x10] sm:$0xff] }
  0x34   :  { %763 = vmatpush.bf16.msrb.mxu1 %v1521_v3  ;;  %403 = vmatpush.msrb.mxu3 %v1890_v41  ;;  %v388_v3 = vld [vmem:[%s2134_s2 + $0x8] sm:$0xff] }
  0x36   :  { %355 = vmatpush.bf16.msrb.mxu2 %v1492_v44  ;;  %404 = vmatpush.msrb.mxu3 %v1895_v42  ;;  %v1340_v44 = vld [vmem:[%s2133_s0 + $0x80] sm:$0xf] }
  0x37   :  { %735 = vmatpush.bf16.msrb.mxu0 %v1512_v6  ;;  %v1341_v52 = vor.u32 %v1503_v45, %v1340_v44  ;;  %v1364_v6 = vld [vmem:[%s2133_s0 + $0xb0] sm:$0xf] }
  0x38   :  { %764 = vmatpush.bf16.msrb.mxu1 %v1520_v7  ;;  %405 = vmatpush.msrb.mxu3 %v1902_v43  ;;  %v1509_v7 = vld [vmem:[%s2133_s0 + $0xb8] sm:$0xf0] }
  0x3a   :  { %356 = vmatpush.bf16.msrb.mxu2 %v1491_v48  ;;  %v1507_v48 = vld [vmem:[%s2133_s0 + $0xac] sm:$0xf] }
  0x3b   :  { %736 = vmatpush.bf16.msrb.mxu0 %v1511_v9  ;;  %v1365_v9 = vor.u32 %v1509_v7, %v1364_v6 }
  0x3c   :  { %765 = vmatpush.bf16.msrb.mxu1 %v1519_v10 }
  0x3e   :  { %357 = vmatpush.bf16.msrb.mxu2 %v1490_v49  ;;  %v1357_v49 = vor.u32 %v1508_v47, %v1356_v46 }
  0x3f   :  { %737 = vmatpush.bf16.msrb.mxu0 %v1510_v12 }
  0x40   :  { %766 = vmatpush.bf16.msrb.mxu1 %v1518_v13 }
  0x41   :  { %358 = vmatmul.bf16.vlgmr.msrb.gmra.mxu2 %v1185_v54  ;;  %v1937_v54 = vld [vmem:[%s2134_s2 + $0x58] sm:$0xff] }
  0x42   :  { %788 = vmatpush.bf16.msra.mxu2 %v1533_v50  ;;  %738 = vmatmul.bf16.vlgmr.msrb.gmra.mxu0 %v1321_v18  ;;  %v1358_v50 = vld [vmem:[%s2133_s0 + $0xb4] sm:$0xf0] }
  0x43   :  { %767 = vmatmul.bf16.vlgmr.msrb.gmra.mxu1 %v1325_v19  ;;  %921 = vmatpush.msra.mxu0 %v1890_v41  ;;  %v1361_v51 = vor.u32 %v1507_v48, %v1358_v50 }
  0x44   :  { %1000 = vmatpush.msra.mxu1 %v1890_v41 }
  0x45   :  { %922 = vmatpush.msra.mxu0 %v1895_v42 }
  0x46   :  { %789 = vmatpush.bf16.msra.mxu2 %v1532_v53  ;;  %1001 = vmatpush.msra.mxu1 %v1895_v42  ;;  %v1932_v53 = vld [vmem:[%s2134_s2 + $0x60] sm:$0xff] }
  0x47   :  { %923 = vmatpush.msra.mxu0 %v1902_v43  ;;  %406 = vmatpush.msrb.mxu3 %v1932_v53 }
  0x48   :  { %1002 = vmatpush.msra.mxu1 %v1902_v43 }
  0x49   :  { %924 = vmatpush.msra.mxu0 %v1932_v53  ;;  %407 = vmatpush.msrb.mxu3 %v1937_v54 }
  0x4a   :  { %790 = vmatpush.bf16.msra.mxu2 %v1531_v55  ;;  %v1943_v55 = vld [vmem:[%s2134_s2 + $0x50] sm:$0xff]  ;;  %1003 = vmatpush.msra.mxu1 %v1932_v53 }
  0x4b   :  { %925 = vmatpush.msra.mxu0 %v1937_v54  ;;  %408 = vmatpush.msrb.mxu3 %v1943_v55 }
  0x4c   :  { %1004 = vmatpush.msra.mxu1 %v1937_v54 }
  0x4d   :  { %926 = vmatpush.msra.mxu0 %v1943_v55  ;;  %409 = vmatpush.msrb.mxu3 %v396_v56 }
  0x4e   :  { %791 = vmatpush.bf16.msra.mxu2 %v1530_v60  ;;  %1005 = vmatpush.msra.mxu1 %v1943_v55  ;;  %v392_v60 = vld [vmem:[%s2134_s2 + $0x28] sm:$0xff] }
  0x4f   :  { %927 = vmatpush.msra.mxu0 %v396_v56  ;;  %410 = vmatpush.msrb.mxu3 %v395_v57 }
  0x50   :  { %1006 = vmatpush.msra.mxu1 %v396_v56 }
  0x51   :  { %363 = vmatmul.bf16.gmra.mxu2 %v1197_v5  ;;  %928 = vmatpush.msra.mxu0 %v395_v57  ;;  %v387_v5 = vld [vmem:[%s2134_s2] sm:$0xff] }
  0x52   :  { %792 = vmatpush.bf16.msra.mxu2 %v1529_v63  ;;  %743 = vmatmul.bf16.gmra.mxu0 %v1333_v27  ;;  %v1353_v63 = vor.u32 %v1506_v62, %v1352_v61 }
  0x53   :  { %772 = vmatmul.bf16.gmra.mxu1 %v1337_v28  ;;  %411 = vmatpush.msrb.mxu3 %v394_v58 }
  0x54   :  { %1007 = vmatpush.msra.mxu1 %v395_v57  ;;  %929 = vmatpush.msra.mxu0 %v394_v58 }
  0x55   :  { %412 = vmatpush.msrb.mxu3 %v393_v59 }
  0x56   :  { %793 = vmatpush.bf16.msra.mxu2 %v1528_v4  ;;  %1008 = vmatpush.msra.mxu1 %v394_v58 }
  0x57   :  { %930 = vmatpush.msra.mxu0 %v393_v59  ;;  %413 = vmatpush.msrb.mxu3 %v392_v60 }
  0x58   :  { %1009 = vmatpush.msra.mxu1 %v393_v59 }
  0x59   :  { %931 = vmatpush.msra.mxu0 %v392_v60  ;;  %414 = vmatpush.msrb.mxu3 %v391_v0 }
  0x5a   :  { %794 = vmatpush.bf16.msra.mxu2 %v1527_v8  ;;  %1010 = vmatpush.msra.mxu1 %v392_v60 }
  0x5b   :  { %932 = vmatpush.msra.mxu0 %v391_v0  ;;  %415 = vmatpush.msrb.mxu3 %v390_v1 }
  0x5c   :  { %1011 = vmatpush.msra.mxu1 %v391_v0 }
  0x5d   :  { %933 = vmatpush.msra.mxu0 %v390_v1  ;;  %416 = vmatpush.msrb.mxu3 %v389_v2 }
  0x5e   :  { %795 = vmatpush.bf16.msra.mxu2 %v1526_v11  ;;  %1012 = vmatpush.msra.mxu1 %v390_v1 }
  0x5f   :  { %934 = vmatpush.msra.mxu0 %v389_v2  ;;  %417 = vmatpush.msrb.mxu3 %v388_v3 }
  0x60   :  { %1013 = vmatpush.msra.mxu1 %v389_v2 }
  0x61   :  { %368 = vmatmul.bf16.gmra.mxu2 %v1209_v22  ;;  %935 = vmatpush.msra.mxu0 %v388_v3 }
  0x62   :  { %748 = vmatmul.bf16.gmra.mxu0 %v1345_v36  ;;  %418 = vmatpush.msrb.mxu3 %v387_v5 }
  0x63   :  { %777 = vmatmul.bf16.gmra.mxu1 %v1349_v37  ;;  %936 = vmatpush.msra.mxu0 %v387_v5 }
  0x64   :  { %1014 = vmatpush.msra.mxu1 %v388_v3  ;;  %841 = vmatpush.msra.mxu3 %v1890_v41 }
  0x66   :  { %1015 = vmatpush.msra.mxu1 %v387_v5  ;;  %842 = vmatpush.msra.mxu3 %v1895_v42 }
  0x68   :  { %843 = vmatpush.msra.mxu3 %v1902_v43 }
  0x6a   :  { %844 = vmatpush.msra.mxu3 %v1932_v53 }
  0x6c   :  { %845 = vmatpush.msra.mxu3 %v1937_v54 }
  0x6e   :  { %846 = vmatpush.msra.mxu3 %v1943_v55 }
  0x70   :  { %847 = vmatpush.msra.mxu3 %v396_v56 }
  0x71   :  { %373 = vmatmul.bf16.gmra.mxu2 %v1221_v31 }
  0x72   :  { %753 = vmatmul.bf16.gmra.mxu0 %v1357_v49  ;;  %848 = vmatpush.msra.mxu3 %v395_v57 }
  0x73   :  { %782 = vmatmul.bf16.gmra.mxu1 %v1361_v51 }
  0x74   :  { %849 = vmatpush.msra.mxu3 %v394_v58 }
  0x76   :  { %850 = vmatpush.msra.mxu3 %v393_v59 }
  0x78   :  { %851 = vmatpush.msra.mxu3 %v392_v60 }
  0x7a   :  { %852 = vmatpush.msra.mxu3 %v391_v0 }
  0x7c   :  { %853 = vmatpush.msra.mxu3 %v390_v1 }
  0x7e   :  { %854 = vmatpush.msra.mxu3 %v389_v2 }
  0x80   :  { %855 = vmatpush.msra.mxu3 %v388_v3 }
  0x81   :  { %796 = vmatmul.bf16.vlgmr.msra.gmra.mxu2 %v1329_v40 }
  0x82   :  { %856 = vmatpush.msra.mxu3 %v387_v5 }
  0x91   :  { %801 = vmatmul.bf16.gmra.mxu2 %v1341_v52 }
  0x9e   :  { %v301_v11 = vpop.f32.mrf.mxu0 }
  0xa0   :  { %v330_v12 = vpop.f32.mrf.mxu1 }
  0xa1   :  { %806 = vmatmul.bf16.gmra.mxu2 %v1353_v63  ;;  %v331_v14 = vadd.f32 %v330_v12, %v301_v11 }
  0xa4   :  { %v311_v4 = vpop.f32.mrf.mxu2 }
  0xa5   :  { %v340_v29 = vpop.f32.mrf.mxu3 }
  0xa6   :  { %v303_v15 = vpop.f32.mrf.mxu0  ;;  %v341_v33 = vadd.f32 %v340_v29, %v311_v4 }
  0xa8   :  { %v332_v16 = vpop.f32.mrf.mxu1 }
  0xa9   :  { %v333_v19 = vadd.f32 %v332_v16, %v303_v15 }
  0xac   :  { %v313_v8 = vpop.f32.mrf.mxu2 }
  0xad   :  { %v342_v34 = vpop.f32.mrf.mxu3 }
  0xae   :  { %v306_v22 = vpop.f32.mrf.mxu0  ;;  %v343_v37 = vadd.f32 %v342_v34, %v313_v8 }
  0xb0   :  { %v335_v23 = vpop.f32.mrf.mxu1 }
  0xb1   :  { %811 = vmatmul.bf16.gmra.mxu2 %v1365_v9  ;;  %v336_v24 = vadd.f32 %v335_v23, %v306_v22 }
  0xb4   :  { %v316_v10 = vpop.f32.mrf.mxu2 }
  0xb5   :  { %v345_v40 = vpop.f32.mrf.mxu3 }
  0xb6   :  { %v308_v27 = vpop.f32.mrf.mxu0  ;;  %v346_v43 = vadd.f32 %v345_v40, %v316_v10 }
  0xb8   :  { %v337_v28 = vpop.f32.mrf.mxu1 }
  0xb9   :  { %v338_v30 = vadd.f32 %v337_v28, %v308_v27 }
  0xbc   :  { %v318_v13 = vpop.f32.mrf.mxu2 }
  0xbd   :  { %v347_v46 = vpop.f32.mrf.mxu3 }
  0xbe   :  { %v348_v47 = vadd.f32 %v347_v46, %v318_v13 }
  0xbf   :  { %v739_v41 = vpop.f32.mrf.mxu0 }
  0xc0   :  { %v768_v42 = vpop.f32.mrf.mxu1 }
  0xc1   :  { %v769_v52 = vadd.f32 %v768_v42, %v739_v41 }
  0xc4   :  { %v359_v17 = vpop.f32.mrf.mxu2 }
  0xc5   :  { %v2001_v18 = vadd.f32 %v359_v17, %v331_v14 }
  0xc7   :  { %419 = vmatmul.f32.vlgmr.msrb.gmra.mxu3 %v2001_v18  ;;  %v741_v48 = vpop.f32.mrf.mxu0 }
  0xc8   :  { %v770_v50 = vpop.f32.mrf.mxu1 }
  0xc9   :  { %v771_v57 = vadd.f32 %v770_v50, %v741_v48 }
  0xcc   :  { %v361_v20 = vpop.f32.mrf.mxu2 }
  0xcd   :  { %v2004_v21 = vadd.f32 %v361_v20, %v333_v19 }
  0xcf   :  { %422 = vmatmul.f32.gmra.mxu3 %v2004_v21  ;;  %v744_v55 = vpop.f32.mrf.mxu0 }
  0xd0   :  { %v773_v56 = vpop.f32.mrf.mxu1 }
  0xd1   :  { %v774_v62 = vadd.f32 %v773_v56, %v744_v55 }
  0xd4   :  { %v364_v25 = vpop.f32.mrf.mxu2 }
  0xd5   :  { %v2007_v26 = vadd.f32 %v364_v25, %v336_v24 }
  0xd7   :  { %425 = vmatmul.f32.gmra.mxu3 %v2007_v26  ;;  %v746_v60 = vpop.f32.mrf.mxu0 }
  0xd8   :  { %v775_v61 = vpop.f32.mrf.mxu1 }
  0xd9   :  { %v776_v3 = vadd.f32 %v775_v61, %v746_v60 }
  0xdc   :  { %v366_v31 = vpop.f32.mrf.mxu2 }
  0xdd   :  { %v2010_v32 = vadd.f32 %v366_v31, %v338_v30 }
  0xdf   :  { %428 = vmatmul.f32.gmra.mxu3 %v2010_v32  ;;  %v749_v1 = vpop.f32.mrf.mxu0 }
  0xe0   :  { %v778_v2 = vpop.f32.mrf.mxu1 }
  0xe1   :  { %v779_v6 = vadd.f32 %v778_v2, %v749_v1 }
  0xe4   :  { %v369_v35 = vpop.f32.mrf.mxu2 }
  0xe5   :  { %v2013_v36 = vadd.f32 %v369_v35, %v341_v33 }
  0xe7   :  { %431 = vmatmul.f32.gmra.mxu3 %v2013_v36  ;;  %v751_v7 = vpop.f32.mrf.mxu0 }
  0xe8   :  { %v780_v8 = vpop.f32.mrf.mxu1 }
  0xe9   :  { %v781_v11 = vadd.f32 %v780_v8, %v751_v7 }
  0xec   :  { %v371_v38 = vpop.f32.mrf.mxu2 }
  0xed   :  { %v2016_v39 = vadd.f32 %v371_v38, %v343_v37 }
  0xef   :  { %434 = vmatmul.f32.gmra.mxu3 %v2016_v39  ;;  %v754_v14 = vpop.f32.mrf.mxu0 }
  0xf0   :  { %v783_v15 = vpop.f32.mrf.mxu1 }
  0xf1   :  { %v784_v16 = vadd.f32 %v783_v15, %v754_v14 }
  0xf4   :  { %v374_v44 = vpop.f32.mrf.mxu2 }
  0xf5   :  { %v2019_v45 = vadd.f32 %v374_v44, %v346_v43 }
  0xf7   :  { %437 = vmatmul.f32.gmra.mxu3 %v2019_v45  ;;  %v756_v20 = vpop.f32.mrf.mxu0 }
  0xf8   :  { %v785_v22 = vpop.f32.mrf.mxu1 }
  0xf9   :  { %v786_v23 = vadd.f32 %v785_v22, %v756_v20 }
  0xfc   :  { %v376_v49 = vpop.f32.mrf.mxu2 }
  0xfd   :  { %v2022_v51 = vadd.f32 %v376_v49, %v348_v47 }
  0xff   :  { %440 = vmatmul.f32.gmra.mxu3 %v2022_v51 }
 0x104   :  { %v797_v53 = vpop.f32.mrf.mxu2 }
 0x105   :  { %v2025_v54 = vadd.f32 %v797_v53, %v769_v52 }
 0x107   :  { %857 = vmatmul.f32.vlgmr.msra.gmra.mxu3 %v2025_v54 }
 0x10c   :  { %v799_v58 = vpop.f32.mrf.mxu2 }
 0x10d   :  { %v2028_v59 = vadd.f32 %v799_v58, %v771_v57 }
 0x10f   :  { %860 = vmatmul.f32.gmra.mxu3 %v2028_v59 }
 0x114   :  { %v802_v63 = vpop.f32.mrf.mxu2 }
 0x115   :  { %v2031_v0 = vadd.f32 %v802_v63, %v774_v62 }
 0x117   :  { %863 = vmatmul.f32.gmra.mxu3 %v2031_v0 }
 0x11c   :  { %v804_v4 = vpop.f32.mrf.mxu2 }
 0x11d   :  { %v2034_v5 = vadd.f32 %v804_v4, %v776_v3 }
 0x11f   :  { %866 = vmatmul.f32.gmra.mxu3 %v2034_v5 }
 0x124   :  { %v807_v9 = vpop.f32.mrf.mxu2 }
 0x125   :  { %v2037_v10 = vadd.f32 %v807_v9, %v779_v6 }
 0x127   :  { %869 = vmatmul.f32.gmra.mxu3 %v2037_v10 }
 0x12c   :  { %v809_v12 = vpop.f32.mrf.mxu2 }
 0x12d   :  { %v2040_v13 = vadd.f32 %v809_v12, %v781_v11 }
 0x12f   :  { %872 = vmatmul.f32.gmra.mxu3 %v2040_v13 }
 0x134   :  { %v812_v17 = vpop.f32.mrf.mxu2 }
 0x135   :  { %v2043_v19 = vadd.f32 %v812_v17, %v784_v16 }
 0x137   :  { %875 = vmatmul.f32.gmra.mxu3 %v2043_v19 }
 0x13c   :  { %v814_v24 = vpop.f32.mrf.mxu2 }
 0x13d   :  { %v2046_v25 = vadd.f32 %v814_v24, %v786_v23 }
 0x13f   :  { %878 = vmatmul.f32.gmra.mxu3 %v2046_v25 }
 0x14a   :  { %v420_v27 = vpop.f32.mrf.mxu3 }
 0x152   :  { %v423_v28 = vpop.f32.mrf.mxu3 }
 0x153   :  { %v444_v29 = vadd.f32 %v423_v28, %v420_v27 }
 0x15a   :  { %v426_v30 = vpop.f32.mrf.mxu3 }
 0x15b   :  { %v445_v31 = vadd.f32 %v444_v29, %v426_v30 }
 0x162   :  { %v429_v33 = vpop.f32.mrf.mxu3 }
 0x163   :  { %v446_v34 = vadd.f32 %v445_v31, %v429_v33 }
 0x16a   :  { %v432_v35 = vpop.f32.mrf.mxu3 }
 0x16b   :  { %v447_v37 = vadd.f32 %v446_v34, %v432_v35 }
 0x172   :  { %v435_v38 = vpop.f32.mrf.mxu3 }
 0x173   :  { %v448_v40 = vadd.f32 %v447_v37, %v435_v38 }
 0x17a   :  { %v438_v41 = vpop.f32.mrf.mxu3 }
 0x17b   :  { %v449_v42 = vadd.f32 %v448_v40, %v438_v41 }
 0x182   :  { %v441_v43 = vpop.f32.mrf.mxu3 }
 0x183   :  { %v450_v44 = vadd.f32 %v449_v42, %v441_v43 }
 0x185   :  { %v451_v57 = vrot.slane %v450_v44, 4 }
 0x187   :  { %v452_v61 = vadd.f32 %v451_v57, %v450_v44 }
 0x189   :  { %v453_v2 = vrot.slane %v452_v61, 2 }
 0x18a   :  { %v858_v46 = vpop.f32.mrf.mxu3 }
 0x18b   :  { %v454_v6 = vadd.f32 %v453_v2, %v452_v61 }
 0x18d   :  { %v455_v9 = vrot.slane %v454_v6, 1 }
 0x18f   :  { %v456_v14 = vadd.f32 %v455_v9, %v454_v6 }
 0x192   :  { %v861_v47 = vpop.f32.mrf.mxu3 }
 0x193   :  { %v882_v53 = vadd.f32 %v861_v47, %v858_v46 }
 0x19a   :  { %v864_v48 = vpop.f32.mrf.mxu3 }
 0x19b   :  { %v883_v55 = vadd.f32 %v882_v53, %v864_v48 }
 0x1a2   :  { %v867_v49 = vpop.f32.mrf.mxu3 }
 0x1a3   :  { %v884_v58 = vadd.f32 %v883_v55, %v867_v49 }
 0x1aa   :  { %v870_v50 = vpop.f32.mrf.mxu3 }
 0x1ab   :  { %v885_v60 = vadd.f32 %v884_v58, %v870_v50 }
 0x1b2   :  { %v873_v52 = vpop.f32.mrf.mxu3 }
 0x1b3   :  { %v886_v62 = vadd.f32 %v885_v60, %v873_v52 }
 0x1ba   :  { %v876_v56 = vpop.f32.mrf.mxu3 }
 0x1bb   :  { %v887_v63 = vadd.f32 %v886_v62, %v876_v56 }
 0x1c2   :  { %v879_v1 = vpop.f32.mrf.mxu3 }
 0x1c3   :  { %v888_v3 = vadd.f32 %v887_v63, %v879_v1 }
 0x1c5   :  { %v889_v4 = vrot.slane %v888_v3, 4 }
 0x1c7   :  { %v890_v7 = vadd.f32 %v889_v4, %v888_v3 }
 0x1c9   :  { %v891_v8 = vrot.slane %v890_v7, 2 }
 0x1cb   :  { %v892_v11 = vadd.f32 %v891_v8, %v890_v7 }
 0x1cd   :  { %v893_v12 = vrot.slane %v892_v11, 1 }
 0x1cf   :  { %v894_v15 = vadd.f32 %v893_v12, %v892_v11 }
 0x1d1   :  { %v895_v16 = vadd.f32 %v894_v15, %v456_v14 }
 0x1d3   :  { %v2049_v17 = vmul.f32 0.001953125, %v895_v16 }
 0x1d5   :  { %v905_v20 = vsub.f32 %v2001_v18, %v2049_v17  ;;  %v984_v22 = vsub.f32 %v2025_v54, %v2049_v17  ;;  %v906_v27 = vsub.f32 %v2004_v21, %v2049_v17  ;;  %v985_v28 = vsub.f32 %v2028_v59, %v2049_v17 }
 0x1d6   :  { %v907_v31 = vsub.f32 %v2007_v26, %v2049_v17  ;;  %v986_v33 = vsub.f32 %v2031_v0, %v2049_v17  ;;  %v908_v37 = vsub.f32 %v2010_v32, %v2049_v17  ;;  %v987_v38 = vsub.f32 %v2034_v5, %v2049_v17 }
 0x1d7   :  { %v913_v23 = vmul.f32 %v905_v20, %v905_v20  ;;  %v992_v24 = vmul.f32 %v984_v22, %v984_v22  ;;  %v914_v29 = vmul.f32 %v906_v27, %v906_v27  ;;  %v993_v30 = vmul.f32 %v985_v28, %v985_v28 }
 0x1d8   :  { %v915_v34 = vmul.f32 %v907_v31, %v907_v31  ;;  %v994_v35 = vmul.f32 %v986_v33, %v986_v33  ;;  %v916_v40 = vmul.f32 %v908_v37, %v908_v37  ;;  %v995_v41 = vmul.f32 %v987_v38, %v987_v38 }
 0x1d9   :  { %937 = vmatmul.f32.vlgmr.msra.gmra.mxu0 %v913_v23  ;;  %1016 = vmatmul.f32.vlgmr.msra.gmra.mxu1 %v992_v24  ;;  %v909_v42 = vsub.f32 %v2013_v36, %v2049_v17  ;;  %v988_v43 = vsub.f32 %v2037_v10, %v2049_v17  ;;  %v910_v47 = vsub.f32 %v2016_v39, %v2049_v17 }
 0x1da   :  { %v989_v48 = vsub.f32 %v2040_v13, %v2049_v17  ;;  %v911_v52 = vsub.f32 %v2019_v45, %v2049_v17  ;;  %v990_v53 = vsub.f32 %v2043_v19, %v2049_v17  ;;  %v912_v57 = vsub.f32 %v2022_v51, %v2049_v17 }
 0x1db   :  { %v917_v44 = vmul.f32 %v909_v42, %v909_v42  ;;  %v996_v46 = vmul.f32 %v988_v43, %v988_v43  ;;  %v918_v49 = vmul.f32 %v910_v47, %v910_v47  ;;  %v991_v58 = vsub.f32 %v2046_v25, %v2049_v17 }
 0x1dc   :  { %v997_v50 = vmul.f32 %v989_v48, %v989_v48  ;;  %v919_v55 = vmul.f32 %v911_v52, %v911_v52  ;;  %v998_v56 = vmul.f32 %v990_v53, %v990_v53  ;;  %v920_v60 = vmul.f32 %v912_v57, %v912_v57 }
 0x1dd   :  { %v999_v61 = vmul.f32 %v991_v58, %v991_v58  ;;  %v1055_v53 = vmul.f32 0.0, %v2049_v17 }
 0x1df   :  { %v1056_v58 = vmul.f32 %v1055_v53, %v2049_v17 }
 0x1e1   :  { %940 = vmatmul.f32.gmra.mxu0 %v914_v29  ;;  %1019 = vmatmul.f32.gmra.mxu1 %v993_v30 }
 0x1e9   :  { %943 = vmatmul.f32.gmra.mxu0 %v915_v34  ;;  %1022 = vmatmul.f32.gmra.mxu1 %v994_v35 }
 0x1f1   :  { %946 = vmatmul.f32.gmra.mxu0 %v916_v40  ;;  %1025 = vmatmul.f32.gmra.mxu1 %v995_v41 }
 0x1f9   :  { %949 = vmatmul.f32.gmra.mxu0 %v917_v44  ;;  %1028 = vmatmul.f32.gmra.mxu1 %v996_v46 }
 0x201   :  { %952 = vmatmul.f32.gmra.mxu0 %v918_v49  ;;  %1031 = vmatmul.f32.gmra.mxu1 %v997_v50 }
 0x209   :  { %955 = vmatmul.f32.gmra.mxu0 %v919_v55  ;;  %1034 = vmatmul.f32.gmra.mxu1 %v998_v56 }
 0x211   :  { %958 = vmatmul.f32.gmra.mxu0 %v920_v60  ;;  %1037 = vmatmul.f32.gmra.mxu1 %v999_v61 }
 0x256   :  { %v938_v62 = vpop.f32.mrf.mxu0  ;;  %v1017_v63 = vpop.f32.mrf.mxu1 }
 0x25e   :  { %v941_v1 = vpop.f32.mrf.mxu0  ;;  %v1020_v2 = vpop.f32.mrf.mxu1 }
 0x25f   :  { %v962_v14 = vadd.f32 %v941_v1, %v938_v62  ;;  %v1041_v15 = vadd.f32 %v1020_v2, %v1017_v63 }
 0x266   :  { %v944_v3 = vpop.f32.mrf.mxu0  ;;  %v1023_v4 = vpop.f32.mrf.mxu1 }
 0x267   :  { %v963_v16 = vadd.f32 %v962_v14, %v944_v3  ;;  %v1042_v20 = vadd.f32 %v1041_v15, %v1023_v4 }
 0x26e   :  { %v947_v6 = vpop.f32.mrf.mxu0  ;;  %v1026_v7 = vpop.f32.mrf.mxu1 }
 0x26f   :  { %v964_v24 = vadd.f32 %v963_v16, %v947_v6  ;;  %v1043_v27 = vadd.f32 %v1042_v20, %v1026_v7  ;;  %v1060_v7 = vld [vmem:[%s2135_s3] sm:$0x1] }
 0x276   :  { %v950_v8 = vpop.f32.mrf.mxu0  ;;  %v1029_v9 = vpop.f32.mrf.mxu1 }
 0x277   :  { %v965_v28 = vadd.f32 %v964_v24, %v950_v8  ;;  %v1044_v29 = vadd.f32 %v1043_v27, %v1029_v9 }
 0x27e   :  { %v953_v11 = vpop.f32.mrf.mxu0  ;;  %v1032_v12 = vpop.f32.mrf.mxu1 }
 0x27f   :  { %v966_v30 = vadd.f32 %v965_v28, %v953_v11  ;;  %v1045_v31 = vadd.f32 %v1044_v29, %v1032_v12  ;;  %v1073_v12 = vld [vmem:[%s2136_s4] sm:$0x1] }
 0x286   :  { %v956_v22 = vpop.f32.mrf.mxu0  ;;  %v1035_v23 = vpop.f32.mrf.mxu1 }
 0x287   :  { %v967_v33 = vadd.f32 %v966_v30, %v956_v22  ;;  %v1046_v34 = vadd.f32 %v1045_v31, %v1035_v23 }
 0x28e   :  { %v959_v35 = vpop.f32.mrf.mxu0  ;;  %v1038_v37 = vpop.f32.mrf.mxu1 }
 0x28f   :  { %v968_v38 = vadd.f32 %v967_v33, %v959_v35  ;;  %v1047_v40 = vadd.f32 %v1046_v34, %v1038_v37 }
 0x291   :  { %v969_v41 = vrot.slane %v968_v38, 4  ;;  %v1048_v42 = vrot.slane %v1047_v40, 4 }
 0x293   :  { %v970_v43 = vadd.f32 %v969_v41, %v968_v38  ;;  %v1049_v44 = vadd.f32 %v1048_v42, %v1047_v40 }
 0x295   :  { %v971_v46 = vrot.slane %v970_v43, 2  ;;  %v1050_v47 = vrot.slane %v1049_v44, 2 }
 0x297   :  { %v972_v48 = vadd.f32 %v971_v46, %v970_v43  ;;  %v1051_v49 = vadd.f32 %v1050_v47, %v1049_v44 }
 0x299   :  { %v973_v50 = vrot.slane %v972_v48, 1  ;;  %v1052_v52 = vrot.slane %v1051_v49, 1 }
 0x29b   :  { %v974_v55 = vadd.f32 %v973_v50, %v972_v48  ;;  %v1053_v56 = vadd.f32 %v1052_v52, %v1051_v49 }
 0x29d   :  { %v1054_v57 = vadd.f32 %v1053_v56, %v974_v55 }
 0x29f   :  { %v1057_v60 = vsub.f32 %v1054_v57, %v1056_v58 }
 0x2a1   :  { %v1058_v61 = vmul.f32 0.001953125, %v1057_v60 }
 0x2a3   :  { %v1059_v62 = vmax.f32 %v1058_v61, 0.0 }
 0x2a5   :  { %v1061_v63 = vadd.f32 1e-05, %v1059_v62 }
 0x2a7   :  { %1597 = vrsqrt.f32 %v1061_v63  ;;  %vm1068_vm1 = vweird.f32 %v1061_v63 }
 0x2ad   :  { %v1598_v1 = vpop.eup %1597 }
 0x2ae   :  { %v1063_v2 = vmul.f32 %v1598_v1, %v1061_v63  ;;  %vm1069_vm0 = vweird.f32 %v1598_v1 }
 0x2af   :  { %vm1070_vm2 = vmor %vm1068_vm1, %vm1069_vm0 }
 0x2b0   :  { %v1064_v3 = vmul.f32 %v1598_v1, %v1063_v2 }
 0x2b2   :  { %v1065_v4 = vmul.f32 0.5, %v1064_v3 }
 0x2b4   :  { %v1066_v6 = vsub.f32 1.5, %v1065_v4 }
 0x2b6   :  { %v1067_v8 = vmul.f32 %v1598_v1, %v1066_v6 }
 0x2b8   :  { %v1071_v9 = vsel %vm1070_vm2, %v1598_v1, %v1067_v8 }
 0x2b9   :  { %v1072_v11 = vmul.f32 %v1071_v9, %v1060_v7 }
 0x2bb   :  { %v1074_v14 = vmul.f32 %v1072_v11, %v2049_v17  ;;  %v1077_v15 = vperm.slane %v1072_v11, 0 }
 0x2bd   :  { %v1075_v16 = vsub.f32 %v1073_v12, %v1074_v14  ;;  %v1079_v20 = vmul.f32 %v1077_v15, %v2001_v18  ;;  %v1080_v22 = vmul.f32 %v1077_v15, %v2004_v21  ;;  %v1081_v23 = vmul.f32 %v1077_v15, %v2007_v26 }
 0x2be   :  { %v1082_v24 = vmul.f32 %v1077_v15, %v2010_v32  ;;  %v1083_v27 = vmul.f32 %v1077_v15, %v2013_v36  ;;  %v1084_v28 = vmul.f32 %v1077_v15, %v2016_v39  ;;  %v1085_v29 = vmul.f32 %v1077_v15, %v2019_v45 }
 0x2bf   :  { %v1086_v30 = vmul.f32 %v1077_v15, %v2022_v51  ;;  %v1088_v31 = vperm.slane %v1075_v16, 0  ;;  %v1130_v17 = vmul.f32 %v1077_v15, %v2025_v54  ;;  %v1131_v33 = vmul.f32 %v1077_v15, %v2028_v59 }
 0x2c0   :  { %v1132_v18 = vmul.f32 %v1077_v15, %v2031_v0  ;;  %v1133_v21 = vmul.f32 %v1077_v15, %v2034_v5  ;;  %v1134_v26 = vmul.f32 %v1077_v15, %v2037_v10  ;;  %v1135_v32 = vmul.f32 %v1077_v15, %v2040_v13 }
 0x2c1   :  { %v1090_v36 = vadd.f32 %v1088_v31, %v1079_v20  ;;  %v1091_v34 = vadd.f32 %v1088_v31, %v1080_v22  ;;  %v1092_v39 = vadd.f32 %v1088_v31, %v1081_v23  ;;  %v1093_v35 = vadd.f32 %v1088_v31, %v1082_v24 }
 0x2c2   :  { %v1094_v45 = vadd.f32 %v1088_v31, %v1083_v27  ;;  %v1095_v37 = vadd.f32 %v1088_v31, %v1084_v28  ;;  %v1096_v51 = vadd.f32 %v1088_v31, %v1085_v29  ;;  %v1097_v38 = vadd.f32 %v1088_v31, %v1086_v30 }
 0x2c3   :  { %v1098_v40 = vmax.f32 %v1090_v36, 0.0  ;;  %v1099_v54 = vmax.f32 %v1091_v34, 0.0  ;;  %v1100_v41 = vmax.f32 %v1092_v39, 0.0  ;;  %v1101_v59 = vmax.f32 %v1093_v35, 0.0 }
 0x2c4   :  { %v1102_v42 = vmax.f32 %v1094_v45, 0.0  ;;  %v1103_v0 = vmax.f32 %v1095_v37, 0.0  ;;  %v1104_v43 = vmax.f32 %v1096_v51, 0.0  ;;  %v1105_v5 = vmax.f32 %v1097_v38, 0.0 }
 0x2c5   :  { %v1537_v44 = vpack.c.bf16 %v1099_v54, %v1098_v40  ;;  %v1542_v10 = vpack.c.bf16 %v1101_v59, %v1100_v41  ;;  %v1136_v13 = vmul.f32 %v1077_v15, %v2043_v19  ;;  %v1137_v46 = vmul.f32 %v1077_v15, %v2046_v25 }
 0x2c6   :  { %v1547_v47 = vpack.c.bf16 %v1103_v0, %v1102_v42  ;;  %v1552_v48 = vpack.c.bf16 %v1105_v5, %v1104_v43  ;;  %v1138_v49 = vadd.f32 %v1130_v17, %v1088_v31  ;;  %v1139_v50 = vadd.f32 %v1131_v33, %v1088_v31 }
 0x2c7   :  { %1538 = vst [vmem:[%s2137_s5] sm:$0xff] %v1537_v44   ;;  %v1140_v52 = vadd.f32 %v1132_v18, %v1088_v31  ;;  %v1141_v53 = vadd.f32 %v1133_v21, %v1088_v31  ;;  %v1142_v55 = vadd.f32 %v1134_v26, %v1088_v31  ;;  %v1143_v56 = vadd.f32 %v1135_v32, %v1088_v31 }
 0x2c8   :  { %1574 = vst [vmem:[%s2137_s5 + $0x8] sm:$0xff] %v1542_v10   ;;  %v1144_v57 = vadd.f32 %v1136_v13, %v1088_v31  ;;  %v1145_v19 = vadd.f32 %v1137_v46, %v1088_v31  ;;  %v1146_v58 = vmax.f32 %v1138_v49, 0.0  ;;  %v1147_v25 = vmax.f32 %v1139_v50, 0.0 }
 0x2c9   :  { %1575 = vst [vmem:[%s2137_s5 + $0x10] sm:$0xff] %v1547_v47   ;;  %v1148_v60 = vmax.f32 %v1140_v52, 0.0  ;;  %v1149_v61 = vmax.f32 %v1141_v53, 0.0  ;;  %v1150_v62 = vmax.f32 %v1142_v55, 0.0  ;;  %v1151_v63 = vmax.f32 %v1143_v56, 0.0 }
 0x2ca   :  { %1576 = vst [vmem:[%s2137_s5 + $0x18] sm:$0xff] %v1552_v48   ;;  %v1152_v1 = vmax.f32 %v1144_v57, 0.0  ;;  %v1153_v2 = vmax.f32 %v1145_v19, 0.0  ;;  %v1557_v3 = vpack.c.bf16 %v1147_v25, %v1146_v58 }
 0x2cb   :  { %v1562_v4 = vpack.c.bf16 %v1149_v61, %v1148_v60  ;;  %v1567_v6 = vpack.c.bf16 %v1151_v63, %v1150_v62 }
 0x2cc   :  { %1577 = vst [vmem:[%s2137_s5 + $0x20] sm:$0xff] %v1557_v3   ;;  %v1572_v7 = vpack.c.bf16 %v1153_v2, %v1152_v1 }
 0x2cd   :  { %1578 = vst [vmem:[%s2137_s5 + $0x28] sm:$0xff] %v1562_v4  }
 0x2ce   :  { %1579 = vst [vmem:[%s2137_s5 + $0x30] sm:$0xff] %v1567_v6  }
 0x2cf   :  { %1580 = vst [vmem:[%s2137_s5 + $0x38] sm:$0xff] %v1572_v7  }

// kernel: netg_forward.8
= control target key start
LH: loop header
LB: loop body
LE: loop exit
PB: predicated region body
PF: predicated region fallthrough
CT: control target
= control target key end

     0   :  { %s6713_s1 = inlined_call_operand.vmem [shape: bf16[256,128], index: 1, kind: input, shape index: {}]   ;;  %s6714_s0 = inlined_call_operand.vmem [shape: bf16[512,256], index: 0, kind: input, shape index: {}]   ;;  %s6715_s2 = inlined_call_operand.vmem [shape: f32[128,128], index: 2, kind: input, shape index: {}]   ;;  %s6716_s3 = inlined_call_operand.vmem [shape: f32[1,128], index: 3, kind: input, shape index: {}]   ;;  %s6717_s4 = inlined_call_operand.vmem [shape: f32[1,128], index: 4, kind: input, shape index: {}]   ;;  %s6718_s5 = inlined_call_operand.vmem [shape: bf16[512,128], index: 5, kind: output, shape index: {}]  }
   0x1   :  { %v4347_v0 = vld [vmem:[%s6713_s1 + $0x38] sm:$0xff]  ;;  %v4346_v2 = vld [vmem:[%s6713_s1 + $0x30] sm:$0xff]  ;;  %v4345_v4 = vld [vmem:[%s6713_s1 + $0x28] sm:$0xff] }
   0x2   :  { %v4355_v1 = vld [vmem:[%s6713_s1 + $0x78] sm:$0xff]  ;;  %196 = vmatpush.bf16.msra.mxu0 %v4347_v0  ;;  %v4354_v3 = vld [vmem:[%s6713_s1 + $0x70] sm:$0xff]  ;;  %v4353_v5 = vld [vmem:[%s6713_s1 + $0x68] sm:$0xff] }
   0x3   :  { %225 = vmatpush.bf16.msra.mxu1 %v4355_v1  ;;  %v4344_v6 = vld [vmem:[%s6713_s1 + $0x20] sm:$0xff]  ;;  %v4343_v8 = vld [vmem:[%s6713_s1 + $0x18] sm:$0xff]  ;;  %v4342_v11 = vld [vmem:[%s6713_s1 + $0x10] sm:$0xff] }
   0x4   :  { %v4352_v7 = vld [vmem:[%s6713_s1 + $0x60] sm:$0xff]  ;;  %v4351_v9 = vld [vmem:[%s6713_s1 + $0x58] sm:$0xff]  ;;  %v4350_v12 = vld [vmem:[%s6713_s1 + $0x50] sm:$0xff] }
   0x5   :  { %v4371_v10 = vld [vmem:[%s6713_s1 + $0x38] sm:$0xff]  ;;  %v4370_v13 = vld [vmem:[%s6713_s1 + $0x30] sm:$0xff]  ;;  %v4341_v14 = vld [vmem:[%s6713_s1 + $0x8] sm:$0xff] }
   0x6   :  { %197 = vmatpush.bf16.msra.mxu0 %v4346_v2  ;;  %509 = vmatpush.bf16.msra.mxu3 %v4371_v10  ;;  %v4349_v15 = vld [vmem:[%s6713_s1 + $0x48] sm:$0xff]  ;;  %v4340_v16 = vld [vmem:[%s6713_s1] sm:$0xff]  ;;  %v4379_v22 = vld [vmem:[%s6713_s1 + $0x78] sm:$0xff] }
   0x7   :  { %226 = vmatpush.bf16.msra.mxu1 %v4354_v3  ;;  %v4348_v17 = vld [vmem:[%s6713_s1 + $0x40] sm:$0xff]  ;;  %v4333_v19 = vld [vmem:[%s6714_s0 + $0x4] sm:$0xf0]  ;;  %v3568_v21 = vld [vmem:[%s6714_s0 + $0x8] sm:$0xf0] }
   0x8   :  { %v3566_v18 = vld [vmem:[%s6714_s0] sm:$0xf]  ;;  %v4332_v20 = vld [vmem:[%s6714_s0 + $0x4] sm:$0xf]  ;;  %v4378_v25 = vld [vmem:[%s6713_s1 + $0x70] sm:$0xff] }
   0x9   :  { %v3567_v23 = vor.u32 %v4333_v19, %v3566_v18  ;;  %v3571_v24 = vor.u32 %v4332_v20, %v3568_v21  ;;  %v4369_v26 = vld [vmem:[%s6713_s1 + $0x28] sm:$0xff]  ;;  %v4368_v27 = vld [vmem:[%s6713_s1 + $0x20] sm:$0xff]  ;;  %v4367_v29 = vld [vmem:[%s6713_s1 + $0x18] sm:$0xff] }
   0xa   :  { %198 = vmatpush.bf16.msra.mxu0 %v4345_v4  ;;  %510 = vmatpush.bf16.msra.mxu3 %v4370_v13  ;;  %v4377_v28 = vld [vmem:[%s6713_s1 + $0x68] sm:$0xff]  ;;  %v4376_v30 = vld [vmem:[%s6713_s1 + $0x60] sm:$0xff]  ;;  %v3574_v31 = vld [vmem:[%s6714_s0 + $0x10] sm:$0xf] }
   0xb   :  { %227 = vmatpush.bf16.msra.mxu1 %v4353_v5  ;;  %v4335_v32 = vld [vmem:[%s6714_s0 + $0x14] sm:$0xf0]  ;;  %v4334_v33 = vld [vmem:[%s6714_s0 + $0x14] sm:$0xf]  ;;  %v3576_v34 = vld [vmem:[%s6714_s0 + $0x18] sm:$0xf0] }
   0xc   :  { %v4366_v35 = vld [vmem:[%s6713_s1 + $0x10] sm:$0xff]  ;;  %v4375_v36 = vld [vmem:[%s6713_s1 + $0x58] sm:$0xff]  ;;  %v3575_v37 = vor.u32 %v4335_v32, %v3574_v31  ;;  %v3579_v38 = vor.u32 %v4334_v33, %v3576_v34  ;;  %v4365_v40 = vld [vmem:[%s6713_s1 + $0x8] sm:$0xff] }
   0xd   :  { %v4374_v39 = vld [vmem:[%s6713_s1 + $0x50] sm:$0xff]  ;;  %v4364_v41 = vld [vmem:[%s6713_s1] sm:$0xff]  ;;  %v4357_v43 = vld [vmem:[%s6714_s0 + $0x44] sm:$0xf0] }
   0xe   :  { %199 = vmatpush.bf16.msra.mxu0 %v4344_v6  ;;  %511 = vmatpush.bf16.msra.mxu3 %v4369_v26  ;;  %v3662_v42 = vld [vmem:[%s6714_s0 + $0x40] sm:$0xf]  ;;  %v4373_v44 = vld [vmem:[%s6713_s1 + $0x48] sm:$0xff]  ;;  %v4336_v49 = vld [vmem:[%s6714_s0 + $0x24] sm:$0xf] }
   0xf   :  { %228 = vmatpush.bf16.msra.mxu1 %v4352_v7  ;;  %v3663_v45 = vor.u32 %v4357_v43, %v3662_v42  ;;  %v4372_v46 = vld [vmem:[%s6713_s1 + $0x40] sm:$0xff]  ;;  %v4337_v48 = vld [vmem:[%s6714_s0 + $0x24] sm:$0xf0]  ;;  %v3584_v50 = vld [vmem:[%s6714_s0 + $0x28] sm:$0xf0] }
  0x10   :  { %v3582_v47 = vld [vmem:[%s6714_s0 + $0x20] sm:$0xf]  ;;  %v3587_v52 = vor.u32 %v4336_v49, %v3584_v50  ;;  %v3670_v53 = vld [vmem:[%s6714_s0 + $0x50] sm:$0xf]  ;;  %v4359_v54 = vld [vmem:[%s6714_s0 + $0x54] sm:$0xf0] }
  0x11   :  { %v3583_v51 = vor.u32 %v4337_v48, %v3582_v47  ;;  %v3671_v55 = vor.u32 %v4359_v54, %v3670_v53  ;;  %v3590_v56 = vld [vmem:[%s6714_s0 + $0x30] sm:$0xf]  ;;  %v4339_v57 = vld [vmem:[%s6714_s0 + $0x34] sm:$0xf0]  ;;  %v4338_v58 = vld [vmem:[%s6714_s0 + $0x34] sm:$0xf] }
  0x12   :  { %200 = vmatpush.bf16.msra.mxu0 %v4343_v8  ;;  %512 = vmatpush.bf16.msra.mxu3 %v4368_v27  ;;  %v3592_v59 = vld [vmem:[%s6714_s0 + $0x38] sm:$0xf0]  ;;  %v3591_v60 = vor.u32 %v4339_v57, %v3590_v56  ;;  %v3678_v62 = vld [vmem:[%s6714_s0 + $0x60] sm:$0xf]  ;;  %v4361_v63 = vld [vmem:[%s6714_s0 + $0x64] sm:$0xf0] }
  0x13   :  { %229 = vmatpush.bf16.msra.mxu1 %v4351_v9  ;;  %v3595_v61 = vor.u32 %v4338_v58, %v3592_v59  ;;  %v3679_v0 = vor.u32 %v4361_v63, %v3678_v62  ;;  %v4356_v1 = vld [vmem:[%s6714_s0 + $0x44] sm:$0xf]  ;;  %v3664_v2 = vld [vmem:[%s6714_s0 + $0x48] sm:$0xf0]  ;;  %v4918_v4 = vld [vmem:[%s6715_s2 + $0x78] sm:$0xff] }
  0x14   :  { %v3667_v3 = vor.u32 %v4356_v1, %v3664_v2  ;;  %v4923_v5 = vld [vmem:[%s6715_s2 + $0x70] sm:$0xff]  ;;  %278 = vmatpush.msra.mxu2 %v4918_v4  ;;  %v4363_v7 = vld [vmem:[%s6714_s0 + $0x74] sm:$0xf0]  ;;  %v4936_v8 = vld [vmem:[%s6715_s2 + $0x68] sm:$0xff] }
  0x15   :  { %v3686_v6 = vld [vmem:[%s6714_s0 + $0x70] sm:$0xf]  ;;  %v4944_v9 = vld [vmem:[%s6715_s2 + $0x60] sm:$0xff]  ;;  %v4358_v13 = vld [vmem:[%s6714_s0 + $0x54] sm:$0xf] }
  0x16   :  { %201 = vmatpush.bf16.msra.mxu0 %v4342_v11  ;;  %513 = vmatpush.bf16.msra.mxu3 %v4367_v29  ;;  %v3687_v10 = vor.u32 %v4363_v7, %v3686_v6  ;;  %v4952_v11 = vld [vmem:[%s6715_s2 + $0x58] sm:$0xff]  ;;  %v4998_v19 = vld [vmem:[%s6715_s2 + $0x30] sm:$0xff]  ;;  %v5005_v20 = vld [vmem:[%s6715_s2 + $0x28] sm:$0xff] }
  0x17   :  { %230 = vmatpush.bf16.msra.mxu1 %v4350_v12  ;;  %279 = vmatpush.msra.mxu2 %v4923_v5  ;;  %v4960_v12 = vld [vmem:[%s6715_s2 + $0x50] sm:$0xff]  ;;  %v4993_v18 = vld [vmem:[%s6715_s2 + $0x38] sm:$0xff]  ;;  %v5013_v21 = vld [vmem:[%s6715_s2 + $0x20] sm:$0xff] }
  0x18   :  { %v5046_v27 = vld [vmem:[%s6715_s2 + $0x8] sm:$0xff]  ;;  %v4395_v29 = vld [vmem:[%s6713_s1 + $0x38] sm:$0xff]  ;;  %v4394_v31 = vld [vmem:[%s6713_s1 + $0x30] sm:$0xff] }
  0x19   :  { %280 = vmatpush.msra.mxu2 %v4936_v8  ;;  %v4402_v32 = vld [vmem:[%s6713_s1 + $0x70] sm:$0xff]  ;;  %v3688_v34 = vld [vmem:[%s6714_s0 + $0x78] sm:$0xf0]  ;;  %v4397_v53 = vld [vmem:[%s6713_s1 + $0x48] sm:$0xff] }
  0x1a   :  { %202 = vmatpush.bf16.msra.mxu0 %v4341_v14  ;;  %514 = vmatpush.bf16.msra.mxu3 %v4366_v35  ;;  %v3672_v14 = vld [vmem:[%s6714_s0 + $0x58] sm:$0xf0]  ;;  %v4362_v33 = vld [vmem:[%s6714_s0 + $0x74] sm:$0xf]  ;;  %v4389_v54 = vld [vmem:[%s6713_s1 + $0x8] sm:$0xff] }
  0x1b   :  { %231 = vmatpush.bf16.msra.mxu1 %v4349_v15  ;;  %281 = vmatpush.msra.mxu2 %v4944_v9  ;;  %v4974_v15 = vld [vmem:[%s6715_s2 + $0x48] sm:$0xff]  ;;  %v3691_v35 = vor.u32 %v4362_v33, %v3688_v34  ;;  %v4391_v43 = vld [vmem:[%s6713_s1 + $0x18] sm:$0xff]  ;;  %v4390_v48 = vld [vmem:[%s6713_s1 + $0x10] sm:$0xff] }
  0x1c   :  { %v4398_v49 = vld [vmem:[%s6713_s1 + $0x50] sm:$0xff]  ;;  %v4380_v58 = vld [vmem:[%s6714_s0 + $0x84] sm:$0xf]  ;;  %v3760_v59 = vld [vmem:[%s6714_s0 + $0x88] sm:$0xf0] }
  0x1d   :  { %282 = vmatpush.msra.mxu2 %v4952_v11  ;;  %v4388_v62 = vld [vmem:[%s6713_s1] sm:$0xff]  ;;  %v4427_v2 = vld [vmem:[%s6713_s1 + $0x78] sm:$0xff] }
  0x1e   :  { %203 = vmatpush.bf16.msra.mxu0 %v4340_v16  ;;  %515 = vmatpush.bf16.msra.mxu3 %v4365_v40  ;;  %v3675_v16 = vor.u32 %v4358_v13, %v3672_v14  ;;  %v3768_v6 = vld [vmem:[%s6714_s0 + $0x98] sm:$0xf0]  ;;  %v4418_v14 = vld [vmem:[%s6713_s1 + $0x30] sm:$0xff] }
  0x1f   :  { %232 = vmatpush.bf16.msra.mxu1 %v4348_v17  ;;  %283 = vmatpush.msra.mxu2 %v4960_v12  ;;  %v4982_v17 = vld [vmem:[%s6715_s2 + $0x40] sm:$0xff] }
  0x21   :  { %204 = vmatmul.bf16.vlgmr.msra.gmra.mxu0 %v3567_v23  ;;  %284 = vmatpush.msra.mxu2 %v4974_v15  ;;  %v5029_v23 = vld [vmem:[%s6715_s2 + $0x10] sm:$0xff] }
  0x22   :  { %538 = vmatpush.bf16.msrb.mxu0 %v4379_v22  ;;  %233 = vmatmul.bf16.vlgmr.msra.gmra.mxu1 %v3571_v24  ;;  %v5021_v22 = vld [vmem:[%s6715_s2 + $0x18] sm:$0xff]  ;;  %v4360_v24 = vld [vmem:[%s6714_s0 + $0x64] sm:$0xf] }
  0x23   :  { %516 = vmatpush.bf16.msra.mxu3 %v4364_v41  ;;  %591 = vmatpush.msrb.mxu1 %v4918_v4 }
  0x24   :  { %285 = vmatpush.msra.mxu2 %v4982_v17 }
  0x25   :  { %592 = vmatpush.msrb.mxu1 %v4923_v5 }
  0x26   :  { %539 = vmatpush.bf16.msrb.mxu0 %v4378_v25  ;;  %517 = vmatmul.bf16.vlgmr.msra.gmra.mxu3 %v3663_v45  ;;  %v3680_v25 = vld [vmem:[%s6714_s0 + $0x68] sm:$0xf0] }
  0x27   :  { %593 = vmatpush.msrb.mxu1 %v4936_v8  ;;  %286 = vmatpush.msra.mxu2 %v4993_v18  ;;  %v3683_v26 = vor.u32 %v4360_v24, %v3680_v25  ;;  %v3758_v25 = vld [vmem:[%s6714_s0 + $0x80] sm:$0xf] }
  0x29   :  { %594 = vmatpush.msrb.mxu1 %v4944_v9  ;;  %287 = vmatpush.msra.mxu2 %v4998_v19 }
  0x2a   :  { %540 = vmatpush.bf16.msrb.mxu0 %v4377_v28  ;;  %v5054_v28 = vld [vmem:[%s6715_s2] sm:$0xff] }
  0x2b   :  { %595 = vmatpush.msrb.mxu1 %v4952_v11  ;;  %288 = vmatpush.msra.mxu2 %v5005_v20 }
  0x2d   :  { %596 = vmatpush.msrb.mxu1 %v4960_v12  ;;  %289 = vmatpush.msra.mxu2 %v5013_v21 }
  0x2e   :  { %541 = vmatpush.bf16.msrb.mxu0 %v4376_v30  ;;  %v4403_v30 = vld [vmem:[%s6713_s1 + $0x78] sm:$0xff] }
  0x2f   :  { %597 = vmatpush.msrb.mxu1 %v4974_v15  ;;  %290 = vmatpush.msra.mxu2 %v5021_v22 }
  0x30   :  { %851 = vmatpush.bf16.msrb.mxu3 %v4403_v30 }
  0x31   :  { %209 = vmatmul.bf16.gmra.mxu0 %v3575_v37  ;;  %598 = vmatpush.msrb.mxu1 %v4982_v17  ;;  %v4401_v37 = vld [vmem:[%s6713_s1 + $0x68] sm:$0xff] }
  0x32   :  { %542 = vmatpush.bf16.msrb.mxu0 %v4375_v36  ;;  %238 = vmatmul.bf16.gmra.mxu1 %v3579_v38  ;;  %v4393_v36 = vld [vmem:[%s6713_s1 + $0x28] sm:$0xff]  ;;  %v4392_v38 = vld [vmem:[%s6713_s1 + $0x20] sm:$0xff] }
  0x33   :  { %599 = vmatpush.msrb.mxu1 %v4993_v18  ;;  %291 = vmatpush.msra.mxu2 %v5029_v23 }
  0x34   :  { %852 = vmatpush.bf16.msrb.mxu3 %v4402_v32  ;;  %v4423_v32 = vld [vmem:[%s6713_s1 + $0x58] sm:$0xff] }
  0x35   :  { %600 = vmatpush.msrb.mxu1 %v4998_v19  ;;  %292 = vmatpush.msra.mxu2 %v5046_v27 }
  0x36   :  { %543 = vmatpush.bf16.msrb.mxu0 %v4374_v39  ;;  %522 = vmatmul.bf16.gmra.mxu3 %v3671_v55  ;;  %v4400_v39 = vld [vmem:[%s6713_s1 + $0x60] sm:$0xff] }
  0x37   :  { %601 = vmatpush.msrb.mxu1 %v5005_v20  ;;  %293 = vmatpush.msra.mxu2 %v5054_v28  ;;  %v4396_v55 = vld [vmem:[%s6713_s1 + $0x40] sm:$0xff] }
  0x38   :  { %853 = vmatpush.bf16.msrb.mxu3 %v4401_v37 }
  0x39   :  { %602 = vmatpush.msrb.mxu1 %v5013_v21  ;;  %822 = vmatpush.bf16.msrb.mxu2 %v4395_v29 }
  0x3a   :  { %544 = vmatpush.bf16.msrb.mxu0 %v4373_v44  ;;  %v4399_v44 = vld [vmem:[%s6713_s1 + $0x58] sm:$0xff] }
  0x3b   :  { %603 = vmatpush.msrb.mxu1 %v5021_v22 }
  0x3c   :  { %854 = vmatpush.bf16.msrb.mxu3 %v4400_v39 }
  0x3d   :  { %604 = vmatpush.msrb.mxu1 %v5029_v23  ;;  %823 = vmatpush.bf16.msrb.mxu2 %v4394_v31  ;;  %v4416_v31 = vld [vmem:[%s6713_s1 + $0x20] sm:$0xff] }
  0x3e   :  { %545 = vmatpush.bf16.msrb.mxu0 %v4372_v46 }
  0x3f   :  { %605 = vmatpush.msrb.mxu1 %v5046_v27 }
  0x40   :  { %855 = vmatpush.bf16.msrb.mxu3 %v4399_v44 }
  0x41   :  { %214 = vmatmul.bf16.gmra.mxu0 %v3583_v51  ;;  %606 = vmatpush.msrb.mxu1 %v5054_v28 }
  0x42   :  { %243 = vmatmul.bf16.gmra.mxu1 %v3587_v52  ;;  %904 = vmatpush.msra.mxu0 %v4918_v4 }
  0x43   :  { %824 = vmatpush.bf16.msrb.mxu2 %v4393_v36  ;;  %v3784_v36 = vld [vmem:[%s6714_s0 + $0xb8] sm:$0xf0] }
  0x44   :  { %905 = vmatpush.msra.mxu0 %v4923_v5  ;;  %856 = vmatpush.bf16.msrb.mxu3 %v4398_v49  ;;  %v4414_v49 = vld [vmem:[%s6713_s1 + $0x10] sm:$0xff] }
  0x46   :  { %527 = vmatmul.bf16.gmra.mxu3 %v3679_v0  ;;  %906 = vmatpush.msra.mxu0 %v4936_v8 }
  0x47   :  { %825 = vmatpush.bf16.msrb.mxu2 %v4392_v38  ;;  %v4415_v38 = vld [vmem:[%s6713_s1 + $0x18] sm:$0xff] }
  0x48   :  { %907 = vmatpush.msra.mxu0 %v4944_v9  ;;  %857 = vmatpush.bf16.msrb.mxu3 %v4397_v53 }
  0x4a   :  { %908 = vmatpush.msra.mxu0 %v4952_v11 }
  0x4b   :  { %826 = vmatpush.bf16.msrb.mxu2 %v4391_v43  ;;  %v4383_v43 = vld [vmem:[%s6714_s0 + $0x94] sm:$0xf0] }
  0x4c   :  { %909 = vmatpush.msra.mxu0 %v4960_v12  ;;  %858 = vmatpush.bf16.msrb.mxu3 %v4396_v55 }
  0x4e   :  { %910 = vmatpush.msra.mxu0 %v4974_v15 }
  0x4f   :  { %827 = vmatpush.bf16.msrb.mxu2 %v4390_v48 }
  0x50   :  { %911 = vmatpush.msra.mxu0 %v4982_v17  ;;  %1217 = vmatpush.msra.mxu3 %v4918_v4 }
  0x51   :  { %219 = vmatmul.bf16.gmra.mxu0 %v3591_v60 }
  0x52   :  { %248 = vmatmul.bf16.gmra.mxu1 %v3595_v61  ;;  %912 = vmatpush.msra.mxu0 %v4993_v18  ;;  %v3763_v61 = vor.u32 %v4380_v58, %v3760_v59  ;;  %v4385_v58 = vld [vmem:[%s6714_s0 + $0xa4] sm:$0xf0]  ;;  %v4412_v59 = vld [vmem:[%s6713_s1] sm:$0xff] }
  0x53   :  { %828 = vmatpush.bf16.msrb.mxu2 %v4389_v54  ;;  %1218 = vmatpush.msra.mxu3 %v4923_v5  ;;  %v4382_v5 = vld [vmem:[%s6714_s0 + $0x94] sm:$0xf]  ;;  %v4413_v54 = vld [vmem:[%s6713_s1 + $0x8] sm:$0xff] }
  0x54   :  { %913 = vmatpush.msra.mxu0 %v4998_v19 }
  0x55   :  { %1219 = vmatpush.msra.mxu3 %v4936_v8  ;;  %v4419_v8 = vld [vmem:[%s6713_s1 + $0x38] sm:$0xff] }
  0x56   :  { %532 = vmatmul.bf16.gmra.mxu3 %v3687_v10  ;;  %914 = vmatpush.msra.mxu0 %v5005_v20  ;;  %v4426_v10 = vld [vmem:[%s6713_s1 + $0x70] sm:$0xff] }
  0x57   :  { %829 = vmatpush.bf16.msrb.mxu2 %v4388_v62  ;;  %1220 = vmatpush.msra.mxu3 %v4944_v9  ;;  %v3771_v9 = vor.u32 %v4382_v5, %v3768_v6  ;;  %v4387_v5 = vld [vmem:[%s6714_s0 + $0xb4] sm:$0xf0] }
  0x58   :  { %915 = vmatpush.msra.mxu0 %v5013_v21  ;;  %1135 = vmatpush.bf16.msra.mxu1 %v4419_v8 }
  0x59   :  { %1221 = vmatpush.msra.mxu3 %v4952_v11 }
  0x5a   :  { %916 = vmatpush.msra.mxu0 %v5021_v22 }
  0x5b   :  { %1222 = vmatpush.msra.mxu3 %v4960_v12 }
  0x5c   :  { %917 = vmatpush.msra.mxu0 %v5029_v23  ;;  %1136 = vmatpush.bf16.msra.mxu1 %v4418_v14 }
  0x5d   :  { %1223 = vmatpush.msra.mxu3 %v4974_v15 }
  0x5e   :  { %918 = vmatpush.msra.mxu0 %v5046_v27 }
  0x5f   :  { %1224 = vmatpush.msra.mxu3 %v4982_v17 }
  0x60   :  { %919 = vmatpush.msra.mxu0 %v5054_v28 }
  0x61   :  { %546 = vmatmul.bf16.vlgmr.msrb.gmra.mxu0 %v3667_v3  ;;  %1225 = vmatpush.msra.mxu3 %v4993_v18 }
  0x63   :  { %1226 = vmatpush.msra.mxu3 %v4998_v19  ;;  %v4384_v19 = vld [vmem:[%s6714_s0 + $0xa4] sm:$0xf] }
  0x65   :  { %1227 = vmatpush.msra.mxu3 %v5005_v20  ;;  %v3776_v20 = vld [vmem:[%s6714_s0 + $0xa8] sm:$0xf0] }
  0x66   :  { %859 = vmatmul.bf16.vlgmr.msrb.gmra.mxu3 %v3763_v61  ;;  %v3779_v24 = vor.u32 %v4384_v19, %v3776_v20 }
  0x67   :  { %1228 = vmatpush.msra.mxu3 %v5013_v21 }
  0x69   :  { %1229 = vmatpush.msra.mxu3 %v5021_v22  ;;  %v4417_v22 = vld [vmem:[%s6713_s1 + $0x28] sm:$0xff] }
  0x6a   :  { %1137 = vmatpush.bf16.msra.mxu1 %v4417_v22 }
  0x6b   :  { %1230 = vmatpush.msra.mxu3 %v5029_v23  ;;  %v4424_v23 = vld [vmem:[%s6713_s1 + $0x60] sm:$0xff] }
  0x6d   :  { %1231 = vmatpush.msra.mxu3 %v5046_v27 }
  0x6e   :  { %1138 = vmatpush.bf16.msra.mxu1 %v4416_v31 }
  0x6f   :  { %1232 = vmatpush.msra.mxu3 %v5054_v28 }
  0x71   :  { %551 = vmatmul.bf16.gmra.mxu0 %v3675_v16  ;;  %v4425_v16 = vld [vmem:[%s6713_s1 + $0x68] sm:$0xff] }
  0x72   :  { %1139 = vmatpush.bf16.msra.mxu1 %v4415_v38 }
  0x76   :  { %864 = vmatmul.bf16.gmra.mxu3 %v3771_v9  ;;  %1140 = vmatpush.bf16.msra.mxu1 %v4414_v49  ;;  %v3880_v49 = vld [vmem:[%s6714_s0 + $0xf8] sm:$0xf0] }
  0x7a   :  { %1141 = vmatpush.bf16.msra.mxu1 %v4413_v54 }
  0x7e   :  { %1142 = vmatpush.bf16.msra.mxu1 %v4412_v59  ;;  %v4441_v59 = vld [vmem:[%s6713_s1 + $0x28] sm:$0xff] }
  0x81   :  { %556 = vmatmul.bf16.gmra.mxu0 %v3683_v26  ;;  %v4381_v26 = vld [vmem:[%s6714_s0 + $0x84] sm:$0xf0] }
  0x82   :  { %v3759_v29 = vor.u32 %v4381_v26, %v3758_v25  ;;  %v4406_v25 = vld [vmem:[%s6714_s0 + $0xd4] sm:$0xf]  ;;  %v3864_v26 = vld [vmem:[%s6714_s0 + $0xd8] sm:$0xf0] }
  0x86   :  { %869 = vmatmul.bf16.gmra.mxu3 %v3779_v24  ;;  %v3862_v24 = vld [vmem:[%s6714_s0 + $0xd0] sm:$0xf] }
  0x91   :  { %561 = vmatmul.bf16.gmra.mxu0 %v3691_v35  ;;  %v4386_v35 = vld [vmem:[%s6714_s0 + $0xb4] sm:$0xf] }
  0x92   :  { %v3787_v39 = vor.u32 %v4386_v35, %v3784_v36  ;;  %v3872_v35 = vld [vmem:[%s6714_s0 + $0xe8] sm:$0xf0] }
  0x96   :  { %874 = vmatmul.bf16.gmra.mxu3 %v3787_v39 }
  0x9e   :  { %v205_v40 = vpop.f32.mrf.mxu0 }
  0x9f   :  { %v234_v41 = vpop.f32.mrf.mxu1 }
  0xa0   :  { %v5091_v42 = vadd.f32 %v234_v41, %v205_v40  ;;  %v4422_v40 = vld [vmem:[%s6713_s1 + $0x50] sm:$0xff] }
  0xa1   :  { %v3766_v41 = vld [vmem:[%s6714_s0 + $0x90] sm:$0xf] }
  0xa2   :  { %6838 = vst [vmem:[#allocation3_spill] sm:$0xff] %v5091_v42  ;;  %294 = vmatmul.f32.vlgmr.msra.gmra.mxu2 %v5091_v42  ;;  %v3767_v44 = vor.u32 %v4383_v43, %v3766_v41  ;;  %v3878_v41 = vld [vmem:[%s6714_s0 + $0xf0] sm:$0xf]  ;;  %v4443_v43 = vld [vmem:[%s6713_s1 + $0x38] sm:$0xff] }
  0xa3   :  { %1164 = vmatpush.bf16.msra.mxu2 %v4427_v2  ;;  %1448 = vmatpush.bf16.msrb.mxu0 %v4443_v43  ;;  %v4437_v43 = vld [vmem:[%s6713_s1 + $0x8] sm:$0xff] }
  0xa6   :  { %v207_v45 = vpop.f32.mrf.mxu0 }
  0xa7   :  { %v236_v46 = vpop.f32.mrf.mxu1  ;;  %1165 = vmatpush.bf16.msra.mxu2 %v4426_v10 }
  0xa8   :  { %v5100_v47 = vadd.f32 %v236_v46, %v207_v45 }
  0xa9   :  { %v518_v15 = vpop.f32.mrf.mxu3 }
  0xaa   :  { %6839 = vst [vmem:[#allocation4_spill] sm:$0xff] %v5100_v47  ;;  %297 = vmatmul.f32.gmra.mxu2 %v5100_v47 }
  0xab   :  { %1166 = vmatpush.bf16.msra.mxu2 %v4425_v16  ;;  %v4405_v16 = vld [vmem:[%s6714_s0 + $0xc4] sm:$0xf0] }
  0xae   :  { %v210_v50 = vpop.f32.mrf.mxu0 }
  0xaf   :  { %v239_v51 = vpop.f32.mrf.mxu1  ;;  %1167 = vmatpush.bf16.msra.mxu2 %v4424_v23  ;;  %v4407_v23 = vld [vmem:[%s6714_s0 + $0xd4] sm:$0xf0] }
  0xb0   :  { %v5109_v52 = vadd.f32 %v239_v51, %v210_v50  ;;  %v4421_v50 = vld [vmem:[%s6713_s1 + $0x48] sm:$0xff] }
  0xb1   :  { %v520_v27 = vpop.f32.mrf.mxu3 }
  0xb2   :  { %6840 = vst [vmem:[#allocation5_spill] sm:$0xff] %v5109_v52  ;;  %300 = vmatmul.f32.gmra.mxu2 %v5109_v52 }
  0xb3   :  { %1168 = vmatpush.bf16.msra.mxu2 %v4423_v32  ;;  %v3870_v32 = vld [vmem:[%s6714_s0 + $0xe0] sm:$0xf] }
  0xb6   :  { %v212_v56 = vpop.f32.mrf.mxu0 }
  0xb7   :  { %v241_v57 = vpop.f32.mrf.mxu1  ;;  %1169 = vmatpush.bf16.msra.mxu2 %v4422_v40 }
  0xb8   :  { %v5127_v60 = vadd.f32 %v241_v57, %v212_v56  ;;  %v4420_v56 = vld [vmem:[%s6713_s1 + $0x40] sm:$0xff] }
  0xb9   :  { %v523_v33 = vpop.f32.mrf.mxu3  ;;  %v3774_v57 = vld [vmem:[%s6714_s0 + $0xa0] sm:$0xf] }
  0xba   :  { %6841 = vst [vmem:[#allocation6_spill] sm:$0xff] %v5127_v60  ;;  %303 = vmatmul.f32.gmra.mxu2 %v5127_v60  ;;  %v3775_v61 = vor.u32 %v4385_v58, %v3774_v57 }
  0xbb   :  { %1170 = vmatpush.bf16.msra.mxu2 %v4421_v50 }
  0xbe   :  { %v215_v63 = vpop.f32.mrf.mxu0 }
  0xbf   :  { %v244_v0 = vpop.f32.mrf.mxu1  ;;  %1171 = vmatpush.bf16.msra.mxu2 %v4420_v56  ;;  %v4450_v56 = vld [vmem:[%s6713_s1 + $0x70] sm:$0xff] }
  0xc0   :  { %v5137_v1 = vadd.f32 %v244_v0, %v215_v63 }
  0xc1   :  { %v525_v46 = vpop.f32.mrf.mxu3 }
  0xc2   :  { %6842 = vst [vmem:[#allocation7_spill] sm:$0xff] %v5137_v1  ;;  %306 = vmatmul.f32.gmra.mxu2 %v5137_v1  ;;  %v4489_v1 = vld [vmem:[%s6713_s1 + $0x28] sm:$0xff] }
  0xc6   :  { %v217_v3 = vpop.f32.mrf.mxu0 }
  0xc7   :  { %v246_v4 = vpop.f32.mrf.mxu1 }
  0xc8   :  { %v5153_v7 = vadd.f32 %v246_v4, %v217_v3  ;;  %v3782_v4 = vld [vmem:[%s6714_s0 + $0xb0] sm:$0xf] }
  0xc9   :  { %v528_v55 = vpop.f32.mrf.mxu3  ;;  %v3783_v8 = vor.u32 %v4387_v5, %v3782_v4  ;;  %v4448_v4 = vld [vmem:[%s6713_s1 + $0x60] sm:$0xff] }
  0xca   :  { %6843 = vst [vmem:[#allocation8_spill] sm:$0xff] %v5153_v7  ;;  %309 = vmatmul.f32.gmra.mxu2 %v5153_v7 }
  0xce   :  { %v220_v11 = vpop.f32.mrf.mxu0 }
  0xcf   :  { %v249_v12 = vpop.f32.mrf.mxu1 }
  0xd0   :  { %v5165_v13 = vadd.f32 %v249_v12, %v220_v11 }
  0xd1   :  { %v530_v0 = vpop.f32.mrf.mxu3 }
  0xd2   :  { %6844 = vst [vmem:[#allocation9_spill] sm:$0xff] %v5165_v13  ;;  %312 = vmatmul.f32.gmra.mxu2 %v5165_v13 }
  0xd6   :  { %v222_v17 = vpop.f32.mrf.mxu0 }
  0xd7   :  { %v251_v18 = vpop.f32.mrf.mxu1 }
  0xd8   :  { %v5184_v21 = vadd.f32 %v251_v18, %v222_v17  ;;  %v4404_v17 = vld [vmem:[%s6714_s0 + $0xc4] sm:$0xf]  ;;  %v3856_v18 = vld [vmem:[%s6714_s0 + $0xc8] sm:$0xf0] }
  0xd9   :  { %v533_v6 = vpop.f32.mrf.mxu3  ;;  %v3859_v20 = vor.u32 %v4404_v17, %v3856_v18 }
  0xda   :  { %6845 = vst [vmem:[#allocation10_spill] sm:$0xff] %v5184_v21  ;;  %315 = vmatmul.f32.gmra.mxu2 %v5184_v21 }
  0xde   :  { %v547_v28 = vpop.f32.mrf.mxu0 }
  0xdf   :  { %v5200_v30 = vadd.f32 %v547_v28, %v518_v15  ;;  %v3854_v15 = vld [vmem:[%s6714_s0 + $0xc0] sm:$0xf]  ;;  %v3867_v28 = vor.u32 %v4406_v25, %v3864_v26 }
  0xe0   :  { %v3855_v19 = vor.u32 %v4405_v16, %v3854_v15 }
  0xe1   :  { %6846 = vst [vmem:[#allocation11_spill] sm:$0xff] %v5200_v30  ;;  %607 = vmatmul.f32.vlgmr.msrb.gmra.mxu1 %v5200_v30  ;;  %v535_v11 = vpop.f32.mrf.mxu3 }
  0xe2   :  { %830 = vmatmul.bf16.vlgmr.msrb.gmra.mxu2 %v3759_v29  ;;  %v3863_v29 = vor.u32 %v4407_v23, %v3862_v24 }
  0xe6   :  { %v549_v34 = vpop.f32.mrf.mxu0 }
  0xe7   :  { %v5215_v37 = vadd.f32 %v549_v34, %v520_v27  ;;  %v4408_v34 = vld [vmem:[%s6714_s0 + $0xe4] sm:$0xf] }
  0xe8   :  { %v3875_v39 = vor.u32 %v4408_v34, %v3872_v35  ;;  %v3952_v34 = vld [vmem:[%s6714_s0 + $0x108] sm:$0xf0] }
  0xe9   :  { %6847 = vst [vmem:[#allocation12_spill] sm:$0xff] %v5215_v37  ;;  %610 = vmatmul.f32.gmra.mxu1 %v5215_v37  ;;  %v860_v58 = vpop.f32.mrf.mxu3  ;;  %v4264_v37 = vld [vmem:[%s6714_s0 + $0x1f8] sm:$0xf0] }
  0xee   :  { %v552_v45 = vpop.f32.mrf.mxu0 }
  0xef   :  { %v5230_v48 = vadd.f32 %v552_v45, %v523_v33  ;;  %v4409_v33 = vld [vmem:[%s6714_s0 + $0xe4] sm:$0xf0]  ;;  %v4411_v45 = vld [vmem:[%s6714_s0 + $0xf4] sm:$0xf0] }
  0xf0   :  { %v3871_v38 = vor.u32 %v4409_v33, %v3870_v32  ;;  %v4428_v33 = vld [vmem:[%s6714_s0 + $0x104] sm:$0xf] }
  0xf1   :  { %6848 = vst [vmem:[#allocation13_spill] sm:$0xff] %v5230_v48  ;;  %613 = vmatmul.f32.gmra.mxu1 %v5230_v48  ;;  %v862_v5 = vpop.f32.mrf.mxu3 }
  0xf2   :  { %835 = vmatmul.bf16.gmra.mxu2 %v3767_v44  ;;  %v4451_v44 = vld [vmem:[%s6713_s1 + $0x78] sm:$0xff] }
  0xf3   :  { %1477 = vmatpush.bf16.msrb.mxu1 %v4451_v44  ;;  %v4436_v44 = vld [vmem:[%s6713_s1] sm:$0xff] }
  0xf6   :  { %v554_v51 = vpop.f32.mrf.mxu0 }
  0xf7   :  { %v5239_v53 = vadd.f32 %v554_v51, %v525_v46  ;;  %v4410_v46 = vld [vmem:[%s6714_s0 + $0xf4] sm:$0xf]  ;;  %v3879_v51 = vor.u32 %v4411_v45, %v3878_v41  ;;  %1478 = vmatpush.bf16.msrb.mxu1 %v4450_v56 }
  0xf8   :  { %v3883_v54 = vor.u32 %v4410_v46, %v3880_v49  ;;  %v4430_v56 = vld [vmem:[%s6714_s0 + $0x114] sm:$0xf] }
  0xf9   :  { %6849 = vst [vmem:[#allocation14_spill] sm:$0xff] %v5239_v53  ;;  %616 = vmatmul.f32.gmra.mxu1 %v5239_v53  ;;  %v865_v15 = vpop.f32.mrf.mxu3 }
  0xfe   :  { %v557_v62 = vpop.f32.mrf.mxu0 }
  0xff   :  { %v5257_v63 = vadd.f32 %v557_v62, %v528_v55  ;;  %v4442_v55 = vld [vmem:[%s6713_s1 + $0x30] sm:$0xff] }
 0x100   :  { %1449 = vmatpush.bf16.msrb.mxu0 %v4442_v55 }
 0x101   :  { %6850 = vst [vmem:[#allocation15_spill] sm:$0xff] %v5257_v63  ;;  %619 = vmatmul.f32.gmra.mxu1 %v5257_v63  ;;  %v867_v23 = vpop.f32.mrf.mxu3 }
 0x102   :  { %840 = vmatmul.bf16.gmra.mxu2 %v3775_v61  ;;  %v4449_v61 = vld [vmem:[%s6713_s1 + $0x68] sm:$0xff] }
 0x103   :  { %1479 = vmatpush.bf16.msrb.mxu1 %v4449_v61  ;;  %v4475_v61 = vld [vmem:[%s6713_s1 + $0x78] sm:$0xff] }
 0x104   :  { %1450 = vmatpush.bf16.msrb.mxu0 %v4441_v59 }
 0x106   :  { %v559_v2 = vpop.f32.mrf.mxu0 }
 0x107   :  { %v5260_v3 = vadd.f32 %v559_v2, %v530_v0  ;;  %v4440_v2 = vld [vmem:[%s6713_s1 + $0x20] sm:$0xff]  ;;  %1480 = vmatpush.bf16.msrb.mxu1 %v4448_v4 }
 0x108   :  { %1451 = vmatpush.bf16.msrb.mxu0 %v4440_v2 }
 0x109   :  { %6851 = vst [vmem:[#allocation16_spill] sm:$0xff] %v5260_v3  ;;  %622 = vmatmul.f32.gmra.mxu1 %v5260_v3  ;;  %v5715_v3 = vld [vmem:[%s6715_s2] sm:$0xff] }
 0x10e   :  { %v562_v9 = vpop.f32.mrf.mxu0 }
 0x10f   :  { %v5269_v10 = vadd.f32 %v562_v9, %v533_v6 }
 0x111   :  { %6852 = vst [vmem:[#allocation17_spill] sm:$0xff] %v5269_v10  ;;  %625 = vmatmul.f32.gmra.mxu1 %v5269_v10  ;;  %v5683_v10 = vld [vmem:[%s6715_s2 + $0x10] sm:$0xff] }
 0x112   :  { %845 = vmatmul.bf16.gmra.mxu2 %v3783_v8 }
 0x116   :  { %v564_v12 = vpop.f32.mrf.mxu0 }
 0x117   :  { %v5272_v14 = vadd.f32 %v564_v12, %v535_v11  ;;  %v4439_v11 = vld [vmem:[%s6713_s1 + $0x18] sm:$0xff] }
 0x118   :  { %v4447_v12 = vld [vmem:[%s6713_s1 + $0x58] sm:$0xff]  ;;  %1452 = vmatpush.bf16.msrb.mxu0 %v4439_v11 }
 0x119   :  { %6853 = vst [vmem:[#allocation18_spill] sm:$0xff] %v5272_v14  ;;  %628 = vmatmul.f32.gmra.mxu1 %v5272_v14 }
 0x11a   :  { %1481 = vmatpush.bf16.msrb.mxu1 %v4447_v12 }
 0x121   :  { %1143 = vmatmul.bf16.vlgmr.msra.gmra.mxu1 %v3855_v19  ;;  %v4438_v19 = vld [vmem:[%s6713_s1 + $0x10] sm:$0xff] }
 0x122   :  { %1172 = vmatmul.bf16.vlgmr.msra.gmra.mxu2 %v3859_v20  ;;  %v4446_v20 = vld [vmem:[%s6713_s1 + $0x50] sm:$0xff]  ;;  %1453 = vmatpush.bf16.msrb.mxu0 %v4438_v19  ;;  %v4465_v19 = vld [vmem:[%s6713_s1 + $0x28] sm:$0xff] }
 0x123   :  { %1482 = vmatpush.bf16.msrb.mxu1 %v4446_v20 }
 0x125   :  { %v5287_v22 = vpop.f32.mrf.mxu2 }
 0x126   :  { %1454 = vmatpush.bf16.msrb.mxu0 %v4437_v43  ;;  %v4429_v43 = vld [vmem:[%s6714_s0 + $0x104] sm:$0xf0] }
 0x12a   :  { %1455 = vmatpush.bf16.msrb.mxu0 %v4436_v44 }
 0x12d   :  { %v5301_v27 = vpop.f32.mrf.mxu2 }
 0x131   :  { %1148 = vmatmul.bf16.gmra.mxu1 %v3863_v29  ;;  %v4445_v29 = vld [vmem:[%s6713_s1 + $0x48] sm:$0xff] }
 0x132   :  { %1177 = vmatmul.bf16.gmra.mxu2 %v3867_v28  ;;  %1483 = vmatpush.bf16.msrb.mxu1 %v4445_v29  ;;  %v4444_v28 = vld [vmem:[%s6713_s1 + $0x40] sm:$0xff]  ;;  %v3968_v29 = vld [vmem:[%s6714_s0 + $0x128] sm:$0xf0] }
 0x135   :  { %v5303_v31 = vpop.f32.mrf.mxu2 }
 0x136   :  { %1484 = vmatpush.bf16.msrb.mxu1 %v4444_v28 }
 0x13d   :  { %v5317_v36 = vpop.f32.mrf.mxu2 }
 0x141   :  { %1153 = vmatmul.bf16.gmra.mxu1 %v3871_v38  ;;  %v3955_v38 = vor.u32 %v4428_v33, %v3952_v34 }
 0x142   :  { %1182 = vmatmul.bf16.gmra.mxu2 %v3875_v39  ;;  %v870_v39 = vpop.f32.mrf.mxu3 }
 0x145   :  { %v5319_v40 = vpop.f32.mrf.mxu2 }
 0x14d   :  { %v5339_v50 = vpop.f32.mrf.mxu2 }
 0x151   :  { %1158 = vmatmul.bf16.gmra.mxu1 %v3879_v51  ;;  %v4467_v51 = vld [vmem:[%s6713_s1 + $0x38] sm:$0xff] }
 0x152   :  { %1187 = vmatmul.bf16.gmra.mxu2 %v3883_v54  ;;  %v872_v54 = vpop.f32.mrf.mxu3  ;;  %1761 = vmatpush.bf16.msrb.mxu3 %v4467_v51 }
 0x155   :  { %v5347_v57 = vpop.f32.mrf.mxu2 }
 0x15d   :  { %v5355_v62 = vpop.f32.mrf.mxu2 }
 0x15e   :  { %6854 = vst [vmem:[#allocation19_spill] sm:$0xff] %v5355_v62  ;;  %v5357_v0 = vpop.f32.mrf.mxu1 }
 0x161   :  { %1485 = vmatmul.bf16.vlgmr.msrb.gmra.mxu1 %v3955_v38  ;;  %v4464_v38 = vld [vmem:[%s6713_s1 + $0x20] sm:$0xff] }
 0x165   :  { %v831_v6 = vpop.f32.mrf.mxu2 }
 0x166   :  { %v5365_v8 = vadd.f32 %v860_v58, %v831_v6  ;;  %v5367_v9 = vpop.f32.mrf.mxu1  ;;  %v3960_v58 = vld [vmem:[%s6714_s0 + $0x118] sm:$0xf0]  ;;  %v875_v6 = vpop.f32.mrf.mxu3 }
 0x167   :  { %v3963_v2 = vor.u32 %v4430_v56, %v3960_v58  ;;  %v4463_v56 = vld [vmem:[%s6713_s1 + $0x18] sm:$0xff] }
 0x168   :  { %6855 = vst [vmem:[#allocation20_spill] sm:$0xff] %v5365_v8  ;;  %920 = vmatmul.f32.vlgmr.msra.gmra.mxu0 %v5365_v8 }
 0x169   :  { %1790 = vmatpush.bf16.msra.mxu0 %v4475_v61  ;;  %v4434_v61 = vld [vmem:[%s6714_s0 + $0x134] sm:$0xf] }
 0x16d   :  { %v833_v16 = vpop.f32.mrf.mxu2 }
 0x16e   :  { %v5376_v17 = vadd.f32 %v862_v5, %v833_v16  ;;  %v5378_v18 = vpop.f32.mrf.mxu1  ;;  %v4466_v5 = vld [vmem:[%s6713_s1 + $0x30] sm:$0xff]  ;;  %v877_v20 = vpop.f32.mrf.mxu3 }
 0x16f   :  { %1762 = vmatpush.bf16.msrb.mxu3 %v4466_v5 }
 0x170   :  { %6856 = vst [vmem:[#allocation21_spill] sm:$0xff] %v5376_v17  ;;  %923 = vmatmul.f32.gmra.mxu0 %v5376_v17 }
 0x171   :  { %1490 = vmatmul.bf16.gmra.mxu1 %v3963_v2  ;;  %v3976_v2 = vld [vmem:[%s6714_s0 + $0x138] sm:$0xf0] }
 0x173   :  { %1763 = vmatpush.bf16.msrb.mxu3 %v4465_v19  ;;  %v4462_v19 = vld [vmem:[%s6713_s1 + $0x10] sm:$0xff] }
 0x175   :  { %v836_v24 = vpop.f32.mrf.mxu2 }
 0x176   :  { %v5387_v25 = vadd.f32 %v865_v15, %v836_v24  ;;  %v5389_v26 = vpop.f32.mrf.mxu1  ;;  %v4474_v15 = vld [vmem:[%s6713_s1 + $0x70] sm:$0xff] }
 0x177   :  { %1791 = vmatpush.bf16.msra.mxu0 %v4474_v15  ;;  %1764 = vmatpush.bf16.msrb.mxu3 %v4464_v38  ;;  %v4461_v38 = vld [vmem:[%s6713_s1 + $0x8] sm:$0xff] }
 0x178   :  { %6857 = vst [vmem:[#allocation22_spill] sm:$0xff] %v5387_v25  ;;  %926 = vmatmul.f32.gmra.mxu0 %v5387_v25  ;;  %v4514_v25 = vld [vmem:[%s6713_s1 + $0x30] sm:$0xff] }
 0x17b   :  { %1765 = vmatpush.bf16.msrb.mxu3 %v4463_v56  ;;  %v4433_v56 = vld [vmem:[%s6714_s0 + $0x124] sm:$0xf0] }
 0x17d   :  { %v838_v32 = vpop.f32.mrf.mxu2 }
 0x17e   :  { %v5404_v35 = vadd.f32 %v867_v23, %v838_v32  ;;  %v5406_v41 = vpop.f32.mrf.mxu1  ;;  %v4432_v23 = vld [vmem:[%s6714_s0 + $0x124] sm:$0xf]  ;;  %v4473_v32 = vld [vmem:[%s6713_s1 + $0x68] sm:$0xff] }
 0x17f   :  { %v3971_v33 = vor.u32 %v4432_v23, %v3968_v29  ;;  %1792 = vmatpush.bf16.msra.mxu0 %v4473_v32  ;;  %1766 = vmatpush.bf16.msrb.mxu3 %v4462_v19 }
 0x180   :  { %6858 = vst [vmem:[#allocation23_spill] sm:$0xff] %v5404_v35  ;;  %929 = vmatmul.f32.gmra.mxu0 %v5404_v35 }
 0x181   :  { %1495 = vmatmul.bf16.gmra.mxu1 %v3971_v33  ;;  %v4470_v33 = vld [vmem:[%s6713_s1 + $0x50] sm:$0xff] }
 0x183   :  { %1767 = vmatpush.bf16.msrb.mxu3 %v4461_v38 }
 0x185   :  { %v841_v45 = vpop.f32.mrf.mxu2 }
 0x186   :  { %v5415_v46 = vadd.f32 %v870_v39, %v841_v45  ;;  %v5417_v49 = vpop.f32.mrf.mxu1  ;;  %v3950_v39 = vld [vmem:[%s6714_s0 + $0x100] sm:$0xf] }
 0x187   :  { %v3951_v44 = vor.u32 %v4429_v43, %v3950_v39 }
 0x188   :  { %6859 = vst [vmem:[#allocation24_spill] sm:$0xff] %v5415_v46  ;;  %932 = vmatmul.f32.gmra.mxu0 %v5415_v46 }
 0x18d   :  { %v843_v55 = vpop.f32.mrf.mxu2 }
 0x18e   :  { %v5429_v59 = vadd.f32 %v872_v54, %v843_v55  ;;  %v5434_v4 = vpop.f32.mrf.mxu1  ;;  %v4472_v54 = vld [vmem:[%s6713_s1 + $0x60] sm:$0xff] }
 0x18f   :  { %1793 = vmatpush.bf16.msra.mxu0 %v4472_v54  ;;  %v4460_v54 = vld [vmem:[%s6713_s1] sm:$0xff] }
 0x190   :  { %6860 = vst [vmem:[#allocation25_spill] sm:$0xff] %v5429_v59  ;;  %935 = vmatmul.f32.gmra.mxu0 %v5429_v59  ;;  %1768 = vmatpush.bf16.msrb.mxu3 %v4460_v54  ;;  %v5578_v54 = vld [vmem:[%s6715_s2 + $0x58] sm:$0xff] }
 0x195   :  { %v846_v11 = vpop.f32.mrf.mxu2 }
 0x196   :  { %v5440_v12 = vadd.f32 %v875_v6, %v846_v11  ;;  %v5445_v16 = vpop.f32.mrf.mxu1  ;;  %v4471_v6 = vld [vmem:[%s6713_s1 + $0x58] sm:$0xff]  ;;  %v3979_v11 = vor.u32 %v4434_v61, %v3976_v2 }
 0x197   :  { %1794 = vmatpush.bf16.msra.mxu0 %v4471_v6  ;;  %v5532_v6 = vld [vmem:[%s6715_s2 + $0x78] sm:$0xff] }
 0x198   :  { %6861 = vst [vmem:[#allocation26_spill] sm:$0xff] %v5440_v12  ;;  %938 = vmatmul.f32.gmra.mxu0 %v5440_v12  ;;  %1500 = vmatmul.bf16.gmra.mxu1 %v3979_v11  ;;  %v5676_v12 = vld [vmem:[%s6715_s2 + $0x18] sm:$0xff] }
 0x199   :  { %1530 = vmatpush.msrb.mxu2 %v5532_v6  ;;  %1843 = vmatpush.msra.mxu1 %v5532_v6 }
 0x19b   :  { %1795 = vmatpush.bf16.msra.mxu0 %v4470_v33  ;;  %v3974_v33 = vld [vmem:[%s6714_s0 + $0x130] sm:$0xf] }
 0x19d   :  { %v848_v24 = vpop.f32.mrf.mxu2 }
 0x19e   :  { %v5457_v28 = vadd.f32 %v877_v20, %v848_v24  ;;  %v1144_v34 = vpop.f32.mrf.mxu1  ;;  %v3958_v20 = vld [vmem:[%s6714_s0 + $0x110] sm:$0xf]  ;;  %v4431_v24 = vld [vmem:[%s6714_s0 + $0x114] sm:$0xf0] }
 0x19f   :  { %v3959_v23 = vor.u32 %v4431_v24, %v3958_v20 }
 0x1a0   :  { %6862 = vst [vmem:[#allocation27_spill] sm:$0xff] %v5457_v28  ;;  %941 = vmatmul.f32.gmra.mxu0 %v5457_v28  ;;  %v4056_v28 = vld [vmem:[%s6714_s0 + $0x158] sm:$0xf0] }
 0x1a5   :  { %v1173_v45 = vpop.f32.mrf.mxu2 }
 0x1a6   :  { %v5472_v51 = vadd.f32 %v1173_v45, %v1144_v34  ;;  %v1146_v55 = vpop.f32.mrf.mxu1 }
 0x1a8   :  { %6863 = vst [vmem:[#allocation28_spill] sm:$0xff] %v5472_v51  ;;  %1233 = vmatmul.f32.vlgmr.msra.gmra.mxu3 %v5472_v51  ;;  %1456 = vmatmul.bf16.vlgmr.msrb.gmra.mxu0 %v3951_v44  ;;  %v4469_v44 = vld [vmem:[%s6713_s1 + $0x48] sm:$0xff] }
 0x1a9   :  { %1796 = vmatpush.bf16.msra.mxu0 %v4469_v44 }
 0x1ad   :  { %v1175_v58 = vpop.f32.mrf.mxu2 }
 0x1ae   :  { %v5487_v5 = vadd.f32 %v1175_v58, %v1146_v55  ;;  %v1149_v15 = vpop.f32.mrf.mxu1  ;;  %v3966_v55 = vld [vmem:[%s6714_s0 + $0x120] sm:$0xf] }
 0x1af   :  { %v4468_v58 = vld [vmem:[%s6713_s1 + $0x40] sm:$0xff]  ;;  %v3967_v61 = vor.u32 %v4433_v56, %v3966_v55  ;;  %v5586_v55 = vld [vmem:[%s6715_s2 + $0x50] sm:$0xff] }
 0x1b0   :  { %6864 = vst [vmem:[#allocation29_spill] sm:$0xff] %v5487_v5  ;;  %1236 = vmatmul.f32.gmra.mxu3 %v5487_v5  ;;  %1797 = vmatpush.bf16.msra.mxu0 %v4468_v58 }
 0x1b4   :  { %2156 = vmatpush.msrb.mxu0 %v5532_v6 }
 0x1b5   :  { %v1178_v29 = vpop.f32.mrf.mxu2 }
 0x1b6   :  { %v5502_v32 = vadd.f32 %v1178_v29, %v1149_v15  ;;  %v1151_v34 = vpop.f32.mrf.mxu1  ;;  %v5543_v15 = vld [vmem:[%s6715_s2 + $0x70] sm:$0xff]  ;;  %v5558_v29 = vld [vmem:[%s6715_s2 + $0x60] sm:$0xff] }
 0x1b7   :  { %1531 = vmatpush.msrb.mxu2 %v5543_v15  ;;  %1844 = vmatpush.msra.mxu1 %v5543_v15 }
 0x1b8   :  { %6865 = vst [vmem:[#allocation30_spill] sm:$0xff] %v5502_v32  ;;  %1239 = vmatmul.f32.gmra.mxu3 %v5502_v32  ;;  %1461 = vmatmul.bf16.gmra.mxu0 %v3959_v23  ;;  %v5553_v23 = vld [vmem:[%s6715_s2 + $0x68] sm:$0xff] }
 0x1b9   :  { %2157 = vmatpush.msrb.mxu0 %v5543_v15  ;;  %1532 = vmatpush.msrb.mxu2 %v5553_v23 }
 0x1ba   :  { %1845 = vmatpush.msra.mxu1 %v5553_v23 }
 0x1bb   :  { %2158 = vmatpush.msrb.mxu0 %v5553_v23  ;;  %1533 = vmatpush.msrb.mxu2 %v5558_v29 }
 0x1bc   :  { %1846 = vmatpush.msra.mxu1 %v5558_v29 }
 0x1bd   :  { %v1180_v39 = vpop.f32.mrf.mxu2  ;;  %2159 = vmatpush.msrb.mxu0 %v5558_v29  ;;  %1534 = vmatpush.msrb.mxu2 %v5578_v54 }
 0x1be   :  { %v5511_v43 = vadd.f32 %v1180_v39, %v1151_v34  ;;  %v1154_v45 = vpop.f32.mrf.mxu1  ;;  %v4435_v34 = vld [vmem:[%s6714_s0 + $0x134] sm:$0xf0]  ;;  %1847 = vmatpush.msra.mxu1 %v5578_v54 }
 0x1bf   :  { %v3975_v39 = vor.u32 %v4435_v34, %v3974_v33  ;;  %1535 = vmatpush.msrb.mxu2 %v5586_v55  ;;  %2160 = vmatpush.msrb.mxu0 %v5578_v54  ;;  %v4453_v33 = vld [vmem:[%s6714_s0 + $0x144] sm:$0xf0]  ;;  %v4452_v34 = vld [vmem:[%s6714_s0 + $0x144] sm:$0xf] }
 0x1c0   :  { %6866 = vst [vmem:[#allocation31_spill] sm:$0xff] %v5511_v43  ;;  %1242 = vmatmul.f32.gmra.mxu3 %v5511_v43  ;;  %1848 = vmatpush.msra.mxu1 %v5586_v55 }
 0x1c1   :  { %2161 = vmatpush.msrb.mxu0 %v5586_v55 }
 0x1c5   :  { %v1183_v2 = vpop.f32.mrf.mxu2 }
 0x1c6   :  { %v5534_v11 = vadd.f32 %v1183_v2, %v1154_v45  ;;  %v1156_v19 = vpop.f32.mrf.mxu1  ;;  %v5597_v2 = vld [vmem:[%s6715_s2 + $0x48] sm:$0xff] }
 0x1c7   :  { %1536 = vmatpush.msrb.mxu2 %v5597_v2  ;;  %1849 = vmatpush.msra.mxu1 %v5597_v2 }
 0x1c8   :  { %6867 = vst [vmem:[#allocation32_spill] sm:$0xff] %v5534_v11  ;;  %1245 = vmatmul.f32.gmra.mxu3 %v5534_v11  ;;  %1466 = vmatmul.bf16.gmra.mxu0 %v3967_v61 }
 0x1c9   :  { %2162 = vmatpush.msrb.mxu0 %v5597_v2 }
 0x1cd   :  { %v1185_v20 = vpop.f32.mrf.mxu2 }
 0x1ce   :  { %v5548_v24 = vadd.f32 %v1185_v20, %v1156_v19  ;;  %v1159_v38 = vpop.f32.mrf.mxu1  ;;  %v5602_v19 = vld [vmem:[%s6715_s2 + $0x40] sm:$0xff] }
 0x1cf   :  { %v4046_v20 = vld [vmem:[%s6714_s0 + $0x140] sm:$0xf]  ;;  %1537 = vmatpush.msrb.mxu2 %v5602_v19  ;;  %1850 = vmatpush.msra.mxu1 %v5602_v19 }
 0x1d0   :  { %6868 = vst [vmem:[#allocation33_spill] sm:$0xff] %v5548_v24  ;;  %1248 = vmatmul.f32.gmra.mxu3 %v5548_v24  ;;  %2163 = vmatpush.msrb.mxu0 %v5602_v19  ;;  %v5706_v24 = vld [vmem:[%s6715_s2 + $0x8] sm:$0xff] }
 0x1d5   :  { %v1188_v44 = vpop.f32.mrf.mxu2 }
 0x1d6   :  { %v5573_v45 = vadd.f32 %v1188_v44, %v1159_v38  ;;  %v1161_v56 = vpop.f32.mrf.mxu1  ;;  %v4048_v38 = vld [vmem:[%s6714_s0 + $0x148] sm:$0xf0] }
 0x1d7   :  { %v4051_v44 = vor.u32 %v4452_v34, %v4048_v38  ;;  %v5651_v34 = vld [vmem:[%s6715_s2 + $0x20] sm:$0xff]  ;;  %v4054_v38 = vld [vmem:[%s6714_s0 + $0x150] sm:$0xf] }
 0x1d8   :  { %6869 = vst [vmem:[#allocation34_spill] sm:$0xff] %v5573_v45  ;;  %1251 = vmatmul.f32.gmra.mxu3 %v5573_v45  ;;  %1471 = vmatmul.bf16.gmra.mxu0 %v3975_v39  ;;  %v4047_v39 = vor.u32 %v4453_v33, %v4046_v20  ;;  %v5646_v33 = vld [vmem:[%s6715_s2 + $0x28] sm:$0xff] }
 0x1dd   :  { %v1190_v58 = vpop.f32.mrf.mxu2 }
 0x1de   :  { %v5592_v61 = vadd.f32 %v1190_v58, %v1161_v56  ;;  %v5628_v58 = vld [vmem:[%s6715_s2 + $0x38] sm:$0xff]  ;;  %v1486_v63 = vpop.f32.mrf.mxu1 }
 0x1df   :  { %1538 = vmatpush.msrb.mxu2 %v5628_v58  ;;  %1851 = vmatpush.msra.mxu1 %v5628_v58 }
 0x1e0   :  { %6870 = vst [vmem:[#allocation35_spill] sm:$0xff] %v5592_v61  ;;  %1254 = vmatmul.f32.gmra.mxu3 %v5592_v61  ;;  %v5635_v61 = vld [vmem:[%s6715_s2 + $0x30] sm:$0xff]  ;;  %2164 = vmatpush.msrb.mxu0 %v5628_v58 }
 0x1e1   :  { %1539 = vmatpush.msrb.mxu2 %v5635_v61  ;;  %1852 = vmatpush.msra.mxu1 %v5635_v61 }
 0x1e2   :  { %2165 = vmatpush.msrb.mxu0 %v5635_v61 }
 0x1e3   :  { %1540 = vmatpush.msrb.mxu2 %v5646_v33  ;;  %1853 = vmatpush.msra.mxu1 %v5646_v33 }
 0x1e4   :  { %2166 = vmatpush.msrb.mxu0 %v5646_v33 }
 0x1e5   :  { %v5623_v56 = vpop.f32.mrf.mxu0  ;;  %1541 = vmatpush.msrb.mxu2 %v5651_v34  ;;  %1854 = vmatpush.msra.mxu1 %v5651_v34 }
 0x1e6   :  { %2167 = vmatpush.msrb.mxu0 %v5651_v34 }
 0x1e7   :  { %1542 = vmatpush.msrb.mxu2 %v5676_v12  ;;  %1855 = vmatpush.msra.mxu1 %v5676_v12 }
 0x1e8   :  { %1769 = vmatmul.bf16.vlgmr.msrb.gmra.mxu3 %v4047_v39  ;;  %1798 = vmatmul.bf16.vlgmr.msra.gmra.mxu0 %v4051_v44  ;;  %v4455_v39 = vld [vmem:[%s6714_s0 + $0x154] sm:$0xf0]  ;;  %v4454_v44 = vld [vmem:[%s6714_s0 + $0x154] sm:$0xf] }
 0x1e9   :  { %v4055_v14 = vor.u32 %v4455_v39, %v4054_v38  ;;  %v4059_v21 = vor.u32 %v4454_v44, %v4056_v28  ;;  %1543 = vmatpush.msrb.mxu2 %v5683_v10  ;;  %1856 = vmatpush.msra.mxu1 %v5683_v10  ;;  %v4456_v38 = vld [vmem:[%s6714_s0 + $0x164] sm:$0xf]  ;;  %v4064_v39 = vld [vmem:[%s6714_s0 + $0x168] sm:$0xf0] }
 0x1ea   :  { %2168 = vmatpush.msrb.mxu0 %v5676_v12  ;;  %v4067_v13 = vor.u32 %v4456_v38, %v4064_v39  ;;  %v4070_v38 = vld [vmem:[%s6714_s0 + $0x170] sm:$0xf]  ;;  %v4459_v39 = vld [vmem:[%s6714_s0 + $0x174] sm:$0xf0] }
 0x1eb   :  { %1544 = vmatpush.msrb.mxu2 %v5706_v24  ;;  %1857 = vmatpush.msra.mxu1 %v5706_v24  ;;  %v4071_v7 = vor.u32 %v4459_v39, %v4070_v38  ;;  %v4499_v39 = vld [vmem:[%s6713_s1 + $0x78] sm:$0xff] }
 0x1ec   :  { %2169 = vmatpush.msrb.mxu0 %v5683_v10  ;;  %2103 = vmatpush.bf16.msra.mxu3 %v4499_v39  ;;  %v4486_v39 = vld [vmem:[%s6713_s1 + $0x10] sm:$0xff] }
 0x1ed   :  { %v5641_v20 = vpop.f32.mrf.mxu0  ;;  %1545 = vmatpush.msrb.mxu2 %v5715_v3  ;;  %1858 = vmatpush.msra.mxu1 %v5715_v3 }
 0x1ee   :  { %2170 = vmatpush.msrb.mxu0 %v5706_v24 }
 0x1f0   :  { %2171 = vmatpush.msrb.mxu0 %v5715_v3 }
 0x1f2   :  { %2549 = vmatpush.msra.mxu0 %v5532_v6 }
 0x1f4   :  { %2550 = vmatpush.msra.mxu0 %v5543_v15 }
 0x1f5   :  { %v5671_v45 = vpop.f32.mrf.mxu0 }
 0x1f6   :  { %2551 = vmatpush.msra.mxu0 %v5553_v23 }
 0x1f8   :  { %1774 = vmatmul.bf16.gmra.mxu3 %v4055_v14  ;;  %1803 = vmatmul.bf16.gmra.mxu0 %v4059_v21  ;;  %v4062_v14 = vld [vmem:[%s6714_s0 + $0x160] sm:$0xf]  ;;  %v4457_v21 = vld [vmem:[%s6714_s0 + $0x164] sm:$0xf0] }
 0x1f9   :  { %v4063_v44 = vor.u32 %v4457_v21, %v4062_v14  ;;  %v4491_v14 = vld [vmem:[%s6713_s1 + $0x38] sm:$0xff]  ;;  %2552 = vmatpush.msra.mxu0 %v5558_v29 }
 0x1fa   :  { %2074 = vmatpush.bf16.msra.mxu2 %v4491_v14  ;;  %v4072_v14 = vld [vmem:[%s6714_s0 + $0x178] sm:$0xf0] }
 0x1fb   :  { %2553 = vmatpush.msra.mxu0 %v5578_v54 }
 0x1fd   :  { %v5689_v28 = vpop.f32.mrf.mxu0  ;;  %2554 = vmatpush.msra.mxu0 %v5586_v55 }
 0x1ff   :  { %2555 = vmatpush.msra.mxu0 %v5597_v2 }
 0x201   :  { %2556 = vmatpush.msra.mxu0 %v5602_v19 }
 0x203   :  { %2557 = vmatpush.msra.mxu0 %v5628_v58 }
 0x205   :  { %v5708_v59 = vpop.f32.mrf.mxu0  ;;  %2558 = vmatpush.msra.mxu0 %v5635_v61 }
 0x207   :  { %2559 = vmatpush.msra.mxu0 %v5646_v33 }
 0x208   :  { %1779 = vmatmul.bf16.gmra.mxu3 %v4063_v44  ;;  %1808 = vmatmul.bf16.gmra.mxu0 %v4067_v13  ;;  %v4490_v13 = vld [vmem:[%s6713_s1 + $0x30] sm:$0xff] }
 0x209   :  { %v4458_v44 = vld [vmem:[%s6714_s0 + $0x174] sm:$0xf]  ;;  %2075 = vmatpush.bf16.msra.mxu2 %v4490_v13  ;;  %2560 = vmatpush.msra.mxu0 %v5651_v34 }
 0x20a   :  { %v4075_v11 = vor.u32 %v4458_v44, %v4072_v14  ;;  %v4487_v44 = vld [vmem:[%s6713_s1 + $0x18] sm:$0xff] }
 0x20b   :  { %2561 = vmatpush.msra.mxu0 %v5676_v12 }
 0x20d   :  { %v5726_v21 = vpop.f32.mrf.mxu0  ;;  %2076 = vmatpush.bf16.msra.mxu2 %v4489_v1  ;;  %2562 = vmatpush.msra.mxu0 %v5683_v10 }
 0x20f   :  { %2563 = vmatpush.msra.mxu0 %v5706_v24 }
 0x211   :  { %2564 = vmatpush.msra.mxu0 %v5715_v3 }
 0x215   :  { %v5747_v46 = vpop.f32.mrf.mxu0 }
 0x218   :  { %1784 = vmatmul.bf16.gmra.mxu3 %v4071_v7  ;;  %1813 = vmatmul.bf16.gmra.mxu0 %v4075_v11  ;;  %v4488_v7 = vld [vmem:[%s6713_s1 + $0x20] sm:$0xff]  ;;  %v1488_v11 = vpop.f32.mrf.mxu1 }
 0x219   :  { %2077 = vmatpush.bf16.msra.mxu2 %v4488_v7  ;;  %v4498_v7 = vld [vmem:[%s6713_s1 + $0x70] sm:$0xff] }
 0x21a   :  { %2104 = vmatpush.bf16.msra.mxu3 %v4498_v7  ;;  %v4496_v7 = vld [vmem:[%s6713_s1 + $0x60] sm:$0xff] }
 0x21d   :  { %v5755_v38 = vpop.f32.mrf.mxu0  ;;  %2078 = vmatpush.bf16.msra.mxu2 %v4487_v44 }
 0x21e   :  { %6871 = vst [vmem:[#allocation36_spill] sm:$0xff] %v5755_v38 }
 0x221   :  { %2079 = vmatpush.bf16.msra.mxu2 %v4486_v39 }
 0x225   :  { %v1457_v13 = vpop.f32.mrf.mxu0 }
 0x226   :  { %v5765_v1 = vadd.f32 %v1486_v63, %v1457_v13  ;;  %v1491_v63 = vpop.f32.mrf.mxu1 }
 0x228   :  { %6872 = vst [vmem:[#allocation37_spill] sm:$0xff] %v5765_v1  ;;  %1546 = vmatmul.f32.vlgmr.msrb.gmra.mxu2 %v5765_v1  ;;  %v4497_v1 = vld [vmem:[%s6713_s1 + $0x68] sm:$0xff] }
 0x229   :  { %2105 = vmatpush.bf16.msra.mxu3 %v4497_v1  ;;  %v4485_v1 = vld [vmem:[%s6713_s1 + $0x8] sm:$0xff] }
 0x22a   :  { %2080 = vmatpush.bf16.msra.mxu2 %v4485_v1 }
 0x22b   :  { %v5776_v14 = vpop.f32.mrf.mxu3 }
 0x22d   :  { %v1459_v13 = vpop.f32.mrf.mxu0  ;;  %2106 = vmatpush.bf16.msra.mxu3 %v4496_v7  ;;  %v4494_v7 = vld [vmem:[%s6713_s1 + $0x50] sm:$0xff] }
 0x22e   :  { %v5781_v43 = vadd.f32 %v1488_v11, %v1459_v13  ;;  %v1493_v13 = vpop.f32.mrf.mxu1 }
 0x230   :  { %6873 = vst [vmem:[#allocation38_spill] sm:$0xff] %v5781_v43  ;;  %1549 = vmatmul.f32.gmra.mxu2 %v5781_v43  ;;  %v4495_v43 = vld [vmem:[%s6713_s1 + $0x58] sm:$0xff] }
 0x231   :  { %2107 = vmatpush.bf16.msra.mxu3 %v4495_v43  ;;  %v4484_v43 = vld [vmem:[%s6713_s1] sm:$0xff] }
 0x232   :  { %2081 = vmatpush.bf16.msra.mxu2 %v4484_v43 }
 0x233   :  { %v5790_v44 = vpop.f32.mrf.mxu3 }
 0x235   :  { %v1462_v11 = vpop.f32.mrf.mxu0  ;;  %2108 = vmatpush.bf16.msra.mxu3 %v4494_v7 }
 0x236   :  { %v5795_v35 = vadd.f32 %v1491_v63, %v1462_v11  ;;  %v1496_v53 = vpop.f32.mrf.mxu1 }
 0x238   :  { %6874 = vst [vmem:[#allocation39_spill] sm:$0xff] %v5795_v35  ;;  %1552 = vmatmul.f32.gmra.mxu2 %v5795_v35  ;;  %v4493_v35 = vld [vmem:[%s6713_s1 + $0x48] sm:$0xff] }
 0x239   :  { %2109 = vmatpush.bf16.msra.mxu3 %v4493_v35 }
 0x23b   :  { %v5804_v39 = vpop.f32.mrf.mxu3 }
 0x23d   :  { %v1464_v63 = vpop.f32.mrf.mxu0 }
 0x23e   :  { %v5809_v11 = vadd.f32 %v1493_v13, %v1464_v63  ;;  %v4492_v13 = vld [vmem:[%s6713_s1 + $0x40] sm:$0xff]  ;;  %v1498_v43 = vpop.f32.mrf.mxu1 }
 0x23f   :  { %2110 = vmatpush.bf16.msra.mxu3 %v4492_v13  ;;  %v4476_v63 = vld [vmem:[%s6714_s0 + $0x184] sm:$0xf] }
 0x240   :  { %6875 = vst [vmem:[#allocation40_spill] sm:$0xff] %v5809_v11  ;;  %1555 = vmatmul.f32.gmra.mxu2 %v5809_v11  ;;  %v4144_v11 = vld [vmem:[%s6714_s0 + $0x188] sm:$0xf0] }
 0x241   :  { %v4147_v35 = vor.u32 %v4476_v63, %v4144_v11  ;;  %v4523_v11 = vld [vmem:[%s6713_s1 + $0x78] sm:$0xff] }
 0x242   :  { %v4515_v63 = vld [vmem:[%s6713_s1 + $0x38] sm:$0xff]  ;;  %2416 = vmatpush.bf16.msrb.mxu2 %v4523_v11 }
 0x243   :  { %v5818_v1 = vpop.f32.mrf.mxu3  ;;  %2469 = vmatpush.msrb.mxu3 %v5532_v6  ;;  %2387 = vmatpush.bf16.msrb.mxu1 %v4515_v63  ;;  %v4152_v11 = vld [vmem:[%s6714_s0 + $0x198] sm:$0xf0] }
 0x244   :  { %2111 = vmatmul.bf16.vlgmr.msra.gmra.mxu3 %v4147_v35 }
 0x245   :  { %v1467_v7 = vpop.f32.mrf.mxu0  ;;  %2470 = vmatpush.msrb.mxu3 %v5543_v15 }
 0x246   :  { %v5826_v60 = vadd.f32 %v1496_v53, %v1467_v7  ;;  %v1501_v35 = vpop.f32.mrf.mxu1 }
 0x247   :  { %2471 = vmatpush.msrb.mxu3 %v5553_v23  ;;  %2388 = vmatpush.bf16.msrb.mxu1 %v4514_v25  ;;  %v4513_v25 = vld [vmem:[%s6713_s1 + $0x28] sm:$0xff] }
 0x248   :  { %6876 = vst [vmem:[#allocation41_spill] sm:$0xff] %v5826_v60  ;;  %1558 = vmatmul.f32.gmra.mxu2 %v5826_v60 }
 0x249   :  { %2472 = vmatpush.msrb.mxu3 %v5558_v29 }
 0x24b   :  { %v5835_v13 = vpop.f32.mrf.mxu3  ;;  %2473 = vmatpush.msrb.mxu3 %v5578_v54  ;;  %2389 = vmatpush.bf16.msrb.mxu1 %v4513_v25  ;;  %v4480_v25 = vld [vmem:[%s6714_s0 + $0x1a4] sm:$0xf] }
 0x24d   :  { %v1469_v53 = vpop.f32.mrf.mxu0  ;;  %2474 = vmatpush.msrb.mxu3 %v5586_v55 }
 0x24e   :  { %v5838_v7 = vadd.f32 %v1498_v43, %v1469_v53  ;;  %v4522_v53 = vld [vmem:[%s6713_s1 + $0x70] sm:$0xff]  ;;  %v1503_v48 = vpop.f32.mrf.mxu1 }
 0x24f   :  { %2475 = vmatpush.msrb.mxu3 %v5597_v2  ;;  %2417 = vmatpush.bf16.msrb.mxu2 %v4522_v53  ;;  %v4520_v53 = vld [vmem:[%s6713_s1 + $0x60] sm:$0xff] }
 0x250   :  { %6877 = vst [vmem:[#allocation42_spill] sm:$0xff] %v5838_v7  ;;  %1561 = vmatmul.f32.gmra.mxu2 %v5838_v7  ;;  %v4478_v7 = vld [vmem:[%s6714_s0 + $0x194] sm:$0xf] }
 0x251   :  { %2476 = vmatpush.msrb.mxu3 %v5602_v19  ;;  %v4155_v63 = vor.u32 %v4478_v7, %v4152_v11  ;;  %v4142_v11 = vld [vmem:[%s6714_s0 + $0x180] sm:$0xf] }
 0x253   :  { %v5850_v60 = vpop.f32.mrf.mxu3  ;;  %2477 = vmatpush.msrb.mxu3 %v5628_v58 }
 0x254   :  { %2116 = vmatmul.bf16.gmra.mxu3 %v4155_v63 }
 0x255   :  { %v1472_v43 = vpop.f32.mrf.mxu0  ;;  %2478 = vmatpush.msrb.mxu3 %v5635_v61 }
 0x256   :  { %v5859_v32 = vadd.f32 %v1501_v35, %v1472_v43  ;;  %v4521_v35 = vld [vmem:[%s6713_s1 + $0x68] sm:$0xff] }
 0x257   :  { %2479 = vmatpush.msrb.mxu3 %v5646_v33  ;;  %2418 = vmatpush.bf16.msrb.mxu2 %v4521_v35 }
 0x258   :  { %6878 = vst [vmem:[#allocation43_spill] sm:$0xff] %v5859_v32  ;;  %1564 = vmatmul.f32.gmra.mxu2 %v5859_v32 }
 0x259   :  { %2480 = vmatpush.msrb.mxu3 %v5651_v34 }
 0x25b   :  { %v5873_v43 = vpop.f32.mrf.mxu3  ;;  %2419 = vmatpush.bf16.msrb.mxu2 %v4520_v53  ;;  %2481 = vmatpush.msrb.mxu3 %v5676_v12  ;;  %v4160_v53 = vld [vmem:[%s6714_s0 + $0x1a8] sm:$0xf0] }
 0x25c   :  { %6879 = vst [vmem:[#allocation44_spill] sm:$0xff] %v5873_v43  ;;  %v4163_v32 = vor.u32 %v4480_v25, %v4160_v53 }
 0x25d   :  { %v1474_v52 = vpop.f32.mrf.mxu0  ;;  %2482 = vmatpush.msrb.mxu3 %v5683_v10 }
 0x25e   :  { %v5876_v7 = vadd.f32 %v1503_v48, %v1474_v52  ;;  %v4477_v52 = vld [vmem:[%s6714_s0 + $0x184] sm:$0xf0] }
 0x25f   :  { %v4143_v63 = vor.u32 %v4477_v52, %v4142_v11  ;;  %2483 = vmatpush.msrb.mxu3 %v5706_v24  ;;  %v4519_v11 = vld [vmem:[%s6713_s1 + $0x58] sm:$0xff] }
 0x260   :  { %6880 = vst [vmem:[#allocation45_spill] sm:$0xff] %v5876_v7  ;;  %1567 = vmatmul.f32.gmra.mxu2 %v5876_v7  ;;  %v4512_v7 = vld [vmem:[%s6713_s1 + $0x20] sm:$0xff] }
 0x261   :  { %2484 = vmatpush.msrb.mxu3 %v5715_v3  ;;  %2390 = vmatpush.bf16.msrb.mxu1 %v4512_v7  ;;  %v4511_v7 = vld [vmem:[%s6713_s1 + $0x18] sm:$0xff] }
 0x262   :  { %2420 = vmatpush.bf16.msrb.mxu2 %v4519_v11 }
 0x263   :  { %v5893_v48 = vpop.f32.mrf.mxu3  ;;  %2786 = vmatpush.msra.mxu3 %v5532_v6 }
 0x264   :  { %6881 = vst [vmem:[#allocation46_spill] sm:$0xff] %v5893_v48  ;;  %2121 = vmatmul.bf16.gmra.mxu3 %v4163_v32  ;;  %v4150_v32 = vld [vmem:[%s6714_s0 + $0x190] sm:$0xf] }
 0x265   :  { %v1799_v35 = vpop.f32.mrf.mxu0  ;;  %2787 = vmatpush.msra.mxu3 %v5543_v15  ;;  %2391 = vmatpush.bf16.msrb.mxu1 %v4511_v7  ;;  %v4482_v7 = vld [vmem:[%s6714_s0 + $0x1b4] sm:$0xf] }
 0x267   :  { %2788 = vmatpush.msra.mxu3 %v5553_v23 }
 0x268   :  { %2082 = vmatmul.bf16.vlgmr.msra.gmra.mxu2 %v4143_v63  ;;  %v4518_v63 = vld [vmem:[%s6713_s1 + $0x50] sm:$0xff] }
 0x269   :  { %2421 = vmatpush.bf16.msrb.mxu2 %v4518_v63  ;;  %2789 = vmatpush.msra.mxu3 %v5558_v29  ;;  %v4510_v63 = vld [vmem:[%s6713_s1 + $0x10] sm:$0xff] }
 0x26a   :  { %2392 = vmatpush.bf16.msrb.mxu1 %v4510_v63 }
 0x26b   :  { %v1770_v52 = vpop.f32.mrf.mxu3  ;;  %2790 = vmatpush.msra.mxu3 %v5578_v54 }
 0x26c   :  { %v5911_v5 = vadd.f32 %v1799_v35, %v1770_v52  ;;  %v4479_v35 = vld [vmem:[%s6714_s0 + $0x194] sm:$0xf0] }
 0x26d   :  { %v1801_v17 = vpop.f32.mrf.mxu0  ;;  %v4151_v11 = vor.u32 %v4479_v35, %v4150_v32  ;;  %2791 = vmatpush.msra.mxu3 %v5586_v55  ;;  %v4517_v32 = vld [vmem:[%s6713_s1 + $0x48] sm:$0xff] }
 0x26e   :  { %6882 = vst [vmem:[#allocation47_spill] sm:$0xff] %v5911_v5  ;;  %1859 = vmatmul.f32.vlgmr.msra.gmra.mxu1 %v5911_v5  ;;  %v4168_v5 = vld [vmem:[%s6714_s0 + $0x1b8] sm:$0xf0]  ;;  %2422 = vmatpush.bf16.msrb.mxu2 %v4517_v32 }
 0x26f   :  { %2792 = vmatpush.msra.mxu3 %v5597_v2 }
 0x271   :  { %2793 = vmatpush.msra.mxu3 %v5602_v19 }
 0x273   :  { %v1772_v25 = vpop.f32.mrf.mxu3  ;;  %2794 = vmatpush.msra.mxu3 %v5628_v58 }
 0x274   :  { %v5930_v53 = vadd.f32 %v1801_v17, %v1772_v25  ;;  %v4171_v17 = vor.u32 %v4482_v7, %v4168_v5  ;;  %v4509_v5 = vld [vmem:[%s6713_s1 + $0x8] sm:$0xff] }
 0x275   :  { %v1804_v52 = vpop.f32.mrf.mxu0  ;;  %2795 = vmatpush.msra.mxu3 %v5635_v61  ;;  %2393 = vmatpush.bf16.msrb.mxu1 %v4509_v5  ;;  %v4481_v7 = vld [vmem:[%s6714_s0 + $0x1a4] sm:$0xf0]  ;;  %v4508_v5 = vld [vmem:[%s6713_s1] sm:$0xff] }
 0x276   :  { %6883 = vst [vmem:[#allocation48_spill] sm:$0xff] %v5930_v53  ;;  %1862 = vmatmul.f32.gmra.mxu1 %v5930_v53  ;;  %2126 = vmatmul.bf16.gmra.mxu3 %v4171_v17 }
 0x277   :  { %2796 = vmatpush.msra.mxu3 %v5646_v33 }
 0x278   :  { %2087 = vmatmul.bf16.gmra.mxu2 %v4151_v11  ;;  %v4516_v11 = vld [vmem:[%s6713_s1 + $0x40] sm:$0xff] }
 0x279   :  { %2423 = vmatpush.bf16.msrb.mxu2 %v4516_v11  ;;  %2797 = vmatpush.msra.mxu3 %v5651_v34 }
 0x27a   :  { %2394 = vmatpush.bf16.msrb.mxu1 %v4508_v5 }
 0x27b   :  { %v1775_v35 = vpop.f32.mrf.mxu3  ;;  %2798 = vmatpush.msra.mxu3 %v5676_v12 }
 0x27c   :  { %v5948_v25 = vadd.f32 %v1804_v52, %v1775_v35  ;;  %v4158_v52 = vld [vmem:[%s6714_s0 + $0x1a0] sm:$0xf] }
 0x27d   :  { %v1806_v53 = vpop.f32.mrf.mxu0  ;;  %2707 = vmatpush.msra.mxu2 %v5532_v6  ;;  %v4159_v32 = vor.u32 %v4481_v7, %v4158_v52  ;;  %2799 = vmatpush.msra.mxu3 %v5683_v10  ;;  %v4166_v7 = vld [vmem:[%s6714_s0 + $0x1b0] sm:$0xf] }
 0x27e   :  { %6884 = vst [vmem:[#allocation49_spill] sm:$0xff] %v5948_v25  ;;  %1865 = vmatmul.f32.gmra.mxu1 %v5948_v25  ;;  %v4506_v25 = vld [vmem:[%s6714_s0 + $0x1f4] sm:$0xf] }
 0x27f   :  { %2708 = vmatpush.msra.mxu2 %v5543_v15  ;;  %2628 = vmatpush.msra.mxu1 %v5532_v6 }
 0x280   :  { %2800 = vmatpush.msra.mxu3 %v5706_v24 }
 0x281   :  { %2709 = vmatpush.msra.mxu2 %v5553_v23  ;;  %2629 = vmatpush.msra.mxu1 %v5543_v15 }
 0x282   :  { %2801 = vmatpush.msra.mxu3 %v5715_v3 }
 0x283   :  { %v1777_v63 = vpop.f32.mrf.mxu3  ;;  %2710 = vmatpush.msra.mxu2 %v5558_v29  ;;  %2630 = vmatpush.msra.mxu1 %v5553_v23 }
 0x284   :  { %v5969_v17 = vadd.f32 %v1806_v53, %v1777_v63  ;;  %v4483_v63 = vld [vmem:[%s6714_s0 + $0x1b4] sm:$0xf0] }
 0x285   :  { %v1809_v35 = vpop.f32.mrf.mxu0  ;;  %2711 = vmatpush.msra.mxu2 %v5578_v54  ;;  %2631 = vmatpush.msra.mxu1 %v5558_v29  ;;  %v4167_v5 = vor.u32 %v4483_v63, %v4166_v7  ;;  %v4500_v7 = vld [vmem:[%s6714_s0 + $0x1c4] sm:$0xf]  ;;  %v4240_v63 = vld [vmem:[%s6714_s0 + $0x1c8] sm:$0xf0] }
 0x286   :  { %6885 = vst [vmem:[#allocation50_spill] sm:$0xff] %v5969_v17  ;;  %1868 = vmatmul.f32.gmra.mxu1 %v5969_v17  ;;  %v4505_v17 = vld [vmem:[%s6714_s0 + $0x1e4] sm:$0xf0] }
 0x287   :  { %2712 = vmatpush.msra.mxu2 %v5586_v55  ;;  %2632 = vmatpush.msra.mxu1 %v5578_v54 }
 0x288   :  { %2092 = vmatmul.bf16.gmra.mxu2 %v4159_v32 }
 0x289   :  { %2713 = vmatpush.msra.mxu2 %v5597_v2  ;;  %2633 = vmatpush.msra.mxu1 %v5586_v55 }
 0x28b   :  { %v1780_v53 = vpop.f32.mrf.mxu3  ;;  %2714 = vmatpush.msra.mxu2 %v5602_v19  ;;  %2634 = vmatpush.msra.mxu1 %v5597_v2 }
 0x28c   :  { %v5984_v11 = vadd.f32 %v1809_v35, %v1780_v53 }
 0x28d   :  { %v1811_v52 = vpop.f32.mrf.mxu0  ;;  %2715 = vmatpush.msra.mxu2 %v5628_v58  ;;  %2635 = vmatpush.msra.mxu1 %v5602_v19 }
 0x28e   :  { %6886 = vst [vmem:[#allocation51_spill] sm:$0xff] %v5984_v11  ;;  %1871 = vmatmul.f32.gmra.mxu1 %v5984_v11 }
 0x28f   :  { %2716 = vmatpush.msra.mxu2 %v5635_v61  ;;  %2636 = vmatpush.msra.mxu1 %v5628_v58 }
 0x291   :  { %2717 = vmatpush.msra.mxu2 %v5646_v33  ;;  %2637 = vmatpush.msra.mxu1 %v5635_v61 }
 0x293   :  { %v1782_v32 = vpop.f32.mrf.mxu3  ;;  %2718 = vmatpush.msra.mxu2 %v5651_v34  ;;  %2638 = vmatpush.msra.mxu1 %v5646_v33 }
 0x294   :  { %v6002_v35 = vadd.f32 %v1811_v52, %v1782_v32 }
 0x295   :  { %v1814_v53 = vpop.f32.mrf.mxu0  ;;  %2719 = vmatpush.msra.mxu2 %v5676_v12  ;;  %2639 = vmatpush.msra.mxu1 %v5651_v34 }
 0x296   :  { %6887 = vst [vmem:[#allocation52_spill] sm:$0xff] %v6002_v35  ;;  %1874 = vmatmul.f32.gmra.mxu1 %v6002_v35  ;;  %v4501_v35 = vld [vmem:[%s6714_s0 + $0x1c4] sm:$0xf0] }
 0x297   :  { %2720 = vmatpush.msra.mxu2 %v5683_v10  ;;  %2640 = vmatpush.msra.mxu1 %v5676_v12 }
 0x298   :  { %2097 = vmatmul.bf16.gmra.mxu2 %v4167_v5 }
 0x299   :  { %2721 = vmatpush.msra.mxu2 %v5706_v24  ;;  %2641 = vmatpush.msra.mxu1 %v5683_v10 }
 0x29b   :  { %v1785_v11 = vpop.f32.mrf.mxu3  ;;  %2722 = vmatpush.msra.mxu2 %v5715_v3  ;;  %2642 = vmatpush.msra.mxu1 %v5706_v24 }
 0x29c   :  { %v6013_v52 = vadd.f32 %v1814_v53, %v1785_v11  ;;  %v4243_v53 = vor.u32 %v4500_v7, %v4240_v63  ;;  %v4502_v7 = vld [vmem:[%s6714_s0 + $0x1d4] sm:$0xf]  ;;  %v4248_v63 = vld [vmem:[%s6714_s0 + $0x1d8] sm:$0xf0] }
 0x29d   :  { %v1816_v11 = vpop.f32.mrf.mxu0  ;;  %2643 = vmatpush.msra.mxu1 %v5715_v3 }
 0x29e   :  { %6888 = vst [vmem:[#allocation53_spill] sm:$0xff] %v6013_v52  ;;  %1877 = vmatmul.f32.gmra.mxu1 %v6013_v52  ;;  %v4238_v52 = vld [vmem:[%s6714_s0 + $0x1c0] sm:$0xf] }
 0x2a3   :  { %v1787_v32 = vpop.f32.mrf.mxu3 }
 0x2a4   :  { %v6028_v5 = vadd.f32 %v1816_v11, %v1787_v32  ;;  %v4239_v11 = vor.u32 %v4501_v35, %v4238_v52  ;;  %v4251_v52 = vor.u32 %v4502_v7, %v4248_v63 }
 0x2a6   :  { %6889 = vst [vmem:[#allocation54_spill] sm:$0xff] %v6028_v5  ;;  %1880 = vmatmul.f32.gmra.mxu1 %v6028_v5  ;;  %v4254_v5 = vld [vmem:[%s6714_s0 + $0x1e0] sm:$0xf] }
 0x2a8   :  { %2424 = vmatmul.bf16.vlgmr.msrb.gmra.mxu2 %v4243_v53  ;;  %v4246_v53 = vld [vmem:[%s6714_s0 + $0x1d0] sm:$0xf] }
 0x2a9   :  { %3023 = vmatpush.msrb.mxu2 %v5532_v6 }
 0x2ab   :  { %v6040_v32 = vpop.f32.mrf.mxu2  ;;  %3024 = vmatpush.msrb.mxu2 %v5543_v15 }
 0x2ad   :  { %3025 = vmatpush.msrb.mxu2 %v5553_v23 }
 0x2ae   :  { %2395 = vmatmul.bf16.vlgmr.msrb.gmra.mxu1 %v4239_v11  ;;  %v4503_v11 = vld [vmem:[%s6714_s0 + $0x1d4] sm:$0xf0] }
 0x2af   :  { %2944 = vmatpush.msrb.mxu1 %v5532_v6  ;;  %3026 = vmatpush.msrb.mxu2 %v5558_v29  ;;  %v4247_v7 = vor.u32 %v4503_v11, %v4246_v53  ;;  %v4256_v53 = vld [vmem:[%s6714_s0 + $0x1e8] sm:$0xf0] }
 0x2b1   :  { %2945 = vmatpush.msrb.mxu1 %v5543_v15  ;;  %3027 = vmatpush.msrb.mxu2 %v5578_v54 }
 0x2b3   :  { %v6054_v35 = vpop.f32.mrf.mxu2  ;;  %2946 = vmatpush.msrb.mxu1 %v5553_v23  ;;  %3028 = vmatpush.msrb.mxu2 %v5586_v55 }
 0x2b5   :  { %2947 = vmatpush.msrb.mxu1 %v5558_v29  ;;  %3029 = vmatpush.msrb.mxu2 %v5597_v2 }
 0x2b7   :  { %2948 = vmatpush.msrb.mxu1 %v5578_v54  ;;  %3030 = vmatpush.msrb.mxu2 %v5602_v19 }
 0x2b8   :  { %2429 = vmatmul.bf16.gmra.mxu2 %v4251_v52  ;;  %v4504_v52 = vld [vmem:[%s6714_s0 + $0x1e4] sm:$0xf] }
 0x2b9   :  { %2949 = vmatpush.msrb.mxu1 %v5586_v55  ;;  %3031 = vmatpush.msrb.mxu2 %v5628_v58 }
 0x2bb   :  { %v6070_v63 = vpop.f32.mrf.mxu2  ;;  %2950 = vmatpush.msrb.mxu1 %v5597_v2  ;;  %3032 = vmatpush.msrb.mxu2 %v5635_v61 }
 0x2bd   :  { %2951 = vmatpush.msrb.mxu1 %v5602_v19  ;;  %3033 = vmatpush.msrb.mxu2 %v5646_v33 }
 0x2be   :  { %2400 = vmatmul.bf16.gmra.mxu1 %v4247_v7  ;;  %v4259_v7 = vor.u32 %v4504_v52, %v4256_v53  ;;  %v4255_v52 = vor.u32 %v4505_v17, %v4254_v5  ;;  %v4262_v17 = vld [vmem:[%s6714_s0 + $0x1f0] sm:$0xf]  ;;  %v4507_v5 = vld [vmem:[%s6714_s0 + $0x1f4] sm:$0xf0] }
 0x2bf   :  { %2952 = vmatpush.msrb.mxu1 %v5628_v58  ;;  %3034 = vmatpush.msrb.mxu2 %v5651_v34 }
 0x2c1   :  { %2953 = vmatpush.msrb.mxu1 %v5635_v61  ;;  %3035 = vmatpush.msrb.mxu2 %v5676_v12 }
 0x2c3   :  { %v6086_v11 = vpop.f32.mrf.mxu2  ;;  %2954 = vmatpush.msrb.mxu1 %v5646_v33  ;;  %3036 = vmatpush.msrb.mxu2 %v5683_v10 }
 0x2c5   :  { %2955 = vmatpush.msrb.mxu1 %v5651_v34  ;;  %3037 = vmatpush.msrb.mxu2 %v5706_v24 }
 0x2c7   :  { %2956 = vmatpush.msrb.mxu1 %v5676_v12  ;;  %3038 = vmatpush.msrb.mxu2 %v5715_v3  ;;  %v2112_v51 = vpop.f32.mrf.mxu3 }
 0x2c8   :  { %2434 = vmatmul.bf16.gmra.mxu2 %v4259_v7  ;;  %v4267_v7 = vor.u32 %v4506_v25, %v4264_v37 }
 0x2c9   :  { %2957 = vmatpush.msrb.mxu1 %v5683_v10 }
 0x2cb   :  { %v6101_v53 = vpop.f32.mrf.mxu2  ;;  %2958 = vmatpush.msrb.mxu1 %v5706_v24 }
 0x2cd   :  { %2959 = vmatpush.msrb.mxu1 %v5715_v3 }
 0x2ce   :  { %2405 = vmatmul.bf16.gmra.mxu1 %v4255_v52  ;;  %v4263_v52 = vor.u32 %v4507_v5, %v4262_v17 }
 0x2cf   :  { %v2114_v42 = vpop.f32.mrf.mxu3 }
 0x2d3   :  { %v6111_v47 = vpop.f32.mrf.mxu2 }
 0x2d4   :  { %6890 = vst [vmem:[#allocation55_spill] sm:$0xff] %v6111_v47 }
 0x2d7   :  { %v2117_v47 = vpop.f32.mrf.mxu3 }
 0x2d8   :  { %2439 = vmatmul.bf16.gmra.mxu2 %v4267_v7 }
 0x2db   :  { %v6119_v8 = vpop.f32.mrf.mxu2 }
 0x2dc   :  { %6891 = vst [vmem:[#allocation56_spill] sm:$0xff] %v6119_v8 }
 0x2de   :  { %2410 = vmatmul.bf16.gmra.mxu1 %v4263_v52 }
 0x2e3   :  { %v6121_v30 = vpop.f32.mrf.mxu2 }
 0x2e4   :  { %6892 = vst [vmem:[#allocation57_spill] sm:$0xff] %v6121_v30 }
 0x2eb   :  { %v6123_v48 = vpop.f32.mrf.mxu1  ;;  %v2083_v37 = vpop.f32.mrf.mxu2 }
 0x2ec   :  { %v6125_v25 = vadd.f32 %v2112_v51, %v2083_v37  ;;  %v2119_v51 = vpop.f32.mrf.mxu3 }
 0x2ee   :  { %6893 = vst [vmem:[#allocation58_spill] sm:$0xff] %v6125_v25  ;;  %2172 = vmatmul.f32.vlgmr.msrb.gmra.mxu0 %v6125_v25 }
 0x2ef   :  { %2865 = vmatpush.msrb.mxu0 %v5532_v6 }
 0x2f1   :  { %2866 = vmatpush.msrb.mxu0 %v5543_v15 }
 0x2f3   :  { %v6130_v7 = vpop.f32.mrf.mxu1  ;;  %v2085_v17 = vpop.f32.mrf.mxu2  ;;  %2867 = vmatpush.msrb.mxu0 %v5553_v23 }
 0x2f4   :  { %v6133_v5 = vadd.f32 %v2114_v42, %v2085_v17  ;;  %v2122_v42 = vpop.f32.mrf.mxu3 }
 0x2f5   :  { %2868 = vmatpush.msrb.mxu0 %v5558_v29 }
 0x2f6   :  { %6894 = vst [vmem:[#allocation59_spill] sm:$0xff] %v6133_v5  ;;  %2175 = vmatmul.f32.gmra.mxu0 %v6133_v5 }
 0x2f7   :  { %2869 = vmatpush.msrb.mxu0 %v5578_v54 }
 0x2f9   :  { %2870 = vmatpush.msrb.mxu0 %v5586_v55 }
 0x2fb   :  { %v6139_v52 = vpop.f32.mrf.mxu1  ;;  %v2088_v37 = vpop.f32.mrf.mxu2  ;;  %2871 = vmatpush.msrb.mxu0 %v5597_v2 }
 0x2fc   :  { %v6142_v25 = vadd.f32 %v2117_v47, %v2088_v37  ;;  %v2124_v8 = vpop.f32.mrf.mxu3 }
 0x2fd   :  { %2872 = vmatpush.msrb.mxu0 %v5602_v19 }
 0x2fe   :  { %6895 = vst [vmem:[#allocation60_spill] sm:$0xff] %v6142_v25  ;;  %2178 = vmatmul.f32.gmra.mxu0 %v6142_v25 }
 0x2ff   :  { %2873 = vmatpush.msrb.mxu0 %v5628_v58 }
 0x301   :  { %2874 = vmatpush.msrb.mxu0 %v5635_v61 }
 0x303   :  { %v6148_v17 = vpop.f32.mrf.mxu1  ;;  %v2090_v5 = vpop.f32.mrf.mxu2  ;;  %2875 = vmatpush.msrb.mxu0 %v5646_v33 }
 0x304   :  { %6896 = vst [vmem:[#allocation61_spill] sm:$0xff] %v6148_v17  ;;  %v6151_v30 = vadd.f32 %v2119_v51, %v2090_v5  ;;  %v2127_v43 = vpop.f32.mrf.mxu3 }
 0x305   :  { %2876 = vmatpush.msrb.mxu0 %v5651_v34 }
 0x306   :  { %6897 = vst [vmem:[#allocation62_spill] sm:$0xff] %v6151_v30  ;;  %2181 = vmatmul.f32.gmra.mxu0 %v6151_v30 }
 0x307   :  { %2877 = vmatpush.msrb.mxu0 %v5676_v12 }
 0x309   :  { %2878 = vmatpush.msrb.mxu0 %v5683_v10 }
 0x30b   :  { %v6157_v47 = vpop.f32.mrf.mxu1  ;;  %v2093_v37 = vpop.f32.mrf.mxu2  ;;  %2879 = vmatpush.msrb.mxu0 %v5706_v24 }
 0x30c   :  { %6898 = vst [vmem:[#allocation63_spill] sm:$0xff] %v6157_v47  ;;  %v6160_v25 = vadd.f32 %v2122_v42, %v2093_v37  ;;  %v2129_v42 = vpop.f32.mrf.mxu3 }
 0x30d   :  { %2880 = vmatpush.msrb.mxu0 %v5715_v3 }
 0x30e   :  { %6899 = vst [vmem:[#allocation64_spill] sm:$0xff] %v6160_v25  ;;  %2184 = vmatmul.f32.gmra.mxu0 %v6160_v25 }
 0x313   :  { %v6164_v5 = vpop.f32.mrf.mxu1  ;;  %v2095_v51 = vpop.f32.mrf.mxu2 }
 0x314   :  { %6900 = vst [vmem:[#allocation65_spill] sm:$0xff] %v6164_v5  ;;  %v6166_v30 = vadd.f32 %v2124_v8, %v2095_v51 }
 0x316   :  { %6901 = vst [vmem:[#allocation66_spill] sm:$0xff] %v6166_v30  ;;  %2187 = vmatmul.f32.gmra.mxu0 %v6166_v30 }
 0x31b   :  { %v6169_v38 = vpop.f32.mrf.mxu1  ;;  %v2098_v47 = vpop.f32.mrf.mxu2 }
 0x31c   :  { %v6171_v62 = vadd.f32 %v2127_v43, %v2098_v47 }
 0x31e   :  { %6902 = vst [vmem:[#allocation67_spill] sm:$0xff] %v6171_v62  ;;  %2190 = vmatmul.f32.gmra.mxu0 %v6171_v62 }
 0x323   :  { %v6174_v37 = vpop.f32.mrf.mxu1  ;;  %v2100_v17 = vpop.f32.mrf.mxu2 }
 0x324   :  { %v6176_v25 = vadd.f32 %v2129_v42, %v2100_v17 }
 0x326   :  { %6903 = vst [vmem:[#allocation68_spill] sm:$0xff] %v6176_v25  ;;  %2193 = vmatmul.f32.gmra.mxu0 %v6176_v25 }
 0x32b   :  { %v2396_v8 = vpop.f32.mrf.mxu1  ;;  %v2425_v51 = vpop.f32.mrf.mxu2 }
 0x32c   :  { %v6179_v5 = vadd.f32 %v2425_v51, %v2396_v8 }
 0x32e   :  { %6904 = vst [vmem:[#allocation69_spill] sm:$0xff] %v6179_v5  ;;  %2485 = vmatmul.f32.vlgmr.msrb.gmra.mxu3 %v6179_v5 }
 0x32f   :  { %3102 = vmatpush.msrb.mxu3 %v5532_v6 }
 0x331   :  { %3103 = vmatpush.msrb.mxu3 %v5543_v15 }
 0x333   :  { %v2398_v43 = vpop.f32.mrf.mxu1  ;;  %v2427_v47 = vpop.f32.mrf.mxu2  ;;  %3104 = vmatpush.msrb.mxu3 %v5553_v23 }
 0x334   :  { %v6185_v62 = vadd.f32 %v2427_v47, %v2398_v43 }
 0x335   :  { %3105 = vmatpush.msrb.mxu3 %v5558_v29 }
 0x336   :  { %6905 = vst [vmem:[#allocation70_spill] sm:$0xff] %v6185_v62  ;;  %2488 = vmatmul.f32.gmra.mxu3 %v6185_v62 }
 0x337   :  { %3106 = vmatpush.msrb.mxu3 %v5578_v54 }
 0x339   :  { %3107 = vmatpush.msrb.mxu3 %v5586_v55 }
 0x33b   :  { %v2401_v17 = vpop.f32.mrf.mxu1  ;;  %v2430_v42 = vpop.f32.mrf.mxu2  ;;  %3108 = vmatpush.msrb.mxu3 %v5597_v2 }
 0x33c   :  { %v6192_v6 = vadd.f32 %v2430_v42, %v2401_v17 }
 0x33d   :  { %3109 = vmatpush.msrb.mxu3 %v5602_v19 }
 0x33e   :  { %6906 = vst [vmem:[#allocation71_spill] sm:$0xff] %v6192_v6  ;;  %2491 = vmatmul.f32.gmra.mxu3 %v6192_v6 }
 0x33f   :  { %3110 = vmatpush.msrb.mxu3 %v5628_v58 }
 0x341   :  { %3111 = vmatpush.msrb.mxu3 %v5635_v61 }
 0x343   :  { %v2403_v15 = vpop.f32.mrf.mxu1  ;;  %v2432_v23 = vpop.f32.mrf.mxu2  ;;  %3112 = vmatpush.msrb.mxu3 %v5646_v33 }
 0x344   :  { %v6199_v29 = vadd.f32 %v2432_v23, %v2403_v15 }
 0x345   :  { %3113 = vmatpush.msrb.mxu3 %v5651_v34 }
 0x346   :  { %6907 = vst [vmem:[#allocation72_spill] sm:$0xff] %v6199_v29  ;;  %2494 = vmatmul.f32.gmra.mxu3 %v6199_v29 }
 0x347   :  { %3114 = vmatpush.msrb.mxu3 %v5676_v12 }
 0x349   :  { %3115 = vmatpush.msrb.mxu3 %v5683_v10 }
 0x34b   :  { %v2406_v54 = vpop.f32.mrf.mxu1  ;;  %v2435_v55 = vpop.f32.mrf.mxu2  ;;  %3116 = vmatpush.msrb.mxu3 %v5706_v24 }
 0x34c   :  { %v6206_v2 = vadd.f32 %v2435_v55, %v2406_v54  ;;  %v632_v54 = vadd.f32 %v5367_v9, %v5357_v0 }
 0x34d   :  { %3117 = vmatpush.msrb.mxu3 %v5715_v3 }
 0x34e   :  { %6908 = vst [vmem:[#allocation73_spill] sm:$0xff] %v6206_v2  ;;  %2497 = vmatmul.f32.gmra.mxu3 %v6206_v2 }
 0x353   :  { %v2408_v61 = vpop.f32.mrf.mxu1  ;;  %v2437_v19 = vpop.f32.mrf.mxu2 }
 0x354   :  { %v6210_v58 = vadd.f32 %v2437_v19, %v2408_v61  ;;  %v319_v61 = vadd.f32 %v5301_v27, %v5287_v22  ;;  %v633_v19 = vadd.f32 %v632_v54, %v5378_v18  ;;  %v6914_v54 = vld [vmem:[#allocation36_spill] sm:$0xff] }
 0x356   :  { %6909 = vst [vmem:[#allocation74_spill] sm:$0xff] %v6210_v58  ;;  %2500 = vmatmul.f32.gmra.mxu3 %v6210_v58 }
 0x35b   :  { %v2411_v33 = vpop.f32.mrf.mxu1  ;;  %v2440_v12 = vpop.f32.mrf.mxu2 }
 0x35c   :  { %v6213_v34 = vadd.f32 %v2440_v12, %v2411_v33  ;;  %v945_v33 = vadd.f32 %v5641_v20, %v5623_v56  ;;  %v320_v12 = vadd.f32 %v319_v61, %v5303_v31  ;;  %v1571_v31 = vadd.f32 %v6054_v35, %v6040_v32 }
 0x35e   :  { %6910 = vst [vmem:[#allocation75_spill] sm:$0xff] %v6213_v34  ;;  %2503 = vmatmul.f32.gmra.mxu3 %v6213_v34  ;;  %v321_v0 = vadd.f32 %v320_v12, %v5317_v36  ;;  %v1572_v36 = vadd.f32 %v1571_v31, %v6070_v63  ;;  %v6912_v63 = vld [vmem:[#allocation61_spill] sm:$0xff]  ;;  %v6918_v12 = vld [vmem:[#allocation46_spill] sm:$0xff] }
 0x363   :  { %v2413_v10 = vpop.f32.mrf.mxu1  ;;  %v2442_v24 = vpop.f32.mrf.mxu2 }
 0x364   :  { %v6216_v8 = vadd.f32 %v2442_v24, %v2413_v10  ;;  %v634_v10 = vadd.f32 %v633_v19, %v5389_v26  ;;  %v946_v24 = vadd.f32 %v945_v33, %v5671_v45  ;;  %v322_v26 = vadd.f32 %v321_v0, %v5319_v40  ;;  %v6917_v19 = vld [vmem:[#allocation63_spill] sm:$0xff] }
 0x366   :  { %6911 = vst [vmem:[#allocation76_spill] sm:$0xff] %v6216_v8  ;;  %2506 = vmatmul.f32.gmra.mxu3 %v6216_v8  ;;  %v1258_v8 = vadd.f32 %v5790_v44, %v5776_v14  ;;  %v635_v9 = vadd.f32 %v634_v10, %v5406_v41  ;;  %v947_v22 = vadd.f32 %v946_v24, %v5689_v28  ;;  %v6919_v10 = vld [vmem:[#allocation56_spill] sm:$0xff]  ;;  %v6920_v24 = vld [vmem:[#allocation65_spill] sm:$0xff] }
 0x367   :  { %v1884_v41 = vadd.f32 %v6130_v7, %v6123_v48  ;;  %v323_v28 = vadd.f32 %v322_v26, %v5339_v50 }
 0x368   :  { %v1259_v18 = vadd.f32 %v1258_v8, %v5804_v39  ;;  %v636_v45 = vadd.f32 %v635_v9, %v5417_v49  ;;  %v948_v56 = vadd.f32 %v947_v22, %v5708_v59  ;;  %v1573_v49 = vadd.f32 %v1572_v36, %v6086_v11  ;;  %v6913_v8 = vld [vmem:[#allocation19_spill] sm:$0xff] }
 0x369   :  { %v1885_v59 = vadd.f32 %v1884_v41, %v6139_v52  ;;  %v6915_v52 = vld [vmem:[#allocation44_spill] sm:$0xff] }
 0x36a   :  { %v1260_v20 = vadd.f32 %v1259_v18, %v5818_v1  ;;  %v637_v14 = vadd.f32 %v636_v45, %v5434_v4  ;;  %v949_v44 = vadd.f32 %v948_v56, %v5726_v21  ;;  %v324_v1 = vadd.f32 %v323_v28, %v5347_v57  ;;  %v6921_v18 = vld [vmem:[#allocation57_spill] sm:$0xff] }
 0x36b   :  { %v2173_v3 = vpop.f32.mrf.mxu0  ;;  %v1574_v4 = vadd.f32 %v1573_v49, %v6101_v53  ;;  %v1886_v21 = vadd.f32 %v1885_v59, %v6912_v63 }
 0x36c   :  { %v1261_v40 = vadd.f32 %v1260_v20, %v5835_v13  ;;  %v638_v35 = vadd.f32 %v637_v14, %v5445_v16  ;;  %v950_v48 = vadd.f32 %v949_v44, %v5747_v46  ;;  %v325_v13 = vadd.f32 %v324_v1, %v6913_v8 }
 0x36d   :  { %v1887_v16 = vadd.f32 %v1886_v21, %v6917_v19 }
 0x36e   :  { %v1262_v50 = vadd.f32 %v1261_v40, %v5850_v60  ;;  %v951_v11 = vadd.f32 %v950_v48, %v6914_v54  ;;  %v639_v46 = vrot.slane %v638_v35, 4  ;;  %v326_v9 = vrot.slane %v325_v13, 4 }
 0x36f   :  { %v1888_v0 = vadd.f32 %v1887_v16, %v6920_v24 }
 0x370   :  { %v952_v22 = vrot.slane %v951_v11, 4  ;;  %v640_v20 = vadd.f32 %v639_v46, %v638_v35  ;;  %v327_v28 = vadd.f32 %v326_v9, %v325_v13 }
 0x371   :  { %v1889_v26 = vadd.f32 %v1888_v0, %v6169_v38 }
 0x372   :  { %v953_v44 = vadd.f32 %v952_v22, %v951_v11  ;;  %v641_v59 = vrot.slane %v640_v20, 2  ;;  %v328_v1 = vrot.slane %v327_v28, 2 }
 0x373   :  { %v2176_v51 = vpop.f32.mrf.mxu0 }
 0x374   :  { %v2197_v32 = vadd.f32 %v2176_v51, %v2173_v3  ;;  %v1263_v3 = vadd.f32 %v1262_v50, %v6915_v52  ;;  %v6916_v51 = vld [vmem:[#allocation55_spill] sm:$0xff]  ;;  %v954_v48 = vrot.slane %v953_v44, 2 }
 0x375   :  { %v1575_v57 = vadd.f32 %v1574_v4, %v6916_v51 }
 0x376   :  { %v1264_v60 = vadd.f32 %v1263_v3, %v6918_v12 }
 0x377   :  { %v1576_v53 = vadd.f32 %v1575_v57, %v6919_v10 }
 0x378   :  { %v1265_v36 = vrot.slane %v1264_v60, 4 }
 0x379   :  { %v1577_v31 = vadd.f32 %v1576_v53, %v6921_v18 }
 0x37b   :  { %v2179_v43 = vpop.f32.mrf.mxu0  ;;  %v1578_v40 = vrot.slane %v1577_v31, 4 }
 0x37c   :  { %v2198_v7 = vadd.f32 %v2197_v32, %v2179_v43 }
 0x37d   :  { %v1579_v50 = vadd.f32 %v1578_v40, %v1577_v31 }
 0x37f   :  { %v1580_v8 = vrot.slane %v1579_v50, 2 }
 0x381   :  { %v1581_v16 = vadd.f32 %v1580_v8, %v1579_v50 }
 0x383   :  { %v2182_v47 = vpop.f32.mrf.mxu0  ;;  %v1582_v24 = vrot.slane %v1581_v16, 1 }
 0x384   :  { %v2199_v33 = vadd.f32 %v2198_v7, %v2182_v47  ;;  %v1890_v47 = vadd.f32 %v1889_v26, %v6174_v37  ;;  %v955_v7 = vadd.f32 %v954_v48, %v953_v44  ;;  %v6923_v48 = vld [vmem:[#allocation11_spill] sm:$0xff] }
 0x385   :  { %v1583_v31 = vadd.f32 %v1582_v24, %v1581_v16 }
 0x386   :  { %v1891_v32 = vrot.slane %v1890_v47, 4  ;;  %v956_v19 = vrot.slane %v955_v7, 1 }
 0x388   :  { %v1892_v63 = vadd.f32 %v1891_v32, %v1890_v47  ;;  %v957_v53 = vadd.f32 %v956_v19, %v955_v7  ;;  %v6922_v32 = vld [vmem:[#allocation3_spill] sm:$0xff]  ;;  %v6926_v7 = vld [vmem:[#allocation4_spill] sm:$0xff] }
 0x38a   :  { %v1893_v3 = vrot.slane %v1892_v63, 2 }
 0x38b   :  { %v2185_v42 = vpop.f32.mrf.mxu0 }
 0x38c   :  { %v2200_v43 = vadd.f32 %v2199_v33, %v2185_v42  ;;  %v1266_v42 = vadd.f32 %v1265_v36, %v1264_v60  ;;  %v1894_v12 = vadd.f32 %v1893_v3, %v1892_v63  ;;  %v6929_v3 = vld [vmem:[#allocation29_spill] sm:$0xff] }
 0x38e   :  { %v1267_v35 = vrot.slane %v1266_v42, 2  ;;  %v1895_v22 = vrot.slane %v1894_v12, 1 }
 0x390   :  { %v1268_v52 = vadd.f32 %v1267_v35, %v1266_v42 }
 0x392   :  { %v1269_v46 = vrot.slane %v1268_v52, 1 }
 0x393   :  { %v2188_v55 = vpop.f32.mrf.mxu0 }
 0x394   :  { %v2201_v45 = vadd.f32 %v2200_v43, %v2188_v55  ;;  %v642_v55 = vadd.f32 %v641_v59, %v640_v20  ;;  %v1270_v9 = vadd.f32 %v1269_v46, %v1268_v52  ;;  %v1896_v20 = vadd.f32 %v1895_v22, %v1894_v12  ;;  %v6931_v46 = vld [vmem:[#allocation13_spill] sm:$0xff] }
 0x396   :  { %v643_v11 = vrot.slane %v642_v55, 1 }
 0x398   :  { %v644_v33 = vadd.f32 %v643_v11, %v642_v55  ;;  %v6925_v55 = vld [vmem:[#allocation28_spill] sm:$0xff]  ;;  %v6928_v11 = vld [vmem:[#allocation21_spill] sm:$0xff] }
 0x39b   :  { %v2191_v39 = vpop.f32.mrf.mxu0 }
 0x39c   :  { %v2202_v41 = vadd.f32 %v2201_v45, %v2191_v39  ;;  %v329_v39 = vadd.f32 %v328_v1, %v327_v28 }
 0x39e   :  { %v330_v57 = vrot.slane %v329_v39, 1 }
 0x3a0   :  { %v331_v60 = vadd.f32 %v330_v57, %v329_v39 }
 0x3a3   :  { %v2194_v56 = vpop.f32.mrf.mxu0 }
 0x3a4   :  { %v2203_v49 = vadd.f32 %v2202_v41, %v2194_v56 }
 0x3a6   :  { %v2204_v4 = vrot.slane %v2203_v49, 4 }
 0x3a8   :  { %v2205_v13 = vadd.f32 %v2204_v4, %v2203_v49  ;;  %v6924_v4 = vld [vmem:[#allocation20_spill] sm:$0xff] }
 0x3b1   :  { %v6219_v17 = vpop.f32.mrf.mxu3 }
 0x3b9   :  { %v6221_v15 = vpop.f32.mrf.mxu3 }
 0x3ba   :  { %v2510_v38 = vadd.f32 %v6221_v15, %v6219_v17  ;;  %v2206_v17 = vrot.slane %v2205_v13, 2 }
 0x3bc   :  { %v2207_v0 = vadd.f32 %v2206_v17, %v2205_v13  ;;  %v6927_v13 = vld [vmem:[#allocation12_spill] sm:$0xff] }
 0x3be   :  { %v2208_v26 = vrot.slane %v2207_v0, 1 }
 0x3c0   :  { %v2209_v41 = vadd.f32 %v2208_v26, %v2207_v0 }
 0x3c1   :  { %v6223_v23 = vpop.f32.mrf.mxu3 }
 0x3c2   :  { %v2511_v37 = vadd.f32 %v2510_v38, %v6223_v23 }
 0x3c9   :  { %v6240_v27 = vpop.f32.mrf.mxu3 }
 0x3ca   :  { %v2512_v54 = vadd.f32 %v2511_v37, %v6240_v27  ;;  %v645_v27 = vadd.f32 %v644_v33, %v331_v60 }
 0x3d1   :  { %v2498_v61 = vpop.f32.mrf.mxu3 }
 0x3d2   :  { %v2513_v51 = vadd.f32 %v2512_v54, %v2498_v61  ;;  %v958_v61 = vadd.f32 %v957_v53, %v645_v27 }
 0x3d4   :  { %v1271_v56 = vadd.f32 %v1270_v9, %v958_v61  ;;  %v6934_v9 = vld [vmem:[#allocation6_spill] sm:$0xff] }
 0x3d6   :  { %v1584_v47 = vadd.f32 %v1583_v31, %v1271_v56  ;;  %v6936_v31 = vld [vmem:[#allocation23_spill] sm:$0xff] }
 0x3d9   :  { %v2501_v14 = vpop.f32.mrf.mxu3 }
 0x3da   :  { %v2514_v15 = vadd.f32 %v2513_v51, %v2501_v14  ;;  %v1897_v14 = vadd.f32 %v1896_v20, %v1584_v47 }
 0x3dc   :  { %v2210_v40 = vadd.f32 %v2209_v41, %v1897_v14 }
 0x3e1   :  { %v2504_v21 = vpop.f32.mrf.mxu3 }
 0x3e2   :  { %v2515_v23 = vadd.f32 %v2514_v15, %v2504_v21  ;;  %v6930_v15 = vld [vmem:[#allocation5_spill] sm:$0xff] }
 0x3e9   :  { %v2507_v10 = vpop.f32.mrf.mxu3 }
 0x3ea   :  { %v2516_v43 = vadd.f32 %v2515_v23, %v2507_v10  ;;  %v6932_v23 = vld [vmem:[#allocation22_spill] sm:$0xff] }
 0x3eb   :  { %v6933_v10 = vld [vmem:[#allocation30_spill] sm:$0xff] }
 0x3ec   :  { %v2517_v18 = vrot.slane %v2516_v43, 4 }
 0x3ee   :  { %v2518_v45 = vadd.f32 %v2517_v18, %v2516_v43  ;;  %v6935_v18 = vld [vmem:[#allocation14_spill] sm:$0xff] }
 0x3f0   :  { %v2519_v36 = vrot.slane %v2518_v45, 2 }
 0x3f2   :  { %v2520_v28 = vadd.f32 %v2519_v36, %v2518_v45  ;;  %v6937_v45 = vld [vmem:[#allocation31_spill] sm:$0xff] }
 0x3f4   :  { %v2521_v44 = vrot.slane %v2520_v28, 1 }
 0x3f6   :  { %v2522_v49 = vadd.f32 %v2521_v44, %v2520_v28  ;;  %v6938_v28 = vld [vmem:[#allocation7_spill] sm:$0xff] }
 0x3f7   :  { %v6939_v44 = vld [vmem:[#allocation15_spill] sm:$0xff] }
 0x3f8   :  { %v2523_v59 = vadd.f32 %v2522_v49, %v2210_v40  ;;  %v6940_v49 = vld [vmem:[#allocation24_spill] sm:$0xff] }
 0x3fa   :  { %v6279_v42 = vmul.f32 0.00048828125, %v2523_v59 }
 0x3fc   :  { %v2533_v1 = vsub.f32 %v6922_v32, %v6279_v42  ;;  %v2612_v50 = vsub.f32 %v6923_v48, %v6279_v42  ;;  %v2691_v38 = vsub.f32 %v6924_v4, %v6279_v42  ;;  %v2770_v35 = vsub.f32 %v6925_v55, %v6279_v42 }
 0x3fd   :  { %v2534_v8 = vsub.f32 %v6926_v7, %v6279_v42  ;;  %v2613_v54 = vsub.f32 %v6927_v13, %v6279_v42  ;;  %v2692_v52 = vsub.f32 %v6928_v11, %v6279_v42  ;;  %v2771_v51 = vsub.f32 %v6929_v3, %v6279_v42 }
 0x3fe   :  { %v2541_v63 = vmul.f32 %v2533_v1, %v2533_v1  ;;  %v2620_v37 = vmul.f32 %v2612_v50, %v2612_v50  ;;  %v2699_v39 = vmul.f32 %v2691_v38, %v2691_v38  ;;  %v2778_v21 = vmul.f32 %v2770_v35, %v2770_v35  ;;  %v6941_v1 = vld [vmem:[#allocation32_spill] sm:$0xff] }
 0x3ff   :  { %v2542_v57 = vmul.f32 %v2534_v8, %v2534_v8  ;;  %v2621_v19 = vmul.f32 %v2613_v54, %v2613_v54  ;;  %v2700_v16 = vmul.f32 %v2692_v52, %v2692_v52  ;;  %v2779_v17 = vmul.f32 %v2771_v51, %v2771_v51  ;;  %v6943_v8 = vld [vmem:[#allocation16_spill] sm:$0xff]  ;;  %v6944_v52 = vld [vmem:[#allocation25_spill] sm:$0xff] }
 0x400   :  { %2565 = vmatmul.f32.vlgmr.msra.gmra.mxu0 %v2541_v63  ;;  %2644 = vmatmul.f32.vlgmr.msra.gmra.mxu1 %v2620_v37  ;;  %v2535_v33 = vsub.f32 %v6930_v15, %v6279_v42  ;;  %v2614_v12 = vsub.f32 %v6931_v46, %v6279_v42  ;;  %v2693_v60 = vsub.f32 %v6932_v23, %v6279_v42 }
 0x401   :  { %2723 = vmatmul.f32.vlgmr.msra.gmra.mxu2 %v2699_v39  ;;  %2802 = vmatmul.f32.vlgmr.msra.gmra.mxu3 %v2778_v21  ;;  %v2772_v53 = vsub.f32 %v6933_v10, %v6279_v42  ;;  %v2536_v22 = vsub.f32 %v6934_v9, %v6279_v42  ;;  %v2615_v61 = vsub.f32 %v6935_v18, %v6279_v42  ;;  %v6942_v39 = vld [vmem:[#allocation8_spill] sm:$0xff] }
 0x402   :  { %v2543_v24 = vmul.f32 %v2535_v33, %v2535_v33  ;;  %v2622_v0 = vmul.f32 %v2614_v12, %v2614_v12  ;;  %v2701_v43 = vmul.f32 %v2693_v60, %v2693_v60  ;;  %v2694_v26 = vsub.f32 %v6936_v31, %v6279_v42  ;;  %v6946_v60 = vld [vmem:[#allocation9_spill] sm:$0xff] }
 0x403   :  { %v2780_v27 = vmul.f32 %v2772_v53, %v2772_v53  ;;  %v2773_v56 = vsub.f32 %v6937_v45, %v6279_v42  ;;  %v2544_v20 = vmul.f32 %v2536_v22, %v2536_v22  ;;  %v2623_v36 = vmul.f32 %v2615_v61, %v2615_v61  ;;  %v6949_v22 = vld [vmem:[#allocation34_spill] sm:$0xff] }
 0x404   :  { %v2702_v47 = vmul.f32 %v2694_v26, %v2694_v26  ;;  %v2537_v14 = vsub.f32 %v6938_v28, %v6279_v42  ;;  %v2616_v40 = vsub.f32 %v6939_v44, %v6279_v42  ;;  %v2695_v59 = vsub.f32 %v6940_v49, %v6279_v42 }
 0x405   :  { %v2781_v41 = vmul.f32 %v2773_v56, %v2773_v56  ;;  %v2774_v50 = vsub.f32 %v6941_v1, %v6279_v42  ;;  %v2538_v21 = vsub.f32 %v6942_v39, %v6279_v42  ;;  %v2617_v54 = vsub.f32 %v6943_v8, %v6279_v42 }
 0x406   :  { %v2545_v38 = vmul.f32 %v2537_v14, %v2537_v14  ;;  %v2624_v35 = vmul.f32 %v2616_v40, %v2616_v40  ;;  %v2703_v63 = vmul.f32 %v2695_v59, %v2695_v59  ;;  %v2696_v51 = vsub.f32 %v6944_v52, %v6279_v42  ;;  %v6951_v14 = vld [vmem:[#allocation18_spill] sm:$0xff]  ;;  %v6952_v59 = vld [vmem:[#allocation27_spill] sm:$0xff] }
 0x407   :  { %v2782_v37 = vmul.f32 %v2774_v50, %v2774_v50  ;;  %v2539_v53 = vsub.f32 %v6946_v60, %v6279_v42  ;;  %v2776_v61 = vsub.f32 %v6949_v22, %v6279_v42  ;;  %v2619_v40 = vsub.f32 %v6951_v14, %v6279_v42 }
 0x408   :  { %2568 = vmatmul.f32.gmra.mxu0 %v2542_v57  ;;  %2647 = vmatmul.f32.gmra.mxu1 %v2621_v19  ;;  %v6945_v57 = vld [vmem:[#allocation33_spill] sm:$0xff]  ;;  %v2704_v33 = vmul.f32 %v2696_v51, %v2696_v51  ;;  %v2698_v50 = vsub.f32 %v6952_v59, %v6279_v42 }
 0x409   :  { %2726 = vmatmul.f32.gmra.mxu2 %v2700_v16  ;;  %2805 = vmatmul.f32.gmra.mxu3 %v2779_v17  ;;  %v2775_v19 = vsub.f32 %v6945_v57, %v6279_v42  ;;  %v2546_v16 = vmul.f32 %v2538_v21, %v2538_v21  ;;  %v2625_v17 = vmul.f32 %v2617_v54, %v2617_v54  ;;  %v6954_v51 = vld [vmem:[#allocation37_spill] sm:$0xff] }
 0x40a   :  { %v2547_v26 = vmul.f32 %v2539_v53, %v2539_v53  ;;  %v2706_v21 = vmul.f32 %v2698_v50, %v2698_v50  ;;  %v3086_v53 = vsub.f32 %v6179_v5, %v6279_v42  ;;  %v6968_v5 = vld [vmem:[#allocation64_spill] sm:$0xff] }
 0x40b   :  { %v2783_v12 = vmul.f32 %v2775_v19, %v2775_v19  ;;  %v2849_v19 = vsub.f32 %v6954_v51, %v6279_v42 }
 0x410   :  { %2571 = vmatmul.f32.gmra.mxu0 %v2543_v24  ;;  %2650 = vmatmul.f32.gmra.mxu1 %v2622_v0  ;;  %v6947_v24 = vld [vmem:[#allocation17_spill] sm:$0xff] }
 0x411   :  { %2729 = vmatmul.f32.gmra.mxu2 %v2701_v43  ;;  %2808 = vmatmul.f32.gmra.mxu3 %v2780_v27  ;;  %v2618_v0 = vsub.f32 %v6947_v24, %v6279_v42  ;;  %v6948_v43 = vld [vmem:[#allocation26_spill] sm:$0xff] }
 0x412   :  { %v2697_v27 = vsub.f32 %v6948_v43, %v6279_v42 }
 0x413   :  { %v2626_v56 = vmul.f32 %v2618_v0, %v2618_v0  ;;  %v2857_v0 = vmul.f32 %v2849_v19, %v2849_v19  ;;  %v6960_v19 = vld [vmem:[#allocation39_spill] sm:$0xff] }
 0x418   :  { %2574 = vmatmul.f32.gmra.mxu0 %v2544_v20  ;;  %2653 = vmatmul.f32.gmra.mxu1 %v2623_v36  ;;  %v2705_v20 = vmul.f32 %v2697_v27, %v2697_v27  ;;  %v2784_v36 = vmul.f32 %v2776_v61, %v2776_v61 }
 0x419   :  { %2732 = vmatmul.f32.gmra.mxu2 %v2702_v47  ;;  %2811 = vmatmul.f32.gmra.mxu3 %v2781_v41  ;;  %v6950_v47 = vld [vmem:[#allocation10_spill] sm:$0xff] }
 0x41a   :  { %v2540_v41 = vsub.f32 %v6950_v47, %v6279_v42 }
 0x420   :  { %2577 = vmatmul.f32.gmra.mxu0 %v2545_v38  ;;  %2656 = vmatmul.f32.gmra.mxu1 %v2624_v35  ;;  %v6953_v38 = vld [vmem:[#allocation35_spill] sm:$0xff] }
 0x421   :  { %2735 = vmatmul.f32.gmra.mxu2 %v2703_v63  ;;  %2814 = vmatmul.f32.gmra.mxu3 %v2782_v37  ;;  %v2777_v35 = vsub.f32 %v6953_v38, %v6279_v42  ;;  %v2548_v63 = vmul.f32 %v2540_v41, %v2540_v41  ;;  %v2627_v37 = vmul.f32 %v2619_v40, %v2619_v40  ;;  %v6959_v40 = vld [vmem:[#allocation59_spill] sm:$0xff] }
 0x422   :  { %v3008_v50 = vsub.f32 %v6959_v40, %v6279_v42  ;;  %v6976_v40 = vld [vmem:[#allocation76_spill] sm:$0xff] }
 0x423   :  { %v2785_v54 = vmul.f32 %v2777_v35, %v2777_v35  ;;  %v3087_v35 = vsub.f32 %v6185_v62, %v6279_v42 }
 0x428   :  { %2580 = vmatmul.f32.gmra.mxu0 %v2546_v16  ;;  %2659 = vmatmul.f32.gmra.mxu1 %v2625_v17  ;;  %v6955_v16 = vld [vmem:[#allocation47_spill] sm:$0xff] }
 0x429   :  { %2738 = vmatmul.f32.gmra.mxu2 %v2704_v33  ;;  %2817 = vmatmul.f32.gmra.mxu3 %v2783_v12  ;;  %v2928_v17 = vsub.f32 %v6955_v16, %v6279_v42  ;;  %v6956_v33 = vld [vmem:[#allocation58_spill] sm:$0xff] }
 0x42a   :  { %v3007_v12 = vsub.f32 %v6956_v33, %v6279_v42 }
 0x42b   :  { %v2936_v27 = vmul.f32 %v2928_v17, %v2928_v17  ;;  %v2851_v17 = vsub.f32 %v6960_v19, %v6279_v42 }
 0x42c   :  { %v3015_v61 = vmul.f32 %v3007_v12, %v3007_v12  ;;  %v6961_v12 = vld [vmem:[#allocation49_spill] sm:$0xff] }
 0x430   :  { %2583 = vmatmul.f32.gmra.mxu0 %v2547_v26  ;;  %2662 = vmatmul.f32.gmra.mxu1 %v2626_v56  ;;  %v3094_v26 = vmul.f32 %v3086_v53, %v3086_v53  ;;  %v6957_v56 = vld [vmem:[#allocation38_spill] sm:$0xff]  ;;  %v2930_v53 = vsub.f32 %v6961_v12, %v6279_v42 }
 0x431   :  { %2741 = vmatmul.f32.gmra.mxu2 %v2705_v20  ;;  %2820 = vmatmul.f32.gmra.mxu3 %v2784_v36  ;;  %v2850_v20 = vsub.f32 %v6957_v56, %v6279_v42  ;;  %v6958_v36 = vld [vmem:[#allocation48_spill] sm:$0xff] }
 0x432   :  { %v2929_v41 = vsub.f32 %v6958_v36, %v6279_v42 }
 0x438   :  { %2586 = vmatmul.f32.gmra.mxu0 %v2548_v63  ;;  %2665 = vmatmul.f32.gmra.mxu1 %v2627_v37  ;;  %v2858_v63 = vmul.f32 %v2850_v20, %v2850_v20  ;;  %v2937_v37 = vmul.f32 %v2929_v41, %v2929_v41  ;;  %v2938_v20 = vmul.f32 %v2930_v53, %v2930_v53 }
 0x439   :  { %2744 = vmatmul.f32.gmra.mxu2 %v2706_v21  ;;  %2823 = vmatmul.f32.gmra.mxu3 %v2785_v54  ;;  %v3016_v21 = vmul.f32 %v3008_v50, %v3008_v50  ;;  %v3095_v54 = vmul.f32 %v3087_v35, %v3087_v35  ;;  %v6963_v35 = vld [vmem:[#allocation40_spill] sm:$0xff] }
 0x440   :  { %2881 = vmatmul.f32.vlgmr.msrb.gmra.mxu0 %v2857_v0  ;;  %2960 = vmatmul.f32.vlgmr.msrb.gmra.mxu1 %v2936_v27  ;;  %v6962_v0 = vld [vmem:[#allocation60_spill] sm:$0xff] }
 0x441   :  { %3039 = vmatmul.f32.vlgmr.msrb.gmra.mxu2 %v3015_v61  ;;  %3118 = vmatmul.f32.vlgmr.msrb.gmra.mxu3 %v3094_v26  ;;  %v3009_v27 = vsub.f32 %v6962_v0, %v6279_v42  ;;  %v3088_v61 = vsub.f32 %v6192_v6, %v6279_v42  ;;  %v2859_v26 = vmul.f32 %v2851_v17, %v2851_v17  ;;  %v6973_v0 = vld [vmem:[#allocation67_spill] sm:$0xff] }
 0x442   :  { %v3089_v6 = vsub.f32 %v6199_v29, %v6279_v42  ;;  %v3090_v29 = vsub.f32 %v6206_v2, %v6279_v42  ;;  %v3091_v2 = vsub.f32 %v6210_v58, %v6279_v42  ;;  %v3092_v58 = vsub.f32 %v6213_v34, %v6279_v42 }
 0x443   :  { %v3017_v41 = vmul.f32 %v3009_v27, %v3009_v27  ;;  %v3096_v50 = vmul.f32 %v3088_v61, %v3088_v61  ;;  %v3093_v34 = vsub.f32 %v6976_v40, %v6279_v42 }
 0x444   :  { %v3097_v61 = vmul.f32 %v3089_v6, %v3089_v6  ;;  %v3098_v6 = vmul.f32 %v3090_v29, %v3090_v29  ;;  %v3099_v29 = vmul.f32 %v3091_v2, %v3091_v2  ;;  %v3100_v2 = vmul.f32 %v3092_v58, %v3092_v58 }
 0x445   :  { %v3101_v58 = vmul.f32 %v3093_v34, %v3093_v34 }
 0x448   :  { %2884 = vmatmul.f32.gmra.mxu0 %v2858_v63  ;;  %2963 = vmatmul.f32.gmra.mxu1 %v2937_v37  ;;  %v2852_v63 = vsub.f32 %v6963_v35, %v6279_v42  ;;  %v6964_v37 = vld [vmem:[#allocation50_spill] sm:$0xff] }
 0x449   :  { %3042 = vmatmul.f32.gmra.mxu2 %v3016_v21  ;;  %3121 = vmatmul.f32.gmra.mxu3 %v3095_v54  ;;  %v2931_v21 = vsub.f32 %v6964_v37, %v6279_v42  ;;  %v6965_v54 = vld [vmem:[#allocation62_spill] sm:$0xff] }
 0x44a   :  { %v3010_v62 = vsub.f32 %v6965_v54, %v6279_v42  ;;  %v2860_v17 = vmul.f32 %v2852_v63, %v2852_v63  ;;  %v3011_v54 = vsub.f32 %v6968_v5, %v6279_v42  ;;  %v3012_v5 = vsub.f32 %v6166_v30, %v6279_v42 }
 0x44b   :  { %v2939_v53 = vmul.f32 %v2931_v21, %v2931_v21  ;;  %v3013_v30 = vsub.f32 %v6973_v0, %v6279_v42  ;;  %v3014_v0 = vsub.f32 %v6176_v25, %v6279_v42 }
 0x44c   :  { %v3018_v27 = vmul.f32 %v3010_v62, %v3010_v62  ;;  %v3019_v62 = vmul.f32 %v3011_v54, %v3011_v54  ;;  %v3020_v54 = vmul.f32 %v3012_v5, %v3012_v5 }
 0x44d   :  { %v3021_v5 = vmul.f32 %v3013_v30, %v3013_v30  ;;  %v3022_v30 = vmul.f32 %v3014_v0, %v3014_v0 }
 0x450   :  { %2887 = vmatmul.f32.gmra.mxu0 %v2859_v26  ;;  %2966 = vmatmul.f32.gmra.mxu1 %v2938_v20  ;;  %v6966_v26 = vld [vmem:[#allocation41_spill] sm:$0xff] }
 0x451   :  { %3045 = vmatmul.f32.gmra.mxu2 %v3017_v41  ;;  %3124 = vmatmul.f32.gmra.mxu3 %v3096_v50  ;;  %v2853_v20 = vsub.f32 %v6966_v26, %v6279_v42  ;;  %v6967_v41 = vld [vmem:[#allocation51_spill] sm:$0xff] }
 0x452   :  { %v2932_v50 = vsub.f32 %v6967_v41, %v6279_v42 }
 0x453   :  { %v2861_v63 = vmul.f32 %v2853_v20, %v2853_v20 }
 0x454   :  { %v2940_v21 = vmul.f32 %v2932_v50, %v2932_v50 }
 0x458   :  { %2890 = vmatmul.f32.gmra.mxu0 %v2860_v17  ;;  %2969 = vmatmul.f32.gmra.mxu1 %v2939_v53  ;;  %v6969_v17 = vld [vmem:[#allocation42_spill] sm:$0xff] }
 0x459   :  { %3048 = vmatmul.f32.gmra.mxu2 %v3018_v27  ;;  %3127 = vmatmul.f32.gmra.mxu3 %v3097_v61  ;;  %v2854_v53 = vsub.f32 %v6969_v17, %v6279_v42  ;;  %v6970_v27 = vld [vmem:[#allocation52_spill] sm:$0xff] }
 0x45a   :  { %v2933_v61 = vsub.f32 %v6970_v27, %v6279_v42 }
 0x45b   :  { %v2862_v20 = vmul.f32 %v2854_v53, %v2854_v53 }
 0x45c   :  { %v2941_v50 = vmul.f32 %v2933_v61, %v2933_v61 }
 0x460   :  { %2893 = vmatmul.f32.gmra.mxu0 %v2861_v63  ;;  %2972 = vmatmul.f32.gmra.mxu1 %v2940_v21  ;;  %v6971_v63 = vld [vmem:[#allocation43_spill] sm:$0xff] }
 0x461   :  { %3051 = vmatmul.f32.gmra.mxu2 %v3019_v62  ;;  %3130 = vmatmul.f32.gmra.mxu3 %v3098_v6  ;;  %v2855_v21 = vsub.f32 %v6971_v63, %v6279_v42  ;;  %v6972_v62 = vld [vmem:[#allocation53_spill] sm:$0xff] }
 0x462   :  { %v2934_v6 = vsub.f32 %v6972_v62, %v6279_v42 }
 0x463   :  { %v2863_v53 = vmul.f32 %v2855_v21, %v2855_v21 }
 0x464   :  { %v2942_v61 = vmul.f32 %v2934_v6, %v2934_v6 }
 0x468   :  { %2896 = vmatmul.f32.gmra.mxu0 %v2862_v20  ;;  %2975 = vmatmul.f32.gmra.mxu1 %v2941_v50  ;;  %v6974_v20 = vld [vmem:[#allocation45_spill] sm:$0xff] }
 0x469   :  { %3054 = vmatmul.f32.gmra.mxu2 %v3020_v54  ;;  %3133 = vmatmul.f32.gmra.mxu3 %v3099_v29  ;;  %v2856_v50 = vsub.f32 %v6974_v20, %v6279_v42  ;;  %v6975_v54 = vld [vmem:[#allocation54_spill] sm:$0xff] }
 0x46a   :  { %v2935_v29 = vsub.f32 %v6975_v54, %v6279_v42 }
 0x46b   :  { %v2864_v21 = vmul.f32 %v2856_v50, %v2856_v50 }
 0x46c   :  { %v2943_v6 = vmul.f32 %v2935_v29, %v2935_v29 }
 0x470   :  { %2899 = vmatmul.f32.gmra.mxu0 %v2863_v53  ;;  %2978 = vmatmul.f32.gmra.mxu1 %v2942_v61 }
 0x471   :  { %3057 = vmatmul.f32.gmra.mxu2 %v3021_v5  ;;  %3136 = vmatmul.f32.gmra.mxu3 %v3100_v2 }
 0x478   :  { %2902 = vmatmul.f32.gmra.mxu0 %v2864_v21  ;;  %2981 = vmatmul.f32.gmra.mxu1 %v2943_v6 }
 0x479   :  { %3060 = vmatmul.f32.gmra.mxu2 %v3022_v30  ;;  %3139 = vmatmul.f32.gmra.mxu3 %v3101_v58 }
 0x47d   :  { %v2566_v53 = vpop.f32.mrf.mxu0  ;;  %v2645_v61 = vpop.f32.mrf.mxu1 }
 0x484   :  { %v2724_v5 = vpop.f32.mrf.mxu2  ;;  %v2803_v2 = vpop.f32.mrf.mxu3 }
 0x485   :  { %v2569_v33 = vpop.f32.mrf.mxu0  ;;  %v2648_v54 = vpop.f32.mrf.mxu1 }
 0x486   :  { %v2590_v62 = vadd.f32 %v2569_v33, %v2566_v53  ;;  %v2669_v27 = vadd.f32 %v2648_v54, %v2645_v61 }
 0x48c   :  { %v2727_v25 = vpop.f32.mrf.mxu2  ;;  %v2806_v41 = vpop.f32.mrf.mxu3 }
 0x48d   :  { %v2748_v37 = vadd.f32 %v2727_v25, %v2724_v5  ;;  %v2827_v40 = vadd.f32 %v2806_v41, %v2803_v2  ;;  %v2572_v50 = vpop.f32.mrf.mxu0  ;;  %v2651_v29 = vpop.f32.mrf.mxu1 }
 0x48e   :  { %v2591_v0 = vadd.f32 %v2590_v62, %v2572_v50  ;;  %v2670_v34 = vadd.f32 %v2669_v27, %v2651_v29 }
 0x494   :  { %v2730_v21 = vpop.f32.mrf.mxu2  ;;  %v2809_v6 = vpop.f32.mrf.mxu3 }
 0x495   :  { %v2749_v30 = vadd.f32 %v2748_v37, %v2730_v21  ;;  %v2828_v58 = vadd.f32 %v2827_v40, %v2809_v6  ;;  %v2575_v12 = vpop.f32.mrf.mxu0  ;;  %v2654_v36 = vpop.f32.mrf.mxu1 }
 0x496   :  { %v2592_v16 = vadd.f32 %v2591_v0, %v2575_v12  ;;  %v2671_v20 = vadd.f32 %v2670_v34, %v2654_v36 }
 0x49c   :  { %v2733_v63 = vpop.f32.mrf.mxu2  ;;  %v2812_v17 = vpop.f32.mrf.mxu3 }
 0x49d   :  { %v2750_v33 = vadd.f32 %v2749_v30, %v2733_v63  ;;  %v2829_v54 = vadd.f32 %v2828_v58, %v2812_v17  ;;  %v2578_v53 = vpop.f32.mrf.mxu0  ;;  %v2657_v61 = vpop.f32.mrf.mxu1 }
 0x49e   :  { %v2593_v25 = vadd.f32 %v2592_v16, %v2578_v53  ;;  %v2672_v41 = vadd.f32 %v2671_v20, %v2657_v61 }
 0x4a4   :  { %v2736_v5 = vpop.f32.mrf.mxu2  ;;  %v2815_v2 = vpop.f32.mrf.mxu3 }
 0x4a5   :  { %v2751_v62 = vadd.f32 %v2750_v33, %v2736_v5  ;;  %v2830_v27 = vadd.f32 %v2829_v54, %v2815_v2  ;;  %v2581_v50 = vpop.f32.mrf.mxu0  ;;  %v2660_v29 = vpop.f32.mrf.mxu1 }
 0x4a6   :  { %v2594_v37 = vadd.f32 %v2593_v25, %v2581_v50  ;;  %v2673_v40 = vadd.f32 %v2672_v41, %v2660_v29 }
 0x4ac   :  { %v2739_v21 = vpop.f32.mrf.mxu2  ;;  %v2818_v6 = vpop.f32.mrf.mxu3 }
 0x4ad   :  { %v2752_v12 = vadd.f32 %v2751_v62, %v2739_v21  ;;  %v2831_v36 = vadd.f32 %v2830_v27, %v2818_v6  ;;  %v2584_v0 = vpop.f32.mrf.mxu0  ;;  %v2663_v34 = vpop.f32.mrf.mxu1 }
 0x4ae   :  { %v2595_v63 = vadd.f32 %v2594_v37, %v2584_v0  ;;  %v2674_v17 = vadd.f32 %v2673_v40, %v2663_v34 }
 0x4b4   :  { %v2742_v30 = vpop.f32.mrf.mxu2  ;;  %v2821_v58 = vpop.f32.mrf.mxu3 }
 0x4b5   :  { %v2587_v16 = vpop.f32.mrf.mxu0  ;;  %v2666_v20 = vpop.f32.mrf.mxu1  ;;  %v2753_v25 = vadd.f32 %v2752_v12, %v2742_v30  ;;  %v2832_v41 = vadd.f32 %v2831_v36, %v2821_v58 }
 0x4b6   :  { %v2596_v53 = vadd.f32 %v2595_v63, %v2587_v16  ;;  %v2675_v61 = vadd.f32 %v2674_v17, %v2666_v20 }
 0x4b8   :  { %v2597_v33 = vrot.slane %v2596_v53, 4  ;;  %v2676_v54 = vrot.slane %v2675_v61, 4 }
 0x4ba   :  { %v2598_v5 = vadd.f32 %v2597_v33, %v2596_v53  ;;  %v2677_v2 = vadd.f32 %v2676_v54, %v2675_v61 }
 0x4bc   :  { %v2599_v50 = vrot.slane %v2598_v5, 2  ;;  %v2678_v29 = vrot.slane %v2677_v2, 2  ;;  %v2745_v62 = vpop.f32.mrf.mxu2  ;;  %v2824_v27 = vpop.f32.mrf.mxu3 }
 0x4bd   :  { %v2754_v21 = vadd.f32 %v2753_v25, %v2745_v62  ;;  %v2833_v6 = vadd.f32 %v2832_v41, %v2824_v27  ;;  %v2882_v37 = vpop.f32.mrf.mxu0  ;;  %v2961_v40 = vpop.f32.mrf.mxu1 }
 0x4be   :  { %v2600_v0 = vadd.f32 %v2599_v50, %v2598_v5  ;;  %v2679_v34 = vadd.f32 %v2678_v29, %v2677_v2 }
 0x4bf   :  { %v2755_v26 = vrot.slane %v2754_v21, 4  ;;  %v2834_v35 = vrot.slane %v2833_v6, 4 }
 0x4c0   :  { %v2601_v63 = vrot.slane %v2600_v0, 1  ;;  %v2680_v17 = vrot.slane %v2679_v34, 1 }
 0x4c1   :  { %v2756_v16 = vadd.f32 %v2755_v26, %v2754_v21  ;;  %v2835_v20 = vadd.f32 %v2834_v35, %v2833_v6 }
 0x4c2   :  { %v2602_v53 = vadd.f32 %v2601_v63, %v2600_v0  ;;  %v2681_v61 = vadd.f32 %v2680_v17, %v2679_v34 }
 0x4c3   :  { %v2757_v12 = vrot.slane %v2756_v16, 2  ;;  %v2836_v36 = vrot.slane %v2835_v20, 2 }
 0x4c4   :  { %v2682_v30 = vadd.f32 %v2681_v61, %v2602_v53  ;;  %v3040_v58 = vpop.f32.mrf.mxu2  ;;  %v3119_v33 = vpop.f32.mrf.mxu3 }
 0x4c5   :  { %v2758_v54 = vadd.f32 %v2757_v12, %v2756_v16  ;;  %v2837_v25 = vadd.f32 %v2836_v36, %v2835_v20  ;;  %v2885_v41 = vpop.f32.mrf.mxu0  ;;  %v2964_v62 = vpop.f32.mrf.mxu1 }
 0x4c7   :  { %v2759_v27 = vrot.slane %v2758_v54, 1  ;;  %v2838_v5 = vrot.slane %v2837_v25, 1 }
 0x4c9   :  { %v2760_v2 = vadd.f32 %v2759_v27, %v2758_v54  ;;  %v2839_v29 = vadd.f32 %v2838_v5, %v2837_v25  ;;  %v2985_v25 = vadd.f32 %v2964_v62, %v2961_v40 }
 0x4cb   :  { %v2761_v50 = vadd.f32 %v2760_v2, %v2682_v30  ;;  %v2906_v30 = vadd.f32 %v2885_v41, %v2882_v37 }
 0x4cc   :  { %v3043_v19 = vpop.f32.mrf.mxu2  ;;  %v3122_v56 = vpop.f32.mrf.mxu3 }
 0x4cd   :  { %v6409_v26 = vadd.f32 %v2839_v29, %v2761_v50  ;;  %v2888_v35 = vpop.f32.mrf.mxu0  ;;  %v2967_v21 = vpop.f32.mrf.mxu1  ;;  %v3064_v45 = vadd.f32 %v3043_v19, %v3040_v58  ;;  %v3143_v10 = vadd.f32 %v3122_v56, %v3119_v33 }
 0x4ce   :  { %v2907_v27 = vadd.f32 %v2906_v30, %v2888_v35  ;;  %v2986_v5 = vadd.f32 %v2985_v25, %v2967_v21 }
 0x4d4   :  { %v3046_v6 = vpop.f32.mrf.mxu2  ;;  %v3125_v0 = vpop.f32.mrf.mxu3 }
 0x4d5   :  { %v2891_v34 = vpop.f32.mrf.mxu0  ;;  %v2970_v63 = vpop.f32.mrf.mxu1  ;;  %v3065_v59 = vadd.f32 %v3064_v45, %v3046_v6  ;;  %v3144_v43 = vadd.f32 %v3143_v10, %v3125_v0 }
 0x4d6   :  { %v2908_v38 = vadd.f32 %v2907_v27, %v2891_v34  ;;  %v2987_v22 = vadd.f32 %v2986_v5, %v2970_v63 }
 0x4dc   :  { %v3049_v17 = vpop.f32.mrf.mxu2  ;;  %v3128_v16 = vpop.f32.mrf.mxu3 }
 0x4dd   :  { %v2894_v20 = vpop.f32.mrf.mxu0  ;;  %v2973_v53 = vpop.f32.mrf.mxu1  ;;  %v3066_v41 = vadd.f32 %v3065_v59, %v3049_v17  ;;  %v3145_v62 = vadd.f32 %v3144_v43, %v3128_v16 }
 0x4de   :  { %v2909_v57 = vadd.f32 %v2908_v38, %v2894_v20  ;;  %v2988_v1 = vadd.f32 %v2987_v22, %v2973_v53 }
 0x4e4   :  { %v3052_v61 = vpop.f32.mrf.mxu2  ;;  %v3131_v12 = vpop.f32.mrf.mxu3 }
 0x4e5   :  { %v2897_v36 = vpop.f32.mrf.mxu0  ;;  %v2976_v54 = vpop.f32.mrf.mxu1  ;;  %v3067_v34 = vadd.f32 %v3066_v41, %v3052_v61  ;;  %v3146_v63 = vadd.f32 %v3145_v62, %v3131_v12 }
 0x4e6   :  { %v2910_v3 = vadd.f32 %v2909_v57, %v2897_v36  ;;  %v2989_v55 = vadd.f32 %v2988_v1, %v2976_v54 }
 0x4ec   :  { %v3055_v2 = vpop.f32.mrf.mxu2  ;;  %v3134_v50 = vpop.f32.mrf.mxu3 }
 0x4ed   :  { %v2900_v29 = vpop.f32.mrf.mxu0  ;;  %v2979_v51 = vpop.f32.mrf.mxu1  ;;  %v3068_v19 = vadd.f32 %v3067_v34, %v3055_v2  ;;  %v3147_v56 = vadd.f32 %v3146_v63, %v3134_v50 }
 0x4ee   :  { %v2911_v52 = vadd.f32 %v2910_v3, %v2900_v29  ;;  %v2990_v49 = vadd.f32 %v2989_v55, %v2979_v51 }
 0x4f4   :  { %v3058_v37 = vpop.f32.mrf.mxu2  ;;  %v3137_v40 = vpop.f32.mrf.mxu3 }
 0x4f5   :  { %v2903_v35 = vpop.f32.mrf.mxu0  ;;  %v2982_v21 = vpop.f32.mrf.mxu1  ;;  %v3069_v45 = vadd.f32 %v3068_v19, %v3058_v37  ;;  %v3148_v10 = vadd.f32 %v3147_v56, %v3137_v40  ;;  %v3157_v40 = vmul.f32 0.0, %v6279_v42 }
 0x4f6   :  { %v2912_v30 = vadd.f32 %v2911_v52, %v2903_v35  ;;  %v2991_v25 = vadd.f32 %v2990_v49, %v2982_v21 }
 0x4f7   :  { %v3158_v21 = vmul.f32 %v3157_v40, %v6279_v42 }
 0x4f8   :  { %v2913_v38 = vrot.slane %v2912_v30, 4  ;;  %v2992_v22 = vrot.slane %v2991_v25, 4 }
 0x4fa   :  { %v2914_v57 = vadd.f32 %v2913_v38, %v2912_v30  ;;  %v2993_v1 = vadd.f32 %v2992_v22, %v2991_v25 }
 0x4fc   :  { %v2915_v3 = vrot.slane %v2914_v57, 2  ;;  %v2994_v55 = vrot.slane %v2993_v1, 2  ;;  %v3061_v51 = vpop.f32.mrf.mxu2  ;;  %v3140_v58 = vpop.f32.mrf.mxu3 }
 0x4fd   :  { %v3070_v59 = vadd.f32 %v3069_v45, %v3061_v51  ;;  %v3149_v43 = vadd.f32 %v3148_v10, %v3140_v58 }
 0x4fe   :  { %v2916_v33 = vadd.f32 %v2915_v3, %v2914_v57  ;;  %v2995_v6 = vadd.f32 %v2994_v55, %v2993_v1  ;;  %v3162_v57 = vld [vmem:[%s6716_s3] sm:$0x1] }
 0x4ff   :  { %v3071_v52 = vrot.slane %v3070_v59, 4  ;;  %v3150_v49 = vrot.slane %v3149_v43, 4  ;;  %v3175_v3 = vld [vmem:[%s6717_s4] sm:$0x1] }
 0x500   :  { %v2917_v0 = vrot.slane %v2916_v33, 1  ;;  %v2996_v53 = vrot.slane %v2995_v6, 1 }
 0x501   :  { %v3072_v17 = vadd.f32 %v3071_v52, %v3070_v59  ;;  %v3151_v16 = vadd.f32 %v3150_v49, %v3149_v43 }
 0x502   :  { %v2918_v20 = vadd.f32 %v2917_v0, %v2916_v33  ;;  %v2997_v5 = vadd.f32 %v2996_v53, %v2995_v6 }
 0x503   :  { %v3073_v61 = vrot.slane %v3072_v17, 2  ;;  %v3152_v12 = vrot.slane %v3151_v16, 2 }
 0x504   :  { %v2919_v36 = vadd.f32 %v2918_v20, %v6409_v26 }
 0x505   :  { %v3074_v54 = vadd.f32 %v3073_v61, %v3072_v17  ;;  %v3153_v27 = vadd.f32 %v3152_v12, %v3151_v16 }
 0x506   :  { %v2998_v29 = vadd.f32 %v2997_v5, %v2919_v36 }
 0x507   :  { %v3075_v2 = vrot.slane %v3074_v54, 1  ;;  %v3154_v50 = vrot.slane %v3153_v27, 1 }
 0x509   :  { %v3076_v37 = vadd.f32 %v3075_v2, %v3074_v54  ;;  %v3155_v62 = vadd.f32 %v3154_v50, %v3153_v27 }
 0x50b   :  { %v3077_v41 = vadd.f32 %v3076_v37, %v2998_v29 }
 0x50d   :  { %v3156_v35 = vadd.f32 %v3155_v62, %v3077_v41 }
 0x50f   :  { %v3159_v30 = vsub.f32 %v3156_v35, %v3158_v21 }
 0x511   :  { %v3160_v25 = vmul.f32 0.00048828125, %v3159_v30 }
 0x513   :  { %v3161_v34 = vmax.f32 %v3160_v25, 0.0 }
 0x515   :  { %v3163_v63 = vadd.f32 1e-05, %v3161_v34 }
 0x517   :  { %4715 = vrsqrt.f32 %v3163_v63  ;;  %vm3170_vm1 = vweird.f32 %v3163_v63 }
 0x51d   :  { %v4716_v26 = vpop.eup %4715 }
 0x51e   :  { %v3165_v38 = vmul.f32 %v4716_v26, %v3163_v63  ;;  %vm3171_vm0 = vweird.f32 %v4716_v26 }
 0x51f   :  { %vm3172_vm2 = vmor %vm3170_vm1, %vm3171_vm0 }
 0x520   :  { %v3166_v22 = vmul.f32 %v4716_v26, %v3165_v38 }
 0x522   :  { %v3167_v19 = vmul.f32 0.5, %v3166_v22 }
 0x524   :  { %v3168_v56 = vsub.f32 1.5, %v3167_v19 }
 0x526   :  { %v3169_v1 = vmul.f32 %v4716_v26, %v3168_v56 }
 0x528   :  { %v3173_v45 = vsel %vm3172_vm2, %v4716_v26, %v3169_v1 }
 0x529   :  { %v3174_v10 = vmul.f32 %v3173_v45, %v3162_v57 }
 0x52b   :  { %v3176_v55 = vmul.f32 %v3174_v10, %v6279_v42  ;;  %v6421_v51 = vperm.slane %v3174_v10, 0 }
 0x52d   :  { %v3177_v58 = vsub.f32 %v3175_v3, %v3176_v55  ;;  %v3181_v59 = vmul.f32 %v6421_v51, %v6922_v32  ;;  %v3182_v43 = vmul.f32 %v6421_v51, %v6926_v7  ;;  %v3183_v33 = vmul.f32 %v6421_v51, %v6930_v15 }
 0x52e   :  { %v3184_v6 = vmul.f32 %v6421_v51, %v6934_v9  ;;  %v3185_v52 = vmul.f32 %v6421_v51, %v6938_v28  ;;  %v3186_v42 = vmul.f32 %v6421_v51, %v6942_v39  ;;  %v3187_v49 = vmul.f32 %v6421_v51, %v6946_v60 }
 0x52f   :  { %v3188_v32 = vmul.f32 %v6421_v51, %v6950_v47  ;;  %v6439_v0 = vperm.slane %v3177_v58, 0  ;;  %v3232_v7 = vmul.f32 %v6421_v51, %v6923_v48  ;;  %v3233_v15 = vmul.f32 %v6421_v51, %v6927_v13 }
 0x530   :  { %v3234_v9 = vmul.f32 %v6421_v51, %v6931_v46  ;;  %v3235_v28 = vmul.f32 %v6421_v51, %v6935_v18  ;;  %v3236_v39 = vmul.f32 %v6421_v51, %v6939_v44  ;;  %v3237_v60 = vmul.f32 %v6421_v51, %v6943_v8 }
 0x531   :  { %v3192_v47 = vadd.f32 %v6439_v0, %v3181_v59  ;;  %v3193_v17 = vadd.f32 %v6439_v0, %v3182_v43  ;;  %v3194_v48 = vadd.f32 %v6439_v0, %v3183_v33  ;;  %v3195_v13 = vadd.f32 %v6439_v0, %v3184_v6  ;;  %v6977_v33 = vld [vmem:[#allocation24_spill] sm:$0xff] }
 0x532   :  { %v3196_v16 = vadd.f32 %v6439_v0, %v3185_v52  ;;  %v3197_v46 = vadd.f32 %v6439_v0, %v3186_v42  ;;  %v3198_v18 = vadd.f32 %v6439_v0, %v3187_v49  ;;  %v3199_v20 = vadd.f32 %v6439_v0, %v3188_v32  ;;  %v6980_v42 = vld [vmem:[#allocation27_spill] sm:$0xff] }
 0x533   :  { %v3200_v44 = vmax.f32 %v3192_v47, 0.0  ;;  %v3201_v53 = vmax.f32 %v3193_v17, 0.0  ;;  %v3202_v61 = vmax.f32 %v3194_v48, 0.0  ;;  %v3203_v8 = vmax.f32 %v3195_v13, 0.0 }
 0x534   :  { %v3204_v12 = vmax.f32 %v3196_v16, 0.0  ;;  %v3205_v36 = vmax.f32 %v3197_v46, 0.0  ;;  %v3206_v54 = vmax.f32 %v3198_v18, 0.0  ;;  %v3207_v27 = vmax.f32 %v3199_v20, 0.0 }
 0x535   :  { %v4527_v5 = vpack.c.bf16 %v3201_v53, %v3200_v44  ;;  %v4532_v2 = vpack.c.bf16 %v3203_v8, %v3202_v61  ;;  %v3238_v50 = vmul.f32 %v6421_v51, %v6947_v24  ;;  %v3239_v29 = vmul.f32 %v6421_v51, %v6951_v14  ;;  %v6981_v53 = vld [vmem:[#allocation28_spill] sm:$0xff] }
 0x536   :  { %v4537_v37 = vpack.c.bf16 %v3205_v36, %v3204_v12  ;;  %v4542_v40 = vpack.c.bf16 %v3207_v27, %v3206_v54  ;;  %v3240_v41 = vadd.f32 %v3232_v7, %v6439_v0  ;;  %v3241_v62 = vadd.f32 %v3233_v15, %v6439_v0  ;;  %v6982_v36 = vld [vmem:[#allocation29_spill] sm:$0xff]  ;;  %v6983_v27 = vld [vmem:[#allocation30_spill] sm:$0xff] }
 0x537   :  { %4528 = vst [vmem:[%s6718_s5] sm:$0xff] %v4527_v5   ;;  %v3242_v35 = vadd.f32 %v3234_v9, %v6439_v0  ;;  %v3243_v21 = vadd.f32 %v3235_v28, %v6439_v0  ;;  %v3244_v30 = vadd.f32 %v3236_v39, %v6439_v0  ;;  %v3245_v24 = vadd.f32 %v3237_v60, %v6439_v0 }
 0x538   :  { %4684 = vst [vmem:[%s6718_s5 + $0x8] sm:$0xff] %v4532_v2   ;;  %v3246_v14 = vadd.f32 %v3238_v50, %v6439_v0  ;;  %v3247_v25 = vadd.f32 %v3239_v29, %v6439_v0  ;;  %v3248_v34 = vmax.f32 %v3240_v41, 0.0  ;;  %v3249_v63 = vmax.f32 %v3241_v62, 0.0  ;;  %v6984_v50 = vld [vmem:[#allocation31_spill] sm:$0xff]  ;;  %v6986_v41 = vld [vmem:[#allocation33_spill] sm:$0xff] }
 0x539   :  { %4685 = vst [vmem:[%s6718_s5 + $0x10] sm:$0xff] %v4537_v37   ;;  %v3250_v26 = vmax.f32 %v3242_v35, 0.0  ;;  %v3251_v38 = vmax.f32 %v3243_v21, 0.0  ;;  %v3252_v22 = vmax.f32 %v3244_v30, 0.0  ;;  %v3253_v19 = vmax.f32 %v3245_v24, 0.0  ;;  %v6985_v37 = vld [vmem:[#allocation32_spill] sm:$0xff] }
 0x53a   :  { %4686 = vst [vmem:[%s6718_s5 + $0x18] sm:$0xff] %v4542_v40   ;;  %v3254_v56 = vmax.f32 %v3246_v14, 0.0  ;;  %v3255_v57 = vmax.f32 %v3247_v25, 0.0  ;;  %v4547_v1 = vpack.c.bf16 %v3249_v63, %v3248_v34  ;;  %v3280_v45 = vmul.f32 %v6421_v51, %v6924_v4  ;;  %v6978_v4 = vld [vmem:[#allocation25_spill] sm:$0xff]  ;;  %v6987_v35 = vld [vmem:[#allocation34_spill] sm:$0xff]  ;;  %v6988_v30 = vld [vmem:[#allocation35_spill] sm:$0xff] }
 0x53b   :  { %v4552_v10 = vpack.c.bf16 %v3251_v38, %v3250_v26  ;;  %v4557_v3 = vpack.c.bf16 %v3253_v19, %v3252_v22  ;;  %v3281_v55 = vmul.f32 %v6421_v51, %v6928_v11  ;;  %v3282_v58 = vmul.f32 %v6421_v51, %v6932_v23  ;;  %v6979_v11 = vld [vmem:[#allocation26_spill] sm:$0xff] }
 0x53c   :  { %4687 = vst [vmem:[%s6718_s5 + $0x20] sm:$0xff] %v4547_v1   ;;  %v4562_v59 = vpack.c.bf16 %v3255_v57, %v3254_v56  ;;  %v3283_v43 = vmul.f32 %v6421_v51, %v6936_v31  ;;  %v3284_v6 = vmul.f32 %v6421_v51, %v6977_v33  ;;  %v3285_v52 = vmul.f32 %v6421_v51, %v6978_v4 }
 0x53d   :  { %4688 = vst [vmem:[%s6718_s5 + $0x28] sm:$0xff] %v4552_v10   ;;  %v3286_v23 = vmul.f32 %v6421_v51, %v6979_v11  ;;  %v3287_v49 = vmul.f32 %v6421_v51, %v6980_v42  ;;  %v3288_v32 = vadd.f32 %v3280_v45, %v6439_v0  ;;  %v3289_v31 = vadd.f32 %v3281_v55, %v6439_v0 }
 0x53e   :  { %4689 = vst [vmem:[%s6718_s5 + $0x30] sm:$0xff] %v4557_v3   ;;  %v3290_v7 = vadd.f32 %v3282_v58, %v6439_v0  ;;  %v3291_v15 = vadd.f32 %v3283_v43, %v6439_v0  ;;  %v3292_v9 = vadd.f32 %v3284_v6, %v6439_v0  ;;  %v3293_v28 = vadd.f32 %v3285_v52, %v6439_v0  ;;  %v6989_v43 = vld [vmem:[#allocation37_spill] sm:$0xff]  ;;  %v6990_v52 = vld [vmem:[#allocation38_spill] sm:$0xff] }
 0x53f   :  { %4690 = vst [vmem:[%s6718_s5 + $0x38] sm:$0xff] %v4562_v59   ;;  %v3294_v39 = vadd.f32 %v3286_v23, %v6439_v0  ;;  %v3295_v60 = vadd.f32 %v3287_v49, %v6439_v0  ;;  %v3296_v47 = vmax.f32 %v3288_v32, 0.0  ;;  %v3297_v17 = vmax.f32 %v3289_v31, 0.0  ;;  %v6991_v23 = vld [vmem:[#allocation39_spill] sm:$0xff]  ;;  %v6992_v32 = vld [vmem:[#allocation40_spill] sm:$0xff] }
 0x540   :  { %v3298_v48 = vmax.f32 %v3290_v7, 0.0  ;;  %v3299_v13 = vmax.f32 %v3291_v15, 0.0  ;;  %v3300_v16 = vmax.f32 %v3292_v9, 0.0  ;;  %v3301_v46 = vmax.f32 %v3293_v28, 0.0  ;;  %v6993_v7 = vld [vmem:[#allocation41_spill] sm:$0xff]  ;;  %v6994_v9 = vld [vmem:[#allocation42_spill] sm:$0xff] }
 0x541   :  { %v3302_v18 = vmax.f32 %v3294_v39, 0.0  ;;  %v3303_v20 = vmax.f32 %v3295_v60, 0.0  ;;  %v4567_v44 = vpack.c.bf16 %v3297_v17, %v3296_v47  ;;  %v3328_v61 = vmul.f32 %v6421_v51, %v6981_v53  ;;  %v6995_v39 = vld [vmem:[#allocation43_spill] sm:$0xff]  ;;  %v6996_v47 = vld [vmem:[#allocation45_spill] sm:$0xff] }
 0x542   :  { %v4572_v8 = vpack.c.bf16 %v3299_v13, %v3298_v48  ;;  %v4577_v12 = vpack.c.bf16 %v3301_v46, %v3300_v16  ;;  %v3329_v54 = vmul.f32 %v6421_v51, %v6982_v36  ;;  %v3330_v5 = vmul.f32 %v6421_v51, %v6983_v27 }
 0x543   :  { %4691 = vst [vmem:[%s6718_s5 + $0x40] sm:$0xff] %v4567_v44   ;;  %v4582_v2 = vpack.c.bf16 %v3303_v20, %v3302_v18  ;;  %v3331_v29 = vmul.f32 %v6421_v51, %v6984_v50  ;;  %v3332_v40 = vmul.f32 %v6421_v51, %v6985_v37  ;;  %v3333_v62 = vmul.f32 %v6421_v51, %v6986_v41 }
 0x544   :  { %4692 = vst [vmem:[%s6718_s5 + $0x48] sm:$0xff] %v4572_v8   ;;  %v3334_v21 = vmul.f32 %v6421_v51, %v6987_v35  ;;  %v3335_v24 = vmul.f32 %v6421_v51, %v6988_v30  ;;  %v3336_v14 = vadd.f32 %v3328_v61, %v6439_v0  ;;  %v3337_v25 = vadd.f32 %v3329_v54, %v6439_v0 }
 0x545   :  { %4693 = vst [vmem:[%s6718_s5 + $0x50] sm:$0xff] %v4577_v12   ;;  %v3338_v34 = vadd.f32 %v3330_v5, %v6439_v0  ;;  %v3339_v63 = vadd.f32 %v3331_v29, %v6439_v0  ;;  %v3340_v26 = vadd.f32 %v3332_v40, %v6439_v0  ;;  %v3341_v38 = vadd.f32 %v3333_v62, %v6439_v0  ;;  %v6997_v29 = vld [vmem:[#allocation47_spill] sm:$0xff]  ;;  %v6998_v62 = vld [vmem:[#allocation48_spill] sm:$0xff] }
 0x546   :  { %4694 = vst [vmem:[%s6718_s5 + $0x58] sm:$0xff] %v4582_v2   ;;  %v3342_v22 = vadd.f32 %v3334_v21, %v6439_v0  ;;  %v3343_v19 = vadd.f32 %v3335_v24, %v6439_v0  ;;  %v3344_v56 = vmax.f32 %v3336_v14, 0.0  ;;  %v3345_v57 = vmax.f32 %v3337_v25, 0.0  ;;  %v6999_v21 = vld [vmem:[#allocation49_spill] sm:$0xff]  ;;  %v7000_v14 = vld [vmem:[#allocation50_spill] sm:$0xff] }
 0x547   :  { %v3346_v1 = vmax.f32 %v3338_v34, 0.0  ;;  %v3347_v45 = vmax.f32 %v3339_v63, 0.0  ;;  %v3348_v10 = vmax.f32 %v3340_v26, 0.0  ;;  %v3349_v3 = vmax.f32 %v3341_v38, 0.0  ;;  %v7001_v34 = vld [vmem:[#allocation51_spill] sm:$0xff]  ;;  %v7002_v26 = vld [vmem:[#allocation52_spill] sm:$0xff] }
 0x548   :  { %v3350_v55 = vmax.f32 %v3342_v22, 0.0  ;;  %v3351_v58 = vmax.f32 %v3343_v19, 0.0  ;;  %v4587_v59 = vpack.c.bf16 %v3345_v57, %v3344_v56  ;;  %v3376_v33 = vmul.f32 %v6421_v51, %v6989_v43  ;;  %v7003_v22 = vld [vmem:[#allocation53_spill] sm:$0xff]  ;;  %v7004_v56 = vld [vmem:[#allocation54_spill] sm:$0xff] }
 0x549   :  { %v4592_v6 = vpack.c.bf16 %v3347_v45, %v3346_v1  ;;  %v4597_v4 = vpack.c.bf16 %v3349_v3, %v3348_v10  ;;  %v3377_v11 = vmul.f32 %v6421_v51, %v6990_v52  ;;  %v3378_v42 = vmul.f32 %v6421_v51, %v6991_v23 }
 0x54a   :  { %4695 = vst [vmem:[%s6718_s5 + $0x60] sm:$0xff] %v4587_v59   ;;  %v4602_v49 = vpack.c.bf16 %v3351_v58, %v3350_v55  ;;  %v3379_v31 = vmul.f32 %v6421_v51, %v6992_v32  ;;  %v3380_v15 = vmul.f32 %v6421_v51, %v6993_v7  ;;  %v3381_v28 = vmul.f32 %v6421_v51, %v6994_v9 }
 0x54b   :  { %4696 = vst [vmem:[%s6718_s5 + $0x68] sm:$0xff] %v4592_v6   ;;  %v3382_v60 = vmul.f32 %v6421_v51, %v6995_v39  ;;  %v3383_v17 = vmul.f32 %v6421_v51, %v6996_v47  ;;  %v3384_v48 = vadd.f32 %v3376_v33, %v6439_v0  ;;  %v3385_v13 = vadd.f32 %v3377_v11, %v6439_v0 }
 0x54c   :  { %4697 = vst [vmem:[%s6718_s5 + $0x70] sm:$0xff] %v4597_v4   ;;  %v3386_v16 = vadd.f32 %v3378_v42, %v6439_v0  ;;  %v3387_v46 = vadd.f32 %v3379_v31, %v6439_v0  ;;  %v3388_v18 = vadd.f32 %v3380_v15, %v6439_v0  ;;  %v3389_v20 = vadd.f32 %v3381_v28, %v6439_v0  ;;  %v7005_v31 = vld [vmem:[#allocation58_spill] sm:$0xff]  ;;  %v7006_v28 = vld [vmem:[#allocation59_spill] sm:$0xff] }
 0x54d   :  { %4698 = vst [vmem:[%s6718_s5 + $0x78] sm:$0xff] %v4602_v49   ;;  %v3390_v44 = vadd.f32 %v3382_v60, %v6439_v0  ;;  %v3391_v53 = vadd.f32 %v3383_v17, %v6439_v0  ;;  %v3392_v61 = vmax.f32 %v3384_v48, 0.0  ;;  %v3393_v8 = vmax.f32 %v3385_v13, 0.0  ;;  %v7007_v60 = vld [vmem:[#allocation60_spill] sm:$0xff]  ;;  %v7008_v48 = vld [vmem:[#allocation62_spill] sm:$0xff] }
 0x54e   :  { %v3394_v12 = vmax.f32 %v3386_v16, 0.0  ;;  %v3395_v36 = vmax.f32 %v3387_v46, 0.0  ;;  %v3396_v54 = vmax.f32 %v3388_v18, 0.0  ;;  %v3397_v27 = vmax.f32 %v3389_v20, 0.0  ;;  %v7009_v16 = vld [vmem:[#allocation64_spill] sm:$0xff]  ;;  %v7010_v18 = vld [vmem:[#allocation66_spill] sm:$0xff] }
 0x54f   :  { %v3398_v5 = vmax.f32 %v3390_v44, 0.0  ;;  %v3399_v2 = vmax.f32 %v3391_v53, 0.0  ;;  %v4607_v50 = vpack.c.bf16 %v3393_v8, %v3392_v61  ;;  %v3424_v37 = vmul.f32 %v6421_v51, %v6997_v29  ;;  %v7011_v44 = vld [vmem:[#allocation67_spill] sm:$0xff]  ;;  %v7012_v61 = vld [vmem:[#allocation68_spill] sm:$0xff] }
 0x550   :  { %v4612_v40 = vpack.c.bf16 %v3395_v36, %v3394_v12  ;;  %v4617_v41 = vpack.c.bf16 %v3397_v27, %v3396_v54  ;;  %v3425_v35 = vmul.f32 %v6421_v51, %v6998_v62  ;;  %v3426_v30 = vmul.f32 %v6421_v51, %v6999_v21 }
 0x551   :  { %4699 = vst [vmem:[%s6718_s5 + $0x80] sm:$0xff] %v4607_v50   ;;  %v4622_v24 = vpack.c.bf16 %v3399_v2, %v3398_v5  ;;  %v3427_v25 = vmul.f32 %v6421_v51, %v7000_v14  ;;  %v3428_v63 = vmul.f32 %v6421_v51, %v7001_v34  ;;  %v3429_v38 = vmul.f32 %v6421_v51, %v7002_v26 }
 0x552   :  { %4700 = vst [vmem:[%s6718_s5 + $0x88] sm:$0xff] %v4612_v40   ;;  %v3430_v19 = vmul.f32 %v6421_v51, %v7003_v22  ;;  %v3431_v57 = vmul.f32 %v6421_v51, %v7004_v56  ;;  %v3432_v1 = vadd.f32 %v3424_v37, %v6439_v0  ;;  %v3433_v45 = vadd.f32 %v3425_v35, %v6439_v0 }
 0x553   :  { %4701 = vst [vmem:[%s6718_s5 + $0x90] sm:$0xff] %v4617_v41   ;;  %v3434_v10 = vadd.f32 %v3426_v30, %v6439_v0  ;;  %v3435_v3 = vadd.f32 %v3427_v25, %v6439_v0  ;;  %v3436_v55 = vadd.f32 %v3428_v63, %v6439_v0  ;;  %v3437_v58 = vadd.f32 %v3429_v38, %v6439_v0  ;;  %v7013_v25 = vld [vmem:[#allocation69_spill] sm:$0xff]  ;;  %v7014_v38 = vld [vmem:[#allocation70_spill] sm:$0xff] }
 0x554   :  { %4702 = vst [vmem:[%s6718_s5 + $0x98] sm:$0xff] %v4622_v24   ;;  %v3438_v59 = vadd.f32 %v3430_v19, %v6439_v0  ;;  %v3439_v43 = vadd.f32 %v3431_v57, %v6439_v0  ;;  %v3440_v33 = vmax.f32 %v3432_v1, 0.0  ;;  %v3441_v6 = vmax.f32 %v3433_v45, 0.0  ;;  %v7015_v19 = vld [vmem:[#allocation71_spill] sm:$0xff]  ;;  %v7016_v1 = vld [vmem:[#allocation72_spill] sm:$0xff] }
 0x555   :  { %v3442_v4 = vmax.f32 %v3434_v10, 0.0  ;;  %v3443_v52 = vmax.f32 %v3435_v3, 0.0  ;;  %v3444_v11 = vmax.f32 %v3436_v55, 0.0  ;;  %v3445_v23 = vmax.f32 %v3437_v58, 0.0  ;;  %v7017_v10 = vld [vmem:[#allocation73_spill] sm:$0xff]  ;;  %v7018_v55 = vld [vmem:[#allocation74_spill] sm:$0xff] }
 0x556   :  { %v3446_v42 = vmax.f32 %v3438_v59, 0.0  ;;  %v3447_v49 = vmax.f32 %v3439_v43, 0.0  ;;  %v4627_v32 = vpack.c.bf16 %v3441_v6, %v3440_v33  ;;  %v3472_v7 = vmul.f32 %v6421_v51, %v7005_v31  ;;  %v7019_v59 = vld [vmem:[#allocation75_spill] sm:$0xff]  ;;  %v7020_v33 = vld [vmem:[#allocation76_spill] sm:$0xff] }
 0x557   :  { %v4632_v15 = vpack.c.bf16 %v3443_v52, %v3442_v4  ;;  %v4637_v9 = vpack.c.bf16 %v3445_v23, %v3444_v11  ;;  %v3473_v39 = vmul.f32 %v6421_v51, %v7006_v28  ;;  %v3474_v47 = vmul.f32 %v6421_v51, %v7007_v60 }
 0x558   :  { %4703 = vst [vmem:[%s6718_s5 + $0xa0] sm:$0xff] %v4627_v32   ;;  %v4642_v17 = vpack.c.bf16 %v3447_v49, %v3446_v42  ;;  %v3475_v13 = vmul.f32 %v6421_v51, %v7008_v48  ;;  %v3476_v46 = vmul.f32 %v6421_v51, %v7009_v16  ;;  %v3477_v20 = vmul.f32 %v6421_v51, %v7010_v18 }
 0x559   :  { %4704 = vst [vmem:[%s6718_s5 + $0xa8] sm:$0xff] %v4632_v15   ;;  %v3478_v53 = vmul.f32 %v6421_v51, %v7011_v44  ;;  %v3479_v8 = vmul.f32 %v6421_v51, %v7012_v61  ;;  %v3480_v12 = vadd.f32 %v3472_v7, %v6439_v0  ;;  %v3481_v36 = vadd.f32 %v3473_v39, %v6439_v0 }
 0x55a   :  { %4705 = vst [vmem:[%s6718_s5 + $0xb0] sm:$0xff] %v4637_v9   ;;  %v3482_v54 = vadd.f32 %v3474_v47, %v6439_v0  ;;  %v3483_v27 = vadd.f32 %v3475_v13, %v6439_v0  ;;  %v3484_v5 = vadd.f32 %v3476_v46, %v6439_v0  ;;  %v3485_v2 = vadd.f32 %v3477_v20, %v6439_v0 }
 0x55b   :  { %4706 = vst [vmem:[%s6718_s5 + $0xb8] sm:$0xff] %v4642_v17   ;;  %v3486_v50 = vadd.f32 %v3478_v53, %v6439_v0  ;;  %v3487_v29 = vadd.f32 %v3479_v8, %v6439_v0  ;;  %v3488_v37 = vmax.f32 %v3480_v12, 0.0  ;;  %v3489_v40 = vmax.f32 %v3481_v36, 0.0 }
 0x55c   :  { %v3490_v41 = vmax.f32 %v3482_v54, 0.0  ;;  %v3491_v62 = vmax.f32 %v3483_v27, 0.0  ;;  %v3492_v35 = vmax.f32 %v3484_v5, 0.0  ;;  %v3493_v21 = vmax.f32 %v3485_v2, 0.0 }
 0x55d   :  { %v3494_v30 = vmax.f32 %v3486_v50, 0.0  ;;  %v3495_v24 = vmax.f32 %v3487_v29, 0.0  ;;  %v4647_v14 = vpack.c.bf16 %v3489_v40, %v3488_v37  ;;  %v3520_v34 = vmul.f32 %v6421_v51, %v7013_v25 }
 0x55e   :  { %v4652_v63 = vpack.c.bf16 %v3491_v62, %v3490_v41  ;;  %v4657_v26 = vpack.c.bf16 %v3493_v21, %v3492_v35  ;;  %v3521_v22 = vmul.f32 %v6421_v51, %v7014_v38  ;;  %v3522_v56 = vmul.f32 %v6421_v51, %v7015_v19 }
 0x55f   :  { %4707 = vst [vmem:[%s6718_s5 + $0xc0] sm:$0xff] %v4647_v14   ;;  %v4662_v57 = vpack.c.bf16 %v3495_v24, %v3494_v30  ;;  %v3523_v45 = vmul.f32 %v6421_v51, %v7016_v1  ;;  %v3524_v3 = vmul.f32 %v6421_v51, %v7017_v10  ;;  %v3525_v58 = vmul.f32 %v6421_v51, %v7018_v55 }
 0x560   :  { %4708 = vst [vmem:[%s6718_s5 + $0xc8] sm:$0xff] %v4652_v63   ;;  %v3526_v43 = vmul.f32 %v6421_v51, %v7019_v59  ;;  %v3527_v6 = vmul.f32 %v6421_v51, %v7020_v33  ;;  %v3528_v4 = vadd.f32 %v3520_v34, %v6439_v0  ;;  %v3529_v52 = vadd.f32 %v3521_v22, %v6439_v0 }
 0x561   :  { %4709 = vst [vmem:[%s6718_s5 + $0xd0] sm:$0xff] %v4657_v26   ;;  %v3530_v11 = vadd.f32 %v3522_v56, %v6439_v0  ;;  %v3531_v23 = vadd.f32 %v3523_v45, %v6439_v0  ;;  %v3532_v42 = vadd.f32 %v3524_v3, %v6439_v0  ;;  %v3533_v49 = vadd.f32 %v3525_v58, %v6439_v0 }
 0x562   :  { %4710 = vst [vmem:[%s6718_s5 + $0xd8] sm:$0xff] %v4662_v57   ;;  %v3534_v51 = vadd.f32 %v3526_v43, %v6439_v0  ;;  %v3535_v32 = vadd.f32 %v3527_v6, %v6439_v0  ;;  %v3536_v31 = vmax.f32 %v3528_v4, 0.0  ;;  %v3537_v7 = vmax.f32 %v3529_v52, 0.0 }
 0x563   :  { %v3538_v15 = vmax.f32 %v3530_v11, 0.0  ;;  %v3539_v9 = vmax.f32 %v3531_v23, 0.0  ;;  %v3540_v28 = vmax.f32 %v3532_v42, 0.0  ;;  %v3541_v39 = vmax.f32 %v3533_v49, 0.0 }
 0x564   :  { %v3542_v60 = vmax.f32 %v3534_v51, 0.0  ;;  %v3543_v47 = vmax.f32 %v3535_v32, 0.0  ;;  %v4667_v17 = vpack.c.bf16 %v3537_v7, %v3536_v31 }
 0x565   :  { %v4672_v48 = vpack.c.bf16 %v3539_v9, %v3538_v15  ;;  %v4677_v13 = vpack.c.bf16 %v3541_v39, %v3540_v28 }
 0x566   :  { %4711 = vst [vmem:[%s6718_s5 + $0xe0] sm:$0xff] %v4667_v17   ;;  %v4682_v16 = vpack.c.bf16 %v3543_v47, %v3542_v60 }
 0x567   :  { %4712 = vst [vmem:[%s6718_s5 + $0xe8] sm:$0xff] %v4672_v48  }
 0x568   :  { %4713 = vst [vmem:[%s6718_s5 + $0xf0] sm:$0xff] %v4677_v13  }
 0x569   :  { %4714 = vst [vmem:[%s6718_s5 + $0xf8] sm:$0xff] %v4682_v16  }

// kernel: netg_forward.9
= control target key start
LH: loop header
LB: loop body
LE: loop exit
PB: predicated region body
PF: predicated region fallthrough
CT: control target
= control target key end

     0   :  { %s2361_s9 = smov 0   ;;  %s2676_s0 = inlined_call_operand.vmem [shape: bf16[2048,128], index: 0, kind: input, shape index: {}]   ;;  %s2677_s1 = inlined_call_operand.vmem [shape: bf16[128,128], index: 1, kind: input, shape index: {}]   ;;  %s2678_s2 = inlined_call_operand.vmem [shape: f32[2048,128], index: 2, kind: output, shape index: {}]  }
   0x1 LB: > { %s1583_s10 = sadd.s32 4294967295, %s2344_s9   ;;  %p1587_p0 = scmp.ge.s32.totalorder %s2344_s9, 1  ;;  %s2344_s9 = sphi %s2361_s9, %s12_s9  }
   0x2   : > { %p113_p1 = scmp.lt.s32.totalorder %s2344_s9, 3 }
   0x4   : > { %p114_p2 = pnand %p1587_p0, %p113_p1 }
   0x5   : > { %s1588_s17 = sshll.u32 (!%p114_p2), %s1583_s10, 7 }
   0x6   : > { %117 = sbr.rel (%p114_p2) target bundleno = 434 (0x1b2), region = 28  ;;  %p136_p3 = scmp.lt.s32.totalorder (!%p114_p2), %s1588_s17, 255 }
   0xb   : > { %v2001_v0 = vld [vmem:[%s2677_s1 + $0x38] sm:$0xff]  ;;  %v2000_v4 = vld [vmem:[%s2677_s1 + $0x30] sm:$0xff]  ;;  %v1999_v8 = vld [vmem:[%s2677_s1 + $0x28] sm:$0xff]  ;;  %s2680_s17 = smov (!%p136_p3, %s1588_s17), 255 }
   0xc   : > { %v2025_v1 = vld [vmem:[%s2677_s1 + $0x38] sm:$0xff]  ;;  %339 = vmatpush.bf16.msra.mxu0 %v2001_v0  ;;  %v2024_v5 = vld [vmem:[%s2677_s1 + $0x30] sm:$0xff]  ;;  %v2023_v9 = vld [vmem:[%s2677_s1 + $0x28] sm:$0xff]  ;;  %s1589_s15 = sshll.u32 %s2680_s17, 2  ;;  %s1591_s27 = sshll.u32 %s2680_s17, 3 }
   0xd   : > { %v2049_v2 = vld [vmem:[%s2677_s1 + $0x38] sm:$0xff]  ;;  %684 = vmatpush.bf16.msra.mxu1 %v2025_v1  ;;  %v2048_v6 = vld [vmem:[%s2677_s1 + $0x30] sm:$0xff]  ;;  %v2047_v10 = vld [vmem:[%s2677_s1 + $0x28] sm:$0xff]  ;;  %s2467_s23 = scalar_lea.vmem %s2676_s0, %s1589_s15  ;;  %s2515_s30 = scalar_lea.vmem %s2678_s2, %s1591_s27 }
   0xe   : > { %v2073_v3 = vld [vmem:[%s2677_s1 + $0x38] sm:$0xff]  ;;  %1029 = vmatpush.bf16.msra.mxu2 %v2049_v2  ;;  %v2072_v7 = vld [vmem:[%s2677_s1 + $0x30] sm:$0xff]  ;;  %v2071_v11 = vld [vmem:[%s2677_s1 + $0x28] sm:$0xff] }
   0xf   : > { %1374 = vmatpush.bf16.msra.mxu3 %v2073_v3  ;;  %v1998_v12 = vld [vmem:[%s2677_s1 + $0x20] sm:$0xff]  ;;  %v1997_v16 = vld [vmem:[%s2677_s1 + $0x18] sm:$0xff]  ;;  %v1996_v20 = vld [vmem:[%s2677_s1 + $0x10] sm:$0xff] }
  0x10   : > { %340 = vmatpush.bf16.msra.mxu0 %v2000_v4  ;;  %v2022_v13 = vld [vmem:[%s2677_s1 + $0x20] sm:$0xff]  ;;  %v2021_v17 = vld [vmem:[%s2677_s1 + $0x18] sm:$0xff]  ;;  %v2020_v21 = vld [vmem:[%s2677_s1 + $0x10] sm:$0xff] }
  0x11   : > { %685 = vmatpush.bf16.msra.mxu1 %v2024_v5  ;;  %v2046_v14 = vld [vmem:[%s2677_s1 + $0x20] sm:$0xff]  ;;  %v2045_v18 = vld [vmem:[%s2677_s1 + $0x18] sm:$0xff]  ;;  %v2044_v22 = vld [vmem:[%s2677_s1 + $0x10] sm:$0xff] }
  0x12   : > { %1030 = vmatpush.bf16.msra.mxu2 %v2048_v6  ;;  %v2070_v15 = vld [vmem:[%s2677_s1 + $0x20] sm:$0xff]  ;;  %v2069_v19 = vld [vmem:[%s2677_s1 + $0x18] sm:$0xff]  ;;  %v2068_v23 = vld [vmem:[%s2677_s1 + $0x10] sm:$0xff] }
  0x13   : > { %1375 = vmatpush.bf16.msra.mxu3 %v2072_v7  ;;  %v1995_v24 = vld [vmem:[%s2677_s1 + $0x8] sm:$0xff]  ;;  %v1994_v28 = vld [vmem:[%s2677_s1] sm:$0xff]  ;;  %v1980_v40 = vld [vmem:[%s2467_s23 + $0x10] sm:$0xff] }
  0x14   : > { %341 = vmatpush.bf16.msra.mxu0 %v1999_v8  ;;  %v2019_v25 = vld [vmem:[%s2677_s1 + $0x8] sm:$0xff]  ;;  %v2018_v29 = vld [vmem:[%s2677_s1] sm:$0xff]  ;;  %v2004_v41 = vld [vmem:[%s2467_s23 + $0x90] sm:$0xff] }
  0x15   : > { %686 = vmatpush.bf16.msra.mxu1 %v2023_v9  ;;  %v2043_v26 = vld [vmem:[%s2677_s1 + $0x8] sm:$0xff]  ;;  %v2042_v30 = vld [vmem:[%s2677_s1] sm:$0xff]  ;;  %v2028_v42 = vld [vmem:[%s2467_s23 + $0x110] sm:$0xff] }
  0x16   : > { %1031 = vmatpush.bf16.msra.mxu2 %v2047_v10  ;;  %v2067_v27 = vld [vmem:[%s2677_s1 + $0x8] sm:$0xff]  ;;  %v2066_v31 = vld [vmem:[%s2677_s1] sm:$0xff]  ;;  %v2052_v43 = vld [vmem:[%s2467_s23 + $0x190] sm:$0xff] }
  0x17   : > { %1376 = vmatpush.bf16.msra.mxu3 %v2071_v11  ;;  %v1978_v32 = vld [vmem:[%s2467_s23] sm:$0xff]  ;;  %v1979_v36 = vld [vmem:[%s2467_s23 + $0x8] sm:$0xff]  ;;  %v1981_v44 = vld [vmem:[%s2467_s23 + $0x18] sm:$0xff] }
  0x18   : > { %342 = vmatpush.bf16.msra.mxu0 %v1998_v12  ;;  %v2002_v33 = vld [vmem:[%s2467_s23 + $0x80] sm:$0xff]  ;;  %v2003_v37 = vld [vmem:[%s2467_s23 + $0x88] sm:$0xff]  ;;  %v2005_v45 = vld [vmem:[%s2467_s23 + $0x98] sm:$0xff] }
  0x19   : > { %687 = vmatpush.bf16.msra.mxu1 %v2022_v13  ;;  %v2026_v34 = vld [vmem:[%s2467_s23 + $0x100] sm:$0xff]  ;;  %v2027_v38 = vld [vmem:[%s2467_s23 + $0x108] sm:$0xff]  ;;  %v2029_v46 = vld [vmem:[%s2467_s23 + $0x118] sm:$0xff] }
  0x1a   : > { %1032 = vmatpush.bf16.msra.mxu2 %v2046_v14  ;;  %v2050_v35 = vld [vmem:[%s2467_s23 + $0x180] sm:$0xff]  ;;  %v2051_v39 = vld [vmem:[%s2467_s23 + $0x188] sm:$0xff]  ;;  %v2053_v47 = vld [vmem:[%s2467_s23 + $0x198] sm:$0xff] }
  0x1b   : > { %1377 = vmatpush.bf16.msra.mxu3 %v2070_v15  ;;  %v1982_v48 = vld [vmem:[%s2467_s23 + $0x20] sm:$0xff]  ;;  %v1983_v52 = vld [vmem:[%s2467_s23 + $0x28] sm:$0xff]  ;;  %v1984_v56 = vld [vmem:[%s2467_s23 + $0x30] sm:$0xff] }
  0x1c   : > { %343 = vmatpush.bf16.msra.mxu0 %v1997_v16  ;;  %v2006_v49 = vld [vmem:[%s2467_s23 + $0xa0] sm:$0xff]  ;;  %v2007_v53 = vld [vmem:[%s2467_s23 + $0xa8] sm:$0xff]  ;;  %v2008_v57 = vld [vmem:[%s2467_s23 + $0xb0] sm:$0xff] }
  0x1d   : > { %688 = vmatpush.bf16.msra.mxu1 %v2021_v17  ;;  %v2030_v50 = vld [vmem:[%s2467_s23 + $0x120] sm:$0xff]  ;;  %v2031_v54 = vld [vmem:[%s2467_s23 + $0x128] sm:$0xff]  ;;  %v2032_v58 = vld [vmem:[%s2467_s23 + $0x130] sm:$0xff] }
  0x1e   : > { %1033 = vmatpush.bf16.msra.mxu2 %v2045_v18  ;;  %v2054_v51 = vld [vmem:[%s2467_s23 + $0x1a0] sm:$0xff]  ;;  %v2055_v55 = vld [vmem:[%s2467_s23 + $0x1a8] sm:$0xff]  ;;  %v2056_v59 = vld [vmem:[%s2467_s23 + $0x1b0] sm:$0xff] }
  0x1f   : > { %1378 = vmatpush.bf16.msra.mxu3 %v2069_v19  ;;  %v1985_v60 = vld [vmem:[%s2467_s23 + $0x38] sm:$0xff]  ;;  %v1986_v0 = vld [vmem:[%s2467_s23 + $0x40] sm:$0xff]  ;;  %v1987_v16 = vld [vmem:[%s2467_s23 + $0x48] sm:$0xff] }
  0x20   : > { %344 = vmatpush.bf16.msra.mxu0 %v1996_v20  ;;  %v2009_v61 = vld [vmem:[%s2467_s23 + $0xb8] sm:$0xff]  ;;  %v2010_v1 = vld [vmem:[%s2467_s23 + $0xc0] sm:$0xff]  ;;  %v2011_v17 = vld [vmem:[%s2467_s23 + $0xc8] sm:$0xff] }
  0x21   : > { %689 = vmatpush.bf16.msra.mxu1 %v2020_v21  ;;  %v2033_v62 = vld [vmem:[%s2467_s23 + $0x138] sm:$0xff]  ;;  %v2034_v4 = vld [vmem:[%s2467_s23 + $0x140] sm:$0xff]  ;;  %v2035_v21 = vld [vmem:[%s2467_s23 + $0x148] sm:$0xff] }
  0x22   : > { %1034 = vmatpush.bf16.msra.mxu2 %v2044_v22  ;;  %v2057_v63 = vld [vmem:[%s2467_s23 + $0x1b8] sm:$0xff]  ;;  %v2058_v5 = vld [vmem:[%s2467_s23 + $0x1c0] sm:$0xff]  ;;  %v2059_v22 = vld [vmem:[%s2467_s23 + $0x1c8] sm:$0xff] }
  0x23   : > { %1379 = vmatpush.bf16.msra.mxu3 %v2068_v23 }
  0x24   : > { %345 = vmatpush.bf16.msra.mxu0 %v1995_v24 }
  0x25   : > { %690 = vmatpush.bf16.msra.mxu1 %v2019_v25 }
  0x26   : > { %1035 = vmatpush.bf16.msra.mxu2 %v2043_v26 }
  0x27   : > { %1380 = vmatpush.bf16.msra.mxu3 %v2067_v27 }
  0x28   : > { %346 = vmatpush.bf16.msra.mxu0 %v1994_v28 }
  0x29   : > { %691 = vmatpush.bf16.msra.mxu1 %v2018_v29 }
  0x2a   : > { %1036 = vmatpush.bf16.msra.mxu2 %v2042_v30 }
  0x2b   : > { %1381 = vmatpush.bf16.msra.mxu3 %v2066_v31  ;;  %347 = vmatmul.bf16.vlgmr.msra.gmra.mxu0 %v1978_v32 }
  0x2c   : > { %692 = vmatmul.bf16.vlgmr.msra.gmra.mxu1 %v2002_v33 }
  0x2d   : > { %1037 = vmatmul.bf16.vlgmr.msra.gmra.mxu2 %v2026_v34 }
  0x2e   : > { %1382 = vmatmul.bf16.vlgmr.msra.gmra.mxu3 %v2050_v35 }
  0x3b   : > { %352 = vmatmul.bf16.gmra.mxu0 %v1979_v36  ;;  %v1988_v36 = vld [vmem:[%s2467_s23 + $0x50] sm:$0xff] }
  0x3c   : > { %697 = vmatmul.bf16.gmra.mxu1 %v2003_v37  ;;  %v2012_v37 = vld [vmem:[%s2467_s23 + $0xd0] sm:$0xff] }
  0x3d   : > { %1042 = vmatmul.bf16.gmra.mxu2 %v2027_v38 }
  0x3e   : > { %1387 = vmatmul.bf16.gmra.mxu3 %v2051_v39 }
  0x4b   : > { %357 = vmatmul.bf16.gmra.mxu0 %v1980_v40 }
  0x4c   : > { %702 = vmatmul.bf16.gmra.mxu1 %v2004_v41  ;;  %v2036_v41 = vld [vmem:[%s2467_s23 + $0x150] sm:$0xff] }
  0x4d   : > { %1047 = vmatmul.bf16.gmra.mxu2 %v2028_v42  ;;  %v2060_v42 = vld [vmem:[%s2467_s23 + $0x1d0] sm:$0xff] }
  0x4e   : > { %1392 = vmatmul.bf16.gmra.mxu3 %v2052_v43 }
  0x5b   : > { %362 = vmatmul.bf16.gmra.mxu0 %v1981_v44 }
  0x5c   : > { %707 = vmatmul.bf16.gmra.mxu1 %v2005_v45 }
  0x5d   : > { %1052 = vmatmul.bf16.gmra.mxu2 %v2029_v46 }
  0x5e   : > { %1397 = vmatmul.bf16.gmra.mxu3 %v2053_v47 }
  0x6b   : > { %367 = vmatmul.bf16.gmra.mxu0 %v1982_v48 }
  0x6c   : > { %712 = vmatmul.bf16.gmra.mxu1 %v2006_v49 }
  0x6d   : > { %1057 = vmatmul.bf16.gmra.mxu2 %v2030_v50 }
  0x6e   : > { %1402 = vmatmul.bf16.gmra.mxu3 %v2054_v51 }
  0x7b   : > { %372 = vmatmul.bf16.gmra.mxu0 %v1983_v52 }
  0x7c   : > { %717 = vmatmul.bf16.gmra.mxu1 %v2007_v53 }
  0x7d   : > { %1062 = vmatmul.bf16.gmra.mxu2 %v2031_v54 }
  0x7e   : > { %1407 = vmatmul.bf16.gmra.mxu3 %v2055_v55 }
  0x8b   : > { %377 = vmatmul.bf16.gmra.mxu0 %v1984_v56  ;;  %v1989_v56 = vld [vmem:[%s2467_s23 + $0x58] sm:$0xff] }
  0x8c   : > { %722 = vmatmul.bf16.gmra.mxu1 %v2008_v57  ;;  %v2013_v57 = vld [vmem:[%s2467_s23 + $0xd8] sm:$0xff] }
  0x8d   : > { %1067 = vmatmul.bf16.gmra.mxu2 %v2032_v58 }
  0x8e   : > { %1412 = vmatmul.bf16.gmra.mxu3 %v2056_v59 }
  0x9b   : > { %382 = vmatmul.bf16.gmra.mxu0 %v1985_v60 }
  0x9c   : > { %727 = vmatmul.bf16.gmra.mxu1 %v2009_v61  ;;  %v2037_v61 = vld [vmem:[%s2467_s23 + $0x158] sm:$0xff] }
  0x9d   : > { %1072 = vmatmul.bf16.gmra.mxu2 %v2033_v62  ;;  %v2061_v62 = vld [vmem:[%s2467_s23 + $0x1d8] sm:$0xff] }
  0x9e   : > { %1417 = vmatmul.bf16.gmra.mxu3 %v2057_v63 }
  0xa8   : > { %v348_v2 = vpop.f32.mrf.mxu0 }
  0xa9   : > { %v693_v3 = vpop.f32.mrf.mxu1  ;;  %2082 = vtanh.f32 %v348_v2 }
  0xaa   : > { %2084 = vtanh.f32 %v693_v3 }
  0xab   : > { %387 = vmatmul.bf16.gmra.mxu0 %v1986_v0 }
  0xac   : > { %732 = vmatmul.bf16.gmra.mxu1 %v2010_v1 }
  0xad   : > { %1077 = vmatmul.bf16.gmra.mxu2 %v2034_v4 }
  0xae   : > { %1422 = vmatmul.bf16.gmra.mxu3 %v2058_v5 }
  0xaf   : > { %v2083_v6 = vpop.eup %2082 }
  0xb0   : > { %v1038_v7 = vpop.f32.mrf.mxu2  ;;  %v2085_v9 = vpop.eup %2084  ;;  %460 = vst [vmem:[%s2515_s30] sm:$0xff] %v2083_v6 }
  0xb1   : > { %v1383_v8 = vpop.f32.mrf.mxu3  ;;  %2086 = vtanh.f32 %v1038_v7  ;;  %v350_v10 = vpop.f32.mrf.mxu0  ;;  %805 = vst [vmem:[%s2515_s30 + $0x100] sm:$0xff] %v2085_v9 }
  0xb2   : > { %v695_v11 = vpop.f32.mrf.mxu1  ;;  %2088 = vtanh.f32 %v1383_v8 }
  0xb3   : > { %2090 = vtanh.f32 %v350_v10 }
  0xb4   : > { %2092 = vtanh.f32 %v695_v11 }
  0xb7   : > { %v2087_v12 = vpop.eup %2086 }
  0xb8   : > { %v2089_v13 = vpop.eup %2088  ;;  %1150 = vst [vmem:[%s2515_s30 + $0x200] sm:$0xff] %v2087_v12  ;;  %v1040_v14 = vpop.f32.mrf.mxu2  ;;  %v1990_v12 = vld [vmem:[%s2467_s23 + $0x60] sm:$0xff] }
  0xb9   : > { %v1385_v15 = vpop.f32.mrf.mxu3  ;;  %v2091_v18 = vpop.eup %2090  ;;  %1495 = vst [vmem:[%s2515_s30 + $0x300] sm:$0xff] %v2089_v13  ;;  %2094 = vtanh.f32 %v1040_v14  ;;  %v2014_v13 = vld [vmem:[%s2467_s23 + $0xe0] sm:$0xff] }
  0xba   : > { %v353_v19 = vpop.f32.mrf.mxu0  ;;  %v698_v20 = vpop.f32.mrf.mxu1  ;;  %461 = vst [vmem:[%s2515_s30 + $0x8] sm:$0xff] %v2091_v18  ;;  %2096 = vtanh.f32 %v1385_v15  ;;  %v2062_v18 = vld [vmem:[%s2467_s23 + $0x1e0] sm:$0xff] }
  0xbb   : > { %v2093_v23 = vpop.eup %2092  ;;  %2098 = vtanh.f32 %v353_v19  ;;  %392 = vmatmul.bf16.gmra.mxu0 %v1987_v16 }
  0xbc   : > { %806 = vst [vmem:[%s2515_s30 + $0x108] sm:$0xff] %v2093_v23  ;;  %2100 = vtanh.f32 %v698_v20  ;;  %737 = vmatmul.bf16.gmra.mxu1 %v2011_v17  ;;  %v2038_v17 = vld [vmem:[%s2467_s23 + $0x160] sm:$0xff] }
  0xbd   : > { %1082 = vmatmul.bf16.gmra.mxu2 %v2035_v21 }
  0xbe   : > { %1427 = vmatmul.bf16.gmra.mxu3 %v2059_v22 }
  0xbf   : > { %v2095_v24 = vpop.eup %2094 }
  0xc0   : > { %v2097_v25 = vpop.eup %2096  ;;  %1151 = vst [vmem:[%s2515_s30 + $0x208] sm:$0xff] %v2095_v24  ;;  %v1043_v26 = vpop.f32.mrf.mxu2 }
  0xc1   : > { %v1388_v27 = vpop.f32.mrf.mxu3  ;;  %v2099_v28 = vpop.eup %2098  ;;  %1496 = vst [vmem:[%s2515_s30 + $0x308] sm:$0xff] %v2097_v25  ;;  %2102 = vtanh.f32 %v1043_v26 }
  0xc2   : > { %v355_v29 = vpop.f32.mrf.mxu0  ;;  %v700_v30 = vpop.f32.mrf.mxu1  ;;  %462 = vst [vmem:[%s2515_s30 + $0x10] sm:$0xff] %v2099_v28  ;;  %2104 = vtanh.f32 %v1388_v27 }
  0xc3   : > { %v2101_v31 = vpop.eup %2100  ;;  %2106 = vtanh.f32 %v355_v29 }
  0xc4   : > { %807 = vst [vmem:[%s2515_s30 + $0x110] sm:$0xff] %v2101_v31  ;;  %2108 = vtanh.f32 %v700_v30 }
  0xc7   : > { %v2103_v32 = vpop.eup %2102 }
  0xc8   : > { %v2105_v33 = vpop.eup %2104  ;;  %1152 = vst [vmem:[%s2515_s30 + $0x210] sm:$0xff] %v2103_v32  ;;  %v1045_v34 = vpop.f32.mrf.mxu2  ;;  %v1991_v32 = vld [vmem:[%s2467_s23 + $0x68] sm:$0xff] }
  0xc9   : > { %v1390_v35 = vpop.f32.mrf.mxu3  ;;  %v2107_v38 = vpop.eup %2106  ;;  %1497 = vst [vmem:[%s2515_s30 + $0x310] sm:$0xff] %v2105_v33  ;;  %2110 = vtanh.f32 %v1045_v34  ;;  %v2015_v33 = vld [vmem:[%s2467_s23 + $0xe8] sm:$0xff] }
  0xca   : > { %v358_v39 = vpop.f32.mrf.mxu0  ;;  %v703_v40 = vpop.f32.mrf.mxu1  ;;  %463 = vst [vmem:[%s2515_s30 + $0x18] sm:$0xff] %v2107_v38  ;;  %2112 = vtanh.f32 %v1390_v35  ;;  %v2063_v38 = vld [vmem:[%s2467_s23 + $0x1e8] sm:$0xff] }
  0xcb   : > { %v2109_v43 = vpop.eup %2108  ;;  %2114 = vtanh.f32 %v358_v39  ;;  %397 = vmatmul.bf16.gmra.mxu0 %v1988_v36 }
  0xcc   : > { %808 = vst [vmem:[%s2515_s30 + $0x118] sm:$0xff] %v2109_v43  ;;  %2116 = vtanh.f32 %v703_v40  ;;  %742 = vmatmul.bf16.gmra.mxu1 %v2012_v37  ;;  %v2039_v37 = vld [vmem:[%s2467_s23 + $0x168] sm:$0xff] }
  0xcd   : > { %1087 = vmatmul.bf16.gmra.mxu2 %v2036_v41 }
  0xce   : > { %1432 = vmatmul.bf16.gmra.mxu3 %v2060_v42 }
  0xcf   : > { %v2111_v44 = vpop.eup %2110 }
  0xd0   : > { %v2113_v45 = vpop.eup %2112  ;;  %1153 = vst [vmem:[%s2515_s30 + $0x218] sm:$0xff] %v2111_v44  ;;  %v1048_v46 = vpop.f32.mrf.mxu2 }
  0xd1   : > { %v1393_v47 = vpop.f32.mrf.mxu3  ;;  %v2115_v48 = vpop.eup %2114  ;;  %1498 = vst [vmem:[%s2515_s30 + $0x318] sm:$0xff] %v2113_v45  ;;  %2118 = vtanh.f32 %v1048_v46 }
  0xd2   : > { %v360_v49 = vpop.f32.mrf.mxu0  ;;  %v705_v50 = vpop.f32.mrf.mxu1  ;;  %464 = vst [vmem:[%s2515_s30 + $0x20] sm:$0xff] %v2115_v48  ;;  %2120 = vtanh.f32 %v1393_v47 }
  0xd3   : > { %v2117_v51 = vpop.eup %2116  ;;  %2122 = vtanh.f32 %v360_v49 }
  0xd4   : > { %809 = vst [vmem:[%s2515_s30 + $0x120] sm:$0xff] %v2117_v51  ;;  %2124 = vtanh.f32 %v705_v50 }
  0xd7   : > { %v2119_v52 = vpop.eup %2118 }
  0xd8   : > { %v2121_v53 = vpop.eup %2120  ;;  %1154 = vst [vmem:[%s2515_s30 + $0x220] sm:$0xff] %v2119_v52  ;;  %v1050_v54 = vpop.f32.mrf.mxu2  ;;  %v1992_v52 = vld [vmem:[%s2467_s23 + $0x70] sm:$0xff] }
  0xd9   : > { %v1395_v55 = vpop.f32.mrf.mxu3  ;;  %v2123_v58 = vpop.eup %2122  ;;  %1499 = vst [vmem:[%s2515_s30 + $0x320] sm:$0xff] %v2121_v53  ;;  %2126 = vtanh.f32 %v1050_v54  ;;  %v2016_v53 = vld [vmem:[%s2467_s23 + $0xf0] sm:$0xff] }
  0xda   : > { %v363_v59 = vpop.f32.mrf.mxu0  ;;  %v708_v60 = vpop.f32.mrf.mxu1  ;;  %465 = vst [vmem:[%s2515_s30 + $0x28] sm:$0xff] %v2123_v58  ;;  %2128 = vtanh.f32 %v1395_v55  ;;  %v2064_v58 = vld [vmem:[%s2467_s23 + $0x1f0] sm:$0xff] }
  0xdb   : > { %v2125_v63 = vpop.eup %2124  ;;  %2130 = vtanh.f32 %v363_v59  ;;  %402 = vmatmul.bf16.gmra.mxu0 %v1989_v56 }
  0xdc   : > { %810 = vst [vmem:[%s2515_s30 + $0x128] sm:$0xff] %v2125_v63  ;;  %2132 = vtanh.f32 %v708_v60  ;;  %747 = vmatmul.bf16.gmra.mxu1 %v2013_v57  ;;  %v2040_v57 = vld [vmem:[%s2467_s23 + $0x170] sm:$0xff] }
  0xdd   : > { %1092 = vmatmul.bf16.gmra.mxu2 %v2037_v61 }
  0xde   : > { %1437 = vmatmul.bf16.gmra.mxu3 %v2061_v62 }
  0xdf   : > { %v2127_v0 = vpop.eup %2126 }
  0xe0   : > { %v2129_v1 = vpop.eup %2128  ;;  %1155 = vst [vmem:[%s2515_s30 + $0x228] sm:$0xff] %v2127_v0  ;;  %v1053_v2 = vpop.f32.mrf.mxu2 }
  0xe1   : > { %v1398_v3 = vpop.f32.mrf.mxu3  ;;  %v2131_v4 = vpop.eup %2130  ;;  %1500 = vst [vmem:[%s2515_s30 + $0x328] sm:$0xff] %v2129_v1  ;;  %2134 = vtanh.f32 %v1053_v2 }
  0xe2   : > { %v365_v5 = vpop.f32.mrf.mxu0  ;;  %v710_v6 = vpop.f32.mrf.mxu1  ;;  %466 = vst [vmem:[%s2515_s30 + $0x30] sm:$0xff] %v2131_v4  ;;  %2136 = vtanh.f32 %v1398_v3 }
  0xe3   : > { %v2133_v7 = vpop.eup %2132  ;;  %2138 = vtanh.f32 %v365_v5 }
  0xe4   : > { %811 = vst [vmem:[%s2515_s30 + $0x130] sm:$0xff] %v2133_v7  ;;  %2140 = vtanh.f32 %v710_v6 }
  0xe7   : > { %v2135_v8 = vpop.eup %2134 }
  0xe8   : > { %v2137_v9 = vpop.eup %2136  ;;  %1156 = vst [vmem:[%s2515_s30 + $0x230] sm:$0xff] %v2135_v8  ;;  %v1055_v10 = vpop.f32.mrf.mxu2  ;;  %v1993_v8 = vld [vmem:[%s2467_s23 + $0x78] sm:$0xff] }
  0xe9   : > { %v1400_v11 = vpop.f32.mrf.mxu3  ;;  %v2139_v14 = vpop.eup %2138  ;;  %1501 = vst [vmem:[%s2515_s30 + $0x330] sm:$0xff] %v2137_v9  ;;  %2142 = vtanh.f32 %v1055_v10  ;;  %v2017_v9 = vld [vmem:[%s2467_s23 + $0xf8] sm:$0xff] }
  0xea   : > { %v368_v15 = vpop.f32.mrf.mxu0  ;;  %v713_v16 = vpop.f32.mrf.mxu1  ;;  %467 = vst [vmem:[%s2515_s30 + $0x38] sm:$0xff] %v2139_v14  ;;  %2144 = vtanh.f32 %v1400_v11  ;;  %v2065_v14 = vld [vmem:[%s2467_s23 + $0x1f8] sm:$0xff] }
  0xeb   : > { %v2141_v19 = vpop.eup %2140  ;;  %2146 = vtanh.f32 %v368_v15  ;;  %407 = vmatmul.bf16.gmra.mxu0 %v1990_v12 }
  0xec   : > { %812 = vst [vmem:[%s2515_s30 + $0x138] sm:$0xff] %v2141_v19  ;;  %2148 = vtanh.f32 %v713_v16  ;;  %752 = vmatmul.bf16.gmra.mxu1 %v2014_v13  ;;  %v2041_v13 = vld [vmem:[%s2467_s23 + $0x178] sm:$0xff] }
  0xed   : > { %1097 = vmatmul.bf16.gmra.mxu2 %v2038_v17 }
  0xee   : > { %1442 = vmatmul.bf16.gmra.mxu3 %v2062_v18 }
  0xef   : > { %v2143_v20 = vpop.eup %2142 }
  0xf0   : > { %v2145_v21 = vpop.eup %2144  ;;  %1157 = vst [vmem:[%s2515_s30 + $0x238] sm:$0xff] %v2143_v20  ;;  %v1058_v22 = vpop.f32.mrf.mxu2 }
  0xf1   : > { %v1403_v23 = vpop.f32.mrf.mxu3  ;;  %v2147_v24 = vpop.eup %2146  ;;  %1502 = vst [vmem:[%s2515_s30 + $0x338] sm:$0xff] %v2145_v21  ;;  %2150 = vtanh.f32 %v1058_v22 }
  0xf2   : > { %v370_v25 = vpop.f32.mrf.mxu0  ;;  %v715_v26 = vpop.f32.mrf.mxu1  ;;  %468 = vst [vmem:[%s2515_s30 + $0x40] sm:$0xff] %v2147_v24  ;;  %2152 = vtanh.f32 %v1403_v23 }
  0xf3   : > { %v2149_v27 = vpop.eup %2148  ;;  %2154 = vtanh.f32 %v370_v25 }
  0xf4   : > { %813 = vst [vmem:[%s2515_s30 + $0x140] sm:$0xff] %v2149_v27  ;;  %2156 = vtanh.f32 %v715_v26 }
  0xf7   : > { %v2151_v28 = vpop.eup %2150 }
  0xf8   : > { %v2153_v29 = vpop.eup %2152  ;;  %1158 = vst [vmem:[%s2515_s30 + $0x240] sm:$0xff] %v2151_v28  ;;  %v1060_v30 = vpop.f32.mrf.mxu2 }
  0xf9   : > { %v1405_v31 = vpop.f32.mrf.mxu3  ;;  %v2155_v34 = vpop.eup %2154  ;;  %1503 = vst [vmem:[%s2515_s30 + $0x340] sm:$0xff] %v2153_v29  ;;  %2158 = vtanh.f32 %v1060_v30 }
  0xfa   : > { %v373_v35 = vpop.f32.mrf.mxu0  ;;  %v718_v36 = vpop.f32.mrf.mxu1  ;;  %469 = vst [vmem:[%s2515_s30 + $0x48] sm:$0xff] %v2155_v34  ;;  %2160 = vtanh.f32 %v1405_v31 }
  0xfb   : > { %v2157_v39 = vpop.eup %2156  ;;  %2162 = vtanh.f32 %v373_v35  ;;  %412 = vmatmul.bf16.gmra.mxu0 %v1991_v32 }
  0xfc   : > { %814 = vst [vmem:[%s2515_s30 + $0x148] sm:$0xff] %v2157_v39  ;;  %2164 = vtanh.f32 %v718_v36  ;;  %757 = vmatmul.bf16.gmra.mxu1 %v2015_v33 }
  0xfd   : > { %1102 = vmatmul.bf16.gmra.mxu2 %v2039_v37 }
  0xfe   : > { %1447 = vmatmul.bf16.gmra.mxu3 %v2063_v38 }
  0xff   : > { %v2159_v40 = vpop.eup %2158 }
 0x100   : > { %v2161_v41 = vpop.eup %2160  ;;  %1159 = vst [vmem:[%s2515_s30 + $0x248] sm:$0xff] %v2159_v40  ;;  %v1063_v42 = vpop.f32.mrf.mxu2 }
 0x101   : > { %v1408_v43 = vpop.f32.mrf.mxu3  ;;  %v2163_v44 = vpop.eup %2162  ;;  %1504 = vst [vmem:[%s2515_s30 + $0x348] sm:$0xff] %v2161_v41  ;;  %2166 = vtanh.f32 %v1063_v42 }
 0x102   : > { %v375_v45 = vpop.f32.mrf.mxu0  ;;  %v720_v46 = vpop.f32.mrf.mxu1  ;;  %470 = vst [vmem:[%s2515_s30 + $0x50] sm:$0xff] %v2163_v44  ;;  %2168 = vtanh.f32 %v1408_v43 }
 0x103   : > { %v2165_v47 = vpop.eup %2164  ;;  %2170 = vtanh.f32 %v375_v45 }
 0x104   : > { %815 = vst [vmem:[%s2515_s30 + $0x150] sm:$0xff] %v2165_v47  ;;  %2172 = vtanh.f32 %v720_v46 }
 0x107   : > { %v2167_v48 = vpop.eup %2166 }
 0x108   : > { %v2169_v49 = vpop.eup %2168  ;;  %1160 = vst [vmem:[%s2515_s30 + $0x250] sm:$0xff] %v2167_v48  ;;  %v1065_v50 = vpop.f32.mrf.mxu2 }
 0x109   : > { %v1410_v51 = vpop.f32.mrf.mxu3  ;;  %v2171_v54 = vpop.eup %2170  ;;  %1505 = vst [vmem:[%s2515_s30 + $0x350] sm:$0xff] %v2169_v49  ;;  %2174 = vtanh.f32 %v1065_v50 }
 0x10a   : > { %v378_v55 = vpop.f32.mrf.mxu0  ;;  %v723_v56 = vpop.f32.mrf.mxu1  ;;  %471 = vst [vmem:[%s2515_s30 + $0x58] sm:$0xff] %v2171_v54  ;;  %2176 = vtanh.f32 %v1410_v51 }
 0x10b   : > { %v2173_v59 = vpop.eup %2172  ;;  %2178 = vtanh.f32 %v378_v55  ;;  %417 = vmatmul.bf16.gmra.mxu0 %v1992_v52 }
 0x10c   : > { %816 = vst [vmem:[%s2515_s30 + $0x158] sm:$0xff] %v2173_v59  ;;  %2180 = vtanh.f32 %v723_v56  ;;  %762 = vmatmul.bf16.gmra.mxu1 %v2016_v53 }
 0x10d   : > { %1107 = vmatmul.bf16.gmra.mxu2 %v2040_v57 }
 0x10e   : > { %1452 = vmatmul.bf16.gmra.mxu3 %v2064_v58 }
 0x10f   : > { %v2175_v60 = vpop.eup %2174 }
 0x110   : > { %v2177_v61 = vpop.eup %2176  ;;  %1161 = vst [vmem:[%s2515_s30 + $0x258] sm:$0xff] %v2175_v60  ;;  %v1068_v62 = vpop.f32.mrf.mxu2 }
 0x111   : > { %v1413_v63 = vpop.f32.mrf.mxu3  ;;  %v2179_v0 = vpop.eup %2178  ;;  %1506 = vst [vmem:[%s2515_s30 + $0x358] sm:$0xff] %v2177_v61  ;;  %2182 = vtanh.f32 %v1068_v62 }
 0x112   : > { %v380_v1 = vpop.f32.mrf.mxu0  ;;  %v725_v2 = vpop.f32.mrf.mxu1  ;;  %472 = vst [vmem:[%s2515_s30 + $0x60] sm:$0xff] %v2179_v0  ;;  %2184 = vtanh.f32 %v1413_v63 }
 0x113   : > { %v2181_v3 = vpop.eup %2180  ;;  %2186 = vtanh.f32 %v380_v1 }
 0x114   : > { %817 = vst [vmem:[%s2515_s30 + $0x160] sm:$0xff] %v2181_v3  ;;  %2188 = vtanh.f32 %v725_v2 }
 0x117   : > { %v2183_v4 = vpop.eup %2182 }
 0x118   : > { %v2185_v5 = vpop.eup %2184  ;;  %1162 = vst [vmem:[%s2515_s30 + $0x260] sm:$0xff] %v2183_v4  ;;  %v1070_v6 = vpop.f32.mrf.mxu2 }
 0x119   : > { %v1415_v7 = vpop.f32.mrf.mxu3  ;;  %v2187_v10 = vpop.eup %2186  ;;  %1507 = vst [vmem:[%s2515_s30 + $0x360] sm:$0xff] %v2185_v5  ;;  %2190 = vtanh.f32 %v1070_v6 }
 0x11a   : > { %v383_v11 = vpop.f32.mrf.mxu0  ;;  %v728_v12 = vpop.f32.mrf.mxu1  ;;  %473 = vst [vmem:[%s2515_s30 + $0x68] sm:$0xff] %v2187_v10  ;;  %2192 = vtanh.f32 %v1415_v7 }
 0x11b   : > { %v2189_v15 = vpop.eup %2188  ;;  %2194 = vtanh.f32 %v383_v11  ;;  %422 = vmatmul.bf16.gmra.mxu0 %v1993_v8 }
 0x11c   : > { %818 = vst [vmem:[%s2515_s30 + $0x168] sm:$0xff] %v2189_v15  ;;  %2196 = vtanh.f32 %v728_v12  ;;  %767 = vmatmul.bf16.gmra.mxu1 %v2017_v9 }
 0x11d   : > { %1112 = vmatmul.bf16.gmra.mxu2 %v2041_v13 }
 0x11e   : > { %1457 = vmatmul.bf16.gmra.mxu3 %v2065_v14 }
 0x11f   : > { %v2191_v16 = vpop.eup %2190 }
 0x120   : > { %v2193_v17 = vpop.eup %2192  ;;  %1163 = vst [vmem:[%s2515_s30 + $0x268] sm:$0xff] %v2191_v16  ;;  %v1073_v18 = vpop.f32.mrf.mxu2 }
 0x121   : > { %v1418_v19 = vpop.f32.mrf.mxu3  ;;  %v2195_v20 = vpop.eup %2194  ;;  %1508 = vst [vmem:[%s2515_s30 + $0x368] sm:$0xff] %v2193_v17  ;;  %2198 = vtanh.f32 %v1073_v18 }
 0x122   : > { %v385_v21 = vpop.f32.mrf.mxu0  ;;  %v730_v22 = vpop.f32.mrf.mxu1  ;;  %474 = vst [vmem:[%s2515_s30 + $0x70] sm:$0xff] %v2195_v20  ;;  %2200 = vtanh.f32 %v1418_v19 }
 0x123   : > { %v2197_v23 = vpop.eup %2196  ;;  %2202 = vtanh.f32 %v385_v21 }
 0x124   : > { %819 = vst [vmem:[%s2515_s30 + $0x170] sm:$0xff] %v2197_v23  ;;  %2204 = vtanh.f32 %v730_v22 }
 0x127   : > { %v2199_v24 = vpop.eup %2198 }
 0x128   : > { %v2201_v25 = vpop.eup %2200  ;;  %1164 = vst [vmem:[%s2515_s30 + $0x270] sm:$0xff] %v2199_v24  ;;  %v1075_v26 = vpop.f32.mrf.mxu2 }
 0x129   : > { %v1420_v27 = vpop.f32.mrf.mxu3  ;;  %v2203_v28 = vpop.eup %2202  ;;  %1509 = vst [vmem:[%s2515_s30 + $0x370] sm:$0xff] %v2201_v25  ;;  %2206 = vtanh.f32 %v1075_v26 }
 0x12a   : > { %v388_v29 = vpop.f32.mrf.mxu0  ;;  %v733_v30 = vpop.f32.mrf.mxu1  ;;  %475 = vst [vmem:[%s2515_s30 + $0x78] sm:$0xff] %v2203_v28  ;;  %2208 = vtanh.f32 %v1420_v27 }
 0x12b   : > { %v2205_v31 = vpop.eup %2204  ;;  %2210 = vtanh.f32 %v388_v29 }
 0x12c   : > { %820 = vst [vmem:[%s2515_s30 + $0x178] sm:$0xff] %v2205_v31  ;;  %2212 = vtanh.f32 %v733_v30 }
 0x12f   : > { %v2207_v32 = vpop.eup %2206 }
 0x130   : > { %v2209_v33 = vpop.eup %2208  ;;  %1165 = vst [vmem:[%s2515_s30 + $0x278] sm:$0xff] %v2207_v32  ;;  %v1078_v34 = vpop.f32.mrf.mxu2 }
 0x131   : > { %v1423_v35 = vpop.f32.mrf.mxu3  ;;  %v2211_v36 = vpop.eup %2210  ;;  %1510 = vst [vmem:[%s2515_s30 + $0x378] sm:$0xff] %v2209_v33  ;;  %2214 = vtanh.f32 %v1078_v34 }
 0x132   : > { %v390_v37 = vpop.f32.mrf.mxu0  ;;  %v735_v38 = vpop.f32.mrf.mxu1  ;;  %476 = vst [vmem:[%s2515_s30 + $0x80] sm:$0xff] %v2211_v36  ;;  %2216 = vtanh.f32 %v1423_v35 }
 0x133   : > { %v2213_v39 = vpop.eup %2212  ;;  %2218 = vtanh.f32 %v390_v37 }
 0x134   : > { %821 = vst [vmem:[%s2515_s30 + $0x180] sm:$0xff] %v2213_v39  ;;  %2220 = vtanh.f32 %v735_v38 }
 0x137   : > { %v2215_v40 = vpop.eup %2214 }
 0x138   : > { %v2217_v41 = vpop.eup %2216  ;;  %1166 = vst [vmem:[%s2515_s30 + $0x280] sm:$0xff] %v2215_v40  ;;  %v1080_v42 = vpop.f32.mrf.mxu2 }
 0x139   : > { %v1425_v43 = vpop.f32.mrf.mxu3  ;;  %v2219_v44 = vpop.eup %2218  ;;  %1511 = vst [vmem:[%s2515_s30 + $0x380] sm:$0xff] %v2217_v41  ;;  %2222 = vtanh.f32 %v1080_v42 }
 0x13a   : > { %v393_v45 = vpop.f32.mrf.mxu0  ;;  %v738_v46 = vpop.f32.mrf.mxu1  ;;  %477 = vst [vmem:[%s2515_s30 + $0x88] sm:$0xff] %v2219_v44  ;;  %2224 = vtanh.f32 %v1425_v43 }
 0x13b   : > { %v2221_v47 = vpop.eup %2220  ;;  %2226 = vtanh.f32 %v393_v45 }
 0x13c   : > { %822 = vst [vmem:[%s2515_s30 + $0x188] sm:$0xff] %v2221_v47  ;;  %2228 = vtanh.f32 %v738_v46 }
 0x13f   : > { %v2223_v48 = vpop.eup %2222 }
 0x140   : > { %v2225_v49 = vpop.eup %2224  ;;  %1167 = vst [vmem:[%s2515_s30 + $0x288] sm:$0xff] %v2223_v48  ;;  %v1083_v50 = vpop.f32.mrf.mxu2 }
 0x141   : > { %v1428_v51 = vpop.f32.mrf.mxu3  ;;  %v2227_v52 = vpop.eup %2226  ;;  %1512 = vst [vmem:[%s2515_s30 + $0x388] sm:$0xff] %v2225_v49  ;;  %2230 = vtanh.f32 %v1083_v50 }
 0x142   : > { %v395_v53 = vpop.f32.mrf.mxu0  ;;  %v740_v54 = vpop.f32.mrf.mxu1  ;;  %478 = vst [vmem:[%s2515_s30 + $0x90] sm:$0xff] %v2227_v52  ;;  %2232 = vtanh.f32 %v1428_v51 }
 0x143   : > { %v2229_v55 = vpop.eup %2228  ;;  %2234 = vtanh.f32 %v395_v53 }
 0x144   : > { %823 = vst [vmem:[%s2515_s30 + $0x190] sm:$0xff] %v2229_v55  ;;  %2236 = vtanh.f32 %v740_v54 }
 0x147   : > { %v2231_v56 = vpop.eup %2230 }
 0x148   : > { %v2233_v57 = vpop.eup %2232  ;;  %1168 = vst [vmem:[%s2515_s30 + $0x290] sm:$0xff] %v2231_v56  ;;  %v1085_v58 = vpop.f32.mrf.mxu2 }
 0x149   : > { %v1430_v59 = vpop.f32.mrf.mxu3  ;;  %v2235_v60 = vpop.eup %2234  ;;  %1513 = vst [vmem:[%s2515_s30 + $0x390] sm:$0xff] %v2233_v57  ;;  %2238 = vtanh.f32 %v1085_v58 }
 0x14a   : > { %v398_v61 = vpop.f32.mrf.mxu0  ;;  %v743_v62 = vpop.f32.mrf.mxu1  ;;  %479 = vst [vmem:[%s2515_s30 + $0x98] sm:$0xff] %v2235_v60  ;;  %2240 = vtanh.f32 %v1430_v59 }
 0x14b   : > { %v2237_v63 = vpop.eup %2236  ;;  %2242 = vtanh.f32 %v398_v61 }
 0x14c   : > { %824 = vst [vmem:[%s2515_s30 + $0x198] sm:$0xff] %v2237_v63  ;;  %2244 = vtanh.f32 %v743_v62 }
 0x14f   : > { %v2239_v0 = vpop.eup %2238 }
 0x150   : > { %v2241_v1 = vpop.eup %2240  ;;  %1169 = vst [vmem:[%s2515_s30 + $0x298] sm:$0xff] %v2239_v0  ;;  %v1088_v2 = vpop.f32.mrf.mxu2 }
 0x151   : > { %v1433_v3 = vpop.f32.mrf.mxu3  ;;  %v2243_v4 = vpop.eup %2242  ;;  %1514 = vst [vmem:[%s2515_s30 + $0x398] sm:$0xff] %v2241_v1  ;;  %2246 = vtanh.f32 %v1088_v2 }
 0x152   : > { %v400_v5 = vpop.f32.mrf.mxu0  ;;  %v745_v6 = vpop.f32.mrf.mxu1  ;;  %480 = vst [vmem:[%s2515_s30 + $0xa0] sm:$0xff] %v2243_v4  ;;  %2248 = vtanh.f32 %v1433_v3 }
 0x153   : > { %v2245_v7 = vpop.eup %2244  ;;  %2250 = vtanh.f32 %v400_v5 }
 0x154   : > { %825 = vst [vmem:[%s2515_s30 + $0x1a0] sm:$0xff] %v2245_v7  ;;  %2252 = vtanh.f32 %v745_v6 }
 0x157   : > { %v2247_v8 = vpop.eup %2246 }
 0x158   : > { %v2249_v9 = vpop.eup %2248  ;;  %1170 = vst [vmem:[%s2515_s30 + $0x2a0] sm:$0xff] %v2247_v8  ;;  %v1090_v10 = vpop.f32.mrf.mxu2 }
 0x159   : > { %v1435_v11 = vpop.f32.mrf.mxu3  ;;  %v2251_v12 = vpop.eup %2250  ;;  %1515 = vst [vmem:[%s2515_s30 + $0x3a0] sm:$0xff] %v2249_v9  ;;  %2254 = vtanh.f32 %v1090_v10 }
 0x15a   : > { %v403_v13 = vpop.f32.mrf.mxu0  ;;  %v748_v14 = vpop.f32.mrf.mxu1  ;;  %481 = vst [vmem:[%s2515_s30 + $0xa8] sm:$0xff] %v2251_v12  ;;  %2256 = vtanh.f32 %v1435_v11 }
 0x15b   : > { %v2253_v15 = vpop.eup %2252  ;;  %2258 = vtanh.f32 %v403_v13 }
 0x15c   : > { %826 = vst [vmem:[%s2515_s30 + $0x1a8] sm:$0xff] %v2253_v15  ;;  %2260 = vtanh.f32 %v748_v14 }
 0x15f   : > { %v2255_v16 = vpop.eup %2254 }
 0x160   : > { %v2257_v17 = vpop.eup %2256  ;;  %1171 = vst [vmem:[%s2515_s30 + $0x2a8] sm:$0xff] %v2255_v16  ;;  %v1093_v18 = vpop.f32.mrf.mxu2 }
 0x161   : > { %v1438_v19 = vpop.f32.mrf.mxu3  ;;  %v2259_v20 = vpop.eup %2258  ;;  %1516 = vst [vmem:[%s2515_s30 + $0x3a8] sm:$0xff] %v2257_v17  ;;  %2262 = vtanh.f32 %v1093_v18 }
 0x162   : > { %v405_v21 = vpop.f32.mrf.mxu0  ;;  %v750_v22 = vpop.f32.mrf.mxu1  ;;  %482 = vst [vmem:[%s2515_s30 + $0xb0] sm:$0xff] %v2259_v20  ;;  %2264 = vtanh.f32 %v1438_v19 }
 0x163   : > { %v2261_v23 = vpop.eup %2260  ;;  %2266 = vtanh.f32 %v405_v21 }
 0x164   : > { %827 = vst [vmem:[%s2515_s30 + $0x1b0] sm:$0xff] %v2261_v23  ;;  %2268 = vtanh.f32 %v750_v22 }
 0x167   : > { %v2263_v24 = vpop.eup %2262 }
 0x168   : > { %v2265_v25 = vpop.eup %2264  ;;  %1172 = vst [vmem:[%s2515_s30 + $0x2b0] sm:$0xff] %v2263_v24  ;;  %v1095_v26 = vpop.f32.mrf.mxu2 }
 0x169   : > { %v1440_v27 = vpop.f32.mrf.mxu3  ;;  %v2267_v28 = vpop.eup %2266  ;;  %1517 = vst [vmem:[%s2515_s30 + $0x3b0] sm:$0xff] %v2265_v25  ;;  %2270 = vtanh.f32 %v1095_v26 }
 0x16a   : > { %v408_v29 = vpop.f32.mrf.mxu0  ;;  %v753_v30 = vpop.f32.mrf.mxu1  ;;  %483 = vst [vmem:[%s2515_s30 + $0xb8] sm:$0xff] %v2267_v28  ;;  %2272 = vtanh.f32 %v1440_v27 }
 0x16b   : > { %v2269_v31 = vpop.eup %2268  ;;  %2274 = vtanh.f32 %v408_v29 }
 0x16c   : > { %828 = vst [vmem:[%s2515_s30 + $0x1b8] sm:$0xff] %v2269_v31  ;;  %2276 = vtanh.f32 %v753_v30 }
 0x16f   : > { %v2271_v32 = vpop.eup %2270 }
 0x170   : > { %v2273_v33 = vpop.eup %2272  ;;  %1173 = vst [vmem:[%s2515_s30 + $0x2b8] sm:$0xff] %v2271_v32  ;;  %v1098_v34 = vpop.f32.mrf.mxu2 }
 0x171   : > { %v1443_v35 = vpop.f32.mrf.mxu3  ;;  %v2275_v36 = vpop.eup %2274  ;;  %1518 = vst [vmem:[%s2515_s30 + $0x3b8] sm:$0xff] %v2273_v33  ;;  %2278 = vtanh.f32 %v1098_v34 }
 0x172   : > { %v410_v37 = vpop.f32.mrf.mxu0  ;;  %v755_v38 = vpop.f32.mrf.mxu1  ;;  %484 = vst [vmem:[%s2515_s30 + $0xc0] sm:$0xff] %v2275_v36  ;;  %2280 = vtanh.f32 %v1443_v35 }
 0x173   : > { %v2277_v39 = vpop.eup %2276  ;;  %2282 = vtanh.f32 %v410_v37 }
 0x174   : > { %829 = vst [vmem:[%s2515_s30 + $0x1c0] sm:$0xff] %v2277_v39  ;;  %2284 = vtanh.f32 %v755_v38 }
 0x177   : > { %v2279_v40 = vpop.eup %2278 }
 0x178   : > { %v2281_v41 = vpop.eup %2280  ;;  %1174 = vst [vmem:[%s2515_s30 + $0x2c0] sm:$0xff] %v2279_v40  ;;  %v1100_v42 = vpop.f32.mrf.mxu2 }
 0x179   : > { %v1445_v43 = vpop.f32.mrf.mxu3  ;;  %v2283_v44 = vpop.eup %2282  ;;  %1519 = vst [vmem:[%s2515_s30 + $0x3c0] sm:$0xff] %v2281_v41  ;;  %2286 = vtanh.f32 %v1100_v42 }
 0x17a   : > { %v413_v45 = vpop.f32.mrf.mxu0  ;;  %v758_v46 = vpop.f32.mrf.mxu1  ;;  %485 = vst [vmem:[%s2515_s30 + $0xc8] sm:$0xff] %v2283_v44  ;;  %2288 = vtanh.f32 %v1445_v43 }
 0x17b   : > { %v2285_v47 = vpop.eup %2284  ;;  %2290 = vtanh.f32 %v413_v45 }
 0x17c   : > { %830 = vst [vmem:[%s2515_s30 + $0x1c8] sm:$0xff] %v2285_v47  ;;  %2292 = vtanh.f32 %v758_v46 }
 0x17f   : > { %v2287_v48 = vpop.eup %2286 }
 0x180   : > { %v2289_v49 = vpop.eup %2288  ;;  %1175 = vst [vmem:[%s2515_s30 + $0x2c8] sm:$0xff] %v2287_v48  ;;  %v1103_v50 = vpop.f32.mrf.mxu2 }
 0x181   : > { %v1448_v51 = vpop.f32.mrf.mxu3  ;;  %v2291_v52 = vpop.eup %2290  ;;  %1520 = vst [vmem:[%s2515_s30 + $0x3c8] sm:$0xff] %v2289_v49  ;;  %2294 = vtanh.f32 %v1103_v50 }
 0x182   : > { %v415_v53 = vpop.f32.mrf.mxu0  ;;  %v760_v54 = vpop.f32.mrf.mxu1  ;;  %486 = vst [vmem:[%s2515_s30 + $0xd0] sm:$0xff] %v2291_v52  ;;  %2296 = vtanh.f32 %v1448_v51 }
 0x183   : > { %v2293_v55 = vpop.eup %2292  ;;  %2298 = vtanh.f32 %v415_v53 }
 0x184   : > { %831 = vst [vmem:[%s2515_s30 + $0x1d0] sm:$0xff] %v2293_v55  ;;  %2300 = vtanh.f32 %v760_v54 }
 0x187   : > { %v2295_v56 = vpop.eup %2294 }
 0x188   : > { %v2297_v57 = vpop.eup %2296  ;;  %1176 = vst [vmem:[%s2515_s30 + $0x2d0] sm:$0xff] %v2295_v56  ;;  %v1105_v58 = vpop.f32.mrf.mxu2 }
 0x189   : > { %v1450_v59 = vpop.f32.mrf.mxu3  ;;  %v2299_v60 = vpop.eup %2298  ;;  %1521 = vst [vmem:[%s2515_s30 + $0x3d0] sm:$0xff] %v2297_v57  ;;  %2302 = vtanh.f32 %v1105_v58 }
 0x18a   : > { %v418_v61 = vpop.f32.mrf.mxu0  ;;  %v763_v62 = vpop.f32.mrf.mxu1  ;;  %487 = vst [vmem:[%s2515_s30 + $0xd8] sm:$0xff] %v2299_v60  ;;  %2304 = vtanh.f32 %v1450_v59 }
 0x18b   : > { %v2301_v63 = vpop.eup %2300  ;;  %2306 = vtanh.f32 %v418_v61 }
 0x18c   : > { %832 = vst [vmem:[%s2515_s30 + $0x1d8] sm:$0xff] %v2301_v63  ;;  %2308 = vtanh.f32 %v763_v62 }
 0x18f   : > { %v2303_v0 = vpop.eup %2302 }
 0x190   : > { %v2305_v1 = vpop.eup %2304  ;;  %1177 = vst [vmem:[%s2515_s30 + $0x2d8] sm:$0xff] %v2303_v0  ;;  %v1108_v2 = vpop.f32.mrf.mxu2 }
 0x191   : > { %v1453_v3 = vpop.f32.mrf.mxu3  ;;  %v2307_v4 = vpop.eup %2306  ;;  %1522 = vst [vmem:[%s2515_s30 + $0x3d8] sm:$0xff] %v2305_v1  ;;  %2310 = vtanh.f32 %v1108_v2 }
 0x192   : > { %v420_v5 = vpop.f32.mrf.mxu0  ;;  %v765_v6 = vpop.f32.mrf.mxu1  ;;  %488 = vst [vmem:[%s2515_s30 + $0xe0] sm:$0xff] %v2307_v4  ;;  %2312 = vtanh.f32 %v1453_v3 }
 0x193   : > { %v2309_v7 = vpop.eup %2308  ;;  %2314 = vtanh.f32 %v420_v5 }
 0x194   : > { %833 = vst [vmem:[%s2515_s30 + $0x1e0] sm:$0xff] %v2309_v7  ;;  %2316 = vtanh.f32 %v765_v6 }
 0x197   : > { %v2311_v8 = vpop.eup %2310 }
 0x198   : > { %v2313_v9 = vpop.eup %2312  ;;  %1178 = vst [vmem:[%s2515_s30 + $0x2e0] sm:$0xff] %v2311_v8  ;;  %v1110_v10 = vpop.f32.mrf.mxu2 }
 0x199   : > { %v1455_v11 = vpop.f32.mrf.mxu3  ;;  %v2315_v12 = vpop.eup %2314  ;;  %1523 = vst [vmem:[%s2515_s30 + $0x3e0] sm:$0xff] %v2313_v9  ;;  %2318 = vtanh.f32 %v1110_v10 }
 0x19a   : > { %v423_v13 = vpop.f32.mrf.mxu0  ;;  %v768_v14 = vpop.f32.mrf.mxu1  ;;  %489 = vst [vmem:[%s2515_s30 + $0xe8] sm:$0xff] %v2315_v12  ;;  %2320 = vtanh.f32 %v1455_v11 }
 0x19b   : > { %v2317_v15 = vpop.eup %2316  ;;  %2322 = vtanh.f32 %v423_v13 }
 0x19c   : > { %834 = vst [vmem:[%s2515_s30 + $0x1e8] sm:$0xff] %v2317_v15  ;;  %2324 = vtanh.f32 %v768_v14 }
 0x19f   : > { %v2319_v16 = vpop.eup %2318 }
 0x1a0   : > { %v2321_v17 = vpop.eup %2320  ;;  %1179 = vst [vmem:[%s2515_s30 + $0x2e8] sm:$0xff] %v2319_v16  ;;  %v1113_v18 = vpop.f32.mrf.mxu2 }
 0x1a1   : > { %v1458_v19 = vpop.f32.mrf.mxu3  ;;  %v2323_v20 = vpop.eup %2322  ;;  %1524 = vst [vmem:[%s2515_s30 + $0x3e8] sm:$0xff] %v2321_v17  ;;  %2326 = vtanh.f32 %v1113_v18 }
 0x1a2   : > { %v425_v21 = vpop.f32.mrf.mxu0  ;;  %v770_v22 = vpop.f32.mrf.mxu1  ;;  %490 = vst [vmem:[%s2515_s30 + $0xf0] sm:$0xff] %v2323_v20  ;;  %2328 = vtanh.f32 %v1458_v19 }
 0x1a3   : > { %v2325_v23 = vpop.eup %2324  ;;  %2330 = vtanh.f32 %v425_v21 }
 0x1a4   : > { %835 = vst [vmem:[%s2515_s30 + $0x1f0] sm:$0xff] %v2325_v23  ;;  %2332 = vtanh.f32 %v770_v22 }
 0x1a7   : > { %v2327_v24 = vpop.eup %2326 }
 0x1a8   : > { %v2329_v25 = vpop.eup %2328  ;;  %1180 = vst [vmem:[%s2515_s30 + $0x2f0] sm:$0xff] %v2327_v24  ;;  %v1115_v26 = vpop.f32.mrf.mxu2 }
 0x1a9   : > { %v1460_v27 = vpop.f32.mrf.mxu3  ;;  %v2331_v28 = vpop.eup %2330  ;;  %1525 = vst [vmem:[%s2515_s30 + $0x3f0] sm:$0xff] %v2329_v25  ;;  %2334 = vtanh.f32 %v1115_v26 }
 0x1aa   : > { %v2333_v29 = vpop.eup %2332  ;;  %491 = vst [vmem:[%s2515_s30 + $0xf8] sm:$0xff] %v2331_v28  ;;  %2336 = vtanh.f32 %v1460_v27 }
 0x1ab   : > { %836 = vst [vmem:[%s2515_s30 + $0x1f8] sm:$0xff] %v2333_v29 }
 0x1af   : > { %v2335_v30 = vpop.eup %2334 }
 0x1b0   : > { %v2337_v31 = vpop.eup %2336  ;;  %1181 = vst [vmem:[%s2515_s30 + $0x2f8] sm:$0xff] %v2335_v30 }
 0x1b1   : > { %1526 = vst [vmem:[%s2515_s30 + $0x3f8] sm:$0xff] %v2337_v31 }
 0x1b2 PF: > { %s12_s9 = sadd.s32 1, %s2344_s9  }
 0x1b3   : > { %p9_p4 = scmp.ge.s32.totalorder %s12_s9, 4  }
 0x1b5   :  { %11 = sbr.rel (!%p9_p4) target bundleno = 1 (0x1), region = 58 }

</bundles_post_ra>
